<compile_context>
chip_gen: v5e
topology: v5e:2x2
jax: 0.10.0
libtpu: 0.0.40
codegen_flags: <defaults>
</compile_context>

<pallas_src>
import numpy as np
import jax
import jax.numpy as jnp
from jax.experimental import pallas as pl
from jax.experimental.pallas import tpu as pltpu

F, D = 8, 2  # as in the PyTorch module


def _elu(v):
    # ELU(alpha=1): x if x>0 else exp(x)-1  (clamp exp arg so the untaken branch is safe)
    return jnp.where(v > 0, v, jnp.exp(jnp.minimum(v, 0.0)) - 1.0)


def make_kernel(C, Nb, LW):
    LO = LW // 4                 # pooled lane width = 3*F*D*Tp
    nacc = 2 if C >= 2 else 1    # independent partial accumulators for the electrode sum

    def kernel(x_ref, A_ref, s1_ref, t1_ref, w2_ref, s2_ref, t2_ref, out_ref):
        # x block: (1, C*Nb, T), rows electrode-major / sample-minor.
        X = x_ref[0]                                                      # (C*Nb, T) bf16

        # Phase 1: one wide bf16 MXU matmul for all branches/filters/depth copies.
        H = jnp.dot(X, A_ref[...], preferred_element_type=jnp.float32)   # (C*Nb, LW) f32
        # BN1 (+ masked conv1 bias folded into t1) + ELU as lane-vector VPU ops.
        H = _elu(H * s1_ref[...] + t1_ref[...])

        # Phase 2: depthwise spatial conv over the C electrodes (groups=F) as lane FMAs,
        # tree-reduced with 2 independent partial accumulators.
        W2 = w2_ref[...]                                                  # (C, LW) f32
        parts = []
        for a in range(nacc):
            acc = H[a * Nb:(a + 1) * Nb, :] * W2[a:a + 1, :]
            for c in range(a + nacc, C, nacc):
                acc = acc + H[c * Nb:(c + 1) * Nb, :] * W2[c:c + 1, :]    # (Nb, LW)
            parts.append(acc)
        acc = parts[0]
        for p_ in parts[1:]:
            acc = acc + p_

        # BN2 (+ conv2 bias folded) + ELU.
        o = _elu(acc * s2_ref[...] + t2_ref[...])                         # (Nb, LW)

        # AvgPool2d((1,4)): pool phase r is the OUTERMOST lane block, so pooling is
        # three lane-aligned adds of LO-wide slabs (no reshape / relayout).
        pooled = (o[:, 0:LO] + o[:, LO:2 * LO]
                  + o[:, 2 * LO:3 * LO] + o[:, 3 * LO:4 * LO]) * 0.25     # (Nb, LO)
        # Lane order of `pooled` is (branch, f, d, tp) == the final channel order.
        out_ref[0] = pooled

    return kernel


def _choose_nb(N, C):
    """Sublane-aligned samples-per-grid-step and grid size (with batch padding)."""
    nb = (256 // max(C, 1)) // 8 * 8          # cap MXU rows at 256 (v6e/v7x MXU)
    nb = max(8, min(32, nb))                  # multiple of 8, bounded
    nb = min(nb, max(8, ((N + 7) // 8) * 8))  # don't exceed the 8-padded batch
    G = -(-N // nb)
    # Prefer G >= 2 so the "parallel" grid axis can shard across v7x's 2 TensorCores.
    while G < 2 and nb > 8 and N > nb // 2:
        nb = max(8, (nb // 2) // 8 * 8)
        G = -(-N // nb)
    return nb, G


def inception_block1_pallas(x, params, kernel_size):
    """x: (N, 1, C, T) float32 (NCHW, like the PyTorch module)."""
    N, one, C, T = x.shape
    assert one == 1 and T % 4 == 0
    Tp = T // 4
    LO = 3 * F * D * Tp          # output lane width per sample (48 * Tp)
    LW = 4 * LO                  # fused Phase-1/2 lane width (r, branch, f, d, tp)

    Nb, G = _choose_nb(N, C)
    N_pad = G * Nb

    ks = [kernel_size, kernel_size // 2, kernel_size // 4]
    pads = [(kernel_size // 2 - 1, kernel_size // 2),
            (kernel_size // 4 - 1, kernel_size // 4),
            (kernel_size // 8 - 1, kernel_size // 8)]

    # ---- fold conv weights / BN running stats into matmul + lane-vector operands ----
    A_flat = np.zeros((T, LW), np.float32)     # banded Toeplitz, cols = (r, branch, f, d, tp)
    s1 = np.zeros((1, LW), np.float32)         # BN1 scale per (branch, f)
    t1 = np.zeros((1, LW), np.float32)         # BN1 shift (+ masked conv1 bias)
    w2t = np.zeros((C, LW), np.float32)        # depthwise weights per (c, branch, f, d)
    s2 = np.zeros((1, LW), np.float32)         # BN2 scale per (branch, f, d)
    t2 = np.zeros((1, LW), np.float32)         # BN2 shift (+ conv2 bias)

    tt = np.arange(T)
    base_r_tp = (tt % 4) * LO + (tt // 4)      # lane offset contributed by (r, tp)

    for b in range(3):
        p = params[b]
        kb = ks[b]
        pad_l, _pad_r = pads[b]
        W1 = T - kb + 1
        w1 = np.asarray(p["w1"], np.float32)                      # (F, kb)
        b1 = np.asarray(p["b1"], np.float32)                      # (F,)
        sc1 = np.asarray(p["g1"], np.float32) / np.sqrt(np.asarray(p["v1"], np.float32))  # eps=0
        sh1 = np.asarray(p["be1"], np.float32) - np.asarray(p["m1"], np.float32) * sc1
        w2 = np.asarray(p["w2"], np.float32)                      # (F*D, C)
        sc2 = np.asarray(p["g2"], np.float32) / np.sqrt(np.asarray(p["v2"], np.float32))
        sh2 = (np.asarray(p["be2"], np.float32)
               + (np.asarray(p["b2"], np.float32) - np.asarray(p["m2"], np.float32)) * sc2)
        for f in range(F):
            for d in range(D):
                ch = f * D + d
                cols = base_r_tp + (b * F * D + f * D + d) * Tp   # lane index per padded time t
                s1[0, cols] = sc1[f]
                t1[0, cols] = sh1[f]
                s2[0, cols] = sc2[ch]
                t2[0, cols] = sh2[ch]
                w2t[:, cols] = w2[ch][:, None]
                # Toeplitz band + conv1 bias only in the valid (un-padded) region.
                for t_out in range(pad_l, pad_l + W1):
                    A_flat[t_out - pad_l:t_out - pad_l + kb, cols[t_out]] = w1[f]
                    t1[0, cols[t_out]] += sc1[f] * b1[f]

    # ---- batch padding + (electrode-major, sample-minor) row layout, bf16 operands ----
    x2 = jnp.asarray(x, jnp.float32).reshape(N, C, T)
    if N_pad != N:
        x2 = jnp.concatenate([x2, jnp.zeros((N_pad - N, C, T), jnp.float32)], axis=0)
    x3 = (x2.reshape(G, Nb, C, T).transpose(0, 2, 1, 3)
             .reshape(G, C * Nb, T).astype(jnp.bfloat16))

    args = (x3,
            jnp.asarray(A_flat, jnp.bfloat16),
            jnp.asarray(s1), jnp.asarray(t1),
            jnp.asarray(w2t), jnp.asarray(s2), jnp.asarray(t2))

    def run(single_buffer):
        kernel = make_kernel(C, Nb, LW)

        def const_spec(shape):
            kw = {"pipeline_mode": pl.Buffered(1)} if single_buffer else {}
            return pl.BlockSpec(shape, lambda g: (0,) * len(shape), **kw)

        return pl.pallas_call(
            kernel,
            out_shape=jax.ShapeDtypeStruct((G, Nb, LO), jnp.float32),
            grid_spec=pltpu.PrefetchScalarGridSpec(
                num_scalar_prefetch=0,
                grid=(G,),
                in_specs=[
                    pl.BlockSpec((1, C * Nb, T), lambda g: (g, 0, 0)),
                    const_spec((T, LW)),     # Toeplitz (grid-invariant)
                    const_spec((1, LW)),     # BN1 scale
                    const_spec((1, LW)),     # BN1 shift
                    const_spec((C, LW)),     # depthwise weights
                    const_spec((1, LW)),     # BN2 scale
                    const_spec((1, LW)),     # BN2 shift
                ],
                out_specs=pl.BlockSpec((1, Nb, LO), lambda g: (g, 0, 0)),
            ),
            compiler_params=pltpu.CompilerParams(
                dimension_semantics=("parallel",),
                vmem_limit_bytes=32 * 1024 * 1024,
            ),
        )(*args)

    try:
        out = run(True)
    except Exception:
        # Fallback: default double-buffering if single-buffer pipeline_mode is unsupported.
        out = run(False)

    # (G, Nb, 48*Tp) lane order (branch, f, d, tp) -> pure reshape, no transpose.
    o = out.reshape(N_pad, 3 * F * D, Tp)[:N]
    return o.reshape(N, 3 * F * D, 1, Tp)


def reference(x, params, kernel_size):
    """Pure-JAX eval-mode reference of InceptionEEGNet_Block1.forward."""
    N, _, C, T = x.shape
    ks = [kernel_size, kernel_size // 2, kernel_size // 4]
    pads = [(kernel_size // 2 - 1, kernel_size // 2),
            (kernel_size // 4 - 1, kernel_size // 4),
            (kernel_size // 8 - 1, kernel_size // 8)]
    xs = x[:, 0]                                              # (N, C, T)
    outs = []
    for bi in range(3):
        p = params[bi]
        k = ks[bi]
        pad_l, pad_r = pads[bi]
        W1 = T - k + 1
        cols = jnp.stack([xs[:, :, j:j + W1] for j in range(k)], axis=-1)   # (N,C,W1,k)
        c1 = jnp.einsum("ncwj,fj->nfcw", cols, p["w1"]) + p["b1"][None, :, None, None]
        h = jnp.pad(c1, ((0, 0), (0, 0), (0, 0), (pad_l, pad_r)))
        sc1 = p["g1"] / jnp.sqrt(p["v1"])
        h = h * sc1[None, :, None, None] + (p["be1"] - p["m1"] * sc1)[None, :, None, None]
        h = jax.nn.elu(h)
        w2r = p["w2"].reshape(F, D, C)
        c2 = jnp.einsum("nfct,fdc->nfdt", h, w2r).reshape(N, F * D, T) + p["b2"][None, :, None]
        sc2 = p["g2"] / jnp.sqrt(p["v2"])
        o = c2 * sc2[None, :, None] + (p["be2"] - p["m2"] * sc2)[None, :, None]
        outs.append(jax.nn.elu(o))
    n1 = jnp.concatenate(outs, axis=1)                         # (N, 48, T)
    a1 = n1.reshape(N, 3 * F * D, T // 4, 4).mean(axis=-1)
    return a1.reshape(N, 3 * F * D, 1, T // 4)


if __name__ == "__main__":
    N, C, T = 2, 8, 64           # small shapes: batch=2, 8 electrode channels, 64 samples
    kernel_size = 16

    key = jax.random.PRNGKey(0)
    keys = jax.random.split(key, 1 + 3 * 12)
    x = jax.random.normal(keys[0], (N, 1, C, T), jnp.float32)

    params = []
    idx = 1
    for bi, k in enumerate([kernel_size, kernel_size // 2, kernel_size // 4]):
        kk = keys[idx:idx + 12]
        idx += 12
        params.append(dict(
            w1=0.3 * jax.random.normal(kk[0], (F, k), jnp.float32),
            b1=0.1 * jax.random.normal(kk[1], (F,), jnp.float32),
            g1=1.0 + 0.2 * jax.random.normal(kk[2], (F,), jnp.float32),
            be1=0.1 * jax.random.normal(kk[3], (F,), jnp.float32),
            m1=0.1 * jax.random.normal(kk[4], (F,), jnp.float32),
            v1=1.0 + 0.5 * jax.random.uniform(kk[5], (F,), jnp.float32),
            w2=0.3 * jax.random.normal(kk[6], (F * D, C), jnp.float32),
            b2=0.1 * jax.random.normal(kk[7], (F * D,), jnp.float32),
            g2=1.0 + 0.2 * jax.random.normal(kk[8], (F * D,), jnp.float32),
            be2=0.1 * jax.random.normal(kk[9], (F * D,), jnp.float32),
            m2=0.1 * jax.random.normal(kk[10], (F * D,), jnp.float32),
            v2=1.0 + 0.5 * jax.random.uniform(kk[11], (F * D,), jnp.float32),
        ))

    out = jax.block_until_ready(inception_block1_pallas(x, params, kernel_size))
    ref = jax.block_until_ready(reference(x, params, kernel_size))

    assert out.shape == (N, 3 * F * D, 1, T // 4), out.shape
    np.testing.assert_allclose(np.asarray(out), np.asarray(ref), rtol=5e-2, atol=5e-2)
    print("KERNEL_OK")
</pallas_src>

<mosaic_0001>
module attributes {stable_mosaic.version = 11 : i64} {
  func.func @kernel(%arg0: i32, %arg1: memref<1x64x64xbf16, #tpu.memory_space<vmem>>, %arg2: memref<64x3072xbf16, #tpu.memory_space<vmem>>, %arg3: memref<1x3072xf32, #tpu.memory_space<vmem>>, %arg4: memref<1x3072xf32, #tpu.memory_space<vmem>>, %arg5: memref<8x3072xf32, #tpu.memory_space<vmem>>, %arg6: memref<1x3072xf32, #tpu.memory_space<vmem>>, %arg7: memref<1x3072xf32, #tpu.memory_space<vmem>>, %arg8: memref<1x8x768xf32, #tpu.memory_space<vmem>>) attributes {dimension_semantics = [#tpu.dimension_semantics<parallel>], iteration_bounds = array<i64: 1>, scalar_prefetch = 0 : i64, scratch_operands = 0 : i64, tpu.core_type = #tpu.core_type<tc>, window_params = [{transform_indices = @transform_0, window_bounds = array<i64: 1, 64, 64>}, {pipeline_mode = #tpu.pipeline_mode<synchronous>, transform_indices = @transform_1, window_bounds = array<i64: 64, 3072>}, {pipeline_mode = #tpu.pipeline_mode<synchronous>, transform_indices = @transform_2, window_bounds = array<i64: 1, 3072>}, {pipeline_mode = #tpu.pipeline_mode<synchronous>, transform_indices = @transform_3, window_bounds = array<i64: 1, 3072>}, {pipeline_mode = #tpu.pipeline_mode<synchronous>, transform_indices = @transform_4, window_bounds = array<i64: 8, 3072>}, {pipeline_mode = #tpu.pipeline_mode<synchronous>, transform_indices = @transform_5, window_bounds = array<i64: 1, 3072>}, {pipeline_mode = #tpu.pipeline_mode<synchronous>, transform_indices = @transform_6, window_bounds = array<i64: 1, 3072>}, {transform_indices = @transform_7, window_bounds = array<i64: 1, 8, 768>}]} {
    %c0 = arith.constant 0 : index
    %c0_0 = arith.constant 0 : index
    %c0_1 = arith.constant 0 : index
    %0 = vector.load %arg1[%c0, %c0_0, %c0_1] : memref<1x64x64xbf16, #tpu.memory_space<vmem>>, vector<1x64x64xbf16>
    %1 = vector.shape_cast %0 : vector<1x64x64xbf16> to vector<64x64xbf16>
    %c0_2 = arith.constant 0 : index
    %c0_3 = arith.constant 0 : index
    %2 = vector.load %arg2[%c0_2, %c0_3] : memref<64x3072xbf16, #tpu.memory_space<vmem>>, vector<64x3072xbf16>
    %cst = arith.constant dense<0.000000e+00> : vector<64x3072xf32>
    %3 = tpu.matmul %1, %2, %cst {dimension_numbers = #tpu.dot_dimension_numbers<[1], [0], [0], [1], [0, 0, 1, 1], [], []>} : vector<64x64xbf16>, vector<64x3072xbf16>, vector<64x3072xf32> -> vector<64x3072xf32>
    %c0_4 = arith.constant 0 : index
    %c0_5 = arith.constant 0 : index
    %4 = vector.load %arg3[%c0_4, %c0_5] : memref<1x3072xf32, #tpu.memory_space<vmem>>, vector<1x3072xf32>
    %5 = vector.broadcast %4 : vector<1x3072xf32> to vector<64x3072xf32>
    %6 = arith.mulf %3, %5 : vector<64x3072xf32>
    %c0_6 = arith.constant 0 : index
    %c0_7 = arith.constant 0 : index
    %7 = vector.load %arg4[%c0_6, %c0_7] : memref<1x3072xf32, #tpu.memory_space<vmem>>, vector<1x3072xf32>
    %8 = vector.broadcast %7 : vector<1x3072xf32> to vector<64x3072xf32>
    %9 = arith.addf %6, %8 : vector<64x3072xf32>
    %cst_8 = arith.constant 0.000000e+00 : f32
    %10 = vector.broadcast %cst_8 : f32 to vector<64x3072xf32>
    %11 = arith.cmpf ogt, %9, %10 : vector<64x3072xf32>
    %cst_9 = arith.constant 0.000000e+00 : f32
    %12 = vector.broadcast %cst_9 : f32 to vector<64x3072xf32>
    %13 = arith.minimumf %9, %12 : vector<64x3072xf32>
    %14 = math.exp %13 : vector<64x3072xf32>
    %cst_10 = arith.constant 1.000000e+00 : f32
    %15 = vector.broadcast %cst_10 : f32 to vector<64x3072xf32>
    %16 = arith.subf %14, %15 : vector<64x3072xf32>
    %17 = arith.select %11, %9, %16 : vector<64x3072xi1>, vector<64x3072xf32>
    %c0_11 = arith.constant 0 : index
    %c0_12 = arith.constant 0 : index
    %18 = vector.load %arg5[%c0_11, %c0_12] : memref<8x3072xf32, #tpu.memory_space<vmem>>, vector<8x3072xf32>
    %19 = vector.extract_strided_slice %17 {offsets = [0, 0], sizes = [8, 3072], strides = [1, 1]} : vector<64x3072xf32> to vector<8x3072xf32>
    %20 = vector.extract_strided_slice %18 {offsets = [0, 0], sizes = [1, 3072], strides = [1, 1]} : vector<8x3072xf32> to vector<1x3072xf32>
    %21 = vector.broadcast %20 : vector<1x3072xf32> to vector<8x3072xf32>
    %22 = arith.mulf %19, %21 : vector<8x3072xf32>
    %23 = vector.extract_strided_slice %17 {offsets = [16, 0], sizes = [8, 3072], strides = [1, 1]} : vector<64x3072xf32> to vector<8x3072xf32>
    %24 = vector.extract_strided_slice %18 {offsets = [2, 0], sizes = [1, 3072], strides = [1, 1]} : vector<8x3072xf32> to vector<1x3072xf32>
    %25 = vector.broadcast %24 : vector<1x3072xf32> to vector<8x3072xf32>
    %26 = arith.mulf %23, %25 : vector<8x3072xf32>
    %27 = arith.addf %22, %26 : vector<8x3072xf32>
    %28 = vector.extract_strided_slice %17 {offsets = [32, 0], sizes = [8, 3072], strides = [1, 1]} : vector<64x3072xf32> to vector<8x3072xf32>
    %29 = vector.extract_strided_slice %18 {offsets = [4, 0], sizes = [1, 3072], strides = [1, 1]} : vector<8x3072xf32> to vector<1x3072xf32>
    %30 = vector.broadcast %29 : vector<1x3072xf32> to vector<8x3072xf32>
    %31 = arith.mulf %28, %30 : vector<8x3072xf32>
    %32 = arith.addf %27, %31 : vector<8x3072xf32>
    %33 = vector.extract_strided_slice %17 {offsets = [48, 0], sizes = [8, 3072], strides = [1, 1]} : vector<64x3072xf32> to vector<8x3072xf32>
    %34 = vector.extract_strided_slice %18 {offsets = [6, 0], sizes = [1, 3072], strides = [1, 1]} : vector<8x3072xf32> to vector<1x3072xf32>
    %35 = vector.broadcast %34 : vector<1x3072xf32> to vector<8x3072xf32>
    %36 = arith.mulf %33, %35 : vector<8x3072xf32>
    %37 = arith.addf %32, %36 : vector<8x3072xf32>
    %38 = vector.extract_strided_slice %17 {offsets = [8, 0], sizes = [8, 3072], strides = [1, 1]} : vector<64x3072xf32> to vector<8x3072xf32>
    %39 = vector.extract_strided_slice %18 {offsets = [1, 0], sizes = [1, 3072], strides = [1, 1]} : vector<8x3072xf32> to vector<1x3072xf32>
    %40 = vector.broadcast %39 : vector<1x3072xf32> to vector<8x3072xf32>
    %41 = arith.mulf %38, %40 : vector<8x3072xf32>
    %42 = vector.extract_strided_slice %17 {offsets = [24, 0], sizes = [8, 3072], strides = [1, 1]} : vector<64x3072xf32> to vector<8x3072xf32>
    %43 = vector.extract_strided_slice %18 {offsets = [3, 0], sizes = [1, 3072], strides = [1, 1]} : vector<8x3072xf32> to vector<1x3072xf32>
    %44 = vector.broadcast %43 : vector<1x3072xf32> to vector<8x3072xf32>
    %45 = arith.mulf %42, %44 : vector<8x3072xf32>
    %46 = arith.addf %41, %45 : vector<8x3072xf32>
    %47 = vector.extract_strided_slice %17 {offsets = [40, 0], sizes = [8, 3072], strides = [1, 1]} : vector<64x3072xf32> to vector<8x3072xf32>
    %48 = vector.extract_strided_slice %18 {offsets = [5, 0], sizes = [1, 3072], strides = [1, 1]} : vector<8x3072xf32> to vector<1x3072xf32>
    %49 = vector.broadcast %48 : vector<1x3072xf32> to vector<8x3072xf32>
    %50 = arith.mulf %47, %49 : vector<8x3072xf32>
    %51 = arith.addf %46, %50 : vector<8x3072xf32>
    %52 = vector.extract_strided_slice %17 {offsets = [56, 0], sizes = [8, 3072], strides = [1, 1]} : vector<64x3072xf32> to vector<8x3072xf32>
    %53 = vector.extract_strided_slice %18 {offsets = [7, 0], sizes = [1, 3072], strides = [1, 1]} : vector<8x3072xf32> to vector<1x3072xf32>
    %54 = vector.broadcast %53 : vector<1x3072xf32> to vector<8x3072xf32>
    %55 = arith.mulf %52, %54 : vector<8x3072xf32>
    %56 = arith.addf %51, %55 : vector<8x3072xf32>
    %57 = arith.addf %37, %56 : vector<8x3072xf32>
    %c0_13 = arith.constant 0 : index
    %c0_14 = arith.constant 0 : index
    %58 = vector.load %arg6[%c0_13, %c0_14] : memref<1x3072xf32, #tpu.memory_space<vmem>>, vector<1x3072xf32>
    %59 = vector.broadcast %58 : vector<1x3072xf32> to vector<8x3072xf32>
    %60 = arith.mulf %57, %59 : vector<8x3072xf32>
    %c0_15 = arith.constant 0 : index
    %c0_16 = arith.constant 0 : index
    %61 = vector.load %arg7[%c0_15, %c0_16] : memref<1x3072xf32, #tpu.memory_space<vmem>>, vector<1x3072xf32>
    %62 = vector.broadcast %61 : vector<1x3072xf32> to vector<8x3072xf32>
    %63 = arith.addf %60, %62 : vector<8x3072xf32>
    %cst_17 = arith.constant 0.000000e+00 : f32
    %64 = vector.broadcast %cst_17 : f32 to vector<8x3072xf32>
    %65 = arith.cmpf ogt, %63, %64 : vector<8x3072xf32>
    %cst_18 = arith.constant 0.000000e+00 : f32
    %66 = vector.broadcast %cst_18 : f32 to vector<8x3072xf32>
    %67 = arith.minimumf %63, %66 : vector<8x3072xf32>
    %68 = math.exp %67 : vector<8x3072xf32>
    %cst_19 = arith.constant 1.000000e+00 : f32
    %69 = vector.broadcast %cst_19 : f32 to vector<8x3072xf32>
    %70 = arith.subf %68, %69 : vector<8x3072xf32>
    %71 = arith.select %65, %63, %70 : vector<8x3072xi1>, vector<8x3072xf32>
    %72 = vector.extract_strided_slice %71 {offsets = [0, 0], sizes = [8, 768], strides = [1, 1]} : vector<8x3072xf32> to vector<8x768xf32>
    %73 = vector.extract_strided_slice %71 {offsets = [0, 768], sizes = [8, 768], strides = [1, 1]} : vector<8x3072xf32> to vector<8x768xf32>
    %74 = arith.addf %72, %73 : vector<8x768xf32>
    %75 = vector.extract_strided_slice %71 {offsets = [0, 1536], sizes = [8, 768], strides = [1, 1]} : vector<8x3072xf32> to vector<8x768xf32>
    %76 = arith.addf %74, %75 : vector<8x768xf32>
    %77 = vector.extract_strided_slice %71 {offsets = [0, 2304], sizes = [8, 768], strides = [1, 1]} : vector<8x3072xf32> to vector<8x768xf32>
    %78 = arith.addf %76, %77 : vector<8x768xf32>
    %cst_20 = arith.constant 2.500000e-01 : f32
    %79 = vector.broadcast %cst_20 : f32 to vector<8x768xf32>
    %80 = arith.mulf %78, %79 : vector<8x768xf32>
    %c0_21 = arith.constant 0 : index
    %c0_22 = arith.constant 0 : index
    %c0_23 = arith.constant 0 : index
    %81 = vector.load %arg8[%c0_21, %c0_22, %c0_23] : memref<1x8x768xf32, #tpu.memory_space<vmem>>, vector<1x8x768xf32>
    %82 = vector.shape_cast %81 : vector<1x8x768xf32> to vector<8x768xf32>
    %83 = vector.shape_cast %80 : vector<8x768xf32> to vector<1x8x768xf32>
    tpu.vector_store %arg8[%c0_21, %c0_22, %c0_23], %83 {strides = array<i32>} : memref<1x8x768xf32, #tpu.memory_space<vmem>>, vector<1x8x768xf32>,
    return
  }
  func.func @transform_0(%arg0: i32) -> (i32, i32, i32) {
    %c0_i32 = arith.constant 0 : i32
    %c0_i32_0 = arith.constant 0 : i32
    %c0_i32_1 = arith.constant 0 : i32
    return %arg0, %c0_i32, %c0_i32_0 : i32, i32, i32
  }
  func.func @transform_1(%arg0: i32) -> (i32, i32) {
    %c0_i32 = arith.constant 0 : i32
    %c0_i32_0 = arith.constant 0 : i32
    %c0_i32_1 = arith.constant 0 : i32
    return %c0_i32, %c0_i32_0 : i32, i32
  }
  func.func @transform_2(%arg0: i32) -> (i32, i32) {
    %c0_i32 = arith.constant 0 : i32
    %c0_i32_0 = arith.constant 0 : i32
    %c0_i32_1 = arith.constant 0 : i32
    return %c0_i32, %c0_i32_0 : i32, i32
  }
  func.func @transform_3(%arg0: i32) -> (i32, i32) {
    %c0_i32 = arith.constant 0 : i32
    %c0_i32_0 = arith.constant 0 : i32
    %c0_i32_1 = arith.constant 0 : i32
    return %c0_i32, %c0_i32_0 : i32, i32
  }
  func.func @transform_4(%arg0: i32) -> (i32, i32) {
    %c0_i32 = arith.constant 0 : i32
    %c0_i32_0 = arith.constant 0 : i32
    %c0_i32_1 = arith.constant 0 : i32
    return %c0_i32, %c0_i32_0 : i32, i32
  }
  func.func @transform_5(%arg0: i32) -> (i32, i32) {
    %c0_i32 = arith.constant 0 : i32
    %c0_i32_0 = arith.constant 0 : i32
    %c0_i32_1 = arith.constant 0 : i32
    return %c0_i32, %c0_i32_0 : i32, i32
  }
  func.func @transform_6(%arg0: i32) -> (i32, i32) {
    %c0_i32 = arith.constant 0 : i32
    %c0_i32_0 = arith.constant 0 : i32
    %c0_i32_1 = arith.constant 0 : i32
    return %c0_i32, %c0_i32_0 : i32, i32
  }
  func.func @transform_7(%arg0: i32) -> (i32, i32, i32) {
    %c0_i32 = arith.constant 0 : i32
    %c0_i32_0 = arith.constant 0 : i32
    %c0_i32_1 = arith.constant 0 : i32
    return %arg0, %c0_i32, %c0_i32_0 : i32, i32, i32
  }
}

module attributes {stable_mosaic.version = 11 : i64} {
  func.func @kernel(%arg0: i32, %arg1: memref<1x64x64xbf16, #tpu.memory_space<vmem>>, %arg2: memref<64x3072xbf16, #tpu.memory_space<vmem>>, %arg3: memref<1x3072xf32, #tpu.memory_space<vmem>>, %arg4: memref<1x3072xf32, #tpu.memory_space<vmem>>, %arg5: memref<8x3072xf32, #tpu.memory_space<vmem>>, %arg6: memref<1x3072xf32, #tpu.memory_space<vmem>>, %arg7: memref<1x3072xf32, #tpu.memory_space<vmem>>, %arg8: memref<1x8x768xf32, #tpu.memory_space<vmem>>) attributes {dimension_semantics = [#tpu.dimension_semantics<parallel>], iteration_bounds = array<i64: 1>, scalar_prefetch = 0 : i64, scratch_operands = 0 : i64, tpu.core_type = #tpu.core_type<tc>, window_params = [{transform_indices = @transform_0, window_bounds = array<i64: 1, 64, 64>}, {pipeline_mode = #tpu.pipeline_mode<synchronous>, transform_indices = @transform_1, window_bounds = array<i64: 64, 3072>}, {pipeline_mode = #tpu.pipeline_mode<synchronous>, transform_indices = @transform_2, window_bounds = array<i64: 1, 3072>}, {pipeline_mode = #tpu.pipeline_mode<synchronous>, transform_indices = @transform_3, window_bounds = array<i64: 1, 3072>}, {pipeline_mode = #tpu.pipeline_mode<synchronous>, transform_indices = @transform_4, window_bounds = array<i64: 8, 3072>}, {pipeline_mode = #tpu.pipeline_mode<synchronous>, transform_indices = @transform_5, window_bounds = array<i64: 1, 3072>}, {pipeline_mode = #tpu.pipeline_mode<synchronous>, transform_indices = @transform_6, window_bounds = array<i64: 1, 3072>}, {transform_indices = @transform_7, window_bounds = array<i64: 1, 8, 768>}]} {
    %c0 = arith.constant 0 : index
    %c0_0 = arith.constant 0 : index
    %c0_1 = arith.constant 0 : index
    %0 = vector.load %arg1[%c0, %c0_0, %c0_1] : memref<1x64x64xbf16, #tpu.memory_space<vmem>>, vector<1x64x64xbf16>
    %1 = vector.shape_cast %0 : vector<1x64x64xbf16> to vector<64x64xbf16>
    %c0_2 = arith.constant 0 : index
    %c0_3 = arith.constant 0 : index
    %2 = vector.load %arg2[%c0_2, %c0_3] : memref<64x3072xbf16, #tpu.memory_space<vmem>>, vector<64x3072xbf16>
    %cst = arith.constant dense<0.000000e+00> : vector<64x3072xf32>
    %3 = tpu.matmul %1, %2, %cst {dimension_numbers = #tpu.dot_dimension_numbers<[1], [0], [0], [1], [0, 0, 1, 1], [], []>} : vector<64x64xbf16>, vector<64x3072xbf16>, vector<64x3072xf32> -> vector<64x3072xf32>
    %c0_4 = arith.constant 0 : index
    %c0_5 = arith.constant 0 : index
    %4 = vector.load %arg3[%c0_4, %c0_5] : memref<1x3072xf32, #tpu.memory_space<vmem>>, vector<1x3072xf32>
    %5 = vector.broadcast %4 : vector<1x3072xf32> to vector<64x3072xf32>
    %6 = arith.mulf %3, %5 : vector<64x3072xf32>
    %c0_6 = arith.constant 0 : index
    %c0_7 = arith.constant 0 : index
    %7 = vector.load %arg4[%c0_6, %c0_7] : memref<1x3072xf32, #tpu.memory_space<vmem>>, vector<1x3072xf32>
    %8 = vector.broadcast %7 : vector<1x3072xf32> to vector<64x3072xf32>
    %9 = arith.addf %6, %8 : vector<64x3072xf32>
    %cst_8 = arith.constant 0.000000e+00 : f32
    %10 = vector.broadcast %cst_8 : f32 to vector<64x3072xf32>
    %11 = arith.cmpf ogt, %9, %10 : vector<64x3072xf32>
    %cst_9 = arith.constant 0.000000e+00 : f32
    %12 = vector.broadcast %cst_9 : f32 to vector<64x3072xf32>
    %13 = arith.minimumf %9, %12 : vector<64x3072xf32>
    %14 = math.exp %13 : vector<64x3072xf32>
    %cst_10 = arith.constant 1.000000e+00 : f32
    %15 = vector.broadcast %cst_10 : f32 to vector<64x3072xf32>
    %16 = arith.subf %14, %15 : vector<64x3072xf32>
    %17 = arith.select %11, %9, %16 : vector<64x3072xi1>, vector<64x3072xf32>
    %c0_11 = arith.constant 0 : index
    %c0_12 = arith.constant 0 : index
    %18 = vector.load %arg5[%c0_11, %c0_12] : memref<8x3072xf32, #tpu.memory_space<vmem>>, vector<8x3072xf32>
    %19 = vector.extract_strided_slice %17 {offsets = [0, 0], sizes = [8, 3072], strides = [1, 1]} : vector<64x3072xf32> to vector<8x3072xf32>
    %20 = vector.extract_strided_slice %18 {offsets = [0, 0], sizes = [1, 3072], strides = [1, 1]} : vector<8x3072xf32> to vector<1x3072xf32>
    %21 = vector.broadcast %20 : vector<1x3072xf32> to vector<8x3072xf32>
    %22 = arith.mulf %19, %21 : vector<8x3072xf32>
    %23 = vector.extract_strided_slice %17 {offsets = [16, 0], sizes = [8, 3072], strides = [1, 1]} : vector<64x3072xf32> to vector<8x3072xf32>
    %24 = vector.extract_strided_slice %18 {offsets = [2, 0], sizes = [1, 3072], strides = [1, 1]} : vector<8x3072xf32> to vector<1x3072xf32>
    %25 = vector.broadcast %24 : vector<1x3072xf32> to vector<8x3072xf32>
    %26 = arith.mulf %23, %25 : vector<8x3072xf32>
    %27 = arith.addf %22, %26 : vector<8x3072xf32>
    %28 = vector.extract_strided_slice %17 {offsets = [32, 0], sizes = [8, 3072], strides = [1, 1]} : vector<64x3072xf32> to vector<8x3072xf32>
    %29 = vector.extract_strided_slice %18 {offsets = [4, 0], sizes = [1, 3072], strides = [1, 1]} : vector<8x3072xf32> to vector<1x3072xf32>
    %30 = vector.broadcast %29 : vector<1x3072xf32> to vector<8x3072xf32>
    %31 = arith.mulf %28, %30 : vector<8x3072xf32>
    %32 = arith.addf %27, %31 : vector<8x3072xf32>
    %33 = vector.extract_strided_slice %17 {offsets = [48, 0], sizes = [8, 3072], strides = [1, 1]} : vector<64x3072xf32> to vector<8x3072xf32>
    %34 = vector.extract_strided_slice %18 {offsets = [6, 0], sizes = [1, 3072], strides = [1, 1]} : vector<8x3072xf32> to vector<1x3072xf32>
    %35 = vector.broadcast %34 : vector<1x3072xf32> to vector<8x3072xf32>
    %36 = arith.mulf %33, %35 : vector<8x3072xf32>
    %37 = arith.addf %32, %36 : vector<8x3072xf32>
    %38 = vector.extract_strided_slice %17 {offsets = [8, 0], sizes = [8, 3072], strides = [1, 1]} : vector<64x3072xf32> to vector<8x3072xf32>
    %39 = vector.extract_strided_slice %18 {offsets = [1, 0], sizes = [1, 3072], strides = [1, 1]} : vector<8x3072xf32> to vector<1x3072xf32>
    %40 = vector.broadcast %39 : vector<1x3072xf32> to vector<8x3072xf32>
    %41 = arith.mulf %38, %40 : vector<8x3072xf32>
    %42 = vector.extract_strided_slice %17 {offsets = [24, 0], sizes = [8, 3072], strides = [1, 1]} : vector<64x3072xf32> to vector<8x3072xf32>
    %43 = vector.extract_strided_slice %18 {offsets = [3, 0], sizes = [1, 3072], strides = [1, 1]} : vector<8x3072xf32> to vector<1x3072xf32>
    %44 = vector.broadcast %43 : vector<1x3072xf32> to vector<8x3072xf32>
    %45 = arith.mulf %42, %44 : vector<8x3072xf32>
    %46 = arith.addf %41, %45 : vector<8x3072xf32>
    %47 = vector.extract_strided_slice %17 {offsets = [40, 0], sizes = [8, 3072], strides = [1, 1]} : vector<64x3072xf32> to vector<8x3072xf32>
    %48 = vector.extract_strided_slice %18 {offsets = [5, 0], sizes = [1, 3072], strides = [1, 1]} : vector<8x3072xf32> to vector<1x3072xf32>
    %49 = vector.broadcast %48 : vector<1x3072xf32> to vector<8x3072xf32>
    %50 = arith.mulf %47, %49 : vector<8x3072xf32>
    %51 = arith.addf %46, %50 : vector<8x3072xf32>
    %52 = vector.extract_strided_slice %17 {offsets = [56, 0], sizes = [8, 3072], strides = [1, 1]} : vector<64x3072xf32> to vector<8x3072xf32>
    %53 = vector.extract_strided_slice %18 {offsets = [7, 0], sizes = [1, 3072], strides = [1, 1]} : vector<8x3072xf32> to vector<1x3072xf32>
    %54 = vector.broadcast %53 : vector<1x3072xf32> to vector<8x3072xf32>
    %55 = arith.mulf %52, %54 : vector<8x3072xf32>
    %56 = arith.addf %51, %55 : vector<8x3072xf32>
    %57 = arith.addf %37, %56 : vector<8x3072xf32>
    %c0_13 = arith.constant 0 : index
    %c0_14 = arith.constant 0 : index
    %58 = vector.load %arg6[%c0_13, %c0_14] : memref<1x3072xf32, #tpu.memory_space<vmem>>, vector<1x3072xf32>
    %59 = vector.broadcast %58 : vector<1x3072xf32> to vector<8x3072xf32>
    %60 = arith.mulf %57, %59 : vector<8x3072xf32>
    %c0_15 = arith.constant 0 : index
    %c0_16 = arith.constant 0 : index
    %61 = vector.load %arg7[%c0_15, %c0_16] : memref<1x3072xf32, #tpu.memory_space<vmem>>, vector<1x3072xf32>
    %62 = vector.broadcast %61 : vector<1x3072xf32> to vector<8x3072xf32>
    %63 = arith.addf %60, %62 : vector<8x3072xf32>
    %cst_17 = arith.constant 0.000000e+00 : f32
    %64 = vector.broadcast %cst_17 : f32 to vector<8x3072xf32>
    %65 = arith.cmpf ogt, %63, %64 : vector<8x3072xf32>
    %cst_18 = arith.constant 0.000000e+00 : f32
    %66 = vector.broadcast %cst_18 : f32 to vector<8x3072xf32>
    %67 = arith.minimumf %63, %66 : vector<8x3072xf32>
    %68 = math.exp %67 : vector<8x3072xf32>
    %cst_19 = arith.constant 1.000000e+00 : f32
    %69 = vector.broadcast %cst_19 : f32 to vector<8x3072xf32>
    %70 = arith.subf %68, %69 : vector<8x3072xf32>
    %71 = arith.select %65, %63, %70 : vector<8x3072xi1>, vector<8x3072xf32>
    %72 = vector.extract_strided_slice %71 {offsets = [0, 0], sizes = [8, 768], strides = [1, 1]} : vector<8x3072xf32> to vector<8x768xf32>
    %73 = vector.extract_strided_slice %71 {offsets = [0, 768], sizes = [8, 768], strides = [1, 1]} : vector<8x3072xf32> to vector<8x768xf32>
    %74 = arith.addf %72, %73 : vector<8x768xf32>
    %75 = vector.extract_strided_slice %71 {offsets = [0, 1536], sizes = [8, 768], strides = [1, 1]} : vector<8x3072xf32> to vector<8x768xf32>
    %76 = arith.addf %74, %75 : vector<8x768xf32>
    %77 = vector.extract_strided_slice %71 {offsets = [0, 2304], sizes = [8, 768], strides = [1, 1]} : vector<8x3072xf32> to vector<8x768xf32>
    %78 = arith.addf %76, %77 : vector<8x768xf32>
    %cst_20 = arith.constant 2.500000e-01 : f32
    %79 = vector.broadcast %cst_20 : f32 to vector<8x768xf32>
    %80 = arith.mulf %78, %79 : vector<8x768xf32>
    %c0_21 = arith.constant 0 : index
    %c0_22 = arith.constant 0 : index
    %c0_23 = arith.constant 0 : index
    %81 = vector.load %arg8[%c0_21, %c0_22, %c0_23] : memref<1x8x768xf32, #tpu.memory_space<vmem>>, vector<1x8x768xf32>
    %82 = vector.shape_cast %81 : vector<1x8x768xf32> to vector<8x768xf32>
    %83 = vector.shape_cast %80 : vector<8x768xf32> to vector<1x8x768xf32>
    tpu.vector_store %arg8[%c0_21, %c0_22, %c0_23], %83 {strides = array<i32>} : memref<1x8x768xf32, #tpu.memory_space<vmem>>, vector<1x8x768xf32>,
    return
  }
  func.func @transform_0(%arg0: i32) -> (i32, i32, i32) {
    %c0_i32 = arith.constant 0 : i32
    %c0_i32_0 = arith.constant 0 : i32
    %c0_i32_1 = arith.constant 0 : i32
    return %arg0, %c0_i32, %c0_i32_0 : i32, i32, i32
  }
  func.func @transform_1(%arg0: i32) -> (i32, i32) {
    %c0_i32 = arith.constant 0 : i32
    %c0_i32_0 = arith.constant 0 : i32
    %c0_i32_1 = arith.constant 0 : i32
    return %c0_i32, %c0_i32_0 : i32, i32
  }
  func.func @transform_2(%arg0: i32) -> (i32, i32) {
    %c0_i32 = arith.constant 0 : i32
    %c0_i32_0 = arith.constant 0 : i32
    %c0_i32_1 = arith.constant 0 : i32
    return %c0_i32, %c0_i32_0 : i32, i32
  }
  func.func @transform_3(%arg0: i32) -> (i32, i32) {
    %c0_i32 = arith.constant 0 : i32
    %c0_i32_0 = arith.constant 0 : i32
    %c0_i32_1 = arith.constant 0 : i32
    return %c0_i32, %c0_i32_0 : i32, i32
  }
  func.func @transform_4(%arg0: i32) -> (i32, i32) {
    %c0_i32 = arith.constant 0 : i32
    %c0_i32_0 = arith.constant 0 : i32
    %c0_i32_1 = arith.constant 0 : i32
    return %c0_i32, %c0_i32_0 : i32, i32
  }
  func.func @transform_5(%arg0: i32) -> (i32, i32) {
    %c0_i32 = arith.constant 0 : i32
    %c0_i32_0 = arith.constant 0 : i32
    %c0_i32_1 = arith.constant 0 : i32
    return %c0_i32, %c0_i32_0 : i32, i32
  }
  func.func @transform_6(%arg0: i32) -> (i32, i32) {
    %c0_i32 = arith.constant 0 : i32
    %c0_i32_0 = arith.constant 0 : i32
    %c0_i32_1 = arith.constant 0 : i32
    return %c0_i32, %c0_i32_0 : i32, i32
  }
  func.func @transform_7(%arg0: i32) -> (i32, i32, i32) {
    %c0_i32 = arith.constant 0 : i32
    %c0_i32_0 = arith.constant 0 : i32
    %c0_i32_1 = arith.constant 0 : i32
    return %arg0, %c0_i32, %c0_i32_0 : i32, i32, i32
  }
}

</mosaic_0001>

<bundles_post_ra>
// kernel: tpu_custom_call.1
= control target key start
LH: loop header
LB: loop body
LE: loop exit
PB: predicated region body
PF: predicated region fallthrough
CT: control target
= control target key end

     0   :  { %12 = vsyncpa [#allocation3], 0  ;;  %s8589_s0 = inlined_call_operand.hbm [shape: bf16[1,64,64], index: 0, kind: input, shape index: {}]   ;;  %s8590_s1 = inlined_call_operand.hbm [shape: bf16[64,3072], index: 1, kind: input, shape index: {}]   ;;  %s8591_s2 = inlined_call_operand.hbm [shape: f32[1,3072], index: 2, kind: input, shape index: {}]   ;;  %s8592_s3 = inlined_call_operand.hbm [shape: f32[1,3072], index: 3, kind: input, shape index: {}]   ;;  %s8593_s4 = inlined_call_operand.hbm [shape: f32[8,3072], index: 4, kind: input, shape index: {}]   ;;  %s8594_s5 = inlined_call_operand.hbm [shape: f32[1,3072], index: 5, kind: input, shape index: {}]   ;;  %s8595_s6 = inlined_call_operand.hbm [shape: f32[1,3072], index: 6, kind: input, shape index: {}]   ;;  %s8596_s7 = inlined_call_operand.hbm [shape: f32[1,8,768], index: 7, kind: output, shape index: {}]  }
   0x1   :  { %13 = vsyncpa [#allocation6], 0 }
   0x2   :  { %14 = vsyncpa [#allocation9], 0 }
   0x3   :  { %15 = vsyncpa [#allocation12], 0  ;;  %s34_s26 = sshll.u32 %s8590_s1, 4  ;;  %s35_s26 = int_to_ptr.hbm [resolvable:$true] %s34_s26 }
   0x4   :  { %16 = vsyncpa [#allocation4], 0  ;;  %s5492_s27 = smov [#allocation5]   ;;  %s59_s8 = sshll.u32 %s8592_s3, 4  ;;  %s60_s8 = int_to_ptr.hbm [resolvable:$true] %s59_s8 }
   0x5   :  { %s36_s28 = sshll.u32 %s5492_s27, 4  ;;  %s5493_s9 = smov 1536   ;;  %s37_s28 = int_to_ptr.vmem [resolvable:$true] %s36_s28 }
   0x6   :  { %s5494_s10 = smov 96   ;;  %s5495_s11 = smov [#allocation8]  }
   0x7   :  { %42 = dma.hbm_to_vmem [thread:$0]  %s35_s26, 12288, %s37_s28, [#allocation6], %s5493_s9, %s5493_s9, %s5494_s10  }
   0x8   :  { %s61_s12 = sshll.u32 %s5495_s11, 4  ;;  %s81_s15 = sshll.u32 %s8594_s5, 4  ;;  %s62_s12 = int_to_ptr.vmem [resolvable:$true] %s61_s12  ;;  %s82_s15 = int_to_ptr.hbm [resolvable:$true] %s81_s15 }
   0x9   :  { %64 = dma.hbm_to_vmem [thread:$0]  %s60_s8, 384, %s62_s12, [#allocation9]  }
   0xa   :  { %s21_s17 = sshll.u32 %s8589_s0, 4  ;;  %s5496_s18 = smov [#allocation11]   ;;  %s22_s17 = int_to_ptr.hbm [resolvable:$true] %s21_s17 }
   0xb   :  { %s83_s19 = sshll.u32 %s5496_s18, 4  ;;  %s5497_s3 = smov [#allocation2]   ;;  %s84_s19 = int_to_ptr.vmem [resolvable:$true] %s83_s19 }
   0xc   :  { %86 = dma.hbm_to_vmem [thread:$0]  %s82_s15, 384, %s84_s19, [#allocation12]  }
   0xd   :  { %s23_s20 = sshll.u32 %s5497_s3, 4  ;;  %s5498_s21 = smov 64   ;;  %s24_s20 = int_to_ptr.vmem [resolvable:$true] %s23_s20 }
   0xe   :  { %s5499_s22 = smov 4   ;;  %s48_s24 = sshll.u32 %s8591_s2, 4  ;;  %s49_s24 = int_to_ptr.hbm [resolvable:$true] %s48_s24 }
   0xf   :  { %29 = dma.hbm_to_vmem [thread:$0]  %s22_s17, 512, %s24_s20, [#allocation3], %s5498_s21, %s5498_s21, %s5499_s22  }
  0x10   :  { %s5500_s25 = smov [#allocation7]   ;;  %s70_s28 = sshll.u32 %s8593_s4, 4  ;;  %s71_s28 = int_to_ptr.hbm [resolvable:$true] %s70_s28 }
  0x11   :  { %s50_s26 = sshll.u32 %s5500_s25, 4  ;;  %s5501_s29 = smov [#allocation10]   ;;  %s51_s26 = int_to_ptr.vmem [resolvable:$true] %s50_s26 }
  0x12   :  { %53 = dma.hbm_to_vmem [thread:$0]  %s49_s24, 384, %s51_s26, [#allocation6]  }
  0x13   :  { %s72_s30 = sshll.u32 %s5501_s29, 4  ;;  %s92_s10 = sshll.u32 %s8595_s6, 4  ;;  %s73_s30 = int_to_ptr.vmem [resolvable:$true] %s72_s30  ;;  %s93_s10 = int_to_ptr.hbm [resolvable:$true] %s92_s10 }
  0x14   :  { %75 = dma.hbm_to_vmem [thread:$0]  %s71_s28, 3072, %s73_s30, [#allocation9]  }
  0x15   :  { %s5502_s2 = smov [#allocation13]  }
  0x16   :  { %s94_s11 = sshll.u32 %s5502_s2, 4  ;;  %s95_s11 = int_to_ptr.vmem [resolvable:$true] %s94_s11 }
  0x17   :  { %97 = dma.hbm_to_vmem [thread:$0]  %s93_s10, 384, %s95_s11, [#allocation12]  }
  0x18   :  { %5482 = dma.done.wait [#allocation3], 512  }
  0x19   :  { %5483 = vsyncadd [#allocation3], 4294966784 }
  0x1a   :  { %5484 = dma.done.wait [#allocation6], 12672  }
  0x1b   :  { %5485 = vsyncadd [#allocation6], 4294954624 }
  0x1c   :  { %5486 = dma.done.wait [#allocation9], 3456  }
  0x1d   :  { %5487 = vsyncadd [#allocation9], 4294963840 }
  0x1e   :  { %5488 = dma.done.wait [#allocation12], 768  }
  0x1f   :  { %5489 = vsyncadd [#allocation12], 4294966528  ;;  %v4316_v0 = vld [vmem:[#allocation5 + $0x240] sm:$0xf]  ;;  %v4798_v2 = vld [vmem:[#allocation5 + $0x244] sm:$0xf] }
  0x20   :  { %v4810_v1 = vld [vmem:[#allocation5 + $0x29c] sm:$0xf0]  ;;  %v4318_v4 = vld [vmem:[#allocation5 + $0x2a0] sm:$0xf0]  ;;  %v4324_v5 = vld [vmem:[#allocation5 + $0x248] sm:$0xf] }
  0x21   :  { %v4317_v3 = vor.u32 %v4810_v1, %v4316_v0  ;;  %v4811_v6 = vld [vmem:[#allocation5 + $0x2a4] sm:$0xf0]  ;;  %v4321_v7 = vor.u32 %v4798_v2, %v4318_v4  ;;  %v4799_v9 = vld [vmem:[#allocation5 + $0x24c] sm:$0xf]  ;;  %v4220_v11 = vld [vmem:[#allocation5 + $0x180] sm:$0xf] }
  0x22   :  { %v4325_v8 = vor.u32 %v4811_v6, %v4324_v5  ;;  %v4326_v10 = vld [vmem:[#allocation5 + $0x2a8] sm:$0xf0]  ;;  %v4786_v13 = vld [vmem:[#allocation5 + $0x1dc] sm:$0xf0]  ;;  %v4774_v14 = vld [vmem:[#allocation5 + $0x184] sm:$0xf] }
  0x23   :  { %748 = vmatpush.bf16.msra.mxu0 %v4317_v3  ;;  %v4329_v12 = vor.u32 %v4799_v9, %v4326_v10  ;;  %v4222_v15 = vld [vmem:[#allocation5 + $0x1e0] sm:$0xf0]  ;;  %777 = vmatpush.bf16.msra.mxu1 %v4321_v7  ;;  %v4221_v16 = vor.u32 %v4786_v13, %v4220_v11  ;;  %v4228_v18 = vld [vmem:[#allocation5 + $0x188] sm:$0xf]  ;;  %v4775_v20 = vld [vmem:[#allocation5 + $0x18c] sm:$0xf] }
  0x24   :  { %806 = vmatpush.bf16.msra.mxu2 %v4325_v8  ;;  %v4225_v17 = vor.u32 %v4774_v14, %v4222_v15  ;;  %v4787_v19 = vld [vmem:[#allocation5 + $0x1e4] sm:$0xf0]  ;;  %v4230_v22 = vld [vmem:[#allocation5 + $0x1e8] sm:$0xf0]  ;;  %v4124_v23 = vld [vmem:[#allocation5 + $0xc0] sm:$0xf] }
  0x25   :  { %835 = vmatpush.bf16.msra.mxu3 %v4329_v12  ;;  %v4229_v21 = vor.u32 %v4787_v19, %v4228_v18  ;;  %v4762_v24 = vld [vmem:[#allocation5 + $0x11c] sm:$0xf0]  ;;  %v4233_v25 = vor.u32 %v4775_v20, %v4230_v22  ;;  %v4750_v26 = vld [vmem:[#allocation5 + $0xc4] sm:$0xf]  ;;  %v4132_v28 = vld [vmem:[#allocation5 + $0xc8] sm:$0xf] }
  0x26   :  { %v4126_v27 = vld [vmem:[#allocation5 + $0x120] sm:$0xf0]  ;;  %v4125_v29 = vor.u32 %v4762_v24, %v4124_v23  ;;  %v4763_v30 = vld [vmem:[#allocation5 + $0x124] sm:$0xf0]  ;;  %v4751_v31 = vld [vmem:[#allocation5 + $0xcc] sm:$0xf] }
  0x27   :  { %749 = vmatpush.bf16.msra.mxu0 %v4221_v16  ;;  %v4134_v32 = vld [vmem:[#allocation5 + $0x128] sm:$0xf0]  ;;  %778 = vmatpush.bf16.msra.mxu1 %v4225_v17  ;;  %v4129_v33 = vor.u32 %v4750_v26, %v4126_v27  ;;  %v4133_v34 = vor.u32 %v4763_v30, %v4132_v28  ;;  %v4028_v35 = vld [vmem:[#allocation5] sm:$0xf]  ;;  %v4726_v37 = vld [vmem:[#allocation5 + $0x4] sm:$0xf] }
  0x28   :  { %807 = vmatpush.bf16.msra.mxu2 %v4229_v21  ;;  %v4738_v36 = vld [vmem:[#allocation5 + $0x5c] sm:$0xf0]  ;;  %v4137_v38 = vor.u32 %v4751_v31, %v4134_v32  ;;  %v4030_v39 = vld [vmem:[#allocation5 + $0x60] sm:$0xf0]  ;;  %v4036_v40 = vld [vmem:[#allocation5 + $0x8] sm:$0xf] }
  0x29   :  { %836 = vmatpush.bf16.msra.mxu3 %v4233_v25  ;;  %v4739_v41 = vld [vmem:[#allocation5 + $0x64] sm:$0xf0]  ;;  %v4727_v42 = vld [vmem:[#allocation5 + $0xc] sm:$0xf]  ;;  %v4029_v44 = vor.u32 %v4738_v36, %v4028_v35  ;;  %v4340_v45 = vld [vmem:[#allocation5 + $0x258] sm:$0xf]  ;;  %v4033_v48 = vor.u32 %v4726_v37, %v4030_v39 }
  0x2a   :  { %v4038_v43 = vld [vmem:[#allocation5 + $0x68] sm:$0xf0]  ;;  %v4813_v46 = vld [vmem:[#allocation5 + $0x2b4] sm:$0xf0]  ;;  %v4801_v47 = vld [vmem:[#allocation5 + $0x25c] sm:$0xf]  ;;  %v4037_v49 = vor.u32 %v4739_v41, %v4036_v40 }
  0x2b   :  { %750 = vmatpush.bf16.msra.mxu0 %v4125_v29  ;;  %779 = vmatpush.bf16.msra.mxu1 %v4129_v33  ;;  %v5565_v50 = vld [vmem:[#allocation2] sm:$0xff]  ;;  %v4342_v51 = vld [vmem:[#allocation5 + $0x2b8] sm:$0xf0]  ;;  %v4041_v52 = vor.u32 %v4727_v42, %v4038_v43  ;;  %v4341_v53 = vor.u32 %v4813_v46, %v4340_v45  ;;  %v4332_v54 = vld [vmem:[#allocation5 + $0x250] sm:$0xf]  ;;  %vm731_vm0 = vcmask 523264  }
  0x2c   :  { %808 = vmatpush.bf16.msra.mxu2 %v4133_v34  ;;  %v4812_v55 = vld [vmem:[#allocation5 + $0x2ac] sm:$0xf0]  ;;  %v4800_v56 = vld [vmem:[#allocation5 + $0x254] sm:$0xf]  ;;  %v4345_v57 = vor.u32 %v4801_v47, %v4342_v51  ;;  %v4244_v59 = vld [vmem:[#allocation5 + $0x198] sm:$0xf] }
  0x2d   :  { %837 = vmatpush.bf16.msra.mxu3 %v4137_v38  ;;  %v4334_v58 = vld [vmem:[#allocation5 + $0x2b0] sm:$0xf0]  ;;  %v4789_v60 = vld [vmem:[#allocation5 + $0x1f4] sm:$0xf0]  ;;  %v4777_v61 = vld [vmem:[#allocation5 + $0x19c] sm:$0xf]  ;;  %v4333_v63 = vor.u32 %v4812_v55, %v4332_v54 }
  0x2e   :  { %v4246_v62 = vld [vmem:[#allocation5 + $0x1f8] sm:$0xf0]  ;;  %v4337_v0 = vor.u32 %v4800_v56, %v4334_v58  ;;  %v4245_v1 = vor.u32 %v4789_v60, %v4244_v59  ;;  %v4236_v2 = vld [vmem:[#allocation5 + $0x190] sm:$0xf]  ;;  %v4776_v5 = vld [vmem:[#allocation5 + $0x194] sm:$0xf] }
  0x2f   :  { %751 = vmatpush.bf16.msra.mxu0 %v4029_v44  ;;  %780 = vmatpush.bf16.msra.mxu1 %v4033_v48  ;;  %v4788_v3 = vld [vmem:[#allocation5 + $0x1ec] sm:$0xf0]  ;;  %v4249_v4 = vor.u32 %v4777_v61, %v4246_v62  ;;  %v4238_v6 = vld [vmem:[#allocation5 + $0x1f0] sm:$0xf0]  ;;  %v4148_v8 = vld [vmem:[#allocation5 + $0xd8] sm:$0xf] }
  0x30   :  { %809 = vmatpush.bf16.msra.mxu2 %v4037_v49  ;;  %v4237_v7 = vor.u32 %v4788_v3, %v4236_v2  ;;  %v4765_v9 = vld [vmem:[#allocation5 + $0x134] sm:$0xf0]  ;;  %v4753_v10 = vld [vmem:[#allocation5 + $0xdc] sm:$0xf]  ;;  %v4241_v11 = vor.u32 %v4776_v5, %v4238_v6  ;;  %v4140_v14 = vld [vmem:[#allocation5 + $0xd0] sm:$0xf] }
  0x31   :  { %838 = vmatpush.bf16.msra.mxu3 %v4041_v52  ;;  %v4149_v12 = vor.u32 %v4765_v9, %v4148_v8  ;;  %v4150_v13 = vld [vmem:[#allocation5 + $0x138] sm:$0xf0]  ;;  %v4764_v15 = vld [vmem:[#allocation5 + $0x12c] sm:$0xf0]  ;;  %v4752_v17 = vld [vmem:[#allocation5 + $0xd4] sm:$0xf] }
  0x32   :  { %4410 = vmatmul.msk.bf16.vlgmr.msra.gmra.mxu0 %vm731_vm0, %v5565_v50  ;;  %4414 = vmatmul.msk.bf16.vlgmr.msra.gmra.mxu1 %vm731_vm0, %v5565_v50  ;;  %v4153_v16 = vor.u32 %v4753_v10, %v4150_v13  ;;  %v4142_v18 = vld [vmem:[#allocation5 + $0x130] sm:$0xf0]  ;;  %v4141_v19 = vor.u32 %v4764_v15, %v4140_v14  ;;  %v5575_v21 = vld [vmem:[#allocation2 + $0x8] sm:$0xff]  ;;  %v4052_v22 = vld [vmem:[#allocation5 + $0x18] sm:$0xf]  ;;  %s5503_s4 = smov [#allocation14]  }
  0x33   :  { %4418 = vmatmul.msk.bf16.vlgmr.msra.gmra.mxu2 %vm731_vm0, %v5565_v50  ;;  %864 = vmatpush.bf16.msrb.mxu0 %v4333_v63  ;;  %v4145_v20 = vor.u32 %v4752_v17, %v4142_v18  ;;  %v4741_v23 = vld [vmem:[#allocation5 + $0x74] sm:$0xf0]  ;;  %v4729_v24 = vld [vmem:[#allocation5 + $0x1c] sm:$0xf]  ;;  %v4044_v27 = vld [vmem:[#allocation5 + $0x10] sm:$0xf] }
  0x34   :  { %922 = vmatpush.bf16.msrb.mxu2 %v4341_v53  ;;  %4422 = vmatmul.msk.bf16.vlgmr.msra.gmra.mxu3 %vm731_vm0, %v5565_v50  ;;  %v4053_v25 = vor.u32 %v4741_v23, %v4052_v22  ;;  %v4054_v26 = vld [vmem:[#allocation5 + $0x78] sm:$0xf0]  ;;  %v4740_v28 = vld [vmem:[#allocation5 + $0x6c] sm:$0xf0]  ;;  %v4728_v31 = vld [vmem:[#allocation5 + $0x14] sm:$0xf] }
  0x35   :  { %951 = vmatpush.bf16.msrb.mxu3 %v4345_v57  ;;  %893 = vmatpush.bf16.msrb.mxu1 %v4337_v0  ;;  %v4057_v29 = vor.u32 %v4729_v24, %v4054_v26  ;;  %v4045_v30 = vor.u32 %v4740_v28, %v4044_v27  ;;  %v4046_v32 = vld [vmem:[#allocation5 + $0x70] sm:$0xf0]  ;;  %v4356_v35 = vld [vmem:[#allocation5 + $0x268] sm:$0xf]  ;;  %v4803_v37 = vld [vmem:[#allocation5 + $0x26c] sm:$0xf] }
  0x36   :  { %v4049_v33 = vor.u32 %v4728_v31, %v4046_v32  ;;  %v5585_v34 = vld [vmem:[#allocation2 + $0x10] sm:$0xff]  ;;  %v4815_v36 = vld [vmem:[#allocation5 + $0x2c4] sm:$0xf0]  ;;  %v4358_v39 = vld [vmem:[#allocation5 + $0x2c8] sm:$0xf0]  ;;  %s3995_s6 = sshll.u32 %s5503_s4, 4  ;;  %s3996_s6 = int_to_ptr.vmem [resolvable:$true] %s3995_s6 }
  0x37   :  { %865 = vmatpush.bf16.msrb.mxu0 %v4237_v7  ;;  %v4357_v38 = vor.u32 %v4815_v36, %v4356_v35  ;;  %v4348_v40 = vld [vmem:[#allocation5 + $0x260] sm:$0xf]  ;;  %v4361_v42 = vor.u32 %v4803_v37, %v4358_v39  ;;  %v4802_v44 = vld [vmem:[#allocation5 + $0x264] sm:$0xf]  ;;  %v5595_v47 = vld [vmem:[#allocation2 + $0x18] sm:$0xff]  ;;  %s3997_s14 = sshll.u32 %s8596_s7, 4  ;;  %s3998_s14 = int_to_ptr.hbm [resolvable:$true] %s3997_s14 }
  0x38   :  { %923 = vmatpush.bf16.msrb.mxu2 %v4245_v1  ;;  %v4814_v41 = vld [vmem:[#allocation5 + $0x2bc] sm:$0xf0]  ;;  %v4350_v45 = vld [vmem:[#allocation5 + $0x2c0] sm:$0xf0]  ;;  %v4260_v48 = vld [vmem:[#allocation5 + $0x1a8] sm:$0xf] }
  0x39   :  { %952 = vmatpush.bf16.msrb.mxu3 %v4249_v4  ;;  %894 = vmatpush.bf16.msrb.mxu1 %v4241_v11  ;;  %v4349_v43 = vor.u32 %v4814_v41, %v4348_v40  ;;  %v4353_v46 = vor.u32 %v4802_v44, %v4350_v45  ;;  %v4791_v49 = vld [vmem:[#allocation5 + $0x204] sm:$0xf0]  ;;  %v4779_v51 = vld [vmem:[#allocation5 + $0x1ac] sm:$0xf]  ;;  %v4252_v54 = vld [vmem:[#allocation5 + $0x1a0] sm:$0xf] }
  0x3a   :  { %v4261_v52 = vor.u32 %v4791_v49, %v4260_v48  ;;  %v4262_v53 = vld [vmem:[#allocation5 + $0x208] sm:$0xf0]  ;;  %v4790_v55 = vld [vmem:[#allocation5 + $0x1fc] sm:$0xf0]  ;;  %v4778_v58 = vld [vmem:[#allocation5 + $0x1a4] sm:$0xf] }
  0x3b   :  { %866 = vmatpush.bf16.msrb.mxu0 %v4141_v19  ;;  %v4265_v56 = vor.u32 %v4779_v51, %v4262_v53  ;;  %v4253_v57 = vor.u32 %v4790_v55, %v4252_v54  ;;  %v4254_v59 = vld [vmem:[#allocation5 + $0x200] sm:$0xf0]  ;;  %v4164_v61 = vld [vmem:[#allocation5 + $0xe8] sm:$0xf]  ;;  %v4755_v63 = vld [vmem:[#allocation5 + $0xec] sm:$0xf] }
  0x3c   :  { %924 = vmatpush.bf16.msrb.mxu2 %v4149_v12  ;;  %v4257_v60 = vor.u32 %v4778_v58, %v4254_v59  ;;  %v4767_v62 = vld [vmem:[#allocation5 + $0x144] sm:$0xf0]  ;;  %v4166_v1 = vld [vmem:[#allocation5 + $0x148] sm:$0xf0]  ;;  %v4156_v2 = vld [vmem:[#allocation5 + $0xe0] sm:$0xf] }
  0x3d   :  { %953 = vmatpush.bf16.msrb.mxu3 %v4153_v16  ;;  %895 = vmatpush.bf16.msrb.mxu1 %v4145_v20  ;;  %v4165_v0 = vor.u32 %v4767_v62, %v4164_v61  ;;  %v4766_v3 = vld [vmem:[#allocation5 + $0x13c] sm:$0xf0]  ;;  %v4169_v4 = vor.u32 %v4755_v63, %v4166_v1  ;;  %v4754_v6 = vld [vmem:[#allocation5 + $0xe4] sm:$0xf]  ;;  %v4068_v9 = vld [vmem:[#allocation5 + $0x28] sm:$0xf] }
  0x3e   :  { %v4157_v5 = vor.u32 %v4766_v3, %v4156_v2  ;;  %v4158_v7 = vld [vmem:[#allocation5 + $0x140] sm:$0xf0]  ;;  %v4743_v10 = vld [vmem:[#allocation5 + $0x84] sm:$0xf0]  ;;  %v4731_v11 = vld [vmem:[#allocation5 + $0x2c] sm:$0xf] }
  0x3f   :  { %867 = vmatpush.bf16.msrb.mxu0 %v4045_v30  ;;  %v4161_v8 = vor.u32 %v4754_v6, %v4158_v7  ;;  %v4069_v12 = vor.u32 %v4743_v10, %v4068_v9  ;;  %v4070_v13 = vld [vmem:[#allocation5 + $0x88] sm:$0xf0]  ;;  %v4060_v14 = vld [vmem:[#allocation5 + $0x20] sm:$0xf]  ;;  %v4730_v18 = vld [vmem:[#allocation5 + $0x24] sm:$0xf] }
  0x40   :  { %925 = vmatpush.bf16.msrb.mxu2 %v4053_v25  ;;  %v4742_v15 = vld [vmem:[#allocation5 + $0x7c] sm:$0xf0]  ;;  %v4073_v16 = vor.u32 %v4731_v11, %v4070_v13  ;;  %v4062_v19 = vld [vmem:[#allocation5 + $0x80] sm:$0xf0]  ;;  %v4372_v22 = vld [vmem:[#allocation5 + $0x278] sm:$0xf] }
  0x41   :  { %954 = vmatpush.bf16.msrb.mxu3 %v4057_v29  ;;  %896 = vmatpush.bf16.msrb.mxu1 %v4049_v33  ;;  %v4061_v17 = vor.u32 %v4742_v15, %v4060_v14  ;;  %v4065_v20 = vor.u32 %v4730_v18, %v4062_v19  ;;  %v4817_v23 = vld [vmem:[#allocation5 + $0x2d4] sm:$0xf0]  ;;  %v4805_v24 = vld [vmem:[#allocation5 + $0x27c] sm:$0xf]  ;;  %v5637_v28 = vld [vmem:[#allocation7] sm:$0xff] }
  0x42   :  { %4411 = vmatmul.msk.bf16.gmra.mxu0 %vm731_vm0, %v5575_v21  ;;  %4415 = vmatmul.msk.bf16.gmra.mxu1 %vm731_vm0, %v5575_v21  ;;  %v4373_v25 = vor.u32 %v4817_v23, %v4372_v22  ;;  %v4374_v26 = vld [vmem:[#allocation5 + $0x2d8] sm:$0xf0]  ;;  %v5640_v29 = vperm.slane %v5637_v28, 0  ;;  %v4364_v31 = vld [vmem:[#allocation5 + $0x270] sm:$0xf]  ;;  %v5645_v35 = vperm.slane %v5637_v28, 1 }
  0x43   :  { %4419 = vmatmul.msk.bf16.gmra.mxu2 %vm731_vm0, %v5575_v21  ;;  %980 = vmatpush.bf16.msra.mxu0 %v4349_v43  ;;  %v4377_v27 = vor.u32 %v4805_v24, %v4374_v26  ;;  %v5642_v30 = vld [vmem:[#allocation8] sm:$0xff]  ;;  %v4816_v32 = vld [vmem:[#allocation5 + $0x2cc] sm:$0xf0]  ;;  %v4804_v33 = vld [vmem:[#allocation5 + $0x274] sm:$0xf]  ;;  %v5668_v48 = vperm.slane %v5637_v28, 2 }
  0x44   :  { %4423 = vmatmul.msk.bf16.gmra.mxu3 %vm731_vm0, %v5575_v21  ;;  %1038 = vmatpush.bf16.msra.mxu2 %v4357_v38  ;;  %v4365_v36 = vor.u32 %v4816_v32, %v4364_v31  ;;  %v4366_v37 = vld [vmem:[#allocation5 + $0x2d0] sm:$0xf0]  ;;  %v5648_v38 = vperm.slane %v5642_v30, 0  ;;  %v5651_v41 = vperm.slane %v5642_v30, 1  ;;  %v5674_v51 = vperm.slane %v5637_v28, 3  ;;  %v5703_v13 = vld [vmem:[#allocation10 + $0x18] sm:$0xff] }
  0x45   :  { %1067 = vmatpush.bf16.msra.mxu3 %v4361_v42  ;;  %1009 = vmatpush.bf16.msra.mxu1 %v4353_v46  ;;  %v4369_v39 = vor.u32 %v4804_v33, %v4366_v37  ;;  %v5678_v53 = vperm.slane %v5642_v30, 2  ;;  %v5681_v55 = vperm.slane %v5642_v30, 3  ;;  %v4781_v62 = vld [vmem:[#allocation5 + $0x1bc] sm:$0xf]  ;;  %v5690_v7 = vld [vmem:[#allocation10] sm:$0xff]  ;;  %v3111_v24 = vperm.slane %v5703_v13, 0 }
  0x46   :  { %v4278_v63 = vld [vmem:[#allocation5 + $0x218] sm:$0xf0] }
  0x47   :  { %981 = vmatpush.bf16.msra.mxu0 %v4253_v57  ;;  %v4793_v57 = vld [vmem:[#allocation5 + $0x214] sm:$0xf0] }
  0x48   :  { %1039 = vmatpush.bf16.msra.mxu2 %v4261_v52 }
  0x49   :  { %1068 = vmatpush.bf16.msra.mxu3 %v4265_v56  ;;  %1010 = vmatpush.bf16.msra.mxu1 %v4257_v60  ;;  %v4276_v56 = vld [vmem:[#allocation5 + $0x1b8] sm:$0xf] }
  0x4b   :  { %982 = vmatpush.bf16.msra.mxu0 %v4157_v5 }
  0x4c   :  { %1040 = vmatpush.bf16.msra.mxu2 %v4165_v0 }
  0x4d   :  { %1069 = vmatpush.bf16.msra.mxu3 %v4169_v4  ;;  %1011 = vmatpush.bf16.msra.mxu1 %v4161_v8  ;;  %v4281_v4 = vor.u32 %v4781_v62, %v4278_v63  ;;  %v5692_v8 = vld [vmem:[#allocation10 + $0x8] sm:$0xff] }
  0x4e   :  { %v3109_v18 = vperm.slane %v5692_v8, 0  ;;  %v3373_v37 = vperm.slane %v5692_v8, 1 }
  0x4f   :  { %983 = vmatpush.bf16.msra.mxu0 %v4061_v17  ;;  %v3108_v17 = vperm.slane %v5690_v7, 0 }
  0x50   :  { %1041 = vmatpush.bf16.msra.mxu2 %v4069_v12  ;;  %v5701_v12 = vld [vmem:[#allocation10 + $0x10] sm:$0xff] }
  0x51   :  { %1070 = vmatpush.bf16.msra.mxu3 %v4073_v16  ;;  %1012 = vmatpush.bf16.msra.mxu1 %v4065_v20  ;;  %v3110_v22 = vperm.slane %v5701_v12, 0 }
  0x52   :  { %4412 = vmatmul.msk.bf16.gmra.mxu0 %vm731_vm0, %v5585_v34  ;;  %4416 = vmatmul.msk.bf16.gmra.mxu1 %vm731_vm0, %v5585_v34 }
  0x53   :  { %4420 = vmatmul.msk.bf16.gmra.mxu2 %vm731_vm0, %v5585_v34 }
  0x54   :  { %4424 = vmatmul.msk.bf16.gmra.mxu3 %vm731_vm0, %v5585_v34 }
  0x62   :  { %4413 = vmatmul.msk.bf16.gmra.mxu0 %vm731_vm0, %v5595_v47  ;;  %4417 = vmatmul.msk.bf16.gmra.mxu1 %vm731_vm0, %v5595_v47 }
  0x63   :  { %4421 = vmatmul.msk.bf16.gmra.mxu2 %vm731_vm0, %v5595_v47 }
  0x64   :  { %4425 = vmatmul.msk.bf16.gmra.mxu3 %vm731_vm0, %v5595_v47 }
  0x72   :  { %4426 = vmatmul.msk.bf16.vlgmr.msrb.gmra.mxu0 %vm731_vm0, %v5565_v50  ;;  %4430 = vmatmul.msk.bf16.vlgmr.msrb.gmra.mxu1 %vm731_vm0, %v5565_v50 }
  0x73   :  { %4434 = vmatmul.msk.bf16.vlgmr.msrb.gmra.mxu2 %vm731_vm0, %v5565_v50  ;;  %1096 = vmatpush.bf16.msrb.mxu0 %v4365_v36 }
  0x74   :  { %4438 = vmatmul.msk.bf16.vlgmr.msrb.gmra.mxu3 %vm731_vm0, %v5565_v50  ;;  %1154 = vmatpush.bf16.msrb.mxu2 %v4373_v25 }
  0x75   :  { %1183 = vmatpush.bf16.msrb.mxu3 %v4377_v27  ;;  %1125 = vmatpush.bf16.msrb.mxu1 %v4369_v39  ;;  %v3372_v27 = vperm.slane %v5690_v7, 1 }
  0x79   :  { %1184 = vmatpush.bf16.msrb.mxu3 %v4281_v4 }
  0x82   :  { %4427 = vmatmul.msk.bf16.gmra.mxu0 %vm731_vm0, %v5575_v21  ;;  %4431 = vmatmul.msk.bf16.gmra.mxu1 %vm731_vm0, %v5575_v21 }
  0x83   :  { %4435 = vmatmul.msk.bf16.gmra.mxu2 %vm731_vm0, %v5575_v21 }
  0x84   :  { %4439 = vmatmul.msk.bf16.gmra.mxu3 %vm731_vm0, %v5575_v21 }
  0x92   :  { %4428 = vmatmul.msk.bf16.gmra.mxu0 %vm731_vm0, %v5585_v34  ;;  %4432 = vmatmul.msk.bf16.gmra.mxu1 %vm731_vm0, %v5585_v34 }
  0x93   :  { %4436 = vmatmul.msk.bf16.gmra.mxu2 %vm731_vm0, %v5585_v34 }
  0x94   :  { %4440 = vmatmul.msk.bf16.gmra.mxu3 %vm731_vm0, %v5585_v34 }
  0xa2   :  { %4429 = vmatmul.msk.bf16.gmra.mxu0 %vm731_vm0, %v5595_v47  ;;  %4433 = vmatmul.msk.bf16.gmra.mxu1 %vm731_vm0, %v5595_v47 }
  0xa3   :  { %4437 = vmatmul.msk.bf16.gmra.mxu2 %vm731_vm0, %v5595_v47 }
  0xa4   :  { %4441 = vmatmul.msk.bf16.gmra.mxu3 %vm731_vm0, %v5595_v47 }
  0xaf   :  { %v753_v40 = vpop.f32.mrf.mxu0  ;;  %v782_v43 = vpop.f32.mrf.mxu1 }
  0xb0   :  { %v1494_v42 = vmul.f32 %v5640_v29, %v753_v40  ;;  %v1495_v44 = vmul.f32 %v5645_v35, %v782_v43 }
  0xb2   :  { %v5656_v45 = vadd.f32 %v5648_v38, %v1494_v42  ;;  %4442 = vmatmul.msk.bf16.vlgmr.msra.gmra.mxu0 %vm731_vm0, %v5565_v50  ;;  %v5661_v46 = vadd.f32 %v5651_v41, %v1495_v44  ;;  %4446 = vmatmul.msk.bf16.vlgmr.msra.gmra.mxu1 %vm731_vm0, %v5565_v50 }
  0xb3   :  { %4450 = vmatmul.msk.bf16.vlgmr.msra.gmra.mxu2 %vm731_vm0, %v5565_v50 }
  0xb4   :  { %v2124_v49 = vmin.f32 %v5656_v45, 0.0  ;;  %4454 = vmatmul.msk.bf16.vlgmr.msra.gmra.mxu3 %vm731_vm0, %v5565_v50  ;;  %v2125_v52 = vmin.f32 %v5661_v46, 0.0  ;;  %v4277_v50 = vor.u32 %v4793_v57, %v4276_v56  ;;  %v3375_v57 = vperm.slane %v5703_v13, 1 }
  0xb5   :  { %vm1932_vm1 = vcmp.gt.f32.partialorder %v5656_v45, 0.0  ;;  %vm1933_vm2 = vcmp.gt.f32.partialorder %v5661_v46, 0.0 }
  0xb6   :  { %v811_v54 = vpop.f32.mrf.mxu2  ;;  %v2316_v58 = vmul.f32 1.442695, %v2124_v49  ;;  %v2318_v0 = vmul.f32 1.442695, %v2125_v52  ;;  %1155 = vmatpush.bf16.msrb.mxu2 %v4277_v50  ;;  %v3374_v49 = vperm.slane %v5701_v12, 1 }
  0xb7   :  { %v1496_v59 = vmul.f32 %v5668_v48, %v811_v54  ;;  %v840_v60 = vpop.f32.mrf.mxu3  ;;  %v755_v61 = vpop.f32.mrf.mxu0  ;;  %v4792_v50 = vld [vmem:[#allocation5 + $0x20c] sm:$0xf0] }
  0xb8   :  { %v1497_v1 = vmul.f32 %v5674_v51, %v840_v60  ;;  %v1518_v2 = vmul.f32 %v5640_v29, %v755_v61  ;;  %v784_v3 = vpop.f32.mrf.mxu1  ;;  %4834 = vpow2.f32 %v2316_v58  ;;  %v3156_v58 = vperm.slane %v5690_v7, 2  ;;  %v4268_v61 = vld [vmem:[#allocation5 + $0x1b0] sm:$0xf] }
  0xb9   :  { %v5687_v5 = vadd.f32 %v5678_v53, %v1496_v59  ;;  %v1519_v6 = vmul.f32 %v5645_v35, %v784_v3  ;;  %4836 = vpow2.f32 %v2318_v0  ;;  %v3157_v60 = vperm.slane %v5692_v8, 2 }
  0xba   :  { %v5695_v9 = vadd.f32 %v5681_v55, %v1497_v1  ;;  %v5698_v10 = vadd.f32 %v5648_v38, %v1518_v2  ;;  %v3158_v0 = vperm.slane %v5701_v12, 2 }
  0xbb   :  { %v2126_v11 = vmin.f32 %v5687_v5, 0.0  ;;  %v5706_v14 = vadd.f32 %v5651_v41, %v1519_v6  ;;  %v4269_v6 = vor.u32 %v4792_v50, %v4268_v61  ;;  %vm1934_vm3 = vcmp.gt.f32.partialorder %v5687_v5, 0.0 }
  0xbc   :  { %v2127_v15 = vmin.f32 %v5695_v9, 0.0  ;;  %v2148_v16 = vmin.f32 %v5698_v10, 0.0  ;;  %vm1935_vm4 = vcmp.gt.f32.partialorder %v5695_v9, 0.0  ;;  %vm1956_vm5 = vcmp.gt.f32.partialorder %v5698_v10, 0.0 }
  0xbd   :  { %v2320_v19 = vmul.f32 1.442695, %v2126_v11  ;;  %v2149_v20 = vmin.f32 %v5706_v14, 0.0  ;;  %1097 = vmatpush.bf16.msrb.mxu0 %v4269_v6  ;;  %vm1957_vm6 = vcmp.gt.f32.partialorder %v5706_v14, 0.0 }
  0xbe   :  { %v2322_v23 = vmul.f32 1.442695, %v2127_v15  ;;  %v2364_v25 = vmul.f32 1.442695, %v2148_v16  ;;  %v813_v26 = vpop.f32.mrf.mxu2  ;;  %v4835_v43 = vpop.eup %4834 }
  0xbf   :  { %4838 = vpow2.f32 %v2320_v19  ;;  %v2366_v31 = vmul.f32 1.442695, %v2149_v20  ;;  %v1520_v32 = vmul.f32 %v5668_v48, %v813_v26  ;;  %v842_v33 = vpop.f32.mrf.mxu3  ;;  %v758_v36 = vpop.f32.mrf.mxu0  ;;  %v4506_v62 = vadd.f32 -1.0, %v4835_v43 }
  0xc0   :  { %4840 = vpow2.f32 %v2322_v23  ;;  %v1521_v39 = vmul.f32 %v5674_v51, %v842_v33  ;;  %v1542_v40 = vmul.f32 %v5640_v29, %v758_v36  ;;  %v787_v42 = vpop.f32.mrf.mxu1  ;;  %v4837_v54 = vpop.eup %4836  ;;  %v3159_v20 = vperm.slane %v5703_v13, 2 }
  0xc1   :  { %4842 = vpow2.f32 %v2364_v25  ;;  %v5721_v44 = vadd.f32 %v5678_v53, %v1520_v32  ;;  %v1543_v52 = vmul.f32 %v5645_v35, %v787_v42  ;;  %v4507_v2 = vadd.f32 -1.0, %v4837_v54  ;;  %v4780_v54 = vld [vmem:[#allocation5 + $0x1b4] sm:$0xf] }
  0xc2   :  { %4844 = vpow2.f32 %v2366_v31  ;;  %v5726_v56 = vadd.f32 %v5681_v55, %v1521_v39  ;;  %4443 = vmatmul.msk.bf16.gmra.mxu0 %vm731_vm0, %v5575_v21  ;;  %v5734_v59 = vadd.f32 %v5648_v38, %v1542_v40  ;;  %4447 = vmatmul.msk.bf16.gmra.mxu1 %vm731_vm0, %v5575_v21  ;;  %v2892_v32 = vsel %vm1932_vm1, %v5656_v45, %v4506_v62  ;;  %v4270_v62 = vld [vmem:[#allocation5 + $0x210] sm:$0xf0] }
  0xc3   :  { %4451 = vmatmul.msk.bf16.gmra.mxu2 %vm731_vm0, %v5575_v21  ;;  %v5743_v63 = vadd.f32 %v5651_v41, %v1543_v52  ;;  %v2150_v3 = vmin.f32 %v5721_v44, 0.0  ;;  %v3420_v39 = vperm.slane %v5690_v7, 3  ;;  %v2893_v40 = vsel %vm1933_vm2, %v5661_v46, %v4507_v2 }
  0xc4   :  { %4455 = vmatmul.msk.bf16.gmra.mxu3 %vm731_vm0, %v5575_v21  ;;  %v2172_v4 = vmin.f32 %v5734_v59, 0.0  ;;  %v2151_v15 = vmin.f32 %v5726_v56, 0.0  ;;  %v3132_v46 = vmul.f32 %v3108_v17, %v2892_v32  ;;  %vm1980_vm7 = vcmp.gt.f32.partialorder %v5734_v59, 0.0 }
  0xc5   :  { %v4839_v1 = vpop.eup %4838  ;;  %v2173_v16 = vmin.f32 %v5743_v63, 0.0  ;;  %v2368_v43 = vmul.f32 1.442695, %v2150_v3  ;;  %v3421_v3 = vperm.slane %v5692_v8, 3  ;;  %vm1981_vm8 = vcmp.gt.f32.partialorder %v5743_v63, 0.0 }
  0xc6   :  { %v4841_v11 = vpop.eup %4840  ;;  %v816_v19 = vpop.f32.mrf.mxu2  ;;  %v2412_v23 = vmul.f32 1.442695, %v2172_v4  ;;  %v4508_v42 = vadd.f32 -1.0, %v4839_v1  ;;  %v2370_v50 = vmul.f32 1.442695, %v2151_v15  ;;  %v3133_v1 = vmul.f32 %v3109_v18, %v2893_v40 }
  0xc7   :  { %v4843_v21 = vpop.eup %4842  ;;  %v1544_v25 = vmul.f32 %v5668_v48, %v816_v19  ;;  %v845_v26 = vpop.f32.mrf.mxu3  ;;  %v2414_v33 = vmul.f32 1.442695, %v2173_v16  ;;  %v4509_v61 = vadd.f32 -1.0, %v4841_v11  ;;  %vm1958_vm9 = vcmp.gt.f32.partialorder %v5721_v44, 0.0 }
  0xc8   :  { %v4845_v31 = vpop.eup %4844  ;;  %v760_v36 = vpop.f32.mrf.mxu0  ;;  %4846 = vpow2.f32 %v2412_v23  ;;  %v4530_v4 = vadd.f32 -1.0, %v4843_v21  ;;  %v1545_v16 = vmul.f32 %v5674_v51, %v845_v26  ;;  %v4273_v21 = vor.u32 %v4780_v54, %v4270_v62 }
  0xc9   :  { %v789_v52 = vpop.f32.mrf.mxu1  ;;  %4848 = vpow2.f32 %v2414_v33  ;;  %v5766_v45 = vadd.f32 %v5678_v53, %v1544_v25  ;;  %v4531_v6 = vadd.f32 -1.0, %v4845_v31  ;;  %v1566_v19 = vmul.f32 %v5640_v29, %v760_v36 }
  0xca   :  { %4850 = vpow2.f32 %v2368_v43  ;;  %v5777_v11 = vadd.f32 %v5681_v55, %v1545_v16  ;;  %v2894_v23 = vsel %vm1934_vm3, %v5687_v5, %v4508_v42  ;;  %v2895_v17 = vsel %vm1935_vm4, %v5695_v9, %v4509_v61  ;;  %1126 = vmatpush.bf16.msrb.mxu1 %v4273_v21 }
  0xcb   :  { %v2174_v2 = vmin.f32 %v5766_v45, 0.0  ;;  %v5780_v15 = vadd.f32 %v5648_v38, %v1566_v19  ;;  %4852 = vpow2.f32 %v2370_v50  ;;  %v2916_v26 = vsel %vm1956_vm5, %v5698_v10, %v4530_v4 }
  0xcc   :  { %v2917_v31 = vsel %vm1957_vm6, %v5706_v14, %v4531_v6  ;;  %v2175_v32 = vmin.f32 %v5777_v11, 0.0  ;;  %v1567_v33 = vmul.f32 %v5645_v35, %v789_v52  ;;  %v3134_v36 = vmul.f32 %v3110_v22, %v2894_v23 }
  0xcd   :  { %v2416_v18 = vmul.f32 1.442695, %v2174_v2  ;;  %v2196_v42 = vmin.f32 %v5780_v15, 0.0  ;;  %v5803_v52 = vmul.f32 %v3111_v24, %v2895_v17  ;;  %v5807_v54 = vmul.f32 %v3372_v27, %v2916_v26 }
  0xce   :  { %v4847_v25 = vpop.eup %4846  ;;  %v2418_v40 = vmul.f32 1.442695, %v2175_v32  ;;  %v818_v14 = vpop.f32.mrf.mxu2  ;;  %v5811_v61 = vmul.f32 %v3373_v37, %v2917_v31  ;;  %v5823_v37 = vadd.f32 %v5651_v41, %v1567_v33  ;;  %vm1959_vm10 = vcmp.gt.f32.partialorder %v5726_v56, 0.0  ;;  %v4180_v32 = vld [vmem:[#allocation5 + $0xf8] sm:$0xf] }
  0xcf   :  { %v4849_v5 = vpop.eup %4848  ;;  %v4554_v9 = vadd.f32 -1.0, %v4847_v25  ;;  %4854 = vpow2.f32 %v2416_v18  ;;  %v847_v43 = vpop.f32.mrf.mxu3  ;;  %vm1982_vm11 = vcmp.gt.f32.partialorder %v5766_v45, 0.0  ;;  %v2460_v19 = vmul.f32 1.442695, %v2196_v42 }
  0xd0   :  { %v4555_v10 = vadd.f32 -1.0, %v4849_v5  ;;  %v763_v50 = vpop.f32.mrf.mxu0  ;;  %v4851_v62 = vpop.eup %4850  ;;  %4856 = vpow2.f32 %v2418_v40  ;;  %v1569_v6 = vmul.f32 %v5674_v51, %v847_v43  ;;  %v3422_v2 = vperm.slane %v5701_v12, 3  ;;  %v4757_v43 = vld [vmem:[#allocation5 + $0xfc] sm:$0xf] }
  0xd1   :  { %v2940_v22 = vsel %vm1980_vm7, %v5734_v59, %v4554_v9  ;;  %v792_v4 = vpop.f32.mrf.mxu1  ;;  %v4853_v59 = vpop.eup %4852  ;;  %v1590_v21 = vmul.f32 %v5640_v29, %v763_v50  ;;  %v4532_v26 = vadd.f32 -1.0, %v4851_v62  ;;  %vm1983_vm12 = vcmp.gt.f32.partialorder %v5777_v11, 0.0  ;;  %v4769_v9 = vld [vmem:[#allocation5 + $0x154] sm:$0xf0] }
  0xd2   :  { %4444 = vmatmul.msk.bf16.gmra.mxu0 %vm731_vm0, %v5585_v34  ;;  %v3180_v24 = vmul.f32 %v3156_v58, %v2940_v22  ;;  %v2941_v27 = vsel %vm1981_vm8, %v5743_v63, %v4555_v10  ;;  %4448 = vmatmul.msk.bf16.gmra.mxu1 %vm731_vm0, %v5585_v34  ;;  %v1568_v63 = vmul.f32 %v5668_v48, %v818_v14  ;;  %v4533_v33 = vadd.f32 -1.0, %v4853_v59  ;;  %v4182_v22 = vld [vmem:[#allocation5 + $0x158] sm:$0xf0] }
  0xd3   :  { %4452 = vmatmul.msk.bf16.gmra.mxu2 %vm731_vm0, %v5585_v34  ;;  %v3181_v58 = vmul.f32 %v3157_v60, %v2941_v27  ;;  %v5847_v18 = vadd.f32 %v5681_v55, %v1569_v6  ;;  %v1591_v25 = vmul.f32 %v5645_v35, %v792_v4  ;;  %v5852_v31 = vadd.f32 %v5648_v38, %v1590_v21 }
  0xd4   :  { %4456 = vmatmul.msk.bf16.gmra.mxu3 %vm731_vm0, %v5585_v34  ;;  %v5837_v16 = vadd.f32 %v3180_v24, %v3132_v46  ;;  %v5844_v60 = vadd.f32 %v5678_v53, %v1568_v63  ;;  %v2197_v46 = vmin.f32 %v5823_v37, 0.0  ;;  %4858 = vpow2.f32 %v2460_v19 }
  0xd5   :  { %v4855_v23 = vpop.eup %4854  ;;  %v5841_v17 = vadd.f32 %v3181_v58, %v3133_v1  ;;  %v2199_v5 = vmin.f32 %v5847_v18, 0.0  ;;  %v2220_v42 = vmin.f32 %v5852_v31, 0.0  ;;  %v5862_v14 = vadd.f32 %v5651_v41, %v1591_v25 }
  0xd6   :  { %v4556_v34 = vadd.f32 -1.0, %v4855_v23  ;;  %v2198_v1 = vmin.f32 %v5844_v60, 0.0  ;;  %v4857_v10 = vpop.eup %4856  ;;  %v2918_v4 = vsel %vm1958_vm9, %v5721_v44, %v4532_v26  ;;  %v2462_v59 = vmul.f32 1.442695, %v2197_v46 }
  0xd7   :  { %v4557_v62 = vadd.f32 -1.0, %v4857_v10  ;;  %v2466_v27 = vmul.f32 1.442695, %v2199_v5  ;;  %v2221_v58 = vmin.f32 %v5862_v14, 0.0  ;;  %v4181_v19 = vor.u32 %v4769_v9, %v4180_v32  ;;  %v850_v25 = vpop.f32.mrf.mxu3 }
  0xd8   :  { %v2942_v40 = vsel %vm1982_vm11, %v5766_v45, %v4556_v34  ;;  %v2464_v24 = vmul.f32 1.442695, %v2198_v1  ;;  %v2508_v45 = vmul.f32 1.442695, %v2220_v42  ;;  %v2919_v21 = vsel %vm1959_vm10, %v5726_v56, %v4533_v33  ;;  %v765_v26 = vpop.f32.mrf.mxu0  ;;  %v4172_v33 = vld [vmem:[#allocation5 + $0xf0] sm:$0xf] }
  0xd9   :  { %v3182_v50 = vmul.f32 %v3158_v0, %v2942_v40  ;;  %v2943_v6 = vsel %vm1983_vm12, %v5777_v11, %v4557_v62  ;;  %v821_v0 = vpop.f32.mrf.mxu2  ;;  %v2510_v23 = vmul.f32 1.442695, %v2221_v58  ;;  %vm2004_vm13 = vcmp.gt.f32.partialorder %v5780_v15, 0.0  ;;  %1156 = vmatpush.bf16.msrb.mxu2 %v4181_v19  ;;  %v794_v32 = vpop.f32.mrf.mxu1  ;;  %v4768_v1 = vld [vmem:[#allocation5 + $0x14c] sm:$0xf0] }
  0xda   :  { %4860 = vpow2.f32 %v2464_v24  ;;  %v3183_v44 = vmul.f32 %v3159_v20, %v2943_v6  ;;  %v4185_v11 = vor.u32 %v4757_v43, %v4182_v22  ;;  %v4859_v34 = vpop.eup %4858  ;;  %v3398_v46 = vmul.f32 %v3374_v49, %v2918_v4 }
  0xdb   :  { %v5870_v63 = vadd.f32 %v3182_v50, %v3134_v36  ;;  %4862 = vpow2.f32 %v2466_v27  ;;  %v3423_v36 = vperm.slane %v5703_v13, 3  ;;  %v1592_v20 = vmul.f32 %v5668_v48, %v821_v0 }
  0xdc   :  { %4864 = vpow2.f32 %v2508_v45  ;;  %v5885_v56 = vadd.f32 %v3183_v44, %v5803_v52  ;;  %v3399_v5 = vmul.f32 %v3375_v57, %v2919_v21  ;;  %v3228_v9 = vperm.slane %v5690_v7, 4  ;;  %1185 = vmatpush.bf16.msrb.mxu3 %v4185_v11 }
  0xdd   :  { %4866 = vpow2.f32 %v2510_v23  ;;  %v1593_v10 = vmul.f32 %v5674_v51, %v850_v25  ;;  %vm2006_vm14 = vcmp.gt.f32.partialorder %v5844_v60, 0.0  ;;  %v3229_v49 = vperm.slane %v5692_v8, 4 }
  0xde   :  { %4868 = vpow2.f32 %v2462_v59  ;;  %v5895_v52 = vadd.f32 %v5678_v53, %v1592_v20  ;;  %v1614_v40 = vmul.f32 %v5640_v29, %v765_v26  ;;  %vm2007_vm15 = vcmp.gt.f32.partialorder %v5847_v18, 0.0 }
  0xdf   :  { %v5900_v57 = vadd.f32 %v5681_v55, %v1593_v10  ;;  %v1615_v43 = vmul.f32 %v5645_v35, %v794_v32  ;;  %v4173_v22 = vor.u32 %v4768_v1, %v4172_v33  ;;  %v4578_v62 = vadd.f32 -1.0, %v4859_v34  ;;  %v4756_v32 = vld [vmem:[#allocation5 + $0xf4] sm:$0xf] }
  0xe0   :  { %v4861_v42 = vpop.eup %4860  ;;  %vm2028_vm1 = vcmp.gt.f32.partialorder %v5852_v31, 0.0  ;;  %v2222_v27 = vmin.f32 %v5895_v52, 0.0  ;;  %vm2029_vm2 = vcmp.gt.f32.partialorder %v5862_v14, 0.0  ;;  %v5914_v58 = vadd.f32 %v5648_v38, %v1614_v40  ;;  %v4174_v33 = vld [vmem:[#allocation5 + $0x150] sm:$0xf0]  ;;  %v852_v40 = vpop.f32.mrf.mxu3 }
  0xe1   :  { %v4863_v50 = vpop.eup %4862  ;;  %v4580_v24 = vadd.f32 -1.0, %v4861_v42  ;;  %v2223_v45 = vmin.f32 %v5900_v57, 0.0  ;;  %1098 = vmatpush.bf16.msrb.mxu0 %v4173_v22  ;;  %v5922_v44 = vadd.f32 %v5651_v41, %v1615_v43  ;;  %v2964_v34 = vsel %vm2004_vm13, %v5780_v15, %v4578_v62  ;;  %v823_v1 = vpop.f32.mrf.mxu2 }
  0xe2   :  { %4445 = vmatmul.msk.bf16.gmra.mxu0 %vm731_vm0, %v5595_v47  ;;  %4449 = vmatmul.msk.bf16.gmra.mxu1 %vm731_vm0, %v5595_v47  ;;  %v4865_v4 = vpop.eup %4864  ;;  %v4581_v59 = vadd.f32 -1.0, %v4863_v50  ;;  %v2512_v21 = vmul.f32 1.442695, %v2222_v27  ;;  %v2244_v43 = vmin.f32 %v5914_v58, 0.0  ;;  %v4177_v50 = vor.u32 %v4756_v32, %v4174_v33  ;;  %v797_v62 = vpop.f32.mrf.mxu1 }
  0xe3   :  { %4453 = vmatmul.msk.bf16.gmra.mxu2 %vm731_vm0, %v5595_v47  ;;  %v4867_v6 = vpop.eup %4866  ;;  %v2966_v19 = vsel %vm2006_vm14, %v5844_v60, %v4580_v24  ;;  %v4602_v0 = vadd.f32 -1.0, %v4865_v4  ;;  %vm2005_vm3 = vcmp.gt.f32.partialorder %v5823_v37, 0.0  ;;  %v3444_v24 = vmul.f32 %v3420_v39, %v2964_v34 }
  0xe4   :  { %4457 = vmatmul.msk.bf16.gmra.mxu3 %vm731_vm0, %v5595_v47  ;;  %v4869_v23 = vpop.eup %4868  ;;  %v3446_v25 = vmul.f32 %v3422_v2, %v2966_v19  ;;  %v2967_v11 = vsel %vm2007_vm15, %v5847_v18, %v4581_v59  ;;  %v4603_v26 = vadd.f32 -1.0, %v4867_v6  ;;  %v2514_v47 = vmul.f32 1.442695, %v2223_v45  ;;  %1127 = vmatpush.bf16.msrb.mxu1 %v4177_v50 }
  0xe5   :  { %v3447_v60 = vmul.f32 %v3423_v36, %v2967_v11  ;;  %v2988_v20 = vsel %vm2028_vm1, %v5852_v31, %v4602_v0  ;;  %4870 = vpow2.f32 %v2512_v21  ;;  %v4579_v42 = vadd.f32 -1.0, %v4869_v23  ;;  %v768_v31 = vpop.f32.mrf.mxu0 }
  0xe6   :  { %v5935_v2 = vadd.f32 %v3446_v25, %v3398_v46  ;;  %v3252_v10 = vmul.f32 %v3228_v9, %v2988_v20  ;;  %v2989_v18 = vsel %vm2029_vm2, %v5862_v14, %v4603_v26  ;;  %4872 = vpow2.f32 %v2514_v47  ;;  %v4084_v26 = vld [vmem:[#allocation5 + $0x38] sm:$0xf] }
  0xe7   :  { %v5940_v15 = vadd.f32 %v3447_v60, %v3399_v5  ;;  %v3253_v36 = vmul.f32 %v3229_v49, %v2989_v18  ;;  %v2245_v46 = vmin.f32 %v5922_v44, 0.0  ;;  %v1616_v9 = vmul.f32 %v5668_v48, %v823_v1  ;;  %v4745_v20 = vld [vmem:[#allocation5 + $0x94] sm:$0xf0]  ;;  %v4086_v18 = vld [vmem:[#allocation5 + $0x98] sm:$0xf0] }
  0xe8   :  { %v5944_v22 = vadd.f32 %v3252_v10, %v5837_v16  ;;  %v2556_v5 = vmul.f32 1.442695, %v2244_v43  ;;  %v1617_v49 = vmul.f32 %v5674_v51, %v852_v40  ;;  %v3230_v16 = vperm.slane %v5701_v12, 4  ;;  %v4733_v10 = vld [vmem:[#allocation5 + $0x3c] sm:$0xf] }
  0xe9   :  { %v5950_v14 = vadd.f32 %v3253_v36, %v5841_v17  ;;  %v5957_v27 = vadd.f32 %v5678_v53, %v1616_v9  ;;  %v1638_v4 = vmul.f32 %v5640_v29, %v768_v31  ;;  %v2965_v45 = vsel %vm2005_vm3, %v5823_v37, %v4579_v42  ;;  %v826_v36 = vpop.f32.mrf.mxu2 }
  0xea   :  { %v2558_v6 = vmul.f32 1.442695, %v2245_v46  ;;  %v5962_v17 = vadd.f32 %v5681_v55, %v1617_v49  ;;  %v1639_v19 = vmul.f32 %v5645_v35, %v797_v62  ;;  %vm2030_vm4 = vcmp.gt.f32.partialorder %v5895_v52, 0.0 }
  0xeb   :  { %v4871_v59 = vpop.eup %4870  ;;  %v3231_v21 = vperm.slane %v5703_v13, 4  ;;  %v2246_v23 = vmin.f32 %v5957_v27, 0.0  ;;  %4874 = vpow2.f32 %v2556_v5  ;;  %v5970_v37 = vadd.f32 %v5648_v38, %v1638_v4 }
  0xec   :  { %v4873_v0 = vpop.eup %4872  ;;  %v4604_v39 = vadd.f32 -1.0, %v4871_v59  ;;  %v2247_v11 = vmin.f32 %v5962_v17, 0.0  ;;  %vm2031_vm5 = vcmp.gt.f32.partialorder %v5900_v57, 0.0  ;;  %v5975_v60 = vadd.f32 %v5651_v41, %v1639_v19 }
  0xed   :  { %v4605_v25 = vadd.f32 -1.0, %v4873_v0  ;;  %v2560_v34 = vmul.f32 1.442695, %v2246_v23  ;;  %4876 = vpow2.f32 %v2558_v6  ;;  %v3445_v40 = vmul.f32 %v3421_v3, %v2965_v45  ;;  %v770_v59 = vpop.f32.mrf.mxu0 }
  0xee   :  { %v2990_v47 = vsel %vm2030_vm4, %v5895_v52, %v4604_v39  ;;  %v2562_v1 = vmul.f32 1.442695, %v2247_v11  ;;  %v2268_v52 = vmin.f32 %v5970_v37, 0.0  ;;  %v2269_v31 = vmin.f32 %v5975_v60, 0.0 }
  0xef   :  { %v3254_v32 = vmul.f32 %v3230_v16, %v2990_v47  ;;  %v2991_v33 = vsel %vm2031_vm5, %v5900_v57, %v4605_v25  ;;  %4878 = vpow2.f32 %v2560_v34  ;;  %v4085_v46 = vor.u32 %v4745_v20, %v4084_v26  ;;  %v855_v57 = vpop.f32.mrf.mxu3  ;;  %v6010_v25 = vld [vmem:[#allocation2] sm:$0xff] }
  0xf0   :  { %v3255_v42 = vmul.f32 %v3231_v21, %v2991_v33  ;;  %4880 = vpow2.f32 %v2562_v1  ;;  %v5986_v50 = vadd.f32 %v3444_v24, %v5807_v54  ;;  %v2604_v3 = vmul.f32 1.442695, %v2268_v52 }
  0xf1   :  { %v5982_v43 = vadd.f32 %v3254_v32, %v5870_v63  ;;  %v4089_v62 = vor.u32 %v4733_v10, %v4086_v18  ;;  %v4875_v5 = vpop.eup %4874  ;;  %v3492_v49 = vperm.slane %v5690_v7, 5  ;;  %v3493_v16 = vperm.slane %v5692_v8, 5  ;;  %1157 = vmatpush.bf16.msrb.mxu2 %v4085_v46 }
  0xf2   :  { %v5989_v9 = vadd.f32 %v3255_v42, %v5885_v56  ;;  %v2606_v63 = vmul.f32 1.442695, %v2269_v31  ;;  %v1640_v4 = vmul.f32 %v5668_v48, %v826_v36  ;;  %v5995_v45 = vadd.f32 %v3445_v40, %v5811_v61  ;;  %v799_v31 = vpop.f32.mrf.mxu1 }
  0xf3   :  { %vm2052_vm6 = vcmp.gt.f32.partialorder %v5914_v58, 0.0  ;;  %4882 = vpow2.f32 %v2604_v3  ;;  %1186 = vmatpush.bf16.msrb.mxu3 %v4089_v62  ;;  %v1641_v54 = vmul.f32 %v5674_v51, %v855_v57  ;;  %v4877_v56 = vpop.eup %4876  ;;  %vm2053_vm7 = vcmp.gt.f32.partialorder %v5922_v44, 0.0 }
  0xf4   :  { %v3494_v24 = vperm.slane %v5701_v12, 5  ;;  %v3495_v6 = vperm.slane %v5703_v13, 5  ;;  %4884 = vpow2.f32 %v2606_v63  ;;  %v6003_v19 = vadd.f32 %v5678_v53, %v1640_v4  ;;  %4466 = vmatmul.msk.bf16.vlgmr.msrb.gmra.mxu2 %vm731_vm0, %v6010_v25 }
  0xf5   :  { %v4879_v0 = vpop.eup %4878  ;;  %v4626_v61 = vadd.f32 -1.0, %v4875_v5  ;;  %v3300_v39 = vperm.slane %v5690_v7, 6  ;;  %v6007_v21 = vadd.f32 %v5681_v55, %v1641_v54  ;;  %v1662_v23 = vmul.f32 %v5640_v29, %v770_v59  ;;  %v4076_v5 = vld [vmem:[#allocation5 + $0x30] sm:$0xf]  ;;  %v4732_v54 = vld [vmem:[#allocation5 + $0x34] sm:$0xf] }
  0xf6   :  { %v4881_v11 = vpop.eup %4880  ;;  %vm2054_vm8 = vcmp.gt.f32.partialorder %v5957_v27, 0.0  ;;  %v4628_v26 = vadd.f32 -1.0, %v4879_v0  ;;  %vm2055_vm9 = vcmp.gt.f32.partialorder %v5962_v17, 0.0  ;;  %v2270_v47 = vmin.f32 %v6003_v19, 0.0  ;;  %4470 = vmatmul.msk.bf16.vlgmr.msrb.gmra.mxu3 %vm731_vm0, %v6010_v25 }
  0xf7   :  { %v4629_v34 = vadd.f32 -1.0, %v4881_v11  ;;  %vm2076_vm10 = vcmp.gt.f32.partialorder %v5970_v37, 0.0  ;;  %v3301_v29 = vperm.slane %v5692_v8, 6  ;;  %v2271_v20 = vmin.f32 %v6007_v21, 0.0 }
  0xf8   :  { %v4627_v32 = vadd.f32 -1.0, %v4877_v56  ;;  %v3014_v33 = vsel %vm2054_vm8, %v5957_v27, %v4628_v26  ;;  %v2608_v1 = vmul.f32 1.442695, %v2270_v47  ;;  %v6024_v10 = vadd.f32 %v5648_v38, %v1662_v23  ;;  %v4078_v56 = vld [vmem:[#allocation5 + $0x90] sm:$0xf0] }
  0xf9   :  { %v4883_v18 = vpop.eup %4882  ;;  %v3012_v40 = vsel %vm2052_vm6, %v5914_v58, %v4626_v61  ;;  %v3518_v42 = vmul.f32 %v3494_v24, %v3014_v33  ;;  %v3015_v52 = vsel %vm2055_vm9, %v5962_v17, %v4629_v34  ;;  %v2610_v36 = vmul.f32 1.442695, %v2271_v20  ;;  %v4744_v58 = vld [vmem:[#allocation5 + $0x8c] sm:$0xf0]  ;;  %v6073_v33 = vld [vmem:[#allocation13] sm:$0xff] }
  0xfa   :  { %v4885_v46 = vpop.eup %4884  ;;  %v3519_v57 = vmul.f32 %v3495_v6, %v3015_v52  ;;  %v4650_v3 = vadd.f32 -1.0, %v4883_v18  ;;  %vm2077_vm11 = vcmp.gt.f32.partialorder %v5975_v60, 0.0  ;;  %4886 = vpow2.f32 %v2608_v1  ;;  %v6064_v34 = vld [vmem:[#allocation11] sm:$0xff] }
  0xfb   :  { %v6032_v27 = vadd.f32 %v3518_v42, %v5935_v2  ;;  %v4651_v38 = vadd.f32 -1.0, %v4885_v46  ;;  %4888 = vpow2.f32 %v2610_v36  ;;  %v2292_v62 = vmin.f32 %v6024_v10, 0.0  ;;  %v828_v2 = vpop.f32.mrf.mxu2  ;;  %v869_v36 = vpop.f32.mrf.mxu0 }
  0xfc   :  { %v3516_v63 = vmul.f32 %v3492_v49, %v3012_v40  ;;  %v6036_v17 = vadd.f32 %v3519_v57, %v5940_v15  ;;  %v3036_v4 = vsel %vm2076_vm10, %v5970_v37, %v4650_v3  ;;  %v1663_v59 = vmul.f32 %v5645_v35, %v799_v31  ;;  %v6092_v3 = vld [vmem:[#allocation2 + $0x8] sm:$0xff] }
  0xfd   :  { %v3013_v24 = vsel %vm2053_vm7, %v5922_v44, %v4627_v32  ;;  %v3324_v6 = vmul.f32 %v3300_v39, %v3036_v4  ;;  %v3037_v49 = vsel %vm2077_vm11, %v5975_v60, %v4651_v38  ;;  %v2652_v15 = vmul.f32 1.442695, %v2292_v62  ;;  %v857_v39 = vpop.f32.mrf.mxu3 }
  0xfe   :  { %v3325_v0 = vmul.f32 %v3301_v29, %v3037_v49  ;;  %v3302_v61 = vperm.slane %v5701_v12, 6  ;;  %v6050_v37 = vadd.f32 %v5651_v41, %v1663_v59  ;;  %v4077_v35 = vor.u32 %v4744_v58, %v4076_v5  ;;  %v898_v58 = vpop.f32.mrf.mxu1 }
  0xff   :  { %v6053_v23 = vadd.f32 %v3324_v6, %v5944_v22  ;;  %4890 = vpow2.f32 %v2652_v15  ;;  %v4081_v11 = vor.u32 %v4732_v54, %v4078_v56  ;;  %v1664_v44 = vmul.f32 %v5668_v48, %v828_v2 }
 0x100   :  { %v4887_v26 = vpop.eup %4886  ;;  %v6058_v60 = vmul.f32 %v3493_v16, %v3013_v24  ;;  %v6061_v47 = vadd.f32 %v3325_v0, %v5950_v14  ;;  %v3303_v41 = vperm.slane %v5703_v13, 6  ;;  %v2293_v22 = vmin.f32 %v6050_v37, 0.0  ;;  %1099 = vmatpush.bf16.msrb.mxu0 %v4077_v35 }
 0x101   :  { %v4889_v29 = vpop.eup %4888  ;;  %v3540_v20 = vadd.f32 %v3516_v63, %v5986_v50  ;;  %v4652_v48 = vadd.f32 -1.0, %v4887_v26  ;;  %v3564_v32 = vperm.slane %v5690_v7, 7  ;;  %1128 = vmatpush.bf16.msrb.mxu1 %v4081_v11  ;;  %v6070_v16 = vadd.f32 %v5678_v53, %v1664_v44  ;;  %v4807_v26 = vld [vmem:[#allocation5 + $0x28c] sm:$0xf] }
 0x102   :  { %vm2078_vm12 = vcmp.gt.f32.partialorder %v6003_v19, 0.0  ;;  %v4653_v14 = vadd.f32 -1.0, %v4889_v29  ;;  %v2654_v1 = vmul.f32 1.442695, %v2293_v22  ;;  %v1665_v18 = vmul.f32 %v5674_v51, %v857_v39  ;;  %v4819_v39 = vld [vmem:[#allocation5 + $0x2e4] sm:$0xf0] }
 0x103   :  { %v3038_v40 = vsel %vm2078_vm12, %v6003_v19, %v4652_v48  ;;  %vm2079_vm13 = vcmp.gt.f32.partialorder %v6007_v21, 0.0  ;;  %v3666_v50 = vperm.slane %v6064_v34, 0  ;;  %v2294_v7 = vmin.f32 %v6070_v16, 0.0  ;;  %4458 = vmatmul.msk.bf16.vlgmr.msrb.gmra.mxu0 %vm731_vm0, %v6010_v25  ;;  %v927_v24 = vpop.f32.mrf.mxu2 }
 0x104   :  { %v3326_v53 = vmul.f32 %v3302_v61, %v3038_v40  ;;  %v3039_v42 = vsel %vm2079_vm13, %v6007_v21, %v4653_v14  ;;  %4892 = vpow2.f32 %v2654_v1  ;;  %v6084_v52 = vadd.f32 %v5681_v55, %v1665_v18  ;;  %4462 = vmatmul.msk.bf16.vlgmr.msrb.gmra.mxu1 %vm731_vm0, %v6010_v25  ;;  %4467 = vmatmul.msk.bf16.gmra.mxu2 %vm731_vm0, %v6092_v3  ;;  %v4388_v61 = vld [vmem:[#allocation5 + $0x288] sm:$0xf] }
 0x105   :  { %v4891_v51 = vpop.eup %4890  ;;  %v3327_v19 = vmul.f32 %v3303_v41, %v3039_v42  ;;  %v3744_v31 = vperm.slane %v6073_v33, 0  ;;  %v2656_v46 = vmul.f32 1.442695, %v2294_v7  ;;  %v6090_v57 = vperm.slane %v5637_v28, 4  ;;  %v4390_v41 = vld [vmem:[#allocation5 + $0x2e8] sm:$0xf0]  ;;  %v871_v42 = vpop.f32.mrf.mxu0 }
 0x106   :  { %v6097_v55 = vadd.f32 %v3326_v53, %v5982_v43  ;;  %vm2100_vm14 = vcmp.gt.f32.partialorder %v6024_v10, 0.0  ;;  %v4674_v21 = vadd.f32 -1.0, %v4891_v51  ;;  %v2295_v25 = vmin.f32 %v6084_v52, 0.0  ;;  %4471 = vmatmul.msk.bf16.gmra.mxu3 %vm731_vm0, %v6092_v3 }
 0x107   :  { %v6104_v38 = vadd.f32 %v3327_v19, %v5989_v9  ;;  %4894 = vpow2.f32 %v2656_v46  ;;  %v1498_v62 = vmul.f32 %v6090_v57, %v869_v36  ;;  %v6108_v5 = vperm.slane %v5642_v30, 4  ;;  %v956_v19 = vpop.f32.mrf.mxu3 }
 0x108   :  { %v3060_v43 = vsel %vm2100_vm14, %v6024_v10, %v4674_v21  ;;  %v3565_v63 = vperm.slane %v5692_v8, 7  ;;  %v2658_v4 = vmul.f32 1.442695, %v2295_v25  ;;  %v6113_v59 = vperm.slane %v5637_v28, 5 }
 0x109   :  { %v3588_v54 = vmul.f32 %v3564_v32, %v3060_v43  ;;  %v3667_v56 = vperm.slane %v6064_v34, 1  ;;  %v6117_v9 = vadd.f32 %v6108_v5, %v1498_v62  ;;  %v6120_v2 = vperm.slane %v5642_v30, 5  ;;  %v5268_v62 = vld [vmem:[#allocation7] sm:$0xff] }
 0x10a   :  { %v4893_v6 = vpop.eup %4892  ;;  %vm2101_vm15 = vcmp.gt.f32.partialorder %v6050_v37, 0.0  ;;  %4896 = vpow2.f32 %v2658_v4  ;;  %v1499_v8 = vmul.f32 %v6113_v59, %v898_v58  ;;  %v6125_v10 = vperm.slane %v5637_v28, 6 }
 0x10b   :  { %v3612_v49 = vadd.f32 %v3588_v54, %v3540_v20  ;;  %v4675_v15 = vadd.f32 -1.0, %v4893_v6  ;;  %v3566_v0 = vperm.slane %v5701_v12, 7  ;;  %v6129_v35 = vperm.slane %v5642_v30, 6  ;;  %v5269_v6 = vld [vmem:[#allocation8] sm:$0xff] }
 0x10c   :  { %v3541_v11 = vadd.f32 %v6058_v60, %v5995_v45  ;;  %v6134_v44 = vadd.f32 %v6120_v2, %v1499_v8  ;;  %v1500_v28 = vmul.f32 %v6125_v10, %v927_v24  ;;  %v2128_v30 = vmin.f32 %v6117_v9, 0.0 }
 0x10d   :  { %v4895_v22 = vpop.eup %4894  ;;  %v3636_v29 = vadd.f32 %v3612_v49, %v6053_v23  ;;  %v3061_v12 = vsel %vm2101_vm15, %v6050_v37, %v4675_v15  ;;  %v4389_v20 = vor.u32 %v4819_v39, %v4388_v61  ;;  %v3745_v45 = vperm.slane %v6073_v33, 1  ;;  %v900_v39 = vpop.f32.mrf.mxu1 }
 0x10e   :  { %v3589_v48 = vmul.f32 %v3565_v63, %v3061_v12  ;;  %v4676_v60 = vadd.f32 -1.0, %v4895_v22  ;;  %v2129_v32 = vmin.f32 %v6134_v44, 0.0  ;;  %vm2102_vm1 = vcmp.gt.f32.partialorder %v6070_v16, 0.0  ;;  %v6196_v12 = vld [vmem:[#allocation10 + $0x28] sm:$0xff] }
 0x10f   :  { %v3714_v14 = vmul.f32 %v3666_v50, %v3636_v29  ;;  %1270 = vmatpush.bf16.msra.mxu2 %v4389_v20  ;;  %v4393_v1 = vor.u32 %v4807_v26, %v4390_v41  ;;  %v6146_v23 = vadd.f32 %v6129_v35, %v1500_v28  ;;  %v3668_v7 = vperm.slane %v6064_v34, 2  ;;  %v6190_v26 = vld [vmem:[#allocation10 + $0x20] sm:$0xff] }
 0x110   :  { %v4897_v18 = vpop.eup %4896  ;;  %v3613_v40 = vadd.f32 %v3589_v48, %v3541_v11  ;;  %v3062_v37 = vsel %vm2102_vm1, %v6070_v16, %v4676_v60  ;;  %v3567_v53 = vperm.slane %v5703_v13, 7  ;;  %vm2103_vm2 = vcmp.gt.f32.partialorder %v6084_v52, 0.0 }
 0x111   :  { %v3590_v36 = vmul.f32 %v3566_v0, %v3062_v37  ;;  %v4677_v50 = vadd.f32 -1.0, %v4897_v18  ;;  %v2324_v51 = vmul.f32 1.442695, %v2128_v30  ;;  %1299 = vmatpush.bf16.msra.mxu3 %v4393_v1  ;;  %v2326_v21 = vmul.f32 1.442695, %v2129_v32 }
 0x112   :  { %v3637_v46 = vadd.f32 %v3613_v40, %v6061_v47  ;;  %v2130_v25 = vmin.f32 %v6146_v23, 0.0  ;;  %v6154_v58 = vperm.slane %v5268_v62, 7  ;;  %v6158_v16 = vadd.f32 %v3744_v31, %v3714_v14  ;;  %v4380_v32 = vld [vmem:[#allocation5 + $0x280] sm:$0xf]  ;;  %v4806_v18 = vld [vmem:[#allocation5 + $0x284] sm:$0xf] }
 0x113   :  { %v3614_v13 = vadd.f32 %v3590_v36, %v6032_v27  ;;  %v3063_v43 = vsel %vm2103_vm2, %v6084_v52, %v4677_v50  ;;  %v1522_v63 = vmul.f32 %v6090_v57, %v871_v42  ;;  %4459 = vmatmul.msk.bf16.gmra.mxu0 %vm731_vm0, %v6092_v3  ;;  %4898 = vpow2.f32 %v2324_v51  ;;  %v6171_v52 = vld [vmem:[#allocation2 + $0x10] sm:$0xff]  ;;  %v4818_v1 = vld [vmem:[#allocation5 + $0x2dc] sm:$0xf0]  ;;  %v929_v50 = vpop.f32.mrf.mxu2  ;;  %v6213_v62 = vld [vmem:[#allocation10 + $0x38] sm:$0xff] }
 0x114   :  { %v3715_v47 = vmul.f32 %v3667_v56, %v3637_v46  ;;  %v3591_v4 = vmul.f32 %v3567_v53, %v3063_v43  ;;  %v1501_v54 = vmul.f32 %v6154_v58, %v956_v19  ;;  %4463 = vmatmul.msk.bf16.gmra.mxu1 %vm731_vm0, %v6092_v3  ;;  %v2328_v31 = vmul.f32 1.442695, %v2130_v25  ;;  %4468 = vmatmul.msk.bf16.gmra.mxu2 %vm731_vm0, %v6171_v52  ;;  %v4382_v53 = vld [vmem:[#allocation5 + $0x2e0] sm:$0xf0]  ;;  %v874_v25 = vpop.f32.mrf.mxu0 }
 0x115   :  { %v3638_v24 = vadd.f32 %v3614_v13, %v6097_v55  ;;  %v6169_v27 = vperm.slane %v5269_v6, 7  ;;  %v3746_v56 = vperm.slane %v6073_v33, 2  ;;  %4900 = vpow2.f32 %v2326_v21  ;;  %v6211_v46 = vld [vmem:[#allocation10 + $0x30] sm:$0xff]  ;;  %v958_v21 = vpop.f32.mrf.mxu3 }
 0x116   :  { %v6175_v8 = vadd.f32 %v3745_v45, %v3715_v47  ;;  %v3615_v49 = vadd.f32 %v3591_v4, %v6036_v17  ;;  %4472 = vmatmul.msk.bf16.gmra.mxu3 %vm731_vm0, %v6171_v52  ;;  %v3840_v3 = vmin.f32 %v6158_v16, 0.0  ;;  %v6186_v0 = vadd.f32 %v6108_v5, %v1522_v63 }
 0x117   :  { %v3716_v55 = vmul.f32 %v3668_v7, %v3638_v24  ;;  %v6183_v15 = vadd.f32 %v6169_v27, %v1501_v54  ;;  %v3669_v11 = vperm.slane %v6064_v34, 3  ;;  %4902 = vpow2.f32 %v2328_v31  ;;  %v903_v24 = vpop.f32.mrf.mxu1 }
 0x118   :  { %v3639_v61 = vadd.f32 %v3615_v49, %v6104_v38  ;;  %v3841_v17 = vmin.f32 %v6175_v8, 0.0  ;;  %v3864_v22 = vmul.f32 1.442695, %v3840_v3  ;;  %v2152_v30 = vmin.f32 %v6186_v0, 0.0 }
 0x119   :  { %v2131_v41 = vmin.f32 %v6183_v15, 0.0  ;;  %v4899_v28 = vpop.eup %4898  ;;  %v6194_v29 = vadd.f32 %v3746_v56, %v3716_v55  ;;  %v1523_v38 = vmul.f32 %v6113_v59, %v900_v39  ;;  %v3747_v48 = vperm.slane %v6073_v33, 3 }
 0x11a   :  { %v3717_v34 = vmul.f32 %v3669_v11, %v3639_v61  ;;  %v3112_v45 = vperm.slane %v6190_v26, 0  ;;  %v2372_v14 = vmul.f32 1.442695, %v2152_v30  ;;  %v3866_v40 = vmul.f32 1.442695, %v3841_v17 }
 0x11b   :  { %v4901_v20 = vpop.eup %4900  ;;  %v2330_v60 = vmul.f32 1.442695, %v2131_v41  ;;  %v4510_v37 = vadd.f32 -1.0, %v4899_v28  ;;  %v3113_v7 = vperm.slane %v6196_v12, 0  ;;  %4904 = vpow2.f32 %v3864_v22  ;;  %v6239_v41 = vld [vmem:[#allocation2 + $0x18] sm:$0xff] }
 0x11c   :  { %v3842_v36 = vmin.f32 %v6194_v29, 0.0  ;;  %vm1936_vm3 = vcmp.gt.f32.partialorder %v6117_v9, 0.0  ;;  %v6206_v33 = vadd.f32 %v6120_v2, %v1523_v38  ;;  %v6208_v51 = vadd.f32 %v3747_v48, %v3717_v34  ;;  %v4795_v48 = vld [vmem:[#allocation5 + $0x224] sm:$0xf0] }
 0x11d   :  { %v4903_v42 = vpop.eup %4902  ;;  %vm1937_vm4 = vcmp.gt.f32.partialorder %v6134_v44, 0.0  ;;  %v4511_v19 = vadd.f32 -1.0, %v4901_v20  ;;  %4906 = vpow2.f32 %v2330_v60  ;;  %v4381_v43 = vor.u32 %v4818_v1, %v4380_v32  ;;  %v4783_v1 = vld [vmem:[#allocation5 + $0x1cc] sm:$0xf] }
 0x11e   :  { %4908 = vpow2.f32 %v2372_v14  ;;  %v2153_v13 = vmin.f32 %v6206_v33, 0.0  ;;  %v4385_v63 = vor.u32 %v4806_v18, %v4382_v53  ;;  %v2896_v47 = vsel %vm1936_vm3, %v6117_v9, %v4510_v37  ;;  %v4294_v53 = vld [vmem:[#allocation5 + $0x228] sm:$0xf0] }
 0x11f   :  { %4910 = vpow2.f32 %v3866_v40  ;;  %v4512_v4 = vadd.f32 -1.0, %v4903_v42  ;;  %v1524_v54 = vmul.f32 %v6125_v10, %v929_v50  ;;  %v3868_v31 = vmul.f32 1.442695, %v3842_v36  ;;  %1212 = vmatpush.bf16.msra.mxu0 %v4381_v43 }
 0x120   :  { %v3114_v6 = vperm.slane %v6211_v46, 0  ;;  %1241 = vmatpush.bf16.msra.mxu1 %v4385_v63  ;;  %v1525_v56 = vmul.f32 %v6154_v58, %v958_v21  ;;  %v1546_v49 = vmul.f32 %v6090_v57, %v874_v25  ;;  %v2897_v3 = vsel %vm1937_vm4, %v6134_v44, %v4511_v19  ;;  %v932_v21 = vpop.f32.mrf.mxu2  ;;  %v961_v25 = vpop.f32.mrf.mxu3 }
 0x121   :  { %vm1938_vm5 = vcmp.gt.f32.partialorder %v6146_v23, 0.0  ;;  %v3115_v9 = vperm.slane %v6213_v62, 0  ;;  %v2374_v55 = vmul.f32 1.442695, %v2153_v13  ;;  %v4905_v61 = vpop.eup %4904  ;;  %v3843_v11 = vmin.f32 %v6208_v51, 0.0 }
 0x122   :  { %v6233_v39 = vmul.f32 %v3112_v45, %v2896_v47  ;;  %v6236_v17 = vadd.f32 %v6108_v5, %v1546_v49  ;;  %v1547_v44 = vmul.f32 %v6113_v59, %v903_v24  ;;  %v2898_v22 = vsel %vm1938_vm5, %v6146_v23, %v4512_v4  ;;  %v4292_v23 = vld [vmem:[#allocation5 + $0x1c8] sm:$0xf]  ;;  %v876_v4 = vpop.f32.mrf.mxu0 }
 0x123   :  { %4460 = vmatmul.msk.bf16.gmra.mxu0 %vm731_vm0, %v6171_v52  ;;  %v4907_v28 = vpop.eup %4906  ;;  %vm1939_vm6 = vcmp.gt.f32.partialorder %v6183_v15, 0.0  ;;  %vm1960_vm7 = vcmp.gt.f32.partialorder %v6186_v0, 0.0  ;;  %4912 = vpow2.f32 %v3868_v31  ;;  %v6251_v38 = vmul.f32 %v3113_v7, %v2897_v3 }
 0x124   :  { %4464 = vmatmul.msk.bf16.gmra.mxu1 %vm731_vm0, %v6171_v52  ;;  %4469 = vmatmul.msk.bf16.gmra.mxu2 %vm731_vm0, %v6239_v41  ;;  %v6247_v52 = vadd.f32 %v6129_v35, %v1524_v54  ;;  %v4909_v30 = vpop.eup %4908  ;;  %v3376_v20 = vperm.slane %v6190_v26, 1  ;;  %v6255_v34 = vadd.f32 %v6169_v27, %v1525_v56  ;;  %v6257_v60 = vadd.f32 -1.0, %v4905_v61  ;;  %v4284_v61 = vld [vmem:[#allocation5 + $0x1c0] sm:$0xf] }
 0x125   :  { %v4911_v45 = vpop.eup %4910  ;;  %4914 = vpow2.f32 %v2374_v55  ;;  %v3377_v32 = vperm.slane %v6196_v12, 1  ;;  %v2176_v14 = vmin.f32 %v6236_v17, 0.0  ;;  %v3870_v18 = vmul.f32 1.442695, %v3843_v11  ;;  %v905_v55 = vpop.f32.mrf.mxu1  ;;  %v4794_v11 = vld [vmem:[#allocation5 + $0x21c] sm:$0xf0] }
 0x126   :  { %4473 = vmatmul.msk.bf16.gmra.mxu3 %vm731_vm0, %v6239_v41  ;;  %v6261_v40 = vmul.f32 %v3114_v6, %v2898_v22  ;;  %v3378_v37 = vperm.slane %v6211_v46, 1  ;;  %v6265_v7 = vadd.f32 %v6120_v2, %v1547_v44  ;;  %v4513_v42 = vadd.f32 -1.0, %v4907_v28 }
 0x127   :  { %v4534_v36 = vadd.f32 -1.0, %v4909_v30  ;;  %v2154_v50 = vmin.f32 %v6247_v52, 0.0  ;;  %v2420_v19 = vmul.f32 1.442695, %v2176_v14  ;;  %v6268_v13 = vadd.f32 -1.0, %v4911_v45 }
 0x128   :  { %v2155_v43 = vmin.f32 %v6255_v34, 0.0  ;;  %v3379_v63 = vperm.slane %v6213_v62, 1  ;;  %v2177_v47 = vmin.f32 %v6265_v7, 0.0  ;;  %vm1961_vm8 = vcmp.gt.f32.partialorder %v6206_v33, 0.0 }
 0x129   :  { %4916 = vpow2.f32 %v2420_v19  ;;  %v3160_v54 = vperm.slane %v6190_v26, 2  ;;  %v4293_v24 = vor.u32 %v4795_v48, %v4292_v23  ;;  %v4297_v31 = vor.u32 %v4783_v1, %v4294_v53  ;;  %v6275_v6 = vpop.eup %4912 }
 0x12a   :  { %4918 = vpow2.f32 %v3870_v18  ;;  %v2422_v56 = vmul.f32 1.442695, %v2177_v47  ;;  %v1548_v49 = vmul.f32 %v6125_v10, %v932_v21  ;;  %v1549_v3 = vmul.f32 %v6154_v58, %v961_v25 }
 0x12b   :  { %v4915_v44 = vpop.eup %4914  ;;  %v2899_v28 = vsel %vm1939_vm6, %v6183_v15, %v4513_v42  ;;  %v2920_v22 = vsel %vm1960_vm7, %v6186_v0, %v4534_v36  ;;  %v2376_v30 = vmul.f32 1.442695, %v2154_v50  ;;  %1271 = vmatpush.bf16.msra.mxu2 %v4293_v24  ;;  %1300 = vmatpush.bf16.msra.mxu3 %v4297_v31  ;;  %v1570_v23 = vmul.f32 %v6090_v57, %v876_v4  ;;  %v4286_v24 = vld [vmem:[#allocation5 + $0x220] sm:$0xf0] }
 0x12c   :  { %v2378_v48 = vmul.f32 1.442695, %v2155_v43  ;;  %4920 = vpow2.f32 %v2422_v56  ;;  %v6287_v45 = vadd.f32 %v6129_v35, %v1548_v49  ;;  %v6290_v14 = vadd.f32 %v6169_v27, %v1549_v3  ;;  %v4782_v43 = vld [vmem:[#allocation5 + $0x1c4] sm:$0xf]  ;;  %v934_v3 = vpop.f32.mrf.mxu2 }
 0x12d   :  { %vm1984_vm9 = vcmp.gt.f32.partialorder %v6236_v17, 0.0  ;;  %v6294_v15 = vadd.f32 %v6108_v5, %v1570_v23  ;;  %v1571_v0 = vmul.f32 %v6113_v59, %v905_v55  ;;  %v4285_v1 = vor.u32 %v4794_v11, %v4284_v61 }
 0x12e   :  { %v6299_v18 = vmul.f32 %v3115_v9, %v2899_v28  ;;  %v6301_v53 = vmul.f32 %v3376_v20, %v2920_v22  ;;  %v4535_v42 = vadd.f32 -1.0, %v4915_v44  ;;  %v2178_v36 = vmin.f32 %v6287_v45, 0.0  ;;  %v963_v28 = vpop.f32.mrf.mxu3 }
 0x12f   :  { %v4917_v50 = vpop.eup %4916  ;;  %4922 = vpow2.f32 %v2376_v30  ;;  %v3161_v19 = vperm.slane %v6196_v12, 2  ;;  %v2179_v21 = vmin.f32 %v6290_v14, 0.0  ;;  %v2200_v25 = vmin.f32 %v6294_v15, 0.0  ;;  %1213 = vmatpush.bf16.msra.mxu0 %v4285_v1  ;;  %v908_v1 = vpop.f32.mrf.mxu1 }
 0x130   :  { %v6307_v47 = vpop.eup %4918  ;;  %4924 = vpow2.f32 %v2378_v48  ;;  %v4558_v9 = vadd.f32 -1.0, %v4917_v50  ;;  %v2424_v4 = vmul.f32 1.442695, %v2178_v36  ;;  %v6310_v20 = vadd.f32 %v6120_v2, %v1571_v0  ;;  %v879_v48 = vpop.f32.mrf.mxu0 }
 0x131   :  { %vm1985_vm10 = vcmp.gt.f32.partialorder %v6265_v7, 0.0  ;;  %v3162_v31 = vperm.slane %v6211_v46, 2  ;;  %v2426_v56 = vmul.f32 1.442695, %v2179_v21  ;;  %v2468_v49 = vmul.f32 1.442695, %v2200_v25 }
 0x132   :  { %v4921_v55 = vpop.eup %4920  ;;  %v2921_v61 = vsel %vm1961_vm8, %v6206_v33, %v4535_v42  ;;  %v2944_v11 = vsel %vm1984_vm9, %v6236_v17, %v4558_v9  ;;  %4926 = vpow2.f32 %v2424_v4  ;;  %v3163_v44 = vperm.slane %v6213_v62, 2 }
 0x133   :  { %4461 = vmatmul.msk.bf16.gmra.mxu0 %vm731_vm0, %v6239_v41  ;;  %v3184_v22 = vmul.f32 %v3160_v54, %v2944_v11  ;;  %v4559_v30 = vadd.f32 -1.0, %v4921_v55  ;;  %4928 = vpow2.f32 %v2426_v56  ;;  %v2201_v23 = vmin.f32 %v6310_v20, 0.0 }
 0x134   :  { %4465 = vmatmul.msk.bf16.gmra.mxu1 %vm731_vm0, %v6239_v41  ;;  %vm1962_vm11 = vcmp.gt.f32.partialorder %v6247_v52, 0.0  ;;  %4930 = vpow2.f32 %v2468_v49  ;;  %v3424_v41 = vperm.slane %v6190_v26, 3  ;;  %v4289_v33 = vor.u32 %v4782_v43, %v4286_v24 }
 0x135   :  { %v1572_v0 = vmul.f32 %v6125_v10, %v934_v3  ;;  %v4923_v17 = vpop.eup %4922  ;;  %vm1963_vm12 = vcmp.gt.f32.partialorder %v6255_v34, 0.0  ;;  %v6331_v42 = vadd.f32 %v3184_v22, %v6233_v39  ;;  %v2945_v54 = vsel %vm1985_vm10, %v6265_v7, %v4559_v30 }
 0x136   :  { %v2470_v36 = vmul.f32 1.442695, %v2201_v23  ;;  %v1573_v50 = vmul.f32 %v6154_v58, %v963_v28  ;;  %v4925_v21 = vpop.eup %4924  ;;  %v6339_v25 = vmul.f32 %v3377_v32, %v2921_v61  ;;  %v3185_v43 = vmul.f32 %v3161_v19, %v2945_v54  ;;  %1242 = vmatpush.bf16.msra.mxu1 %v4289_v33 }
 0x137   :  { %v6342_v9 = vadd.f32 %v6129_v35, %v1572_v0  ;;  %v1594_v39 = vmul.f32 %v6090_v57, %v879_v48  ;;  %v3425_v4 = vperm.slane %v6196_v12, 3  ;;  %v1595_v24 = vmul.f32 %v6113_v59, %v908_v1  ;;  %v4196_v1 = vld [vmem:[#allocation5 + $0x108] sm:$0xf] }
 0x138   :  { %4932 = vpow2.f32 %v2470_v36  ;;  %v6347_v7 = vadd.f32 %v6169_v27, %v1573_v50  ;;  %v4927_v56 = vpop.eup %4926  ;;  %v4536_v49 = vadd.f32 -1.0, %v4923_v17  ;;  %v6351_v32 = vadd.f32 %v3185_v43, %v6251_v38  ;;  %v4771_v43 = vld [vmem:[#allocation5 + $0x164] sm:$0xf0] }
 0x139   :  { %v2202_v19 = vmin.f32 %v6342_v9, 0.0  ;;  %v6355_v3 = vadd.f32 %v6108_v5, %v1594_v39  ;;  %v4929_v55 = vpop.eup %4928  ;;  %vm1986_vm13 = vcmp.gt.f32.partialorder %v6287_v45, 0.0  ;;  %v4560_v61 = vadd.f32 -1.0, %v4927_v56  ;;  %v4759_v56 = vld [vmem:[#allocation5 + $0x10c] sm:$0xf] }
 0x13a   :  { %v2203_v11 = vmin.f32 %v6347_v7, 0.0  ;;  %v6360_v28 = vadd.f32 %v6120_v2, %v1595_v24  ;;  %v4931_v22 = vpop.eup %4930  ;;  %v4537_v30 = vadd.f32 -1.0, %v4925_v21  ;;  %v4561_v23 = vadd.f32 -1.0, %v4929_v55  ;;  %v937_v55 = vpop.f32.mrf.mxu2 }
 0x13b   :  { %v2472_v48 = vmul.f32 1.442695, %v2202_v19  ;;  %v2224_v38 = vmin.f32 %v6355_v3, 0.0  ;;  %v2946_v33 = vsel %vm1986_vm13, %v6287_v45, %v4560_v61  ;;  %vm1987_vm14 = vcmp.gt.f32.partialorder %v6290_v14, 0.0  ;;  %v4198_v19 = vld [vmem:[#allocation5 + $0x168] sm:$0xf0] }
 0x13c   :  { %vm2008_vm15 = vcmp.gt.f32.partialorder %v6294_v15, 0.0  ;;  %v4582_v0 = vadd.f32 -1.0, %v4931_v22  ;;  %v3186_v17 = vmul.f32 %v3162_v31, %v2946_v33  ;;  %v2947_v54 = vsel %vm1987_vm14, %v6290_v14, %v4561_v23  ;;  %v881_v23 = vpop.f32.mrf.mxu0 }
 0x13d   :  { %v2474_v36 = vmul.f32 1.442695, %v2203_v11  ;;  %v2516_v50 = vmul.f32 1.442695, %v2224_v38  ;;  %v2922_v21 = vsel %vm1962_vm11, %v6247_v52, %v4536_v49  ;;  %v3187_v24 = vmul.f32 %v3163_v44, %v2947_v54  ;;  %v966_v52 = vpop.f32.mrf.mxu3 }
 0x13e   :  { %v4933_v39 = vpop.eup %4932  ;;  %4934 = vpow2.f32 %v2472_v48  ;;  %v2225_v45 = vmin.f32 %v6360_v28, 0.0  ;;  %v2923_v31 = vsel %vm1963_vm12, %v6255_v34, %v4537_v30  ;;  %v6375_v14 = vadd.f32 %v3186_v17, %v6261_v40 }
 0x13f   :  { %v2968_v61 = vsel %vm2008_vm15, %v6294_v15, %v4582_v0  ;;  %4936 = vpow2.f32 %v2516_v50  ;;  %v6381_v44 = vadd.f32 %v3187_v24, %v6299_v18  ;;  %v4583_v49 = vadd.f32 -1.0, %v4933_v39  ;;  %v910_v0 = vpop.f32.mrf.mxu1 }
 0x140   :  { %v2518_v11 = vmul.f32 1.442695, %v2225_v45  ;;  %v4197_v22 = vor.u32 %v4771_v43, %v4196_v1  ;;  %v6385_v48 = vmul.f32 %v3378_v37, %v2922_v21  ;;  %4938 = vpow2.f32 %v2474_v36 }
 0x141   :  { %v4201_v34 = vor.u32 %v4759_v56, %v4198_v19  ;;  %v1596_v40 = vmul.f32 %v6125_v10, %v937_v55  ;;  %v6390_v15 = vmul.f32 %v3379_v63, %v2923_v31  ;;  %vm2009_vm1 = vcmp.gt.f32.partialorder %v6310_v20, 0.0 }
 0x142   :  { %4940 = vpow2.f32 %v2518_v11  ;;  %1272 = vmatpush.bf16.msra.mxu2 %v4197_v22  ;;  %v1597_v18 = vmul.f32 %v6154_v58, %v966_v52  ;;  %v3448_v30 = vmul.f32 %v3424_v41, %v2968_v61  ;;  %v3426_v37 = vperm.slane %v6211_v46, 3  ;;  %v4188_v61 = vld [vmem:[#allocation5 + $0x100] sm:$0xf] }
 0x143   :  { %1301 = vmatpush.bf16.msra.mxu3 %v4201_v34  ;;  %v6398_v38 = vadd.f32 %v6129_v35, %v1596_v40  ;;  %v1618_v33 = vmul.f32 %v6090_v57, %v881_v23  ;;  %v2969_v1 = vsel %vm2009_vm1, %v6310_v20, %v4583_v49  ;;  %v3427_v17 = vperm.slane %v6213_v62, 3  ;;  %v4770_v34 = vld [vmem:[#allocation5 + $0x15c] sm:$0xf0] }
 0x144   :  { %v4935_v63 = vpop.eup %4934  ;;  %v3232_v54 = vperm.slane %v6190_v26, 4  ;;  %v6405_v36 = vadd.f32 %v6169_v27, %v1597_v18  ;;  %vm2010_vm2 = vcmp.gt.f32.partialorder %v6342_v9, 0.0  ;;  %vm2032_vm3 = vcmp.gt.f32.partialorder %v6355_v3, 0.0  ;;  %v4758_v18 = vld [vmem:[#allocation5 + $0x104] sm:$0xf] }
 0x145   :  { %v4937_v41 = vpop.eup %4936  ;;  %vm2033_vm4 = vcmp.gt.f32.partialorder %v6360_v28, 0.0  ;;  %v2226_v50 = vmin.f32 %v6398_v38, 0.0  ;;  %v6412_v43 = vadd.f32 %v6108_v5, %v1618_v33  ;;  %vm2011_vm5 = vcmp.gt.f32.partialorder %v6347_v7, 0.0 }
 0x146   :  { %v4606_v20 = vadd.f32 -1.0, %v4937_v41  ;;  %v3233_v39 = vperm.slane %v6196_v12, 4  ;;  %v2227_v21 = vmin.f32 %v6405_v36, 0.0  ;;  %v1619_v24 = vmul.f32 %v6113_v59, %v910_v0  ;;  %v4939_v45 = vpop.eup %4938  ;;  %v968_v41 = vpop.f32.mrf.mxu3 }
 0x147   :  { %v6419_v56 = vadd.f32 %v3448_v30, %v6301_v53  ;;  %v3449_v19 = vmul.f32 %v3425_v4, %v2969_v1  ;;  %v2520_v55 = vmul.f32 1.442695, %v2226_v50  ;;  %v3234_v31 = vperm.slane %v6211_v46, 4  ;;  %v4190_v1 = vld [vmem:[#allocation5 + $0x160] sm:$0xf0] }
 0x148   :  { %v4941_v52 = vpop.eup %4940  ;;  %v2992_v49 = vsel %vm2032_vm3, %v6355_v3, %v4606_v20  ;;  %v2522_v11 = vmul.f32 1.442695, %v2227_v21  ;;  %v3235_v22 = vperm.slane %v6213_v62, 4  ;;  %v2248_v23 = vmin.f32 %v6412_v43, 0.0  ;;  %v939_v3 = vpop.f32.mrf.mxu2 }
 0x149   :  { %v3256_v53 = vmul.f32 %v3232_v54, %v2992_v49  ;;  %v4607_v40 = vadd.f32 -1.0, %v4941_v52  ;;  %4942 = vpow2.f32 %v2520_v55  ;;  %v3496_v4 = vperm.slane %v6190_v26, 5  ;;  %v884_v55 = vpop.f32.mrf.mxu0 }
 0x14a   :  { %v4584_v30 = vadd.f32 -1.0, %v4935_v63  ;;  %4944 = vpow2.f32 %v2522_v11  ;;  %v2564_v33 = vmul.f32 1.442695, %v2248_v23  ;;  %v6431_v0 = vadd.f32 %v6120_v2, %v1619_v24  ;;  %v913_v11 = vpop.f32.mrf.mxu1 }
 0x14b   :  { %v4585_v50 = vadd.f32 -1.0, %v4939_v45  ;;  %v6434_v20 = vadd.f32 %v3256_v53, %v6331_v42  ;;  %v2993_v54 = vsel %vm2033_vm4, %v6360_v28, %v4607_v40  ;;  %v4189_v21 = vor.u32 %v4770_v34, %v4188_v61 }
 0x14c   :  { %v6440_v63 = vadd.f32 %v3449_v19, %v6339_v25  ;;  %v3257_v52 = vmul.f32 %v3233_v39, %v2993_v54  ;;  %4946 = vpow2.f32 %v2564_v33  ;;  %v2249_v24 = vmin.f32 %v6431_v0, 0.0 }
 0x14d   :  { %vm2034_vm6 = vcmp.gt.f32.partialorder %v6398_v38, 0.0  ;;  %1214 = vmatpush.bf16.msra.mxu0 %v4189_v21  ;;  %v4193_v45 = vor.u32 %v4758_v18, %v4190_v1  ;;  %v1620_v42 = vmul.f32 %v6125_v10, %v939_v3  ;;  %v1621_v49 = vmul.f32 %v6154_v58, %v968_v41  ;;  %v4100_v21 = vld [vmem:[#allocation5 + $0x48] sm:$0xf] }
 0x14e   :  { %v2970_v28 = vsel %vm2010_vm2, %v6342_v9, %v4584_v30  ;;  %v6450_v25 = vadd.f32 %v3257_v52, %v6351_v32  ;;  %v2566_v39 = vmul.f32 1.442695, %v2249_v24  ;;  %v1642_v19 = vmul.f32 %v6090_v57, %v884_v55  ;;  %v4747_v55 = vld [vmem:[#allocation5 + $0xa4] sm:$0xf0] }
 0x14f   :  { %v4943_v61 = vpop.eup %4942  ;;  %v2971_v23 = vsel %vm2011_vm5, %v6347_v7, %v4585_v50  ;;  %vm2035_vm7 = vcmp.gt.f32.partialorder %v6405_v36, 0.0  ;;  %1243 = vmatpush.bf16.msra.mxu1 %v4193_v45  ;;  %v6458_v34 = vadd.f32 %v6129_v35, %v1620_v42  ;;  %v6461_v53 = vadd.f32 %v6169_v27, %v1621_v49  ;;  %v4735_v42 = vld [vmem:[#allocation5 + $0x4c] sm:$0xf] }
 0x150   :  { %v4945_v9 = vpop.eup %4944  ;;  %v4608_v32 = vadd.f32 -1.0, %v4943_v61  ;;  %4948 = vpow2.f32 %v2566_v39  ;;  %v6464_v40 = vadd.f32 %v6108_v5, %v1642_v19  ;;  %v1643_v18 = vmul.f32 %v6113_v59, %v913_v11  ;;  %v942_v61 = vpop.f32.mrf.mxu2 }
 0x151   :  { %v3450_v7 = vmul.f32 %v3426_v37, %v2970_v28  ;;  %v4609_v30 = vadd.f32 -1.0, %v4945_v9  ;;  %vm2056_vm8 = vcmp.gt.f32.partialorder %v6412_v43, 0.0  ;;  %v2250_v33 = vmin.f32 %v6458_v34, 0.0 }
 0x152   :  { %v4947_v1 = vpop.eup %4946  ;;  %v3451_v3 = vmul.f32 %v3427_v17, %v2971_v23  ;;  %v2994_v41 = vsel %vm2034_vm6, %v6398_v38, %v4608_v32  ;;  %v2251_v50 = vmin.f32 %v6461_v53, 0.0  ;;  %v2272_v54 = vmin.f32 %v6464_v40, 0.0  ;;  %v4102_v38 = vld [vmem:[#allocation5 + $0xa8] sm:$0xf0] }
 0x153   :  { %v3258_v37 = vmul.f32 %v3234_v31, %v2994_v41  ;;  %v2995_v52 = vsel %vm2035_vm7, %v6405_v36, %v4609_v30  ;;  %v4630_v24 = vadd.f32 -1.0, %v4947_v1  ;;  %v2568_v45 = vmul.f32 1.442695, %v2250_v33  ;;  %v971_v36 = vpop.f32.mrf.mxu3 }
 0x154   :  { %v3259_v49 = vmul.f32 %v3235_v22, %v2995_v52  ;;  %v2570_v17 = vmul.f32 1.442695, %v2251_v50  ;;  %v2612_v11 = vmul.f32 1.442695, %v2272_v54  ;;  %v6482_v28 = vadd.f32 %v6120_v2, %v1643_v18 }
 0x155   :  { %v6485_v39 = vadd.f32 %v3450_v7, %v6385_v48  ;;  %v6488_v19 = vadd.f32 %v3258_v37, %v6375_v14  ;;  %4950 = vpow2.f32 %v2568_v45  ;;  %v4101_v31 = vor.u32 %v4747_v55, %v4100_v21  ;;  %v886_v48 = vpop.f32.mrf.mxu0  ;;  %v6516_v55 = vld [vmem:[#allocation2] sm:$0xff] }
 0x156   :  { %v4949_v23 = vpop.eup %4948  ;;  %v6491_v9 = vadd.f32 %v3451_v3, %v6390_v15  ;;  %v6494_v22 = vadd.f32 %v3259_v49, %v6381_v44  ;;  %v3016_v32 = vsel %vm2056_vm8, %v6412_v43, %v4630_v24  ;;  %4952 = vpow2.f32 %v2570_v17 }
 0x157   :  { %v3497_v14 = vperm.slane %v6196_v12, 5  ;;  %4954 = vpow2.f32 %v2612_v11  ;;  %v2273_v18 = vmin.f32 %v6482_v28, 0.0  ;;  %1273 = vmatpush.bf16.msra.mxu2 %v4101_v31  ;;  %v4105_v7 = vor.u32 %v4735_v42, %v4102_v38  ;;  %v915_v42 = vpop.f32.mrf.mxu1 }
 0x158   :  { %vm2057_vm9 = vcmp.gt.f32.partialorder %v6431_v0, 0.0  ;;  %v4631_v15 = vadd.f32 -1.0, %v4949_v23  ;;  %v1644_v30 = vmul.f32 %v6125_v10, %v942_v61  ;;  %v1645_v44 = vmul.f32 %v6154_v58, %v971_v36 }
 0x159   :  { %v3520_v33 = vmul.f32 %v3496_v4, %v3016_v32  ;;  %v3498_v43 = vperm.slane %v6211_v46, 5  ;;  %v2614_v1 = vmul.f32 1.442695, %v2273_v18  ;;  %1302 = vmatpush.bf16.msra.mxu3 %v4105_v7  ;;  %v1666_v3 = vmul.f32 %v6090_v57, %v886_v48 }
 0x15a   :  { %v3499_v41 = vperm.slane %v6213_v62, 5  ;;  %v3304_v50 = vperm.slane %v6190_v26, 6  ;;  %v6511_v54 = vadd.f32 %v6129_v35, %v1644_v30  ;;  %v6514_v21 = vadd.f32 %v6169_v27, %v1645_v44  ;;  %4482 = vmatmul.msk.bf16.vlgmr.msra.gmra.mxu2 %vm731_vm0, %v6516_v55 }
 0x15b   :  { %v4951_v4 = vpop.eup %4950  ;;  %vm2058_vm10 = vcmp.gt.f32.partialorder %v6458_v34, 0.0  ;;  %4956 = vpow2.f32 %v2614_v1  ;;  %v3305_v57 = vperm.slane %v6196_v12, 6  ;;  %v6523_v37 = vadd.f32 %v6108_v5, %v1666_v3  ;;  %v4746_v1 = vld [vmem:[#allocation5 + $0x9c] sm:$0xf0]  ;;  %v4094_v3 = vld [vmem:[#allocation5 + $0xa0] sm:$0xf0] }
 0x15c   :  { %v4953_v52 = vpop.eup %4952  ;;  %v3017_v24 = vsel %vm2057_vm9, %v6431_v0, %v4631_v15  ;;  %vm2059_vm11 = vcmp.gt.f32.partialorder %v6461_v53, 0.0  ;;  %vm2080_vm12 = vcmp.gt.f32.partialorder %v6464_v40, 0.0  ;;  %v2274_v45 = vmin.f32 %v6511_v54, 0.0  ;;  %4486 = vmatmul.msk.bf16.vlgmr.msra.gmra.mxu3 %vm731_vm0, %v6516_v55  ;;  %v4092_v15 = vld [vmem:[#allocation5 + $0x40] sm:$0xf] }
 0x15d   :  { %v4955_v49 = vpop.eup %4954  ;;  %v6534_v17 = vadd.f32 %v3520_v33, %v6419_v56  ;;  %v4632_v5 = vadd.f32 -1.0, %v4951_v4  ;;  %vm2081_vm13 = vcmp.gt.f32.partialorder %v6482_v28, 0.0  ;;  %v2275_v11 = vmin.f32 %v6514_v21, 0.0 }
 0x15e   :  { %v4654_v0 = vadd.f32 -1.0, %v4955_v49  ;;  %v2616_v38 = vmul.f32 1.442695, %v2274_v45  ;;  %v3306_v31 = vperm.slane %v6211_v46, 6  ;;  %v2296_v61 = vmin.f32 %v6523_v37, 0.0  ;;  %v944_v45 = vpop.f32.mrf.mxu2 }
 0x15f   :  { %v3521_v36 = vmul.f32 %v3497_v14, %v3017_v24  ;;  %v2618_v23 = vmul.f32 1.442695, %v2275_v11  ;;  %v3307_v32 = vperm.slane %v6213_v62, 6  ;;  %v1667_v48 = vmul.f32 %v6113_v59, %v915_v42  ;;  %v4734_v59 = vld [vmem:[#allocation5 + $0x44] sm:$0xf] }
 0x160   :  { %v4633_v18 = vadd.f32 -1.0, %v4953_v52  ;;  %v3040_v56 = vsel %vm2080_vm12, %v6464_v40, %v4654_v0  ;;  %4958 = vpow2.f32 %v2616_v38  ;;  %v2660_v7 = vmul.f32 1.442695, %v2296_v61  ;;  %v6552_v52 = vld [vmem:[#allocation11] sm:$0xff] }
 0x161   :  { %v4957_v30 = vpop.eup %4956  ;;  %v3018_v44 = vsel %vm2058_vm10, %v6458_v34, %v4632_v5  ;;  %v3328_v33 = vmul.f32 %v3304_v50, %v3040_v56  ;;  %4960 = vpow2.f32 %v2618_v23  ;;  %v6549_v14 = vadd.f32 %v6120_v2, %v1667_v48  ;;  %v6561_v2 = vld [vmem:[#allocation13] sm:$0xff]  ;;  %v973_v5 = vpop.f32.mrf.mxu3 }
 0x162   :  { %v4655_v4 = vadd.f32 -1.0, %v4957_v30  ;;  %4962 = vpow2.f32 %v2660_v7  ;;  %v3568_v40 = vperm.slane %v6190_v26, 7  ;;  %v3670_v24 = vperm.slane %v6552_v52, 4 }
 0x163   :  { %v6556_v42 = vadd.f32 %v3521_v36, %v6440_v63  ;;  %v6559_v34 = vadd.f32 %v3328_v33, %v6434_v20  ;;  %v3748_v50 = vperm.slane %v6561_v2, 4  ;;  %v2297_v49 = vmin.f32 %v6549_v14, 0.0  ;;  %v6610_v33 = vld [vmem:[#allocation2 + $0x8] sm:$0xff] }
 0x164   :  { %v3522_v11 = vmul.f32 %v3498_v43, %v3018_v44  ;;  %v3041_v26 = vsel %vm2081_vm13, %v6482_v28, %v4655_v4  ;;  %v4093_v0 = vor.u32 %v4746_v1, %v4092_v15  ;;  %v4097_v38 = vor.u32 %v4734_v59, %v4094_v3 }
 0x165   :  { %v3019_v63 = vsel %vm2059_vm11, %v6461_v53, %v4633_v18  ;;  %v3329_v20 = vmul.f32 %v3305_v57, %v3041_v26  ;;  %v2662_v61 = vmul.f32 1.442695, %v2297_v49  ;;  %v1668_v36 = vmul.f32 %v6125_v10, %v944_v45 }
 0x166   :  { %v4959_v23 = vpop.eup %4958  ;;  %vm2082_vm14 = vcmp.gt.f32.partialorder %v6511_v54, 0.0  ;;  %vm2083_vm15 = vcmp.gt.f32.partialorder %v6514_v21, 0.0  ;;  %vm2104_vm1 = vcmp.gt.f32.partialorder %v6523_v37, 0.0  ;;  %1215 = vmatpush.bf16.msra.mxu0 %v4093_v0  ;;  %1244 = vmatpush.bf16.msra.mxu1 %v4097_v38  ;;  %v1669_v28 = vmul.f32 %v6154_v58, %v973_v5  ;;  %v6590_v58 = vld [vmem:[#allocation7 + $0x8] sm:$0xff] }
 0x167   :  { %v4961_v43 = vpop.eup %4960  ;;  %v6577_v48 = vadd.f32 %v3329_v20, %v6450_v25  ;;  %v4656_v53 = vadd.f32 -1.0, %v4959_v23  ;;  %4964 = vpow2.f32 %v2662_v61  ;;  %v6580_v57 = vadd.f32 %v6129_v35, %v1668_v36 }
 0x168   :  { %v4963_v10 = vpop.eup %4962  ;;  %v6583_v18 = vadd.f32 %v3522_v11, %v6485_v39  ;;  %v3523_v56 = vmul.f32 %v3499_v41, %v3019_v63  ;;  %v4657_v7 = vadd.f32 -1.0, %v4961_v43  ;;  %v6588_v15 = vadd.f32 %v6169_v27, %v1669_v28  ;;  %v6597_v39 = vld [vmem:[#allocation8 + $0x8] sm:$0xff]  ;;  %v1014_v11 = vpop.f32.mrf.mxu1  ;;  %v4404_v28 = vld [vmem:[#allocation5 + $0x298] sm:$0xf] }
 0x169   :  { %v3042_v25 = vsel %vm2082_vm14, %v6511_v54, %v4656_v53  ;;  %v4678_v30 = vadd.f32 -1.0, %v4963_v10  ;;  %v3569_v35 = vperm.slane %v6196_v12, 7  ;;  %v2298_v44 = vmin.f32 %v6580_v57, 0.0  ;;  %4474 = vmatmul.msk.bf16.vlgmr.msra.gmra.mxu0 %vm731_vm0, %v6516_v55  ;;  %4478 = vmatmul.msk.bf16.vlgmr.msra.gmra.mxu1 %vm731_vm0, %v6516_v55  ;;  %v985_v54 = vpop.f32.mrf.mxu0  ;;  %v1043_v63 = vpop.f32.mrf.mxu2  ;;  %v4821_v43 = vld [vmem:[#allocation5 + $0x2f4] sm:$0xf0] }
 0x16a   :  { %v3330_v27 = vmul.f32 %v3306_v31, %v3042_v25  ;;  %v3043_v41 = vsel %vm2083_vm15, %v6514_v21, %v4657_v7  ;;  %vm2105_vm2 = vcmp.gt.f32.partialorder %v6549_v14, 0.0  ;;  %v2299_v12 = vmin.f32 %v6588_v15, 0.0  ;;  %4483 = vmatmul.msk.bf16.gmra.mxu2 %vm731_vm0, %v6610_v33  ;;  %v4809_v53 = vld [vmem:[#allocation5 + $0x29c] sm:$0xf] }
 0x16b   :  { %v3331_v55 = vmul.f32 %v3307_v32, %v3043_v41  ;;  %v3064_v31 = vsel %vm2104_vm1, %v6523_v37, %v4678_v30  ;;  %v2664_v1 = vmul.f32 1.442695, %v2298_v44  ;;  %v6620_v21 = vperm.slane %v6590_v58, 0  ;;  %v4406_v44 = vld [vmem:[#allocation5 + $0x2f8] sm:$0xf0] }
 0x16c   :  { %v6623_v59 = vadd.f32 %v3330_v27, %v6488_v19  ;;  %v3592_v3 = vmul.f32 %v3568_v40, %v3064_v31  ;;  %v2666_v4 = vmul.f32 1.442695, %v2299_v12  ;;  %v6626_v45 = vperm.slane %v6597_v39, 0  ;;  %4487 = vmatmul.msk.bf16.gmra.mxu3 %vm731_vm0, %v6610_v33 }
 0x16d   :  { %v4965_v32 = vpop.eup %4964  ;;  %v6631_v49 = vadd.f32 %v3331_v55, %v6494_v22  ;;  %v3671_v37 = vperm.slane %v6552_v52, 5  ;;  %4966 = vpow2.f32 %v2664_v1  ;;  %v1502_v5 = vmul.f32 %v6620_v21, %v985_v54 }
 0x16e   :  { %v3616_v19 = vadd.f32 %v3592_v3, %v6534_v17  ;;  %v4679_v40 = vadd.f32 -1.0, %v4965_v32  ;;  %4968 = vpow2.f32 %v2666_v4  ;;  %v6637_v26 = vperm.slane %v6590_v58, 1 }
 0x16f   :  { %v3749_v0 = vperm.slane %v6561_v2, 5  ;;  %v6641_v38 = vadd.f32 %v6626_v45, %v1502_v5  ;;  %v6644_v22 = vperm.slane %v6597_v39, 1  ;;  %v6647_v20 = vperm.slane %v6590_v58, 2 }
 0x170   :  { %v3547_v61 = vadd.f32 %v3523_v56, %v6491_v9  ;;  %v3640_v17 = vadd.f32 %v3616_v19, %v6559_v34  ;;  %v3065_v36 = vsel %vm2105_vm2, %v6549_v14, %v4679_v40  ;;  %v1503_v23 = vmul.f32 %v6637_v26, %v1014_v11 }
 0x171   :  { %v3593_v10 = vmul.f32 %v3569_v35, %v3065_v36  ;;  %v3570_v7 = vperm.slane %v6211_v46, 7  ;;  %v2132_v25 = vmin.f32 %v6641_v38, 0.0  ;;  %v4405_v30 = vor.u32 %v4821_v43, %v4404_v28  ;;  %v987_v4 = vpop.f32.mrf.mxu0  ;;  %v1072_v36 = vpop.f32.mrf.mxu3 }
 0x172   :  { %v3718_v9 = vmul.f32 %v3670_v24, %v3640_v17  ;;  %v6660_v34 = vadd.f32 %v6644_v22, %v1503_v23  ;;  %v4409_v56 = vor.u32 %v4809_v53, %v4406_v44  ;;  %v1504_v14 = vmul.f32 %v6647_v20, %v1043_v63 }
 0x173   :  { %v4967_v27 = vpop.eup %4966  ;;  %v3617_v41 = vadd.f32 %v3593_v10, %v6556_v42  ;;  %v3672_v35 = vperm.slane %v6552_v52, 6  ;;  %v3571_v46 = vperm.slane %v6213_v62, 7  ;;  %1386 = vmatpush.bf16.msrb.mxu2 %v4405_v30  ;;  %v6667_v12 = vperm.slane %v6597_v39, 2 }
 0x174   :  { %v4969_v54 = vpop.eup %4968  ;;  %v6671_v24 = vadd.f32 %v3748_v50, %v3718_v9  ;;  %v4680_v55 = vadd.f32 -1.0, %v4967_v27  ;;  %v2332_v31 = vmul.f32 1.442695, %v2132_v25  ;;  %v2133_v1 = vmin.f32 %v6660_v34, 0.0  ;;  %1415 = vmatpush.bf16.msrb.mxu3 %v4409_v56  ;;  %v6722_v9 = vld [vmem:[#allocation10 + $0x48] sm:$0xff] }
 0x175   :  { %v3641_v42 = vadd.f32 %v3617_v41, %v6577_v48  ;;  %vm2106_vm3 = vcmp.gt.f32.partialorder %v6580_v57, 0.0  ;;  %v4681_v3 = vadd.f32 -1.0, %v4969_v54  ;;  %v6677_v62 = vadd.f32 %v6667_v12, %v1504_v14  ;;  %v6743_v54 = vld [vmem:[#allocation10 + $0x50] sm:$0xff] }
 0x176   :  { %vm3816_vm4 = vcmp.gt.f32.partialorder %v6158_v16, 0.0  ;;  %vm3817_vm5 = vcmp.gt.f32.partialorder %v6175_v8, 0.0  ;;  %v3844_v50 = vmin.f32 %v6671_v24, 0.0  ;;  %v3066_v32 = vsel %vm2106_vm3, %v6580_v57, %v4680_v55 }
 0x177   :  { %v3750_v5 = vperm.slane %v6561_v2, 6  ;;  %vm2107_vm6 = vcmp.gt.f32.partialorder %v6588_v15, 0.0  ;;  %v3719_v48 = vmul.f32 %v3671_v37, %v3641_v42  ;;  %v3594_v11 = vmul.f32 %v3570_v7, %v3066_v32  ;;  %v6704_v7 = vld [vmem:[#allocation2 + $0x10] sm:$0xff] }
 0x178   :  { %v3067_v19 = vsel %vm2107_vm6, %v6588_v15, %v4681_v3  ;;  %v2334_v40 = vmul.f32 1.442695, %v2133_v1  ;;  %vm3818_vm7 = vcmp.gt.f32.partialorder %v6194_v29, 0.0  ;;  %vm3819_vm8 = vcmp.gt.f32.partialorder %v6208_v51, 0.0 }
 0x179   :  { %v3595_v63 = vmul.f32 %v3571_v46, %v3067_v19  ;;  %4970 = vpow2.f32 %v2332_v31  ;;  %v2134_v17 = vmin.f32 %v6677_v62, 0.0  ;;  %v1526_v57 = vmul.f32 %v6620_v21, %v987_v4  ;;  %4475 = vmatmul.msk.bf16.gmra.mxu0 %vm731_vm0, %v6610_v33  ;;  %4479 = vmatmul.msk.bf16.gmra.mxu1 %vm731_vm0, %v6610_v33  ;;  %v4820_v4 = vld [vmem:[#allocation5 + $0x2ec] sm:$0xf0] }
 0x17a   :  { %v6690_v23 = vadd.f32 %v3749_v0, %v3719_v48  ;;  %v3618_v28 = vadd.f32 %v3594_v11, %v6583_v18  ;;  %v6694_v37 = vperm.slane %v6590_v58, 3  ;;  %v6697_v15 = vperm.slane %v6597_v39, 3  ;;  %4484 = vmatmul.msk.bf16.gmra.mxu2 %vm731_vm0, %v6704_v7  ;;  %v4398_v11 = vld [vmem:[#allocation5 + $0x2f0] sm:$0xf0] }
 0x17b   :  { %v3872_v43 = vmul.f32 1.442695, %v3844_v50  ;;  %v3619_v53 = vadd.f32 %v3595_v63, %v3547_v61  ;;  %v3673_v10 = vperm.slane %v6552_v52, 7  ;;  %v2336_v0 = vmul.f32 1.442695, %v2134_v17  ;;  %v6714_v52 = vld [vmem:[#allocation10 + $0x40] sm:$0xff] }
 0x17c   :  { %v3845_v18 = vmin.f32 %v6690_v23, 0.0  ;;  %v3642_v58 = vadd.f32 %v3618_v28, %v6623_v59  ;;  %4972 = vpow2.f32 %v2334_v40  ;;  %v1505_v39 = vmul.f32 %v6694_v37, %v1072_v36  ;;  %4488 = vmatmul.msk.bf16.gmra.mxu3 %vm731_vm0, %v6704_v7  ;;  %v4808_v50 = vld [vmem:[#allocation5 + $0x294] sm:$0xf]  ;;  %v6764_v36 = vld [vmem:[#allocation10 + $0x58] sm:$0xff]  ;;  %v1045_v28 = vpop.f32.mrf.mxu2 }
 0x17d   :  { %v4700_v25 = vadd.f32 -1.0, %v6275_v6  ;;  %v3643_v33 = vadd.f32 %v3619_v53, %v6631_v49  ;;  %v3751_v61 = vperm.slane %v6561_v2, 7  ;;  %v6717_v30 = vadd.f32 %v6626_v45, %v1526_v57  ;;  %v1016_v49 = vpop.f32.mrf.mxu1 }
 0x17e   :  { %v4701_v44 = vadd.f32 -1.0, %v6307_v47  ;;  %v3720_v59 = vmul.f32 %v3672_v35, %v3642_v58  ;;  %4974 = vpow2.f32 %v2336_v0  ;;  %v6725_v6 = vadd.f32 %v6697_v15, %v1505_v39  ;;  %v990_v0 = vpop.f32.mrf.mxu0 }
 0x17f   :  { %v4971_v56 = vpop.eup %4970  ;;  %4976 = vpow2.f32 %v3872_v43  ;;  %v3874_v2 = vmul.f32 1.442695, %v3845_v18  ;;  %v3721_v14 = vmul.f32 %v3673_v10, %v3643_v33  ;;  %v2156_v27 = vmin.f32 %v6717_v30, 0.0  ;;  %v1074_v10 = vpop.f32.mrf.mxu3 }
 0x180   :  { %v6732_v41 = vsel %vm3816_vm4, %v6158_v16, %v6257_v60  ;;  %v6738_v47 = vsel %vm3817_vm5, %v6175_v8, %v6268_v13  ;;  %v6740_v35 = vadd.f32 %v3750_v5, %v3720_v59  ;;  %v3116_v46 = vperm.slane %v6714_v52, 0  ;;  %v4396_v60 = vld [vmem:[#allocation5 + $0x290] sm:$0xf] }
 0x181   :  { %v6745_v55 = vadd.f32 %v3751_v61, %v3721_v14  ;;  %v3117_v31 = vperm.slane %v6722_v9, 0  ;;  %v2135_v1 = vmin.f32 %v6725_v6, 0.0  ;;  %v2380_v16 = vmul.f32 1.442695, %v2156_v27 }
 0x182   :  { %v4973_v42 = vpop.eup %4972  ;;  %v6752_v8 = vsel %vm3818_vm7, %v6194_v29, %v4700_v25  ;;  %v6757_v13 = vsel %vm3819_vm8, %v6208_v51, %v4701_v44  ;;  %v3846_v3 = vmin.f32 %v6740_v35, 0.0  ;;  %vm1940_vm9 = vcmp.gt.f32.partialorder %v6641_v38, 0.0 }
 0x183   :  { %4978 = vpow2.f32 %v3874_v2  ;;  %v3847_v32 = vmin.f32 %v6745_v55, 0.0  ;;  %v4514_v5 = vadd.f32 -1.0, %v4971_v56  ;;  %v2338_v48 = vmul.f32 1.442695, %v2135_v1 }
 0x184   :  { %v4975_v19 = vpop.eup %4974  ;;  %v3876_v29 = vmul.f32 1.442695, %v3846_v3  ;;  %vm1941_vm10 = vcmp.gt.f32.partialorder %v6660_v34, 0.0  ;;  %v3118_v40 = vperm.slane %v6743_v54, 0  ;;  %4980 = vpow2.f32 %v2380_v16 }
 0x185   :  { %v4977_v51 = vpop.eup %4976  ;;  %v3878_v63 = vmul.f32 1.442695, %v3847_v32  ;;  %v4515_v17 = vadd.f32 -1.0, %v4973_v42  ;;  %4982 = vpow2.f32 %v2338_v48  ;;  %v1527_v57 = vmul.f32 %v6637_v26, %v1016_v49  ;;  %v1019_v44 = vpop.f32.mrf.mxu1  ;;  %v6800_v42 = vld [vmem:[#allocation2 + $0x18] sm:$0xff] }
 0x186   :  { %vm3820_vm11 = vcmp.gt.f32.partialorder %v6671_v24, 0.0  ;;  %4984 = vpow2.f32 %v3876_v29  ;;  %v4397_v43 = vor.u32 %v4820_v4, %v4396_v60  ;;  %v4401_v53 = vor.u32 %v4808_v50, %v4398_v11 }
 0x187   :  { %4986 = vpow2.f32 %v3878_v63  ;;  %v2900_v18 = vsel %vm1940_vm9, %v6641_v38, %v4514_v5  ;;  %v4516_v58 = vadd.f32 -1.0, %v4975_v19  ;;  %v6772_v39 = vadd.f32 %v6644_v22, %v1527_v57  ;;  %v4797_v63 = vld [vmem:[#allocation5 + $0x234] sm:$0xf0] }
 0x188   :  { %v4702_v25 = vadd.f32 -1.0, %v4977_v51  ;;  %vm1942_vm12 = vcmp.gt.f32.partialorder %v6677_v62, 0.0  ;;  %v3119_v33 = vperm.slane %v6764_v36, 0  ;;  %1328 = vmatpush.bf16.msrb.mxu0 %v4397_v43  ;;  %1357 = vmatpush.bf16.msrb.mxu1 %v4401_v53  ;;  %v1528_v61 = vmul.f32 %v6647_v20, %v1045_v28 }
 0x189   :  { %v4979_v59 = vpop.eup %4978  ;;  %v2901_v49 = vsel %vm1941_vm10, %v6660_v34, %v4515_v17  ;;  %v2157_v38 = vmin.f32 %v6772_v39, 0.0  ;;  %v1529_v56 = vmul.f32 %v6694_v37, %v1074_v10  ;;  %v1550_v2 = vmul.f32 %v6620_v21, %v990_v0  ;;  %4476 = vmatmul.msk.bf16.gmra.mxu0 %vm731_vm0, %v6704_v7  ;;  %4480 = vmatmul.msk.bf16.gmra.mxu1 %vm731_vm0, %v6704_v7  ;;  %v4785_v17 = vld [vmem:[#allocation5 + $0x1dc] sm:$0xf]  ;;  %v1048_v0 = vpop.f32.mrf.mxu2 }
 0x18a   :  { %v4981_v14 = vpop.eup %4980  ;;  %v6783_v27 = vmul.f32 %v3116_v46, %v2900_v18  ;;  %vm1964_vm13 = vcmp.gt.f32.partialorder %v6717_v30, 0.0  ;;  %v3380_v1 = vperm.slane %v6714_v52, 1  ;;  %v6788_v16 = vadd.f32 %v6667_v12, %v1528_v61  ;;  %4485 = vmatmul.msk.bf16.gmra.mxu2 %vm731_vm0, %v6800_v42  ;;  %v4310_v10 = vld [vmem:[#allocation5 + $0x238] sm:$0xf0]  ;;  %v1077_v61 = vpop.f32.mrf.mxu3 }
 0x18b   :  { %v4983_v34 = vpop.eup %4982  ;;  %vm3822_vm14 = vcmp.gt.f32.partialorder %v6740_v35, 0.0  ;;  %vm3823_vm15 = vcmp.gt.f32.partialorder %v6745_v55, 0.0  ;;  %v2902_v46 = vsel %vm1942_vm12, %v6677_v62, %v4516_v58  ;;  %vm1943_vm1 = vcmp.gt.f32.partialorder %v6725_v6, 0.0 }
 0x18c   :  { %v2382_v60 = vmul.f32 1.442695, %v2157_v38  ;;  %v4985_v3 = vpop.eup %4984  ;;  %v6807_v7 = vsel %vm3820_vm11, %v6671_v24, %v4702_v25  ;;  %v6811_v4 = vmul.f32 %v3117_v31, %v2901_v49  ;;  %v3381_v62 = vperm.slane %v6722_v9, 1  ;;  %v4308_v24 = vld [vmem:[#allocation5 + $0x1d8] sm:$0xf]  ;;  %4489 = vmatmul.msk.bf16.gmra.mxu3 %vm731_vm0, %v6800_v42  ;;  %v992_v38 = vpop.f32.mrf.mxu0 }
 0x18d   :  { %v6815_v50 = vadd.f32 %v6626_v45, %v1550_v2  ;;  %v4987_v32 = vpop.eup %4986  ;;  %v6817_v5 = vadd.f32 -1.0, %v4979_v59  ;;  %v4704_v48 = vadd.f32 -1.0, %v4985_v3  ;;  %v6820_v11 = vadd.f32 %v6697_v15, %v1529_v56 }
 0x18e   :  { %v1551_v19 = vmul.f32 %v6637_v26, %v1019_v44  ;;  %v4705_v31 = vadd.f32 -1.0, %v4987_v32  ;;  %v6825_v29 = vmul.f32 %v3118_v40, %v2902_v46  ;;  %4988 = vpow2.f32 %v2382_v60 }
 0x18f   :  { %v2158_v51 = vmin.f32 %v6788_v16, 0.0  ;;  %v3942_v57 = vsel %vm3822_vm14, %v6740_v35, %v4704_v48  ;;  %v4538_v28 = vadd.f32 -1.0, %v4981_v14  ;;  %v3382_v43 = vperm.slane %v6743_v54, 1 }
 0x190   :  { %v3383_v53 = vperm.slane %v6764_v36, 1  ;;  %v6834_v18 = vadd.f32 %v3942_v57, %v6732_v41  ;;  %v3943_v40 = vsel %vm3823_vm15, %v6745_v55, %v4705_v31  ;;  %v4517_v58 = vadd.f32 -1.0, %v4983_v34  ;;  %v1021_v55 = vpop.f32.mrf.mxu1 }
 0x191   :  { %v2180_v25 = vmin.f32 %v6815_v50, 0.0  ;;  %v6841_v35 = vadd.f32 %v3943_v40, %v6738_v47  ;;  %v2159_v44 = vmin.f32 %v6820_v11, 0.0  ;;  %v6845_v59 = vadd.f32 %v6644_v22, %v1551_v19 }
 0x192   :  { %v4309_v49 = vor.u32 %v4797_v63, %v4308_v24  ;;  %v2384_v41 = vmul.f32 1.442695, %v2158_v51  ;;  %v4313_v2 = vor.u32 %v4785_v17, %v4310_v10  ;;  %v1552_v14 = vmul.f32 %v6647_v20, %v1048_v0  ;;  %v4300_v10 = vld [vmem:[#allocation5 + $0x1d0] sm:$0xf] }
 0x193   :  { %v2428_v56 = vmul.f32 1.442695, %v2180_v25  ;;  %v2924_v34 = vsel %vm1964_vm13, %v6717_v30, %v4538_v28  ;;  %vm1965_vm2 = vcmp.gt.f32.partialorder %v6772_v39, 0.0  ;;  %v2181_v47 = vmin.f32 %v6845_v59, 0.0  ;;  %v4796_v25 = vld [vmem:[#allocation5 + $0x22c] sm:$0xf0] }
 0x194   :  { %1387 = vmatpush.bf16.msrb.mxu2 %v4309_v49  ;;  %v1553_v46 = vmul.f32 %v6694_v37, %v1077_v61  ;;  %v4989_v60 = vpop.eup %4988  ;;  %v2903_v3 = vsel %vm1943_vm1, %v6725_v6, %v4517_v58  ;;  %1416 = vmatpush.bf16.msrb.mxu3 %v4313_v2  ;;  %v6858_v32 = vadd.f32 %v6667_v12, %v1552_v14  ;;  %v2386_v30 = vmul.f32 1.442695, %v2159_v44  ;;  %v4784_v49 = vld [vmem:[#allocation5 + $0x1d4] sm:$0xf]  ;;  %v1050_v2 = vpop.f32.mrf.mxu2 }
 0x195   :  { %4990 = vpow2.f32 %v2428_v56  ;;  %v1574_v48 = vmul.f32 %v6620_v21, %v992_v38  ;;  %v2430_v19 = vmul.f32 1.442695, %v2181_v47  ;;  %v1575_v31 = vmul.f32 %v6637_v26, %v1021_v55  ;;  %v4302_v38 = vld [vmem:[#allocation5 + $0x230] sm:$0xf0] }
 0x196   :  { %v6862_v24 = vadd.f32 %v6697_v15, %v1553_v46  ;;  %4992 = vpow2.f32 %v2384_v41  ;;  %v3164_v51 = vperm.slane %v6714_v52, 2  ;;  %v2182_v63 = vmin.f32 %v6858_v32, 0.0  ;;  %v1079_v46 = vpop.f32.mrf.mxu3 }
 0x197   :  { %v6868_v6 = vadd.f32 %v6626_v45, %v1574_v48  ;;  %v6872_v17 = vmul.f32 %v3380_v1, %v2924_v34  ;;  %v4539_v57 = vadd.f32 -1.0, %v4989_v60  ;;  %4994 = vpow2.f32 %v2430_v19  ;;  %v995_v19 = vpop.f32.mrf.mxu0 }
 0x198   :  { %v3165_v28 = vperm.slane %v6722_v9, 2  ;;  %v6877_v0 = vmul.f32 %v3119_v33, %v2903_v3  ;;  %vm1988_vm3 = vcmp.gt.f32.partialorder %v6815_v50, 0.0  ;;  %v2432_v40 = vmul.f32 1.442695, %v2182_v63 }
 0x199   :  { %v2183_v58 = vmin.f32 %v6862_v24, 0.0  ;;  %4996 = vpow2.f32 %v2386_v30  ;;  %v3166_v61 = vperm.slane %v6743_v54, 2  ;;  %v2204_v1 = vmin.f32 %v6868_v6, 0.0  ;;  %4477 = vmatmul.msk.bf16.gmra.mxu0 %vm731_vm0, %v6800_v42  ;;  %4481 = vmatmul.msk.bf16.gmra.mxu1 %vm731_vm0, %v6800_v42 }
 0x19a   :  { %v6884_v44 = vadd.f32 %v6644_v22, %v1575_v31  ;;  %vm1989_vm4 = vcmp.gt.f32.partialorder %v6845_v59, 0.0  ;;  %4998 = vpow2.f32 %v2432_v40  ;;  %v3167_v56 = vperm.slane %v6764_v36, 2 }
 0x19b   :  { %v4991_v41 = vpop.eup %4990  ;;  %v2434_v33 = vmul.f32 1.442695, %v2183_v58  ;;  %v2925_v14 = vsel %vm1965_vm2, %v6772_v39, %v4539_v57  ;;  %vm1966_vm5 = vcmp.gt.f32.partialorder %v6788_v16, 0.0  ;;  %v2476_v34 = vmul.f32 1.442695, %v2204_v1 }
 0x19c   :  { %v4562_v55 = vadd.f32 -1.0, %v4991_v41  ;;  %v3428_v47 = vperm.slane %v6714_v52, 3  ;;  %v4993_v60 = vpop.eup %4992  ;;  %v2205_v3 = vmin.f32 %v6884_v44, 0.0  ;;  %v4301_v48 = vor.u32 %v4796_v25, %v4300_v10 }
 0x19d   :  { %5000 = vpow2.f32 %v2434_v33  ;;  %v4305_v30 = vor.u32 %v4784_v49, %v4302_v38  ;;  %v4995_v31 = vpop.eup %4994  ;;  %vm1967_vm6 = vcmp.gt.f32.partialorder %v6820_v11, 0.0  ;;  %vm1990_vm7 = vcmp.gt.f32.partialorder %v6858_v32, 0.0  ;;  %v1024_v38 = vpop.f32.mrf.mxu1 }
 0x19e   :  { %v2948_v39 = vsel %vm1988_vm3, %v6815_v50, %v4562_v55  ;;  %5002 = vpow2.f32 %v2476_v34  ;;  %v1576_v42 = vmul.f32 %v6647_v20, %v1050_v2  ;;  %v4563_v57 = vadd.f32 -1.0, %v4995_v31  ;;  %1329 = vmatpush.bf16.msrb.mxu0 %v4301_v48 }
 0x19f   :  { %v3188_v63 = vmul.f32 %v3164_v51, %v2948_v39  ;;  %v2478_v40 = vmul.f32 1.442695, %v2205_v3  ;;  %1358 = vmatpush.bf16.msrb.mxu1 %v4305_v30  ;;  %v1577_v10 = vmul.f32 %v6694_v37, %v1079_v46  ;;  %v4997_v58 = vpop.eup %4996  ;;  %v6907_v25 = vmul.f32 %v3381_v62, %v2925_v14 }
 0x1a0   :  { %v4540_v1 = vadd.f32 -1.0, %v4993_v60  ;;  %v6910_v50 = vadd.f32 %v6667_v12, %v1576_v42  ;;  %v1598_v49 = vmul.f32 %v6620_v21, %v995_v19  ;;  %v4999_v41 = vpop.eup %4998  ;;  %v2949_v33 = vsel %vm1989_vm4, %v6845_v59, %v4563_v57 }
 0x1a1   :  { %v6914_v51 = vadd.f32 %v3188_v63, %v6783_v27  ;;  %5004 = vpow2.f32 %v2478_v40  ;;  %v6920_v2 = vadd.f32 %v6697_v15, %v1577_v10  ;;  %v3189_v62 = vmul.f32 %v3165_v28, %v2949_v33  ;;  %v4212_v40 = vld [vmem:[#allocation5 + $0x118] sm:$0xf] }
 0x1a2   :  { %v4564_v14 = vadd.f32 -1.0, %v4999_v41  ;;  %vm1991_vm8 = vcmp.gt.f32.partialorder %v6862_v24, 0.0  ;;  %v2206_v55 = vmin.f32 %v6910_v50, 0.0  ;;  %v4541_v46 = vadd.f32 -1.0, %v4997_v58  ;;  %v4773_v10 = vld [vmem:[#allocation5 + $0x174] sm:$0xf0] }
 0x1a3   :  { %v5001_v34 = vpop.eup %5000  ;;  %v2207_v60 = vmin.f32 %v6920_v2, 0.0  ;;  %v6926_v27 = vadd.f32 %v6626_v45, %v1598_v49  ;;  %v1599_v3 = vmul.f32 %v6637_v26, %v1024_v38  ;;  %v6930_v48 = vadd.f32 %v3189_v62, %v6811_v4  ;;  %v4761_v49 = vld [vmem:[#allocation5 + $0x11c] sm:$0xf] }
 0x1a4   :  { %v5003_v59 = vpop.eup %5002  ;;  %v2950_v28 = vsel %vm1990_vm7, %v6858_v32, %v4564_v14  ;;  %v4565_v30 = vadd.f32 -1.0, %v5001_v34  ;;  %v2480_v19 = vmul.f32 1.442695, %v2206_v55  ;;  %v2926_v31 = vsel %vm1966_vm5, %v6788_v16, %v4540_v1  ;;  %v4214_v38 = vld [vmem:[#allocation5 + $0x178] sm:$0xf0]  ;;  %v1053_v14 = vpop.f32.mrf.mxu2 }
 0x1a5   :  { %v3190_v39 = vmul.f32 %v3166_v61, %v2950_v28  ;;  %vm2012_vm9 = vcmp.gt.f32.partialorder %v6868_v6, 0.0  ;;  %v4586_v42 = vadd.f32 -1.0, %v5003_v59  ;;  %v3429_v63 = vperm.slane %v6722_v9, 3  ;;  %v1082_v34 = vpop.f32.mrf.mxu3  ;;  %v1026_v59 = vpop.f32.mrf.mxu1 }
 0x1a6   :  { %v2951_v4 = vsel %vm1991_vm8, %v6862_v24, %v4565_v30  ;;  %v2228_v32 = vmin.f32 %v6926_v27, 0.0  ;;  %v6947_v57 = vadd.f32 %v6644_v22, %v1599_v3  ;;  %v2927_v61 = vsel %vm1967_vm6, %v6820_v11, %v4541_v46  ;;  %v997_v46 = vpop.f32.mrf.mxu0 }
 0x1a7   :  { %v5005_v16 = vpop.eup %5004  ;;  %v6953_v58 = vadd.f32 %v3190_v39, %v6825_v29  ;;  %v3191_v24 = vmul.f32 %v3167_v56, %v2951_v4  ;;  %v2482_v1 = vmul.f32 1.442695, %v2207_v60  ;;  %v6959_v41 = vmul.f32 %v3382_v43, %v2926_v31 }
 0x1a8   :  { %v4587_v33 = vadd.f32 -1.0, %v5005_v16  ;;  %5006 = vpow2.f32 %v2480_v19  ;;  %v2524_v62 = vmul.f32 1.442695, %v2228_v32  ;;  %v2972_v11 = vsel %vm2012_vm9, %v6868_v6, %v4586_v42 }
 0x1a9   :  { %v6962_v55 = vadd.f32 %v3191_v24, %v6877_v0  ;;  %v2229_v29 = vmin.f32 %v6947_v57, 0.0  ;;  %v4213_v56 = vor.u32 %v4773_v10, %v4212_v40  ;;  %v6970_v43 = vmul.f32 %v3383_v53, %v2927_v61  ;;  %v4204_v40 = vld [vmem:[#allocation5 + $0x110] sm:$0xf] }
 0x1aa   :  { %vm2013_vm10 = vcmp.gt.f32.partialorder %v6884_v44, 0.0  ;;  %5008 = vpow2.f32 %v2524_v62  ;;  %v4217_v60 = vor.u32 %v4761_v49, %v4214_v38  ;;  %v3430_v0 = vperm.slane %v6743_v54, 3  ;;  %v4772_v61 = vld [vmem:[#allocation5 + $0x16c] sm:$0xf0] }
 0x1ab   :  { %5010 = vpow2.f32 %v2482_v1  ;;  %v2526_v3 = vmul.f32 1.442695, %v2229_v29  ;;  %1388 = vmatpush.bf16.msrb.mxu2 %v4213_v56  ;;  %v1600_v6 = vmul.f32 %v6647_v20, %v1053_v14  ;;  %v3452_v28 = vmul.f32 %v3428_v47, %v2972_v11 }
 0x1ac   :  { %v2973_v30 = vsel %vm2013_vm10, %v6884_v44, %v4587_v33  ;;  %1417 = vmatpush.bf16.msrb.mxu3 %v4217_v60  ;;  %v1601_v53 = vmul.f32 %v6694_v37, %v1082_v34  ;;  %v1622_v19 = vmul.f32 %v6620_v21, %v997_v46  ;;  %v3431_v31 = vperm.slane %v6764_v36, 3 }
 0x1ad   :  { %v3236_v39 = vperm.slane %v6714_v52, 4  ;;  %5012 = vpow2.f32 %v2526_v3  ;;  %v6983_v42 = vadd.f32 %v6667_v12, %v1600_v6  ;;  %vm2014_vm11 = vcmp.gt.f32.partialorder %v6910_v50, 0.0  ;;  %v4206_v3 = vld [vmem:[#allocation5 + $0x170] sm:$0xf0]  ;;  %v1055_v6 = vpop.f32.mrf.mxu2 }
 0x1ae   :  { %v5007_v4 = vpop.eup %5006  ;;  %v6987_v47 = vadd.f32 %v6697_v15, %v1601_v53  ;;  %v6990_v44 = vadd.f32 %v6626_v45, %v1622_v19  ;;  %v1623_v32 = vmul.f32 %v6637_v26, %v1026_v59  ;;  %v3453_v10 = vmul.f32 %v3429_v63, %v2973_v30  ;;  %v4760_v63 = vld [vmem:[#allocation5 + $0x114] sm:$0xf] }
 0x1af   :  { %vm2036_vm12 = vcmp.gt.f32.partialorder %v6926_v27, 0.0  ;;  %vm2037_vm13 = vcmp.gt.f32.partialorder %v6947_v57, 0.0  ;;  %v2230_v16 = vmin.f32 %v6983_v42, 0.0  ;;  %v6997_v1 = vadd.f32 %v3452_v28, %v6872_v17 }
 0x1b0   :  { %v5009_v24 = vpop.eup %5008  ;;  %vm2015_vm14 = vcmp.gt.f32.partialorder %v6920_v2, 0.0  ;;  %v3237_v49 = vperm.slane %v6722_v9, 4  ;;  %v3238_v38 = vperm.slane %v6743_v54, 4  ;;  %v2231_v33 = vmin.f32 %v6987_v47, 0.0 }
 0x1b1   :  { %v5011_v62 = vpop.eup %5010  ;;  %v4610_v14 = vadd.f32 -1.0, %v5009_v24  ;;  %v2528_v11 = vmul.f32 1.442695, %v2230_v16  ;;  %v4588_v34 = vadd.f32 -1.0, %v5007_v4  ;;  %v2252_v17 = vmin.f32 %v6990_v44, 0.0  ;;  %v1084_v24 = vpop.f32.mrf.mxu3 }
 0x1b2   :  { %v2530_v46 = vmul.f32 1.442695, %v2231_v33  ;;  %v7007_v60 = vadd.f32 %v6644_v22, %v1623_v32  ;;  %v7010_v28 = vadd.f32 %v3453_v10, %v6907_v25  ;;  %v4205_v53 = vor.u32 %v4772_v61, %v4204_v40  ;;  %v1000_v25 = vpop.f32.mrf.mxu0  ;;  %v1029_v10 = vpop.f32.mrf.mxu1 }
 0x1b3   :  { %v5013_v59 = vpop.eup %5012  ;;  %v2996_v30 = vsel %vm2036_vm12, %v6926_v27, %v4610_v14  ;;  %5014 = vpow2.f32 %v2528_v11  ;;  %v2572_v16 = vmul.f32 1.442695, %v2252_v17  ;;  %v4589_v33 = vadd.f32 -1.0, %v5011_v62 }
 0x1b4   :  { %v3260_v19 = vmul.f32 %v3236_v39, %v2996_v30  ;;  %v4611_v4 = vadd.f32 -1.0, %v5013_v59  ;;  %5016 = vpow2.f32 %v2530_v46  ;;  %v2253_v32 = vmin.f32 %v7007_v60, 0.0  ;;  %1330 = vmatpush.bf16.msrb.mxu0 %v4205_v53  ;;  %v4749_v46 = vld [vmem:[#allocation5 + $0xb4] sm:$0xf0] }
 0x1b5   :  { %v4209_v56 = vor.u32 %v4760_v63, %v4206_v3  ;;  %v1624_v29 = vmul.f32 %v6647_v20, %v1055_v6  ;;  %v2974_v27 = vsel %vm2014_vm11, %v6910_v50, %v4588_v34  ;;  %5018 = vpow2.f32 %v2572_v16  ;;  %v4116_v34 = vld [vmem:[#allocation5 + $0x58] sm:$0xf] }
 0x1b6   :  { %v7021_v40 = vadd.f32 %v3260_v19, %v6914_v51  ;;  %v2997_v39 = vsel %vm2037_vm13, %v6947_v57, %v4611_v4  ;;  %v2574_v62 = vmul.f32 1.442695, %v2253_v32  ;;  %v1625_v14 = vmul.f32 %v6694_v37, %v1084_v24  ;;  %v4118_v32 = vld [vmem:[#allocation5 + $0xb8] sm:$0xf0] }
 0x1b7   :  { %v3261_v61 = vmul.f32 %v3237_v49, %v2997_v39  ;;  %1359 = vmatpush.bf16.msrb.mxu1 %v4209_v56  ;;  %v7027_v63 = vadd.f32 %v6667_v12, %v1624_v29  ;;  %vm2038_vm15 = vcmp.gt.f32.partialorder %v6983_v42, 0.0  ;;  %v3501_v50 = vperm.slane %v6722_v9, 5 }
 0x1b8   :  { %v1646_v51 = vmul.f32 %v6620_v21, %v1000_v25  ;;  %v1647_v11 = vmul.f32 %v6637_v26, %v1029_v10  ;;  %v2975_v49 = vsel %vm2015_vm14, %v6920_v2, %v4589_v33  ;;  %5020 = vpow2.f32 %v2574_v62  ;;  %v4737_v33 = vld [vmem:[#allocation5 + $0x5c] sm:$0xf]  ;;  %v1058_v62 = vpop.f32.mrf.mxu2 }
 0x1b9   :  { %v5015_v57 = vpop.eup %5014  ;;  %v7038_v29 = vadd.f32 %v3261_v61, %v6930_v48  ;;  %v2254_v56 = vmin.f32 %v7027_v63, 0.0  ;;  %v3454_v3 = vmul.f32 %v3430_v0, %v2974_v27  ;;  %v7044_v59 = vadd.f32 %v6697_v15, %v1625_v14 }
 0x1ba   :  { %v5017_v17 = vpop.eup %5016  ;;  %v4612_v6 = vadd.f32 -1.0, %v5015_v57  ;;  %v7047_v30 = vadd.f32 %v6626_v45, %v1646_v51  ;;  %v7050_v2 = vadd.f32 %v6644_v22, %v1647_v11  ;;  %v4117_v48 = vor.u32 %v4749_v46, %v4116_v34  ;;  %v1087_v34 = vpop.f32.mrf.mxu3 }
 0x1bb   :  { %v4613_v53 = vadd.f32 -1.0, %v5017_v17  ;;  %v2576_v19 = vmul.f32 1.442695, %v2254_v56  ;;  %v5019_v4 = vpop.eup %5018  ;;  %v3455_v16 = vmul.f32 %v3431_v31, %v2975_v49  ;;  %vm2039_vm1 = vcmp.gt.f32.partialorder %v6987_v47, 0.0  ;;  %v1002_v56 = vpop.f32.mrf.mxu0  ;;  %v7080_v17 = vld [vmem:[#allocation2] sm:$0xff] }
 0x1bc   :  { %v2998_v0 = vsel %vm2038_vm15, %v6983_v42, %v4612_v6  ;;  %v2255_v24 = vmin.f32 %v7044_v59, 0.0  ;;  %v4634_v27 = vadd.f32 -1.0, %v5019_v4  ;;  %1389 = vmatpush.bf16.msrb.mxu2 %v4117_v48  ;;  %v8597_v31 = vperm.slane %v6764_v36, 4 }
 0x1bd   :  { %v3262_v25 = vmul.f32 %v3238_v38, %v2998_v0  ;;  %v2999_v10 = vsel %vm2039_vm1, %v6987_v47, %v4613_v53  ;;  %5022 = vpow2.f32 %v2576_v19  ;;  %vm2060_vm2 = vcmp.gt.f32.partialorder %v6990_v44, 0.0 }
 0x1be   :  { %v3263_v39 = vmul.f32 %v8597_v31, %v2999_v10  ;;  %v2578_v42 = vmul.f32 1.442695, %v2255_v24  ;;  %v2276_v61 = vmin.f32 %v7047_v30, 0.0  ;;  %v5021_v14 = vpop.eup %5020  ;;  %v7067_v51 = vadd.f32 %v3454_v3, %v6959_v41 }
 0x1bf   :  { %v7070_v38 = vadd.f32 %v3262_v25, %v6953_v58  ;;  %v2277_v47 = vmin.f32 %v7050_v2, 0.0  ;;  %v4121_v11 = vor.u32 %v4737_v33, %v4118_v32  ;;  %v7074_v46 = vadd.f32 %v3455_v16, %v6970_v43  ;;  %4498 = vmatmul.msk.bf16.vlgmr.msrb.gmra.mxu2 %vm731_vm0, %v7080_v17  ;;  %v1031_v25 = vpop.f32.mrf.mxu1 }
 0x1c0   :  { %v7077_v57 = vadd.f32 %v3263_v39, %v6962_v55  ;;  %vm2061_vm3 = vcmp.gt.f32.partialorder %v7007_v60, 0.0  ;;  %v4635_v49 = vadd.f32 -1.0, %v5021_v14  ;;  %v3020_v58 = vsel %vm2060_vm2, %v6990_v44, %v4634_v27 }
 0x1c1   :  { %v2620_v41 = vmul.f32 1.442695, %v2276_v61  ;;  %v2622_v3 = vmul.f32 1.442695, %v2277_v47  ;;  %1418 = vmatpush.bf16.msrb.mxu3 %v4121_v11  ;;  %v1648_v43 = vmul.f32 %v6647_v20, %v1058_v62  ;;  %v3502_v6 = vperm.slane %v6743_v54, 5 }
 0x1c2   :  { %v3021_v55 = vsel %vm2061_vm3, %v7007_v60, %v4635_v49  ;;  %5024 = vpow2.f32 %v2578_v42  ;;  %v1649_v53 = vmul.f32 %v6694_v37, %v1087_v34  ;;  %v3503_v48 = vperm.slane %v6764_v36, 5 }
 0x1c3   :  { %v5023_v19 = vpop.eup %5022  ;;  %5026 = vpow2.f32 %v2620_v41  ;;  %v7093_v4 = vadd.f32 %v6667_v12, %v1648_v43  ;;  %v1670_v44 = vmul.f32 %v6620_v21, %v1002_v56  ;;  %v8598_v16 = vperm.slane %v6714_v52, 5  ;;  %v4108_v56 = vld [vmem:[#allocation5 + $0x50] sm:$0xf] }
 0x1c4   :  { %v3308_v24 = vperm.slane %v6714_v52, 6  ;;  %5028 = vpow2.f32 %v2622_v3  ;;  %v7100_v60 = vadd.f32 %v6697_v15, %v1649_v53  ;;  %4502 = vmatmul.msk.bf16.vlgmr.msrb.gmra.mxu3 %vm731_vm0, %v7080_v17  ;;  %v3525_v33 = vmul.f32 %v3501_v50, %v3021_v55 }
 0x1c5   :  { %v3524_v0 = vmul.f32 %v8598_v16, %v3020_v58  ;;  %vm2062_vm4 = vcmp.gt.f32.partialorder %v7027_v63, 0.0  ;;  %v2278_v32 = vmin.f32 %v7093_v4, 0.0  ;;  %v7109_v21 = vadd.f32 %v6626_v45, %v1670_v44  ;;  %v4748_v58 = vld [vmem:[#allocation5 + $0xac] sm:$0xf0]  ;;  %v4110_v44 = vld [vmem:[#allocation5 + $0xb0] sm:$0xf0]  ;;  %v1060_v16 = vpop.f32.mrf.mxu2 }
 0x1c6   :  { %v4636_v10 = vadd.f32 -1.0, %v5023_v19  ;;  %vm2063_vm5 = vcmp.gt.f32.partialorder %v7044_v59, 0.0  ;;  %v3309_v27 = vperm.slane %v6722_v9, 6  ;;  %v2279_v31 = vmin.f32 %v7100_v60, 0.0 }
 0x1c7   :  { %vm2084_vm6 = vcmp.gt.f32.partialorder %v7047_v30, 0.0  ;;  %vm2085_vm7 = vcmp.gt.f32.partialorder %v7050_v2, 0.0  ;;  %v2624_v50 = vmul.f32 1.442695, %v2278_v32  ;;  %v3310_v39 = vperm.slane %v6743_v54, 6 }
 0x1c8   :  { %v5025_v42 = vpop.eup %5024  ;;  %v7118_v61 = vadd.f32 %v3524_v0, %v6997_v1  ;;  %v2626_v45 = vmul.f32 1.442695, %v2279_v31  ;;  %v2300_v62 = vmin.f32 %v7109_v21, 0.0  ;;  %v1671_v14 = vmul.f32 %v6637_v26, %v1031_v25  ;;  %v4736_v26 = vld [vmem:[#allocation5 + $0x54] sm:$0xf] }
 0x1c9   :  { %v5027_v47 = vpop.eup %5026  ;;  %v7123_v11 = vadd.f32 %v3525_v33, %v7010_v28  ;;  %5030 = vpow2.f32 %v2624_v50  ;;  %v3311_v34 = vperm.slane %v6764_v36, 6  ;;  %v3572_v49 = vperm.slane %v6714_v52, 7  ;;  %v7131_v28 = vld [vmem:[#allocation11 + $0x8] sm:$0xff] }
 0x1ca   :  { %v5029_v41 = vpop.eup %5028  ;;  %v3022_v1 = vsel %vm2062_vm4, %v7027_v63, %v4636_v10  ;;  %v4658_v3 = vadd.f32 -1.0, %v5027_v47  ;;  %5032 = vpow2.f32 %v2626_v45  ;;  %v2668_v43 = vmul.f32 1.442695, %v2300_v62 }
 0x1cb   :  { %v4637_v55 = vadd.f32 -1.0, %v5025_v42  ;;  %v4659_v53 = vadd.f32 -1.0, %v5029_v41  ;;  %vm2086_vm8 = vcmp.gt.f32.partialorder %v7093_v4, 0.0  ;;  %v7134_v19 = vadd.f32 %v6644_v22, %v1671_v14  ;;  %v1089_v22 = vpop.f32.mrf.mxu3  ;;  %v7145_v42 = vld [vmem:[#allocation13 + $0x8] sm:$0xff] }
 0x1cc   :  { %v3044_v0 = vsel %vm2084_vm6, %v7047_v30, %v4658_v3  ;;  %vm2087_vm9 = vcmp.gt.f32.partialorder %v7100_v60, 0.0  ;;  %5034 = vpow2.f32 %v2668_v43  ;;  %v4109_v63 = vor.u32 %v4748_v58, %v4108_v56  ;;  %v7160_v58 = vld [vmem:[#allocation2 + $0x8] sm:$0xff] }
 0x1cd   :  { %v3526_v33 = vmul.f32 %v3502_v6, %v3022_v1  ;;  %v3332_v32 = vmul.f32 %v3308_v24, %v3044_v0  ;;  %v3045_v25 = vsel %vm2085_vm7, %v7050_v2, %v4659_v53  ;;  %v2301_v10 = vmin.f32 %v7134_v19, 0.0 }
 0x1ce   :  { %v3333_v31 = vmul.f32 %v3309_v27, %v3045_v25  ;;  %v3674_v50 = vperm.slane %v7131_v28, 0  ;;  %1331 = vmatpush.bf16.msrb.mxu0 %v4109_v63  ;;  %v4113_v30 = vor.u32 %v4736_v26, %v4110_v44  ;;  %v1672_v45 = vmul.f32 %v6647_v20, %v1060_v16  ;;  %v1101_v44 = vpop.f32.mrf.mxu0 }
 0x1cf   :  { %v5031_v62 = vpop.eup %5030  ;;  %v3023_v6 = vsel %vm2063_vm5, %v7044_v59, %v4637_v55  ;;  %v3356_v24 = vadd.f32 %v3332_v32, %v7021_v40  ;;  %vm2108_vm10 = vcmp.gt.f32.partialorder %v7109_v21, 0.0  ;;  %v2670_v2 = vmul.f32 1.442695, %v2301_v10  ;;  %4499 = vmatmul.msk.bf16.gmra.mxu2 %vm731_vm0, %v7160_v58 }
 0x1d0   :  { %v5033_v14 = vpop.eup %5032  ;;  %v7154_v27 = vadd.f32 %v3333_v31, %v7038_v29  ;;  %v4660_v47 = vadd.f32 -1.0, %v5031_v62  ;;  %1360 = vmatpush.bf16.msrb.mxu1 %v4113_v30  ;;  %v7157_v56 = vadd.f32 %v6667_v12, %v1672_v45  ;;  %v1673_v20 = vmul.f32 %v6694_v37, %v1089_v22  ;;  %v1159_v45 = vpop.f32.mrf.mxu2 }
 0x1d1   :  { %v7165_v40 = vadd.f32 %v3526_v33, %v7067_v51  ;;  %v4661_v59 = vadd.f32 -1.0, %v5033_v14  ;;  %v3752_v41 = vperm.slane %v7145_v42, 0  ;;  %5036 = vpow2.f32 %v2670_v2  ;;  %4490 = vmatmul.msk.bf16.vlgmr.msrb.gmra.mxu0 %vm731_vm0, %v7080_v17 }
 0x1d2   :  { %v5035_v29 = vpop.eup %5034  ;;  %v3046_v12 = vsel %vm2086_vm8, %v7093_v4, %v4660_v47  ;;  %v3573_v37 = vperm.slane %v6722_v9, 7  ;;  %v2302_v1 = vmin.f32 %v7157_v56, 0.0  ;;  %v7176_v3 = vadd.f32 %v6697_v15, %v1673_v20 }
 0x1d3   :  { %v3527_v51 = vmul.f32 %v3503_v48, %v3023_v6  ;;  %v3334_v43 = vmul.f32 %v3310_v39, %v3046_v12  ;;  %v3047_v26 = vsel %vm2087_vm9, %v7100_v60, %v4661_v59  ;;  %v4682_v55 = vadd.f32 -1.0, %v5035_v29  ;;  %4494 = vmatmul.msk.bf16.vlgmr.msrb.gmra.mxu1 %vm731_vm0, %v7080_v17  ;;  %v5280_v39 = vld [vmem:[#allocation7 + $0x8] sm:$0xff]  ;;  %v5281_v17 = vld [vmem:[#allocation8 + $0x8] sm:$0xff]  ;;  %v1188_v6 = vpop.f32.mrf.mxu3 }
 0x1d4   :  { %v3335_v9 = vmul.f32 %v3311_v34, %v3047_v26  ;;  %v3675_v4 = vperm.slane %v7131_v28, 1  ;;  %v2672_v53 = vmul.f32 1.442695, %v2302_v1  ;;  %v2303_v15 = vmin.f32 %v7176_v3, 0.0  ;;  %4503 = vmatmul.msk.bf16.gmra.mxu3 %vm731_vm0, %v7160_v58 }
 0x1d5   :  { %v7192_v48 = vadd.f32 %v3334_v43, %v7070_v38  ;;  %v3068_v60 = vsel %vm2108_vm10, %v7109_v21, %v4682_v55  ;;  %v7197_v16 = vperm.slane %v5280_v39, 4  ;;  %v7199_v34 = vperm.slane %v5281_v17, 4  ;;  %v1130_v38 = vpop.f32.mrf.mxu1 }
 0x1d6   :  { %v7202_v0 = vadd.f32 %v3335_v9, %v7077_v57  ;;  %v3596_v63 = vmul.f32 %v3572_v49, %v3068_v60  ;;  %5038 = vpow2.f32 %v2672_v53  ;;  %v2674_v33 = vmul.f32 1.442695, %v2303_v15 }
 0x1d7   :  { %v5037_v32 = vpop.eup %5036  ;;  %v3753_v25 = vperm.slane %v7145_v42, 1  ;;  %v1506_v21 = vmul.f32 %v7197_v16, %v1101_v44  ;;  %v7208_v10 = vperm.slane %v5280_v39, 5  ;;  %v7210_v22 = vperm.slane %v5281_v17, 5 }
 0x1d8   :  { %v3551_v31 = vadd.f32 %v3527_v51, %v7074_v46  ;;  %v3620_v57 = vadd.f32 %v3596_v63, %v7118_v61  ;;  %v4683_v30 = vadd.f32 -1.0, %v5037_v32  ;;  %5040 = vpow2.f32 %v2674_v33 }
 0x1d9   :  { %vm2109_vm11 = vcmp.gt.f32.partialorder %v7134_v19, 0.0  ;;  %v7216_v52 = vadd.f32 %v7199_v34, %v1506_v21  ;;  %v1507_v49 = vmul.f32 %v7208_v10, %v1130_v38  ;;  %v7219_v62 = vperm.slane %v5280_v39, 6 }
 0x1da   :  { %v3644_v2 = vadd.f32 %v3620_v57, %v3356_v24  ;;  %v3069_v14 = vsel %vm2109_vm11, %v7134_v19, %v4683_v30  ;;  %v7222_v47 = vperm.slane %v5281_v17, 6  ;;  %v7224_v46 = vperm.slane %v5280_v39, 7 }
 0x1db   :  { %v3597_v61 = vmul.f32 %v3573_v37, %v3069_v14  ;;  %v3574_v20 = vperm.slane %v6743_v54, 7  ;;  %v2136_v59 = vmin.f32 %v7216_v52, 0.0  ;;  %v7229_v29 = vadd.f32 %v7210_v22, %v1507_v49 }
 0x1dc   :  { %v5039_v12 = vpop.eup %5038  ;;  %vm3821_vm12 = vcmp.gt.f32.partialorder %v6690_v23, 0.0  ;;  %v3722_v24 = vmul.f32 %v3674_v50, %v3644_v2  ;;  %v1508_v19 = vmul.f32 %v7219_v62, %v1159_v45  ;;  %v1509_v1 = vmul.f32 %v7224_v46, %v1188_v6  ;;  %v1103_v45 = vpop.f32.mrf.mxu0 }
 0x1dd   :  { %v7236_v51 = vperm.slane %v5281_v17, 7  ;;  %v3621_v37 = vadd.f32 %v3597_v61, %v7123_v11  ;;  %v4684_v54 = vadd.f32 -1.0, %v5039_v12  ;;  %v3575_v43 = vperm.slane %v6764_v36, 7  ;;  %v1132_v14 = vpop.f32.mrf.mxu1 }
 0x1de   :  { %v2340_v26 = vmul.f32 1.442695, %v2136_v59  ;;  %v5041_v55 = vpop.eup %5040  ;;  %v7242_v9 = vadd.f32 %v3752_v41, %v3722_v24  ;;  %vm2110_vm13 = vcmp.gt.f32.partialorder %v7157_v56, 0.0  ;;  %v2137_v50 = vmin.f32 %v7229_v29, 0.0  ;;  %v7256_v41 = vld [vmem:[#allocation2 + $0x10] sm:$0xff]  ;;  %v7289_v59 = vld [vmem:[#allocation10 + $0x68] sm:$0xff] }
 0x1df   :  { %v7247_v53 = vadd.f32 %v7222_v47, %v1508_v19  ;;  %v3645_v15 = vadd.f32 %v3621_v37, %v7154_v27  ;;  %v3070_v11 = vsel %vm2110_vm13, %v7157_v56, %v4684_v54  ;;  %v4685_v44 = vadd.f32 -1.0, %v5041_v55  ;;  %4500 = vmatmul.msk.bf16.gmra.mxu2 %vm731_vm0, %v7256_v41 }
 0x1e0   :  { %v7252_v36 = vadd.f32 %v7236_v51, %v1509_v1  ;;  %v3848_v60 = vmin.f32 %v7242_v9, 0.0  ;;  %v3598_v39 = vmul.f32 %v3574_v20, %v3070_v11  ;;  %vm2111_vm14 = vcmp.gt.f32.partialorder %v7176_v3, 0.0 }
 0x1e1   :  { %5042 = vpow2.f32 %v2340_v26  ;;  %v3723_v27 = vmul.f32 %v3675_v4, %v3645_v15  ;;  %v3676_v56 = vperm.slane %v7131_v28, 2  ;;  %v3071_v17 = vsel %vm2111_vm14, %v7176_v3, %v4685_v44  ;;  %4491 = vmatmul.msk.bf16.gmra.mxu0 %vm731_vm0, %v7160_v58 }
 0x1e2   :  { %v2138_v63 = vmin.f32 %v7247_v53, 0.0  ;;  %v3880_v33 = vmul.f32 1.442695, %v3848_v60  ;;  %v3622_v38 = vadd.f32 %v3598_v39, %v7165_v40  ;;  %v3599_v32 = vmul.f32 %v3575_v43, %v3071_v17  ;;  %v7276_v40 = vld [vmem:[#allocation10 + $0x60] sm:$0xff]  ;;  %v7312_v60 = vld [vmem:[#allocation10 + $0x78] sm:$0xff] }
 0x1e3   :  { %v2342_v21 = vmul.f32 1.442695, %v2137_v50  ;;  %v7268_v57 = vadd.f32 %v3753_v25, %v3723_v27  ;;  %v3754_v30 = vperm.slane %v7145_v42, 2  ;;  %v2139_v4 = vmin.f32 %v7252_v36, 0.0  ;;  %4495 = vmatmul.msk.bf16.gmra.mxu1 %vm731_vm0, %v7160_v58 }
 0x1e4   :  { %v2344_v49 = vmul.f32 1.442695, %v2138_v63  ;;  %5044 = vpow2.f32 %v3880_v33  ;;  %v3646_v3 = vadd.f32 %v3622_v38, %v7192_v48  ;;  %v3623_v6 = vadd.f32 %v3599_v32, %v3551_v31  ;;  %4504 = vmatmul.msk.bf16.gmra.mxu3 %vm731_vm0, %v7256_v41 }
 0x1e5   :  { %v3677_v2 = vperm.slane %v7131_v28, 3  ;;  %v7284_v25 = vsel %vm3821_vm12, %v6690_v23, %v6817_v5  ;;  %v3849_v58 = vmin.f32 %v7268_v57, 0.0  ;;  %v3755_v61 = vperm.slane %v7145_v42, 3  ;;  %v7293_v23 = vld [vmem:[#allocation10 + $0x70] sm:$0xff] }
 0x1e6   :  { %v2346_v48 = vmul.f32 1.442695, %v2139_v4  ;;  %v3724_v20 = vmul.f32 %v3676_v56, %v3646_v3  ;;  %v3647_v28 = vadd.f32 %v3623_v6, %v7202_v0  ;;  %5046 = vpow2.f32 %v2342_v21  ;;  %v1161_v0 = vpop.f32.mrf.mxu2 }
 0x1e7   :  { %v5043_v31 = vpop.eup %5042  ;;  %v1530_v12 = vmul.f32 %v7197_v16, %v1103_v45  ;;  %v3882_v24 = vmul.f32 1.442695, %v3849_v58  ;;  %v3120_v19 = vperm.slane %v7276_v40, 0  ;;  %5048 = vpow2.f32 %v2344_v49 }
 0x1e8   :  { %v1531_v5 = vmul.f32 %v7208_v10, %v1132_v14  ;;  %v7296_v1 = vadd.f32 %v3754_v30, %v3724_v20  ;;  %v3725_v42 = vmul.f32 %v3677_v2, %v3647_v28  ;;  %5050 = vpow2.f32 %v2346_v48  ;;  %v1106_v14 = vpop.f32.mrf.mxu0  ;;  %v7329_v48 = vld [vmem:[#allocation2 + $0x18] sm:$0xff] }
 0x1e9   :  { %v7299_v37 = vadd.f32 %v7199_v34, %v1530_v12  ;;  %5052 = vpow2.f32 %v3882_v24  ;;  %v4518_v54 = vadd.f32 -1.0, %v5043_v31  ;;  %v3121_v43 = vperm.slane %v7289_v59, 0 }
 0x1ea   :  { %v7303_v26 = vadd.f32 %v7210_v22, %v1531_v5  ;;  %v5045_v55 = vpop.eup %5044  ;;  %v3850_v50 = vmin.f32 %v7296_v1, 0.0  ;;  %v7306_v15 = vadd.f32 %v3755_v61, %v3725_v42  ;;  %vm1944_vm15 = vcmp.gt.f32.partialorder %v7216_v52, 0.0 }
 0x1eb   :  { %v3122_v11 = vperm.slane %v7293_v23, 0  ;;  %vm3824_vm1 = vcmp.gt.f32.partialorder %v7242_v9, 0.0  ;;  %v4706_v44 = vadd.f32 -1.0, %v5045_v55  ;;  %vm1945_vm2 = vcmp.gt.f32.partialorder %v7229_v29, 0.0 }
 0x1ec   :  { %v2160_v39 = vmin.f32 %v7299_v37, 0.0  ;;  %v5047_v27 = vpop.eup %5046  ;;  %v3884_v56 = vmul.f32 1.442695, %v3850_v50  ;;  %v3851_v17 = vmin.f32 %v7306_v15, 0.0  ;;  %vm1946_vm3 = vcmp.gt.f32.partialorder %v7247_v53, 0.0 }
 0x1ed   :  { %vm1947_vm4 = vcmp.gt.f32.partialorder %v7252_v36, 0.0  ;;  %v5049_v63 = vpop.eup %5048  ;;  %v3944_v33 = vsel %vm3824_vm1, %v7242_v9, %v4706_v44  ;;  %v2904_v38 = vsel %vm1944_vm15, %v7216_v52, %v4518_v54  ;;  %v2161_v21 = vmin.f32 %v7303_v26, 0.0  ;;  %v1190_v9 = vpop.f32.mrf.mxu3 }
 0x1ee   :  { %v2388_v32 = vmul.f32 1.442695, %v2160_v39  ;;  %v5051_v30 = vpop.eup %5050  ;;  %v7322_v49 = vadd.f32 %v3944_v33, %v6752_v8  ;;  %5054 = vpow2.f32 %v3884_v56  ;;  %v3886_v4 = vmul.f32 1.442695, %v3851_v17  ;;  %v1135_v8 = vpop.f32.mrf.mxu1 }
 0x1ef   :  { %v3123_v45 = vperm.slane %v7312_v60, 0  ;;  %v5053_v3 = vpop.eup %5052  ;;  %vm3825_vm5 = vcmp.gt.f32.partialorder %v7268_v57, 0.0  ;;  %v4519_v6 = vadd.f32 -1.0, %v5047_v27  ;;  %v2390_v2 = vmul.f32 1.442695, %v2161_v21  ;;  %4501 = vmatmul.msk.bf16.gmra.mxu2 %vm731_vm0, %v7329_v48  ;;  %v1164_v5 = vpop.f32.mrf.mxu2 }
 0x1f0   :  { %5056 = vpow2.f32 %v2388_v32  ;;  %v4707_v52 = vadd.f32 -1.0, %v5053_v3  ;;  %v7326_v58 = vmul.f32 %v3120_v19, %v2904_v38  ;;  %v3384_v61 = vperm.slane %v7276_v40, 1 }
 0x1f1   :  { %5058 = vpow2.f32 %v3886_v4  ;;  %v4520_v31 = vadd.f32 -1.0, %v5049_v63  ;;  %v4521_v20 = vadd.f32 -1.0, %v5051_v30  ;;  %v1532_v28 = vmul.f32 %v7219_v62, %v1161_v0  ;;  %4492 = vmatmul.msk.bf16.gmra.mxu0 %vm731_vm0, %v7256_v41 }
 0x1f2   :  { %5060 = vpow2.f32 %v2390_v2  ;;  %v3945_v12 = vsel %vm3825_vm5, %v7268_v57, %v4707_v52  ;;  %vm3826_vm6 = vcmp.gt.f32.partialorder %v7296_v1, 0.0  ;;  %v1533_v24 = vmul.f32 %v7224_v46, %v1190_v9 }
 0x1f3   :  { %v1554_v19 = vmul.f32 %v7197_v16, %v1106_v14  ;;  %v7343_v42 = vadd.f32 %v3945_v12, %v6757_v13  ;;  %v2905_v0 = vsel %vm1945_vm2, %v7229_v29, %v4519_v6  ;;  %v7349_v54 = vadd.f32 %v7222_v47, %v1532_v28  ;;  %4496 = vmatmul.msk.bf16.gmra.mxu1 %vm731_vm0, %v7256_v41 }
 0x1f4   :  { %v1555_v55 = vmul.f32 %v7208_v10, %v1135_v8  ;;  %v5055_v57 = vpop.eup %5054  ;;  %vm3827_vm7 = vcmp.gt.f32.partialorder %v7306_v15, 0.0  ;;  %vm1968_vm8 = vcmp.gt.f32.partialorder %v7299_v37, 0.0  ;;  %vm1969_vm9 = vcmp.gt.f32.partialorder %v7303_v26, 0.0  ;;  %4505 = vmatmul.msk.bf16.gmra.mxu3 %vm731_vm0, %v7329_v48  ;;  %v1108_v8 = vpop.f32.mrf.mxu0 }
 0x1f5   :  { %v7358_v13 = vadd.f32 %v7236_v51, %v1533_v24  ;;  %v7361_v29 = vadd.f32 %v7199_v34, %v1554_v19  ;;  %v4708_v44 = vadd.f32 -1.0, %v5055_v57  ;;  %v2906_v41 = vsel %vm1946_vm3, %v7247_v53, %v4520_v31  ;;  %v1193_v52 = vpop.f32.mrf.mxu3 }
 0x1f6   :  { %v5057_v50 = vpop.eup %5056  ;;  %v2907_v39 = vsel %vm1947_vm4, %v7252_v36, %v4521_v20  ;;  %v2162_v27 = vmin.f32 %v7349_v54, 0.0  ;;  %v7374_v17 = vmul.f32 %v3121_v43, %v2905_v0  ;;  %v3385_v63 = vperm.slane %v7289_v59, 1  ;;  %v1137_v12 = vpop.f32.mrf.mxu1 }
 0x1f7   :  { %v5059_v56 = vpop.eup %5058  ;;  %v2163_v33 = vmin.f32 %v7358_v13, 0.0  ;;  %v1556_v38 = vmul.f32 %v7219_v62, %v1164_v5  ;;  %v3946_v53 = vsel %vm3826_vm6, %v7296_v1, %v4708_v44  ;;  %v2184_v36 = vmin.f32 %v7361_v29, 0.0  ;;  %v1166_v5 = vpop.f32.mrf.mxu2 }
 0x1f8   :  { %v5061_v32 = vpop.eup %5060  ;;  %v4709_v21 = vadd.f32 -1.0, %v5059_v56  ;;  %v7384_v30 = vadd.f32 %v7210_v22, %v1555_v55  ;;  %v7387_v43 = vadd.f32 %v3946_v53, %v6807_v7  ;;  %v7391_v4 = vmul.f32 %v3122_v11, %v2906_v41 }
 0x1f9   :  { %v7393_v3 = vmul.f32 %v3123_v45, %v2907_v39  ;;  %v2392_v6 = vmul.f32 1.442695, %v2162_v27  ;;  %v4542_v2 = vadd.f32 -1.0, %v5057_v50  ;;  %v4543_v9 = vadd.f32 -1.0, %v5061_v32 }
 0x1fa   :  { %v3947_v1 = vsel %vm3827_vm7, %v7306_v15, %v4709_v21  ;;  %v2436_v14 = vmul.f32 1.442695, %v2184_v36  ;;  %v3386_v7 = vperm.slane %v7293_v23, 1  ;;  %v2394_v20 = vmul.f32 1.442695, %v2163_v33 }
 0x1fb   :  { %v7399_v31 = vadd.f32 %v3947_v1, %v7284_v25  ;;  %v3387_v11 = vperm.slane %v7312_v60, 1  ;;  %v3168_v45 = vperm.slane %v7276_v40, 2  ;;  %v2185_v28 = vmin.f32 %v7384_v30, 0.0 }
 0x1fc   :  { %5062 = vpow2.f32 %v2436_v14  ;;  %v7406_v15 = vadd.f32 %v7222_v47, %v1556_v38  ;;  %v3169_v24 = vperm.slane %v7289_v59, 2  ;;  %v1557_v25 = vmul.f32 %v7224_v46, %v1193_v52 }
 0x1fd   :  { %5064 = vpow2.f32 %v2392_v6  ;;  %v1578_v19 = vmul.f32 %v7197_v16, %v1108_v8  ;;  %v2928_v0 = vsel %vm1968_vm8, %v7299_v37, %v4542_v2  ;;  %v2929_v55 = vsel %vm1969_vm9, %v7303_v26, %v4543_v9  ;;  %v1195_v52 = vpop.f32.mrf.mxu3 }
 0x1fe   :  { %v2438_v57 = vmul.f32 1.442695, %v2185_v28  ;;  %v2186_v50 = vmin.f32 %v7406_v15, 0.0  ;;  %5066 = vpow2.f32 %v2394_v20  ;;  %v7419_v44 = vadd.f32 %v7236_v51, %v1557_v25  ;;  %v1111_v25 = vpop.f32.mrf.mxu0 }
 0x1ff   :  { %v7422_v41 = vadd.f32 %v7199_v34, %v1578_v19  ;;  %v1579_v39 = vmul.f32 %v7208_v10, %v1137_v12  ;;  %vm1992_vm10 = vcmp.gt.f32.partialorder %v7361_v29, 0.0  ;;  %v1580_v27 = vmul.f32 %v7219_v62, %v1166_v5 }
 0x200   :  { %5068 = vpow2.f32 %v2438_v57  ;;  %v2440_v37 = vmul.f32 1.442695, %v2186_v50  ;;  %v7429_v26 = vmul.f32 %v3384_v61, %v2928_v0  ;;  %v7431_v56 = vmul.f32 %v3385_v63, %v2929_v55 }
 0x201   :  { %vm1993_vm11 = vcmp.gt.f32.partialorder %v7384_v30, 0.0  ;;  %v2187_v33 = vmin.f32 %v7419_v44, 0.0  ;;  %vm1970_vm12 = vcmp.gt.f32.partialorder %v7349_v54, 0.0  ;;  %v3170_v32 = vperm.slane %v7293_v23, 2  ;;  %4493 = vmatmul.msk.bf16.gmra.mxu0 %vm731_vm0, %v7329_v48 }
 0x202   :  { %v5063_v38 = vpop.eup %5062  ;;  %5070 = vpow2.f32 %v2440_v37  ;;  %v2208_v53 = vmin.f32 %v7422_v41, 0.0  ;;  %v7439_v21 = vadd.f32 %v7210_v22, %v1579_v39  ;;  %vm1971_vm13 = vcmp.gt.f32.partialorder %v7358_v13, 0.0  ;;  %v1140_v39 = vpop.f32.mrf.mxu1 }
 0x203   :  { %v5065_v61 = vpop.eup %5064  ;;  %v4566_v63 = vadd.f32 -1.0, %v5063_v38  ;;  %v2442_v36 = vmul.f32 1.442695, %v2187_v33  ;;  %v3171_v6 = vperm.slane %v7312_v60, 2  ;;  %v7446_v1 = vadd.f32 %v7222_v47, %v1580_v27  ;;  %4497 = vmatmul.msk.bf16.gmra.mxu1 %vm731_vm0, %v7329_v48 }
 0x204   :  { %vm1994_vm14 = vcmp.gt.f32.partialorder %v7406_v15, 0.0  ;;  %v2484_v2 = vmul.f32 1.442695, %v2208_v53  ;;  %v3432_v9 = vperm.slane %v7276_v40, 3  ;;  %v3433_v14 = vperm.slane %v7289_v59, 3  ;;  %v5067_v8 = vpop.eup %5066 }
 0x205   :  { %v2952_v20 = vsel %vm1992_vm10, %v7361_v29, %v4566_v63  ;;  %5072 = vpow2.f32 %v2442_v36  ;;  %v2209_v28 = vmin.f32 %v7439_v21, 0.0  ;;  %v3434_v12 = vperm.slane %v7293_v23, 3 }
 0x206   :  { %v5069_v19 = vpop.eup %5068  ;;  %v4544_v5 = vadd.f32 -1.0, %v5065_v61  ;;  %v3192_v0 = vmul.f32 %v3168_v45, %v2952_v20  ;;  %5074 = vpow2.f32 %v2484_v2  ;;  %v2210_v55 = vmin.f32 %v7446_v1, 0.0 }
 0x207   :  { %v4567_v57 = vadd.f32 -1.0, %v5069_v19  ;;  %vm1995_vm0 = vcmp.gt.f32.partialorder %v7419_v44, 0.0  ;;  %v2486_v48 = vmul.f32 1.442695, %v2209_v28  ;;  %v1581_v50 = vmul.f32 %v7224_v46, %v1195_v52 }
 0x208   :  { %v5071_v29 = vpop.eup %5070  ;;  %v4545_v37 = vadd.f32 -1.0, %v5067_v8  ;;  %v7462_v27 = vadd.f32 %v3192_v0, %v7326_v58  ;;  %v2488_v33 = vmul.f32 1.442695, %v2210_v55  ;;  %v1602_v38 = vmul.f32 %v7197_v16, %v1111_v25 }
 0x209   :  { %v2953_v45 = vsel %vm1993_vm11, %v7384_v30, %v4567_v57  ;;  %v4568_v53 = vadd.f32 -1.0, %v5071_v29  ;;  %5076 = vpow2.f32 %v2486_v48  ;;  %v7469_v61 = vadd.f32 %v7236_v51, %v1581_v50  ;;  %v1198_v29 = vpop.f32.mrf.mxu3 }
 0x20a   :  { %v3193_v63 = vmul.f32 %v3169_v24, %v2953_v45  ;;  %5078 = vpow2.f32 %v2488_v33  ;;  %v7474_v36 = vadd.f32 %v7199_v34, %v1602_v38  ;;  %v1603_v58 = vmul.f32 %v7208_v10, %v1140_v39  ;;  %v1169_v24 = vpop.f32.mrf.mxu2 }
 0x20b   :  { %v5073_v2 = vpop.eup %5072  ;;  %v2930_v52 = vsel %vm1970_vm12, %v7349_v54, %v4544_v5  ;;  %v2954_v30 = vsel %vm1994_vm14, %v7406_v15, %v4568_v53  ;;  %vm2016_vm15 = vcmp.gt.f32.partialorder %v7422_v41, 0.0  ;;  %v2211_v8 = vmin.f32 %v7469_v61, 0.0 }
 0x20c   :  { %v5075_v20 = vpop.eup %5074  ;;  %v2931_v28 = vsel %vm1971_vm13, %v7358_v13, %v4545_v37  ;;  %v7489_v25 = vadd.f32 %v3193_v63, %v7374_v17  ;;  %v3194_v19 = vmul.f32 %v3170_v32, %v2954_v30  ;;  %v4569_v0 = vadd.f32 -1.0, %v5073_v2 }
 0x20d   :  { %v4590_v54 = vadd.f32 -1.0, %v5075_v20  ;;  %v2490_v5 = vmul.f32 1.442695, %v2211_v8  ;;  %v2232_v55 = vmin.f32 %v7474_v36, 0.0  ;;  %v7493_v15 = vadd.f32 %v7210_v22, %v1603_v58  ;;  %v1113_v58 = vpop.f32.mrf.mxu0 }
 0x20e   :  { %v7496_v57 = vadd.f32 %v3194_v19, %v7391_v4  ;;  %v2955_v48 = vsel %vm1995_vm0, %v7419_v44, %v4569_v0  ;;  %vm2017_vm1 = vcmp.gt.f32.partialorder %v7439_v21, 0.0  ;;  %v1604_v13 = vmul.f32 %v7219_v62, %v1169_v24 }
 0x20f   :  { %v5077_v17 = vpop.eup %5076  ;;  %v3195_v32 = vmul.f32 %v3171_v6, %v2955_v48  ;;  %v2976_v50 = vsel %vm2016_vm15, %v7422_v41, %v4590_v54  ;;  %5080 = vpow2.f32 %v2490_v5  ;;  %v2532_v39 = vmul.f32 1.442695, %v2232_v55 }
 0x210   :  { %v5079_v37 = vpop.eup %5078  ;;  %v3456_v4 = vmul.f32 %v3432_v9, %v2976_v50  ;;  %v4591_v33 = vadd.f32 -1.0, %v5077_v17  ;;  %vm2018_vm2 = vcmp.gt.f32.partialorder %v7446_v1, 0.0  ;;  %v2233_v44 = vmin.f32 %v7493_v15, 0.0 }
 0x211   :  { %v7509_v38 = vadd.f32 %v3195_v32, %v7393_v3  ;;  %v4592_v45 = vadd.f32 -1.0, %v5079_v37  ;;  %5082 = vpow2.f32 %v2532_v39  ;;  %v7512_v6 = vadd.f32 %v7222_v47, %v1604_v13  ;;  %v1200_v37 = vpop.f32.mrf.mxu3 }
 0x212   :  { %v7515_v41 = vadd.f32 %v3456_v4, %v7429_v26  ;;  %v2977_v9 = vsel %vm2017_vm1, %v7439_v21, %v4591_v33  ;;  %v2534_v53 = vmul.f32 1.442695, %v2233_v44  ;;  %v1605_v63 = vmul.f32 %v7224_v46, %v1198_v29  ;;  %v1142_v26 = vpop.f32.mrf.mxu1  ;;  %v1171_v0 = vpop.f32.mrf.mxu2 }
 0x213   :  { %v3410_v3 = vmul.f32 %v3386_v7, %v2930_v52  ;;  %v3457_v2 = vmul.f32 %v3433_v14, %v2977_v9  ;;  %v2978_v30 = vsel %vm2018_vm2, %v7446_v1, %v4592_v45  ;;  %v2234_v8 = vmin.f32 %v7512_v6, 0.0 }
 0x214   :  { %v3411_v24 = vmul.f32 %v3387_v11, %v2931_v28  ;;  %v3458_v21 = vmul.f32 %v3434_v12, %v2978_v30  ;;  %5084 = vpow2.f32 %v2534_v53  ;;  %v7532_v20 = vadd.f32 %v7236_v51, %v1605_v63 }
 0x215   :  { %v5081_v19 = vpop.eup %5080  ;;  %v7535_v7 = vadd.f32 %v3457_v2, %v7431_v56  ;;  %v3435_v14 = vperm.slane %v7312_v60, 3  ;;  %v2536_v1 = vmul.f32 1.442695, %v2234_v8  ;;  %v1626_v52 = vmul.f32 %v7197_v16, %v1113_v58 }
 0x216   :  { %v7539_v54 = vadd.f32 %v3458_v21, %v3410_v3  ;;  %v4593_v11 = vadd.f32 -1.0, %v5081_v19  ;;  %v3240_v28 = vperm.slane %v7276_v40, 4  ;;  %v2235_v12 = vmin.f32 %v7532_v20, 0.0 }
 0x217   :  { %v5083_v5 = vpop.eup %5082  ;;  %vm2019_vm3 = vcmp.gt.f32.partialorder %v7469_v61, 0.0  ;;  %5086 = vpow2.f32 %v2536_v1  ;;  %v7545_v56 = vadd.f32 %v7199_v34, %v1626_v52  ;;  %v1627_v55 = vmul.f32 %v7208_v10, %v1142_v26 }
 0x218   :  { %v2979_v48 = vsel %vm2019_vm3, %v7469_v61, %v4593_v11  ;;  %v4614_v13 = vadd.f32 -1.0, %v5083_v5  ;;  %v2538_v17 = vmul.f32 1.442695, %v2235_v12  ;;  %v1628_v32 = vmul.f32 %v7219_v62, %v1171_v0 }
 0x219   :  { %v3459_v50 = vmul.f32 %v3435_v14, %v2979_v48  ;;  %vm2040_vm4 = vcmp.gt.f32.partialorder %v7474_v36, 0.0  ;;  %v2256_v39 = vmin.f32 %v7545_v56, 0.0  ;;  %v7553_v29 = vadd.f32 %v7210_v22, %v1627_v55 }
 0x21a   :  { %v5085_v4 = vpop.eup %5084  ;;  %v3000_v33 = vsel %vm2040_vm4, %v7474_v36, %v4614_v13  ;;  %v3241_v44 = vperm.slane %v7289_v59, 4  ;;  %5088 = vpow2.f32 %v2538_v17  ;;  %v7558_v61 = vadd.f32 %v7222_v47, %v1628_v32  ;;  %v1116_v36 = vpop.f32.mrf.mxu0 }
 0x21b   :  { %v7560_v45 = vadd.f32 %v3459_v50, %v3411_v24  ;;  %v3264_v9 = vmul.f32 %v3240_v28, %v3000_v33  ;;  %v4615_v53 = vadd.f32 -1.0, %v5085_v4  ;;  %v2580_v63 = vmul.f32 1.442695, %v2256_v39  ;;  %v1145_v21 = vpop.f32.mrf.mxu1  ;;  %v1174_v55 = vpop.f32.mrf.mxu2 }
 0x21c   :  { %vm2041_vm5 = vcmp.gt.f32.partialorder %v7493_v15, 0.0  ;;  %v3242_v58 = vperm.slane %v7293_v23, 4  ;;  %v2257_v3 = vmin.f32 %v7553_v29, 0.0  ;;  %v2258_v2 = vmin.f32 %v7558_v61, 0.0 }
 0x21d   :  { %v5087_v30 = vpop.eup %5086  ;;  %v7567_v8 = vadd.f32 %v3264_v9, %v7462_v27  ;;  %v3001_v26 = vsel %vm2041_vm5, %v7493_v15, %v4615_v53  ;;  %5090 = vpow2.f32 %v2580_v63  ;;  %v1629_v24 = vmul.f32 %v7224_v46, %v1200_v37 }
 0x21e   :  { %v3265_v19 = vmul.f32 %v3241_v44, %v3001_v26  ;;  %v4616_v14 = vadd.f32 -1.0, %v5087_v30  ;;  %v2582_v1 = vmul.f32 1.442695, %v2257_v3  ;;  %v2584_v52 = vmul.f32 1.442695, %v2258_v2  ;;  %v1203_v44 = vpop.f32.mrf.mxu3 }
 0x21f   :  { %vm2042_vm6 = vcmp.gt.f32.partialorder %v7512_v6, 0.0  ;;  %v3243_v0 = vperm.slane %v7312_v60, 4  ;;  %v7574_v11 = vadd.f32 %v7236_v51, %v1629_v24  ;;  %v1650_v27 = vmul.f32 %v7197_v16, %v1116_v36 }
 0x220   :  { %v5089_v28 = vpop.eup %5088  ;;  %v7578_v15 = vadd.f32 %v3265_v19, %v7489_v25  ;;  %v3002_v12 = vsel %vm2042_vm6, %v7512_v6, %v4616_v14  ;;  %5092 = vpow2.f32 %v2582_v1  ;;  %v1651_v5 = vmul.f32 %v7208_v10, %v1145_v21 }
 0x221   :  { %v3266_v48 = vmul.f32 %v3242_v58, %v3002_v12  ;;  %v4617_v13 = vadd.f32 -1.0, %v5089_v28  ;;  %v3504_v17 = vperm.slane %v7276_v40, 5  ;;  %5094 = vpow2.f32 %v2584_v52 }
 0x222   :  { %vm2043_vm7 = vcmp.gt.f32.partialorder %v7532_v20, 0.0  ;;  %v2259_v32 = vmin.f32 %v7574_v11, 0.0  ;;  %v7586_v50 = vadd.f32 %v7199_v34, %v1650_v27  ;;  %v7589_v25 = vadd.f32 %v7210_v22, %v1651_v5 }
 0x223   :  { %v5091_v6 = vpop.eup %5090  ;;  %v7592_v39 = vadd.f32 %v3266_v48, %v7496_v57  ;;  %v3003_v37 = vsel %vm2043_vm7, %v7532_v20, %v4617_v13  ;;  %v3505_v4 = vperm.slane %v7289_v59, 5  ;;  %v1652_v33 = vmul.f32 %v7219_v62, %v1174_v55 }
 0x224   :  { %v3267_v9 = vmul.f32 %v3243_v0, %v3003_v37  ;;  %vm2064_vm8 = vcmp.gt.f32.partialorder %v7545_v56, 0.0  ;;  %v4638_v53 = vadd.f32 -1.0, %v5091_v6  ;;  %v2586_v63 = vmul.f32 1.442695, %v2259_v32  ;;  %v1147_v32 = vpop.f32.mrf.mxu1 }
 0x225   :  { %v3506_v58 = vperm.slane %v7293_v23, 5  ;;  %v2280_v3 = vmin.f32 %v7586_v50, 0.0  ;;  %v2281_v2 = vmin.f32 %v7589_v25, 0.0  ;;  %v7602_v57 = vadd.f32 %v7222_v47, %v1652_v33 }
 0x226   :  { %v5093_v20 = vpop.eup %5092  ;;  %v7605_v36 = vadd.f32 %v3267_v9, %v7509_v38  ;;  %v3024_v30 = vsel %vm2064_vm8, %v7545_v56, %v4638_v53  ;;  %5096 = vpow2.f32 %v2586_v63  ;;  %v1653_v26 = vmul.f32 %v7224_v46, %v1203_v44  ;;  %v1118_v38 = vpop.f32.mrf.mxu0 }
 0x227   :  { %v5095_v24 = vpop.eup %5094  ;;  %v3528_v21 = vmul.f32 %v3504_v17, %v3024_v30  ;;  %v4639_v19 = vadd.f32 -1.0, %v5093_v20  ;;  %v2628_v14 = vmul.f32 1.442695, %v2280_v3  ;;  %v2630_v1 = vmul.f32 1.442695, %v2281_v2  ;;  %v1176_v9 = vpop.f32.mrf.mxu2 }
 0x228   :  { %vm2065_vm9 = vcmp.gt.f32.partialorder %v7553_v29, 0.0  ;;  %v4640_v52 = vadd.f32 -1.0, %v5095_v24  ;;  %v2282_v0 = vmin.f32 %v7602_v57, 0.0  ;;  %v7612_v27 = vadd.f32 %v7236_v51, %v1653_v26 }
 0x229   :  { %v7615_v28 = vadd.f32 %v3528_v21, %v7515_v41  ;;  %v3025_v56 = vsel %vm2065_vm9, %v7553_v29, %v4639_v19  ;;  %vm2066_vm10 = vcmp.gt.f32.partialorder %v7558_v61, 0.0  ;;  %5098 = vpow2.f32 %v2628_v14  ;;  %v1205_v14 = vpop.f32.mrf.mxu3 }
 0x22a   :  { %v3529_v12 = vmul.f32 %v3505_v4, %v3025_v56  ;;  %v3026_v5 = vsel %vm2066_vm10, %v7558_v61, %v4640_v52  ;;  %5100 = vpow2.f32 %v2630_v1  ;;  %v2632_v55 = vmul.f32 1.442695, %v2282_v0 }
 0x22b   :  { %v3530_v48 = vmul.f32 %v3506_v58, %v3026_v5  ;;  %v2283_v13 = vmin.f32 %v7612_v27, 0.0  ;;  %v1674_v17 = vmul.f32 %v7197_v16, %v1118_v38  ;;  %v3507_v29 = vperm.slane %v7312_v60, 5 }
 0x22c   :  { %v5097_v6 = vpop.eup %5096  ;;  %v7623_v41 = vadd.f32 %v3529_v12, %v7535_v7  ;;  %5102 = vpow2.f32 %v2632_v55  ;;  %vm2067_vm11 = vcmp.gt.f32.partialorder %v7574_v11, 0.0  ;;  %v3312_v16 = vperm.slane %v7276_v40, 6 }
 0x22d   :  { %v7627_v37 = vadd.f32 %v3530_v48, %v7539_v54  ;;  %v4641_v4 = vadd.f32 -1.0, %v5097_v6  ;;  %v2634_v61 = vmul.f32 1.442695, %v2283_v13  ;;  %v7630_v33 = vadd.f32 %v7199_v34, %v1674_v17  ;;  %v7662_v17 = vld [vmem:[#allocation7 + $0x10] sm:$0xff] }
 0x22e   :  { %v1675_v44 = vmul.f32 %v7208_v10, %v1147_v32  ;;  %v3313_v63 = vperm.slane %v7289_v59, 6  ;;  %v3314_v34 = vperm.slane %v7293_v23, 6  ;;  %vm2088_vm12 = vcmp.gt.f32.partialorder %v7586_v50, 0.0 }
 0x22f   :  { %v5099_v7 = vpop.eup %5098  ;;  %v3027_v53 = vsel %vm2067_vm11, %v7574_v11, %v4641_v4  ;;  %5104 = vpow2.f32 %v2634_v61  ;;  %v2304_v54 = vmin.f32 %v7630_v33, 0.0  ;;  %v1676_v26 = vmul.f32 %v7219_v62, %v1176_v9  ;;  %v1217_v4 = vpop.f32.mrf.mxu0  ;;  %v7670_v61 = vld [vmem:[#allocation8 + $0x10] sm:$0xff] }
 0x230   :  { %v5101_v58 = vpop.eup %5100  ;;  %v3531_v3 = vmul.f32 %v3507_v29, %v3027_v53  ;;  %v4662_v2 = vadd.f32 -1.0, %v5099_v7  ;;  %v1921_v20 = vadd.f32 %v7210_v22, %v1675_v44  ;;  %vm2089_vm13 = vcmp.gt.f32.partialorder %v7589_v25, 0.0 }
 0x231   :  { %v4663_v30 = vadd.f32 -1.0, %v5101_v58  ;;  %v2676_v10 = vmul.f32 1.442695, %v2304_v54  ;;  %vm2090_vm14 = vcmp.gt.f32.partialorder %v7602_v57, 0.0  ;;  %v7650_v62 = vadd.f32 %v7222_v47, %v1676_v26  ;;  %v1246_v54 = vpop.f32.mrf.mxu1 }
 0x232   :  { %v5103_v24 = vpop.eup %5102  ;;  %v7643_v11 = vadd.f32 %v3531_v3, %v7560_v45  ;;  %v3048_v21 = vsel %vm2088_vm12, %v7586_v50, %v4662_v2  ;;  %v2305_v19 = vmin.f32 %v1921_v20, 0.0  ;;  %v3315_v12 = vperm.slane %v7312_v60, 6 }
 0x233   :  { %v3336_v1 = vmul.f32 %v3312_v16, %v3048_v21  ;;  %v3049_v52 = vsel %vm2089_vm13, %v7589_v25, %v4663_v30  ;;  %v4664_v22 = vadd.f32 -1.0, %v5103_v24  ;;  %5106 = vpow2.f32 %v2676_v10  ;;  %v7696_v10 = vld [vmem:[#allocation13 + $0x8] sm:$0xff] }
 0x234   :  { %v3337_v0 = vmul.f32 %v3313_v63, %v3049_v52  ;;  %v2678_v38 = vmul.f32 1.442695, %v2305_v19  ;;  %v1677_v5 = vmul.f32 %v7224_v46, %v1205_v14  ;;  %vm2091_vm0 = vcmp.gt.f32.partialorder %v7612_v27, 0.0 }
 0x235   :  { %v5105_v45 = vpop.eup %5104  ;;  %v3360_v56 = vadd.f32 %v3336_v1, %v7567_v8  ;;  %v3050_v50 = vsel %vm2090_vm14, %v7602_v57, %v4664_v22  ;;  %v2306_v13 = vmin.f32 %v7650_v62, 0.0  ;;  %vm2112_vm15 = vcmp.gt.f32.partialorder %v7630_v33, 0.0 }
 0x236   :  { %v3361_v25 = vadd.f32 %v3337_v0, %v7578_v15  ;;  %v3338_v55 = vmul.f32 %v3314_v34, %v3050_v50  ;;  %v4665_v48 = vadd.f32 -1.0, %v5105_v45  ;;  %5108 = vpow2.f32 %v2678_v38 }
 0x237   :  { %v7660_v47 = vadd.f32 %v7236_v51, %v1677_v5  ;;  %v3576_v15 = vperm.slane %v7276_v40, 7  ;;  %v2680_v6 = vmul.f32 1.442695, %v2306_v13  ;;  %v7674_v16 = vperm.slane %v7662_v17, 0  ;;  %v1275_v5 = vpop.f32.mrf.mxu2 }
 0x238   :  { %v7665_v8 = vadd.f32 %v3338_v55, %v7592_v39  ;;  %v3051_v57 = vsel %vm2091_vm0, %v7612_v27, %v4665_v48  ;;  %v7680_v44 = vperm.slane %v7662_v17, 1  ;;  %v3577_v7 = vperm.slane %v7289_v59, 7 }
 0x239   :  { %v5107_v46 = vpop.eup %5106  ;;  %v3339_v32 = vmul.f32 %v3315_v12, %v3051_v57  ;;  %v2307_v29 = vmin.f32 %v7660_v47, 0.0  ;;  %5110 = vpow2.f32 %v2680_v6  ;;  %v1510_v53 = vmul.f32 %v7674_v16, %v1217_v4 }
 0x23a   :  { %v4686_v51 = vadd.f32 -1.0, %v5107_v46  ;;  %v7686_v63 = vperm.slane %v7670_v61, 0  ;;  %vm2113_vm1 = vcmp.gt.f32.partialorder %v1921_v20, 0.0  ;;  %v7694_v59 = vperm.slane %v7670_v61, 1 }
 0x23b   :  { %v7677_v39 = vadd.f32 %v3339_v32, %v7605_v36  ;;  %v2682_v27 = vmul.f32 1.442695, %v2307_v29  ;;  %v7688_v36 = vld [vmem:[#allocation11 + $0x8] sm:$0xff]  ;;  %v3756_v26 = vperm.slane %v7696_v10, 4  ;;  %vm2114_vm2 = vcmp.gt.f32.partialorder %v7650_v62, 0.0 }
 0x23c   :  { %v5109_v40 = vpop.eup %5108  ;;  %v3072_v9 = vsel %vm2112_vm15, %v7630_v33, %v4686_v51  ;;  %v3678_v2 = vperm.slane %v7688_v36, 4  ;;  %v1511_v33 = vmul.f32 %v7680_v44, %v1246_v54  ;;  %v3679_v21 = vperm.slane %v7688_v36, 5 }
 0x23d   :  { %v3600_v58 = vmul.f32 %v3576_v15, %v3072_v9  ;;  %v4687_v3 = vadd.f32 -1.0, %v5109_v40  ;;  %5112 = vpow2.f32 %v2682_v27  ;;  %v7701_v19 = vadd.f32 %v7686_v63, %v1510_v53 }
 0x23e   :  { %v3680_v52 = vperm.slane %v7688_v36, 6  ;;  %v7709_v38 = vperm.slane %v7662_v17, 2  ;;  %v3579_v12 = vperm.slane %v7312_v60, 7  ;;  %v3758_v32 = vperm.slane %v7696_v10, 6  ;;  %v1304_v60 = vpop.f32.mrf.mxu3 }
 0x23f   :  { %v3624_v34 = vadd.f32 %v3600_v58, %v7615_v28  ;;  %v3073_v30 = vsel %vm2113_vm1, %v1921_v20, %v4687_v3  ;;  %v5111_v14 = vpop.eup %5110  ;;  %v3757_v28 = vperm.slane %v7696_v10, 5  ;;  %v3578_v20 = vperm.slane %v7293_v23, 7 }
 0x240   :  { %v3601_v24 = vmul.f32 %v3577_v7, %v3073_v30  ;;  %v4688_v0 = vadd.f32 -1.0, %v5111_v14  ;;  %v7716_v23 = vperm.slane %v7662_v17, 3  ;;  %v2140_v13 = vmin.f32 %v7701_v19, 0.0 }
 0x241   :  { %v3648_v1 = vadd.f32 %v3624_v34, %v3360_v56  ;;  %v7713_v56 = vadd.f32 %v7694_v59, %v1511_v33  ;;  %vm2115_vm3 = vcmp.gt.f32.partialorder %v7660_v47, 0.0  ;;  %v1512_v29 = vmul.f32 %v7709_v38, %v1275_v5  ;;  %v1219_v33 = vpop.f32.mrf.mxu0 }
 0x242   :  { %v3625_v22 = vadd.f32 %v3601_v24, %v7623_v41  ;;  %v3074_v41 = vsel %vm2114_vm2, %v7650_v62, %v4688_v0  ;;  %v7725_v4 = vperm.slane %v7670_v61, 2  ;;  %v3681_v27 = vperm.slane %v7688_v36, 7 }
 0x243   :  { %v5113_v45 = vpop.eup %5112  ;;  %v3726_v50 = vmul.f32 %v3678_v2, %v3648_v1  ;;  %v3602_v46 = vmul.f32 %v3578_v20, %v3074_v41  ;;  %v2348_v9 = vmul.f32 1.442695, %v2140_v13  ;;  %v2141_v7 = vmin.f32 %v7713_v56, 0.0 }
 0x244   :  { %v3649_v55 = vadd.f32 %v3625_v22, %v3361_v25  ;;  %v4689_v48 = vadd.f32 -1.0, %v5113_v45  ;;  %v1513_v53 = vmul.f32 %v7716_v23, %v1304_v60  ;;  %v7734_v3 = vperm.slane %v7670_v61, 3  ;;  %v7752_v45 = vld [vmem:[#allocation10 + $0x80] sm:$0xff] }
 0x245   :  { %v3804_v57 = vadd.f32 %v3756_v26, %v3726_v50  ;;  %v3626_v62 = vadd.f32 %v3602_v46, %v7627_v37  ;;  %v7737_v37 = vadd.f32 %v7725_v4, %v1512_v29  ;;  %v3759_v30 = vperm.slane %v7696_v10, 7  ;;  %v1277_v10 = vpop.f32.mrf.mxu2  ;;  %v7754_v50 = vld [vmem:[#allocation10 + $0x88] sm:$0xff]  ;;  %v7763_v29 = vld [vmem:[#allocation10 + $0x90] sm:$0xff] }
 0x246   :  { %v3727_v15 = vmul.f32 %v3679_v21, %v3649_v55  ;;  %v3075_v6 = vsel %vm2115_vm3, %v7660_v47, %v4689_v48  ;;  %v2350_v24 = vmul.f32 1.442695, %v2141_v7  ;;  %v1248_v21 = vpop.f32.mrf.mxu1  ;;  %v7744_v14 = vadd.f32 %v7734_v3, %v1513_v53  ;;  %v7768_v7 = vld [vmem:[#allocation10 + $0x98] sm:$0xff] }
 0x247   :  { %v3852_v25 = vmin.f32 %v3804_v57, 0.0  ;;  %v3603_v51 = vmul.f32 %v3579_v12, %v3075_v6  ;;  %v3650_v47 = vadd.f32 %v3626_v62, %v7665_v8  ;;  %v2142_v1 = vmin.f32 %v7737_v37, 0.0 }
 0x248   :  { %v3805_v40 = vadd.f32 %v3757_v28, %v3727_v15  ;;  %v1534_v28 = vmul.f32 %v7674_v16, %v1219_v33  ;;  %v2143_v12 = vmin.f32 %v7744_v14, 0.0  ;;  %v1535_v48 = vmul.f32 %v7680_v44, %v1248_v21 }
 0x249   :  { %v3888_v54 = vmul.f32 1.442695, %v3852_v25  ;;  %v3627_v58 = vadd.f32 %v3603_v51, %v7643_v11  ;;  %v3728_v36 = vmul.f32 %v3680_v52, %v3650_v47  ;;  %v2352_v55 = vmul.f32 1.442695, %v2142_v1  ;;  %v1306_v25 = vpop.f32.mrf.mxu3 }
 0x24a   :  { %v3853_v2 = vmin.f32 %v3805_v40, 0.0  ;;  %v7758_v41 = vadd.f32 %v7686_v63, %v1534_v28  ;;  %vm3828_vm4 = vcmp.gt.f32.partialorder %v3804_v57, 0.0  ;;  %v3124_v15 = vperm.slane %v7752_v45, 0 }
 0x24b   :  { %5114 = vpow2.f32 %v3888_v54  ;;  %v3651_v34 = vadd.f32 %v3627_v58, %v7677_v39  ;;  %v7741_v8 = vadd.f32 %v3758_v32, %v3728_v36  ;;  %v3125_v6 = vperm.slane %v7754_v50, 0 }
 0x24c   :  { %v3890_v26 = vmul.f32 1.442695, %v3853_v2  ;;  %5116 = vpow2.f32 %v2348_v9  ;;  %v1222_v9 = vpop.f32.mrf.mxu0  ;;  %vm3829_vm5 = vcmp.gt.f32.partialorder %v3805_v40, 0.0  ;;  %v7772_v53 = vadd.f32 %v7694_v59, %v1535_v48 }
 0x24d   :  { %v3729_v11 = vmul.f32 %v3681_v27, %v3651_v34  ;;  %v3854_v39 = vmin.f32 %v7741_v8, 0.0  ;;  %v2354_v27 = vmul.f32 1.442695, %v2143_v12  ;;  %v1536_v36 = vmul.f32 %v7709_v38, %v1277_v10  ;;  %v1280_v21 = vpop.f32.mrf.mxu2 }
 0x24e   :  { %5118 = vpow2.f32 %v3890_v26  ;;  %v1251_v54 = vpop.f32.mrf.mxu1  ;;  %vm1948_vm6 = vcmp.gt.f32.partialorder %v7701_v19, 0.0  ;;  %vm1949_vm7 = vcmp.gt.f32.partialorder %v7713_v56, 0.0  ;;  %v3127_v26 = vperm.slane %v7768_v7, 0 }
 0x24f   :  { %v7749_v20 = vadd.f32 %v3759_v30, %v3729_v11  ;;  %v3892_v22 = vmul.f32 1.442695, %v3854_v39  ;;  %5120 = vpow2.f32 %v2350_v24  ;;  %v1558_v30 = vmul.f32 %v7674_v16, %v1222_v9 }
 0x250   :  { %v1559_v24 = vmul.f32 %v7680_v44, %v1251_v54  ;;  %vm1950_vm8 = vcmp.gt.f32.partialorder %v7737_v37, 0.0  ;;  %v2165_v1 = vmin.f32 %v7772_v53, 0.0  ;;  %vm3830_vm9 = vcmp.gt.f32.partialorder %v7741_v8, 0.0 }
 0x251   :  { %v5115_v52 = vpop.eup %5114  ;;  %v3855_v0 = vmin.f32 %v7749_v20, 0.0  ;;  %5122 = vpow2.f32 %v3892_v22  ;;  %v7788_v28 = vadd.f32 %v7686_v63, %v1558_v30  ;;  %v7795_v22 = vadd.f32 %v7725_v4, %v1536_v36 }
 0x252   :  { %v4710_v5 = vadd.f32 -1.0, %v5115_v52  ;;  %v5117_v13 = vpop.eup %5116  ;;  %v1560_v48 = vmul.f32 %v7709_v38, %v1280_v21  ;;  %vm3831_vm10 = vcmp.gt.f32.partialorder %v7749_v20, 0.0  ;;  %vm1951_vm11 = vcmp.gt.f32.partialorder %v7744_v14, 0.0 }
 0x253   :  { %v3894_v46 = vmul.f32 1.442695, %v3855_v0  ;;  %v4522_v2 = vadd.f32 -1.0, %v5117_v13  ;;  %v2166_v9 = vmin.f32 %v7795_v22, 0.0  ;;  %vm1972_vm12 = vcmp.gt.f32.partialorder %v7758_v41, 0.0 }
 0x254   :  { %v5119_v32 = vpop.eup %5118  ;;  %v3948_v60 = vsel %vm3828_vm4, %v3804_v57, %v4710_v5  ;;  %v2164_v57 = vmin.f32 %v7758_v41, 0.0  ;;  %v1224_v54 = vpop.f32.mrf.mxu0  ;;  %vm1996_vm13 = vcmp.gt.f32.partialorder %v7788_v28, 0.0  ;;  %vm1973_vm14 = vcmp.gt.f32.partialorder %v7772_v53, 0.0 }
 0x255   :  { %v7766_v62 = vadd.f32 %v6834_v18, %v3948_v60  ;;  %v4711_v51 = vadd.f32 -1.0, %v5119_v32  ;;  %5124 = vpow2.f32 %v3894_v46  ;;  %v5121_v47 = vpop.eup %5120  ;;  %v3126_v18 = vperm.slane %v7763_v29, 0 }
 0x256   :  { %5126 = vpow2.f32 %v2352_v55  ;;  %v2908_v10 = vsel %vm1948_vm6, %v7701_v19, %v4522_v2  ;;  %v4523_v52 = vadd.f32 -1.0, %v5121_v47  ;;  %v2188_v55 = vmin.f32 %v7788_v28, 0.0 }
 0x257   :  { %v3949_v58 = vsel %vm3829_vm5, %v3805_v40, %v4711_v51  ;;  %v5123_v33 = vpop.eup %5122  ;;  %5128 = vpow2.f32 %v2354_v27  ;;  %v1537_v40 = vmul.f32 %v7716_v23, %v1306_v25  ;;  %v7808_v19 = vadd.f32 %v7694_v59, %v1559_v24  ;;  %v1309_v25 = vpop.f32.mrf.mxu3 }
 0x258   :  { %v7777_v34 = vadd.f32 %v6841_v35, %v3949_v58  ;;  %v4712_v11 = vadd.f32 -1.0, %v5123_v33  ;;  %v2396_v35 = vmul.f32 1.442695, %v2164_v57  ;;  %v2444_v60 = vmul.f32 1.442695, %v2188_v55  ;;  %v1253_v58 = vpop.f32.mrf.mxu1 }
 0x259   :  { %v7805_v46 = vadd.f32 %v7734_v3, %v1537_v40  ;;  %v2189_v57 = vmin.f32 %v7808_v19, 0.0  ;;  %v3388_v47 = vperm.slane %v7752_v45, 1  ;;  %v1561_v30 = vmul.f32 %v7716_v23, %v1309_v25 }
 0x25a   :  { %v3950_v12 = vsel %vm3830_vm9, %v7741_v8, %v4712_v11  ;;  %5130 = vpow2.f32 %v2396_v35  ;;  %v2398_v8 = vmul.f32 1.442695, %v2165_v1  ;;  %v3148_v33 = vmul.f32 %v3124_v15, %v2908_v10 }
 0x25b   :  { %v5125_v39 = vpop.eup %5124  ;;  %v7801_v13 = vadd.f32 %v7322_v49, %v3950_v12  ;;  %5132 = vpow2.f32 %v2444_v60  ;;  %v2167_v2 = vmin.f32 %v7805_v46, 0.0  ;;  %v2446_v36 = vmul.f32 1.442695, %v2189_v57  ;;  %v1282_v12 = vpop.f32.mrf.mxu2 }
 0x25c   :  { %v5127_v0 = vpop.eup %5126  ;;  %v4713_v5 = vadd.f32 -1.0, %v5125_v39  ;;  %5134 = vpow2.f32 %v2398_v8  ;;  %v1582_v24 = vmul.f32 %v7674_v16, %v1224_v54  ;;  %v2400_v11 = vmul.f32 1.442695, %v2166_v9 }
 0x25d   :  { %v5129_v51 = vpop.eup %5128  ;;  %v4524_v49 = vadd.f32 -1.0, %v5127_v0  ;;  %5136 = vpow2.f32 %v2446_v36  ;;  %v3389_v10 = vperm.slane %v7754_v50, 1  ;;  %vm1997_vm0 = vcmp.gt.f32.partialorder %v7808_v19, 0.0 }
 0x25e   :  { %v3951_v32 = vsel %vm3831_vm10, %v7749_v20, %v4713_v5  ;;  %v7819_v20 = vadd.f32 %v7725_v4, %v1560_v48  ;;  %v4525_v40 = vadd.f32 -1.0, %v5129_v51  ;;  %v7838_v39 = vadd.f32 %v7686_v63, %v1582_v24 }
 0x25f   :  { %v7812_v27 = vadd.f32 %v7343_v42, %v3951_v32  ;;  %v2909_v42 = vsel %vm1949_vm7, %v7713_v56, %v4523_v52  ;;  %v2910_v21 = vsel %vm1950_vm8, %v7737_v37, %v4524_v49  ;;  %v1583_v56 = vmul.f32 %v7680_v44, %v1253_v58 }
 0x260   :  { %v5131_v35 = vpop.eup %5130  ;;  %v3149_v1 = vmul.f32 %v3125_v6, %v2909_v42  ;;  %v2190_v15 = vmin.f32 %v7819_v20, 0.0  ;;  %v2402_v52 = vmul.f32 1.442695, %v2167_v2  ;;  %v7842_v37 = vadd.f32 %v7734_v3, %v1561_v30  ;;  %v1311_v42 = vpop.f32.mrf.mxu3 }
 0x261   :  { %8599 = vst [vmem:[#allocation20_spill] sm:$0xff] %v7812_v27  ;;  %v7845_v0 = vadd.f32 %v7694_v59, %v1583_v56  ;;  %v5133_v5 = vpop.eup %5132  ;;  %v7849_v6 = vmul.f32 %v3126_v18, %v2910_v21  ;;  %v2911_v55 = vsel %vm1951_vm11, %v7744_v14, %v4525_v40  ;;  %v3172_v48 = vperm.slane %v7752_v45, 2  ;;  %v1227_v30 = vpop.f32.mrf.mxu0 }
 0x262   :  { %v2212_v32 = vmin.f32 %v7838_v39, 0.0  ;;  %v4546_v8 = vadd.f32 -1.0, %v5131_v35  ;;  %5138 = vpow2.f32 %v2400_v11  ;;  %v4570_v60 = vadd.f32 -1.0, %v5133_v5  ;;  %v5135_v51 = vpop.eup %5134  ;;  %v1256_v21 = vpop.f32.mrf.mxu1 }
 0x263   :  { %v2213_v25 = vmin.f32 %v7845_v0, 0.0  ;;  %v3173_v49 = vperm.slane %v7754_v50, 2  ;;  %v2448_v18 = vmul.f32 1.442695, %v2190_v15  ;;  %v5137_v57 = vpop.eup %5136  ;;  %5140 = vpow2.f32 %v2402_v52 }
 0x264   :  { %v2492_v9 = vmul.f32 1.442695, %v2212_v32  ;;  %v2956_v14 = vsel %vm1996_vm13, %v7788_v28, %v4570_v60  ;;  %v2191_v54 = vmin.f32 %v7842_v37, 0.0  ;;  %v4571_v36 = vadd.f32 -1.0, %v5137_v57 }
 0x265   :  { %v2494_v58 = vmul.f32 1.442695, %v2213_v25  ;;  %v3196_v2 = vmul.f32 %v3172_v48, %v2956_v14  ;;  %v2932_v40 = vsel %vm1972_vm12, %v7758_v41, %v4546_v8  ;;  %v4547_v24 = vadd.f32 -1.0, %v5135_v51  ;;  %v1285_v25 = vpop.f32.mrf.mxu2 }
 0x266   :  { %5142 = vpow2.f32 %v2492_v9  ;;  %v7868_v28 = vmul.f32 %v3127_v26, %v2911_v55  ;;  %v2957_v56 = vsel %vm1997_vm0, %v7808_v19, %v4571_v36  ;;  %v2450_v52 = vmul.f32 1.442695, %v2191_v54 }
 0x267   :  { %5144 = vpow2.f32 %v2494_v58  ;;  %v7870_v11 = vadd.f32 %v3196_v2, %v3148_v33  ;;  %v3197_v15 = vmul.f32 %v3173_v49, %v2957_v56  ;;  %v1584_v5 = vmul.f32 %v7709_v38, %v1282_v12 }
 0x268   :  { %5146 = vpow2.f32 %v2448_v18  ;;  %v5139_v35 = vpop.eup %5138  ;;  %v1606_v41 = vmul.f32 %v7674_v16, %v1227_v30  ;;  %v3412_v48 = vmul.f32 %v3388_v47, %v2932_v40  ;;  %v3390_v32 = vperm.slane %v7763_v29, 1 }
 0x269   :  { %v3391_v26 = vperm.slane %v7768_v7, 1  ;;  %v1607_v33 = vmul.f32 %v7680_v44, %v1256_v21  ;;  %v5141_v55 = vpop.eup %5140  ;;  %v2933_v19 = vsel %vm1973_vm14, %v7772_v53, %v4547_v24  ;;  %v7883_v8 = vadd.f32 %v3197_v15, %v3149_v1  ;;  %v1314_v24 = vpop.f32.mrf.mxu3 }
 0x26a   :  { %v1585_v12 = vmul.f32 %v7716_v23, %v1311_v42  ;;  %v7887_v60 = vadd.f32 %v7686_v63, %v1606_v41  ;;  %vm1974_vm15 = vcmp.gt.f32.partialorder %v7795_v22, 0.0  ;;  %v4548_v51 = vadd.f32 -1.0, %v5139_v35  ;;  %v1229_v41 = vpop.f32.mrf.mxu0 }
 0x26b   :  { %v3436_v49 = vperm.slane %v7752_v45, 3  ;;  %v3437_v18 = vperm.slane %v7754_v50, 3  ;;  %v7893_v9 = vadd.f32 %v7694_v59, %v1607_v33  ;;  %vm1975_vm1 = vcmp.gt.f32.partialorder %v7805_v46, 0.0 }
 0x26c   :  { %v5143_v47 = vpop.eup %5142  ;;  %5148 = vpow2.f32 %v2450_v52  ;;  %v7897_v57 = vadd.f32 %v7725_v4, %v1584_v5  ;;  %v2236_v14 = vmin.f32 %v7887_v60, 0.0  ;;  %v3413_v58 = vmul.f32 %v3389_v10, %v2933_v19 }
 0x26d   :  { %v5145_v53 = vpop.eup %5144  ;;  %v4594_v1 = vadd.f32 -1.0, %v5143_v47  ;;  %vm2020_vm2 = vcmp.gt.f32.partialorder %v7838_v39, 0.0  ;;  %v2237_v2 = vmin.f32 %v7893_v9, 0.0  ;;  %vm2021_vm3 = vcmp.gt.f32.partialorder %v7845_v0, 0.0 }
 0x26e   :  { %v5147_v54 = vpop.eup %5146  ;;  %v4595_v42 = vadd.f32 -1.0, %v5145_v53  ;;  %v7907_v30 = vadd.f32 %v7734_v3, %v1585_v12  ;;  %v2540_v40 = vmul.f32 1.442695, %v2236_v14  ;;  %v4549_v21 = vadd.f32 -1.0, %v5141_v55 }
 0x26f   :  { %v2980_v36 = vsel %vm2020_vm2, %v7838_v39, %v4594_v1  ;;  %v2542_v15 = vmul.f32 1.442695, %v2237_v2  ;;  %v2214_v52 = vmin.f32 %v7897_v57, 0.0  ;;  %v1608_v5 = vmul.f32 %v7709_v38, %v1285_v25  ;;  %v1258_v39 = vpop.f32.mrf.mxu1 }
 0x270   :  { %v3460_v56 = vmul.f32 %v3436_v49, %v2980_v36  ;;  %v2981_v35 = vsel %vm2021_vm3, %v7845_v0, %v4595_v42  ;;  %5150 = vpow2.f32 %v2540_v40  ;;  %v4572_v33 = vadd.f32 -1.0, %v5147_v54  ;;  %v1287_v42 = vpop.f32.mrf.mxu2 }
 0x271   :  { %v3461_v10 = vmul.f32 %v3437_v18, %v2981_v35  ;;  %5152 = vpow2.f32 %v2542_v15  ;;  %v1609_v12 = vmul.f32 %v7716_v23, %v1314_v24  ;;  %vm1998_vm4 = vcmp.gt.f32.partialorder %v7819_v20, 0.0 }
 0x272   :  { %v7912_v19 = vadd.f32 %v3460_v56, %v3412_v48  ;;  %v5149_v47 = vpop.eup %5148  ;;  %v2215_v0 = vmin.f32 %v7907_v30, 0.0  ;;  %v7920_v49 = vadd.f32 %v7725_v4, %v1608_v5  ;;  %v3174_v25 = vperm.slane %v7763_v29, 2 }
 0x273   :  { %v7916_v55 = vadd.f32 %v3461_v10, %v3413_v58  ;;  %v7924_v18 = vadd.f32 %v7734_v3, %v1609_v12  ;;  %v1630_v48 = vmul.f32 %v7674_v16, %v1229_v41  ;;  %v1631_v53 = vmul.f32 %v7680_v44, %v1258_v39  ;;  %v1316_v12 = vpop.f32.mrf.mxu3 }
 0x274   :  { %v2934_v1 = vsel %vm1974_vm15, %v7795_v22, %v4548_v51  ;;  %v3175_v14 = vperm.slane %v7768_v7, 2  ;;  %v2496_v54 = vmul.f32 1.442695, %v2214_v52  ;;  %v2238_v58 = vmin.f32 %v7920_v49, 0.0 }
 0x275   :  { %v2935_v2 = vsel %vm1975_vm1, %v7805_v46, %v4549_v21  ;;  %v2958_v36 = vsel %vm1998_vm4, %v7819_v20, %v4572_v33  ;;  %vm1999_vm5 = vcmp.gt.f32.partialorder %v7842_v37, 0.0  ;;  %v4573_v40 = vadd.f32 -1.0, %v5149_v47 }
 0x276   :  { %v5151_v24 = vpop.eup %5150  ;;  %v2498_v56 = vmul.f32 1.442695, %v2215_v0  ;;  %v3244_v35 = vperm.slane %v7752_v45, 4  ;;  %v7940_v22 = vadd.f32 %v7686_v63, %v1630_v48  ;;  %v7943_v51 = vadd.f32 %v7694_v59, %v1631_v53 }
 0x277   :  { %v5153_v15 = vpop.eup %5152  ;;  %v4618_v10 = vadd.f32 -1.0, %v5151_v24  ;;  %v3245_v52 = vperm.slane %v7754_v50, 4  ;;  %v2239_v46 = vmin.f32 %v7924_v18, 0.0  ;;  %v1632_v20 = vmul.f32 %v7709_v38, %v1287_v42 }
 0x278   :  { %5154 = vpow2.f32 %v2496_v54  ;;  %vm2044_vm6 = vcmp.gt.f32.partialorder %v7887_v60, 0.0  ;;  %v4619_v21 = vadd.f32 -1.0, %v5153_v15  ;;  %v2544_v5 = vmul.f32 1.442695, %v2238_v58 }
 0x279   :  { %v2959_v41 = vsel %vm1999_vm5, %v7842_v37, %v4573_v40  ;;  %v3004_v39 = vsel %vm2044_vm6, %v7887_v60, %v4618_v10  ;;  %vm2045_vm7 = vcmp.gt.f32.partialorder %v7893_v9, 0.0  ;;  %v2260_v33 = vmin.f32 %v7940_v22, 0.0  ;;  %v1232_v37 = vpop.f32.mrf.mxu0 }
 0x27a   :  { %5156 = vpow2.f32 %v2498_v56  ;;  %v3268_v47 = vmul.f32 %v3244_v35, %v3004_v39  ;;  %v3005_v0 = vsel %vm2045_vm7, %v7893_v9, %v4619_v21  ;;  %v2261_v48 = vmin.f32 %v7943_v51, 0.0  ;;  %v1261_v56 = vpop.f32.mrf.mxu1 }
 0x27b   :  { %v3269_v53 = vmul.f32 %v3245_v52, %v3005_v0  ;;  %v2546_v54 = vmul.f32 1.442695, %v2239_v46  ;;  %v2588_v58 = vmul.f32 1.442695, %v2260_v33  ;;  %v7958_v42 = vadd.f32 %v7725_v4, %v1632_v20  ;;  %v1290_v20 = vpop.f32.mrf.mxu2 }
 0x27c   :  { %v7961_v60 = vadd.f32 %v3268_v47, %v7870_v11  ;;  %5158 = vpow2.f32 %v2544_v5  ;;  %v2590_v40 = vmul.f32 1.442695, %v2261_v48  ;;  %v1633_v24 = vmul.f32 %v7716_v23, %v1316_v12 }
 0x27d   :  { %v3198_v35 = vmul.f32 %v3174_v25, %v2958_v36  ;;  %v3199_v15 = vmul.f32 %v3175_v14, %v2959_v41  ;;  %v7965_v9 = vadd.f32 %v3269_v53, %v7883_v8  ;;  %5160 = vpow2.f32 %v2588_v58 }
 0x27e   :  { %v5155_v10 = vpop.eup %5154  ;;  %5162 = vpow2.f32 %v2590_v40  ;;  %v2262_v52 = vmin.f32 %v7958_v42, 0.0  ;;  %v7969_v46 = vadd.f32 %v7734_v3, %v1633_v24  ;;  %v1654_v11 = vmul.f32 %v7674_v16, %v1232_v37  ;;  %v1319_v24 = vpop.f32.mrf.mxu3 }
 0x27f   :  { %v7974_v21 = vmul.f32 %v3390_v32, %v2934_v1  ;;  %v7978_v25 = vmul.f32 %v3391_v26, %v2935_v2  ;;  %v3438_v8 = vperm.slane %v7763_v29, 3  ;;  %v1655_v14 = vmul.f32 %v7680_v44, %v1261_v56 }
 0x280   :  { %v5157_v36 = vpop.eup %5156  ;;  %vm2022_vm8 = vcmp.gt.f32.partialorder %v7897_v57, 0.0  ;;  %v3439_v5 = vperm.slane %v7768_v7, 3  ;;  %5164 = vpow2.f32 %v2546_v54  ;;  %v7985_v41 = vadd.f32 %v7686_v63, %v1654_v11 }
 0x281   :  { %v7988_v32 = vadd.f32 %v3198_v35, %v7849_v6  ;;  %v7991_v1 = vadd.f32 %v3199_v15, %v7868_v28  ;;  %vm2023_vm9 = vcmp.gt.f32.partialorder %v7907_v30, 0.0  ;;  %v7995_v26 = vadd.f32 %v7694_v59, %v1655_v14 }
 0x282   :  { %v1656_v2 = vmul.f32 %v7709_v38, %v1290_v20  ;;  %v5159_v39 = vpop.eup %5158  ;;  %v4596_v33 = vadd.f32 -1.0, %v5155_v10  ;;  %v3508_v12 = vperm.slane %v7752_v45, 5  ;;  %v2592_v47 = vmul.f32 1.442695, %v2262_v52 }
 0x283   :  { %v2263_v0 = vmin.f32 %v7969_v46, 0.0  ;;  %v5161_v48 = vpop.eup %5160  ;;  %v4597_v6 = vadd.f32 -1.0, %v5157_v36  ;;  %v3509_v53 = vperm.slane %v7754_v50, 5  ;;  %v2284_v28 = vmin.f32 %v7985_v41, 0.0  ;;  %v1234_v36 = vpop.f32.mrf.mxu0 }
 0x284   :  { %v2285_v54 = vmin.f32 %v7995_v26, 0.0  ;;  %v5163_v58 = vpop.eup %5162  ;;  %vm2068_vm10 = vcmp.gt.f32.partialorder %v7940_v22, 0.0  ;;  %v4642_v37 = vadd.f32 -1.0, %v5161_v48  ;;  %vm2069_vm11 = vcmp.gt.f32.partialorder %v7943_v51, 0.0 }
 0x285   :  { %v8006_v40 = vadd.f32 %v7725_v4, %v1656_v2  ;;  %v4620_v56 = vadd.f32 -1.0, %v5159_v39  ;;  %v4643_v35 = vadd.f32 -1.0, %v5163_v58  ;;  %v2636_v15 = vmul.f32 1.442695, %v2284_v28 }
 0x286   :  { %v2638_v10 = vmul.f32 1.442695, %v2285_v54  ;;  %v5165_v52 = vpop.eup %5164  ;;  %v3028_v11 = vsel %vm2068_vm10, %v7940_v22, %v4642_v37  ;;  %5166 = vpow2.f32 %v2592_v47  ;;  %v2594_v20 = vmul.f32 1.442695, %v2263_v0 }
 0x287   :  { %v2286_v14 = vmin.f32 %v8006_v40, 0.0  ;;  %v3532_v27 = vmul.f32 %v3508_v12, %v3028_v11  ;;  %v3029_v48 = vsel %vm2069_vm11, %v7943_v51, %v4643_v35  ;;  %5168 = vpow2.f32 %v2636_v15  ;;  %v1263_v12 = vpop.f32.mrf.mxu1 }
 0x288   :  { %v1657_v2 = vmul.f32 %v7716_v23, %v1319_v24  ;;  %v2982_v39 = vsel %vm2022_vm8, %v7897_v57, %v4596_v33  ;;  %v3246_v28 = vperm.slane %v7763_v29, 4  ;;  %v3533_v54 = vmul.f32 %v3509_v53, %v3029_v48 }
 0x289   :  { %5170 = vpow2.f32 %v2638_v10  ;;  %v4621_v22 = vadd.f32 -1.0, %v5165_v52  ;;  %v8017_v47 = vadd.f32 %v3532_v27, %v7912_v19  ;;  %v1678_v51 = vmul.f32 %v7674_v16, %v1234_v36 }
 0x28a   :  { %v8020_v0 = vadd.f32 %v7734_v3, %v1657_v2  ;;  %v2983_v58 = vsel %vm2023_vm9, %v7907_v30, %v4597_v6  ;;  %vm2046_vm12 = vcmp.gt.f32.partialorder %v7920_v49, 0.0  ;;  %v8028_v57 = vadd.f32 %v3533_v54, %v7916_v55 }
 0x28b   :  { %5172 = vpow2.f32 %v2594_v20  ;;  %v3006_v33 = vsel %vm2046_vm12, %v7920_v49, %v4620_v56  ;;  %v3247_v27 = vperm.slane %v7768_v7, 4  ;;  %v2640_v19 = vmul.f32 1.442695, %v2286_v14 }
 0x28c   :  { %v2287_v53 = vmin.f32 %v8020_v0, 0.0  ;;  %v5167_v37 = vpop.eup %5166  ;;  %v3462_v16 = vmul.f32 %v3438_v8, %v2982_v39  ;;  %vm2047_vm13 = vcmp.gt.f32.partialorder %v7924_v18, 0.0  ;;  %v8035_v24 = vadd.f32 %v7686_v63, %v1678_v51 }
 0x28d   :  { %v1679_v30 = vmul.f32 %v7680_v44, %v1263_v12  ;;  %v5169_v6 = vpop.eup %5168  ;;  %v3463_v55 = vmul.f32 %v3439_v5, %v2983_v58  ;;  %v3007_v35 = vsel %vm2047_vm13, %v7924_v18, %v4621_v22  ;;  %v3316_v49 = vperm.slane %v7752_v45, 6  ;;  %v1292_v5 = vpop.f32.mrf.mxu2 }
 0x28e   :  { %v2642_v56 = vmul.f32 1.442695, %v2287_v53  ;;  %v3270_v10 = vmul.f32 %v3246_v28, %v3006_v33  ;;  %v4666_v52 = vadd.f32 -1.0, %v5169_v6  ;;  %v3317_v11 = vperm.slane %v7754_v50, 6  ;;  %v1321_v22 = vpop.f32.mrf.mxu3 }
 0x28f   :  { %v5171_v15 = vpop.eup %5170  ;;  %v2308_v8 = vmin.f32 %v8035_v24, 0.0  ;;  %vm2092_vm14 = vcmp.gt.f32.partialorder %v7985_v41, 0.0  ;;  %5174 = vpow2.f32 %v2640_v19  ;;  %v8044_v44 = vadd.f32 %v7694_v59, %v1679_v30 }
 0x290   :  { %v4667_v63 = vadd.f32 -1.0, %v5171_v15  ;;  %v3271_v18 = vmul.f32 %v3247_v27, %v3007_v35  ;;  %v3052_v14 = vsel %vm2092_vm14, %v7985_v41, %v4666_v52  ;;  %vm2093_vm0 = vcmp.gt.f32.partialorder %v7995_v26, 0.0 }
 0x291   :  { %v5173_v20 = vpop.eup %5172  ;;  %v2684_v36 = vmul.f32 1.442695, %v2308_v8  ;;  %v4644_v48 = vadd.f32 -1.0, %v5167_v37  ;;  %v3340_v2 = vmul.f32 %v3316_v49, %v3052_v14  ;;  %5176 = vpow2.f32 %v2642_v56 }
 0x292   :  { %v3053_v39 = vsel %vm2093_vm0, %v7995_v26, %v4667_v63  ;;  %v2309_v54 = vmin.f32 %v8044_v44, 0.0  ;;  %v1680_v59 = vmul.f32 %v7709_v38, %v1292_v5  ;;  %v3486_v51 = vadd.f32 %v3462_v16, %v7974_v21  ;;  %v8072_v16 = vld [vmem:[#allocation11 + $0x10] sm:$0xff] }
 0x293   :  { %v3341_v28 = vmul.f32 %v3317_v11, %v3053_v39  ;;  %5178 = vpow2.f32 %v2684_v36  ;;  %v3487_v12 = vadd.f32 %v3463_v55, %v7978_v25  ;;  %v4645_v41 = vadd.f32 -1.0, %v5173_v20 }
 0x294   :  { %v3364_v58 = vadd.f32 %v3340_v2, %v7961_v60  ;;  %v3510_v33 = vperm.slane %v7763_v29, 5  ;;  %v2686_v26 = vmul.f32 1.442695, %v2309_v54  ;;  %v8059_v19 = vadd.f32 %v7725_v4, %v1680_v59 }
 0x295   :  { %v8056_v27 = vadd.f32 %v3341_v28, %v7965_v9  ;;  %v5175_v53 = vpop.eup %5174  ;;  %vm2070_vm15 = vcmp.gt.f32.partialorder %v7958_v42, 0.0  ;;  %vm2071_vm1 = vcmp.gt.f32.partialorder %v7969_v46, 0.0  ;;  %v3511_v38 = vperm.slane %v7768_v7, 5 }
 0x296   :  { %v1681_v21 = vmul.f32 %v7716_v23, %v1321_v22  ;;  %v3294_v60 = vadd.f32 %v3270_v10, %v7988_v32  ;;  %v8067_v25 = vadd.f32 %v3271_v18, %v7991_v1  ;;  %v3030_v9 = vsel %vm2070_vm15, %v7958_v42, %v4644_v48 }
 0x297   :  { %5180 = vpow2.f32 %v2686_v26  ;;  %v5177_v37 = vpop.eup %5176  ;;  %v3031_v4 = vsel %vm2071_vm1, %v7969_v46, %v4645_v41  ;;  %vm2094_vm2 = vcmp.gt.f32.partialorder %v8006_v40, 0.0  ;;  %v2310_v30 = vmin.f32 %v8059_v19, 0.0 }
 0x298   :  { %v8076_v6 = vadd.f32 %v7734_v3, %v1681_v21  ;;  %v4668_v32 = vadd.f32 -1.0, %v5175_v53  ;;  %v3318_v1 = vperm.slane %v7763_v29, 6  ;;  %v3319_v55 = vperm.slane %v7768_v7, 6  ;;  %v8084_v3 = vld [vmem:[#allocation13 + $0x10] sm:$0xff] }
 0x299   :  { %v5179_v23 = vpop.eup %5178  ;;  %v3580_v42 = vperm.slane %v7752_v45, 7  ;;  %v3534_v35 = vmul.f32 %v3510_v33, %v3030_v9  ;;  %vm2095_vm3 = vcmp.gt.f32.partialorder %v8020_v0, 0.0  ;;  %v2688_v49 = vmul.f32 1.442695, %v2310_v30  ;;  %v1362_v9 = vpop.f32.mrf.mxu1 }
 0x29a   :  { %v4690_v46 = vadd.f32 -1.0, %v5179_v23  ;;  %v3535_v56 = vmul.f32 %v3511_v38, %v3031_v4  ;;  %vm2116_vm4 = vcmp.gt.f32.partialorder %v8035_v24, 0.0  ;;  %v3682_v15 = vperm.slane %v8072_v16, 0  ;;  %v5286_v4 = vld [vmem:[#allocation7 + $0x10] sm:$0xff] }
 0x29b   :  { %v2311_v10 = vmin.f32 %v8076_v6, 0.0  ;;  %v4669_v52 = vadd.f32 -1.0, %v5177_v37  ;;  %v3581_v8 = vperm.slane %v7754_v50, 7  ;;  %5182 = vpow2.f32 %v2688_v49 }
 0x29c   :  { %v3076_v11 = vsel %vm2116_vm4, %v8035_v24, %v4690_v46  ;;  %v3054_v63 = vsel %vm2094_vm2, %v8006_v40, %v4668_v32  ;;  %v8093_v18 = vperm.slane %v7662_v17, 4  ;;  %v3558_v14 = vadd.f32 %v3534_v35, %v3486_v51  ;;  %v1333_v24 = vpop.f32.mrf.mxu0 }
 0x29d   :  { %v5181_v45 = vpop.eup %5180  ;;  %v3604_v5 = vmul.f32 %v3580_v42, %v3076_v11  ;;  %v2690_v20 = vmul.f32 1.442695, %v2311_v10  ;;  %v3760_v36 = vperm.slane %v8084_v3, 0  ;;  %v3683_v2 = vperm.slane %v8072_v16, 1 }
 0x29e   :  { %v4691_v48 = vadd.f32 -1.0, %v5181_v45  ;;  %v3559_v39 = vadd.f32 %v3535_v56, %v3487_v12  ;;  %vm2117_vm5 = vcmp.gt.f32.partialorder %v8044_v44, 0.0  ;;  %v3342_v28 = vmul.f32 %v3318_v1, %v3054_v63  ;;  %v1391_v1 = vpop.f32.mrf.mxu2  ;;  %v1420_v63 = vpop.f32.mrf.mxu3 }
 0x29f   :  { %v3628_v50 = vadd.f32 %v3604_v5, %v8017_v47  ;;  %5184 = vpow2.f32 %v2690_v20  ;;  %v3055_v40 = vsel %vm2095_vm3, %v8020_v0, %v4669_v52  ;;  %v3761_v59 = vperm.slane %v8084_v3, 1 }
 0x2a0   :  { %v3077_v54 = vsel %vm2117_vm5, %v8044_v44, %v4691_v48  ;;  %v1514_v41 = vmul.f32 %v8093_v18, %v1333_v24  ;;  %v8106_v12 = vperm.slane %v7670_v61, 4  ;;  %v3582_v33 = vperm.slane %v7763_v29, 7 }
 0x2a1   :  { %v3652_v22 = vadd.f32 %v3628_v50, %v3364_v58  ;;  %v3605_v51 = vmul.f32 %v3581_v8, %v3077_v54  ;;  %v5183_v47 = vpop.eup %5182  ;;  %v3684_v26 = vperm.slane %v8072_v16, 2  ;;  %v3762_v53 = vperm.slane %v8084_v3, 2 }
 0x2a2   :  { %v8112_v0 = vperm.slane %v7662_v17, 5  ;;  %v4692_v58 = vadd.f32 -1.0, %v5183_v47  ;;  %v3583_v21 = vperm.slane %v7768_v7, 7  ;;  %v3366_v37 = vadd.f32 %v3342_v28, %v3294_v60  ;;  %v1364_v47 = vpop.f32.mrf.mxu1 }
 0x2a3   :  { %v3730_v44 = vmul.f32 %v3682_v15, %v3652_v22  ;;  %v3629_v38 = vadd.f32 %v3605_v51, %v8028_v57  ;;  %v3343_v61 = vmul.f32 %v3319_v55, %v3055_v40  ;;  %vm2118_vm6 = vcmp.gt.f32.partialorder %v8059_v19, 0.0  ;;  %v5287_v55 = vld [vmem:[#allocation8 + $0x10] sm:$0xff] }
 0x2a4   :  { %v8117_v29 = vperm.slane %v5286_v4, 6  ;;  %v3078_v32 = vsel %vm2118_vm6, %v8059_v19, %v4692_v58  ;;  %v8124_v57 = vadd.f32 %v8106_v12, %v1514_v41  ;;  %v1515_v60 = vmul.f32 %v8112_v0, %v1362_v9 }
 0x2a5   :  { %v5185_v30 = vpop.eup %5184  ;;  %v8119_v23 = vadd.f32 %v3760_v36, %v3730_v44  ;;  %v3653_v17 = vadd.f32 %v3629_v38, %v8056_v27  ;;  %v3606_v7 = vmul.f32 %v3582_v33, %v3078_v32  ;;  %v8127_v35 = vperm.slane %v5287_v55, 5 }
 0x2a6   :  { %v4693_v42 = vadd.f32 -1.0, %v5185_v30  ;;  %vm2119_vm7 = vcmp.gt.f32.partialorder %v8076_v6, 0.0  ;;  %v8131_v56 = vperm.slane %v5287_v55, 6  ;;  %v1516_v15 = vmul.f32 %v8117_v29, %v1391_v1 }
 0x2a7   :  { %v3856_v46 = vmin.f32 %v8119_v23, 0.0  ;;  %v3731_v49 = vmul.f32 %v3683_v2, %v3653_v17  ;;  %v3630_v27 = vadd.f32 %v3606_v7, %v3558_v14  ;;  %v8135_v10 = vperm.slane %v5286_v4, 7  ;;  %v8169_v17 = vld [vmem:[#allocation10 + $0xa0] sm:$0xff]  ;;  %v1422_v7 = vpop.f32.mrf.mxu3 }
 0x2a8   :  { %v3079_v19 = vsel %vm2119_vm7, %v8076_v6, %v4693_v42  ;;  %v2144_v45 = vmin.f32 %v8124_v57, 0.0  ;;  %v3685_v20 = vperm.slane %v8072_v16, 3  ;;  %v3763_v36 = vperm.slane %v8084_v3, 3  ;;  %v1335_v6 = vpop.f32.mrf.mxu0 }
 0x2a9   :  { %v3896_v52 = vmul.f32 1.442695, %v3856_v46  ;;  %v8137_v11 = vadd.f32 %v3761_v59, %v3731_v49  ;;  %v3607_v8 = vmul.f32 %v3583_v21, %v3079_v19  ;;  %v3654_v5 = vadd.f32 %v3630_v27, %v3366_v37  ;;  %v8178_v19 = vld [vmem:[#allocation10 + $0xa8] sm:$0xff] }
 0x2aa   :  { %v8143_v14 = vadd.f32 %v8127_v35, %v1515_v60  ;;  %v3367_v48 = vadd.f32 %v3343_v61, %v8067_v25  ;;  %v8148_v28 = vadd.f32 %v8131_v56, %v1516_v15  ;;  %v1517_v40 = vmul.f32 %v8135_v10, %v1420_v63 }
 0x2ab   :  { %5186 = vpow2.f32 %v3896_v52  ;;  %v3857_v2 = vmin.f32 %v8137_v11, 0.0  ;;  %v3631_v24 = vadd.f32 %v3607_v8, %v3559_v39  ;;  %v3732_v50 = vmul.f32 %v3684_v26, %v3654_v5  ;;  %v1393_v26 = vpop.f32.mrf.mxu2 }
 0x2ac   :  { %v8151_v54 = vperm.slane %v5287_v55, 7  ;;  %v2356_v51 = vmul.f32 1.442695, %v2144_v45  ;;  %v1538_v41 = vmul.f32 %v8093_v18, %v1335_v6  ;;  %v2145_v25 = vmin.f32 %v8143_v14, 0.0  ;;  %v8182_v45 = vld [vmem:[#allocation10 + $0xb0] sm:$0xff] }
 0x2ad   :  { %v3898_v59 = vmul.f32 1.442695, %v3857_v2  ;;  %v3655_v22 = vadd.f32 %v3631_v24, %v3367_v48  ;;  %v8154_v33 = vadd.f32 %v3762_v53, %v3732_v50  ;;  %v2146_v38 = vmin.f32 %v8148_v28, 0.0 }
 0x2ae   :  { %v8160_v58 = vadd.f32 %v8151_v54, %v1517_v40  ;;  %v8165_v37 = vadd.f32 %v8106_v12, %v1538_v41  ;;  %v2358_v4 = vmul.f32 1.442695, %v2145_v25  ;;  %vm3832_vm8 = vcmp.gt.f32.partialorder %v8119_v23, 0.0  ;;  %v8199_v41 = vld [vmem:[#allocation10 + $0xb8] sm:$0xff] }
 0x2af   :  { %5188 = vpow2.f32 %v3898_v59  ;;  %v3733_v39 = vmul.f32 %v3685_v20, %v3655_v22  ;;  %v3858_v44 = vmin.f32 %v8154_v33, 0.0  ;;  %v1539_v32 = vmul.f32 %v8112_v0, %v1364_v47  ;;  %v1367_v20 = vpop.f32.mrf.mxu1 }
 0x2b0   :  { %5190 = vpow2.f32 %v2356_v51  ;;  %v1540_v1 = vmul.f32 %v8117_v29, %v1393_v26  ;;  %v2360_v60 = vmul.f32 1.442695, %v2146_v38  ;;  %v2147_v55 = vmin.f32 %v8160_v58, 0.0 }
 0x2b1   :  { %v5187_v21 = vpop.eup %5186  ;;  %v8162_v9 = vadd.f32 %v3763_v36, %v3733_v39  ;;  %v3900_v61 = vmul.f32 1.442695, %v3858_v44  ;;  %v2168_v15 = vmin.f32 %v8165_v37, 0.0  ;;  %v3128_v8 = vperm.slane %v8169_v17, 0 }
 0x2b2   :  { %v4714_v53 = vadd.f32 -1.0, %v5187_v21  ;;  %vm3833_vm9 = vcmp.gt.f32.partialorder %v8137_v11, 0.0  ;;  %v8186_v5 = vadd.f32 %v8127_v35, %v1539_v32  ;;  %v3129_v6 = vperm.slane %v8178_v19, 0 }
 0x2b3   :  { %v3859_v30 = vmin.f32 %v8162_v9, 0.0  ;;  %5192 = vpow2.f32 %v3900_v61  ;;  %v2362_v48 = vmul.f32 1.442695, %v2147_v55  ;;  %v3130_v24 = vperm.slane %v8182_v45, 0  ;;  %v1396_v59 = vpop.f32.mrf.mxu2 }
 0x2b4   :  { %v3952_v42 = vsel %vm3832_vm8, %v8119_v23, %v4714_v53  ;;  %5194 = vpow2.f32 %v2358_v4  ;;  %v1338_v23 = vpop.f32.mrf.mxu0  ;;  %v2404_v50 = vmul.f32 1.442695, %v2168_v15  ;;  %vm1952_vm10 = vcmp.gt.f32.partialorder %v8124_v57, 0.0 }
 0x2b5   :  { %v5189_v46 = vpop.eup %5188  ;;  %v8176_v49 = vadd.f32 %v7387_v43, %v3952_v42  ;;  %v3902_v27 = vmul.f32 1.442695, %v3859_v30  ;;  %v8189_v43 = vadd.f32 %v8131_v56, %v1540_v1  ;;  %v1562_v40 = vmul.f32 %v8093_v18, %v1338_v23  ;;  %v1425_v30 = vpop.f32.mrf.mxu3 }
 0x2b6   :  { %v4715_v52 = vadd.f32 -1.0, %v5189_v46  ;;  %v5191_v63 = vpop.eup %5190  ;;  %v1563_v47 = vmul.f32 %v8112_v0, %v1367_v20  ;;  %vm1953_vm11 = vcmp.gt.f32.partialorder %v8143_v14, 0.0  ;;  %vm3834_vm12 = vcmp.gt.f32.partialorder %v8154_v33, 0.0 }
 0x2b7   :  { %5196 = vpow2.f32 %v3902_v27  ;;  %v4526_v51 = vadd.f32 -1.0, %v5191_v63  ;;  %v2170_v39 = vmin.f32 %v8189_v43, 0.0  ;;  %v8208_v44 = vadd.f32 %v8106_v12, %v1562_v40 }
 0x2b8   :  { %v3953_v36 = vsel %vm3833_vm9, %v8137_v11, %v4715_v52  ;;  %5198 = vpow2.f32 %v2360_v60  ;;  %v1541_v11 = vmul.f32 %v8135_v10, %v1422_v7  ;;  %v1564_v38 = vmul.f32 %v8117_v29, %v1396_v59 }
 0x2b9   :  { %v8194_v2 = vadd.f32 %v7399_v31, %v3953_v36  ;;  %v5193_v22 = vpop.eup %5192  ;;  %v2169_v31 = vmin.f32 %v8186_v5, 0.0  ;;  %5200 = vpow2.f32 %v2362_v48  ;;  %v3131_v61 = vperm.slane %v8199_v41, 0  ;;  %v1369_v36 = vpop.f32.mrf.mxu1 }
 0x2ba   :  { %v4716_v25 = vadd.f32 -1.0, %v5193_v22  ;;  %v5195_v26 = vpop.eup %5194  ;;  %5202 = vpow2.f32 %v2404_v50  ;;  %v8214_v4 = vadd.f32 %v8127_v35, %v1563_v47  ;;  %v2912_v42 = vsel %vm1952_vm10, %v8124_v57, %v4526_v51 }
 0x2bb   :  { %8600 = vst [vmem:[#allocation21_spill] sm:$0xff] %v8194_v2  ;;  %v8223_v60 = vadd.f32 %v8151_v54, %v1541_v11  ;;  %vm3835_vm13 = vcmp.gt.f32.partialorder %v8162_v9, 0.0  ;;  %v2406_v55 = vmul.f32 1.442695, %v2169_v31  ;;  %v2408_v46 = vmul.f32 1.442695, %v2170_v39  ;;  %v1398_v51 = vpop.f32.mrf.mxu2 }
 0x2bc   :  { %v3954_v53 = vsel %vm3834_vm12, %v8154_v33, %v4716_v25  ;;  %v4527_v33 = vadd.f32 -1.0, %v5195_v26  ;;  %v2192_v15 = vmin.f32 %v8208_v44, 0.0  ;;  %v1565_v52 = vmul.f32 %v8135_v10, %v1425_v30  ;;  %v1340_v23 = vpop.f32.mrf.mxu0 }
 0x2bd   :  { %v5197_v21 = vpop.eup %5196  ;;  %v8217_v1 = vadd.f32 %v7766_v62, %v3954_v53  ;;  %v8229_v62 = vadd.f32 %v8131_v56, %v1564_v38  ;;  %vm1954_vm14 = vcmp.gt.f32.partialorder %v8148_v28, 0.0  ;;  %v2193_v20 = vmin.f32 %v8214_v4, 0.0 }
 0x2be   :  { %v5199_v32 = vpop.eup %5198  ;;  %v4717_v7 = vadd.f32 -1.0, %v5197_v21  ;;  %v8237_v50 = vmul.f32 %v3128_v8, %v2912_v42  ;;  %vm1955_vm0 = vcmp.gt.f32.partialorder %v8160_v58, 0.0  ;;  %vm1976_vm15 = vcmp.gt.f32.partialorder %v8165_v37, 0.0 }
 0x2bf   :  { %v4528_v63 = vadd.f32 -1.0, %v5199_v32  ;;  %v5201_v48 = vpop.eup %5200  ;;  %5204 = vpow2.f32 %v2406_v55  ;;  %v8246_v59 = vadd.f32 %v8151_v54, %v1565_v52  ;;  %v1586_v22 = vmul.f32 %v8093_v18, %v1340_v23 }
 0x2c0   :  { %v3955_v27 = vsel %vm3835_vm13, %v8162_v9, %v4717_v7  ;;  %v2171_v9 = vmin.f32 %v8223_v60, 0.0  ;;  %v5203_v40 = vpop.eup %5202  ;;  %5206 = vpow2.f32 %v2408_v46  ;;  %v2452_v8 = vmul.f32 1.442695, %v2192_v15  ;;  %v1427_v46 = vpop.f32.mrf.mxu3 }
 0x2c1   :  { %v8233_v57 = vadd.f32 %v7777_v34, %v3955_v27  ;;  %v2913_v34 = vsel %vm1953_vm11, %v8143_v14, %v4527_v33  ;;  %v2194_v11 = vmin.f32 %v8229_v62, 0.0  ;;  %v1587_v47 = vmul.f32 %v8112_v0, %v1369_v36 }
 0x2c2   :  { %v2914_v25 = vsel %vm1954_vm14, %v8148_v28, %v4528_v63  ;;  %v4529_v31 = vadd.f32 -1.0, %v5201_v48  ;;  %v2454_v39 = vmul.f32 1.442695, %v2193_v20  ;;  %v8255_v14 = vadd.f32 %v8106_v12, %v1586_v22 }
 0x2c3   :  { %v4550_v26 = vadd.f32 -1.0, %v5203_v40  ;;  %v2410_v38 = vmul.f32 1.442695, %v2171_v9  ;;  %v8258_v21 = vadd.f32 %v8127_v35, %v1587_v47  ;;  %v1588_v53 = vmul.f32 %v8117_v29, %v1398_v51  ;;  %v1372_v9 = vpop.f32.mrf.mxu1 }
 0x2c4   :  { %v8263_v30 = vmul.f32 %v3129_v6, %v2913_v34  ;;  %v3392_v32 = vperm.slane %v8169_v17, 1  ;;  %v3393_v28 = vperm.slane %v8178_v19, 1  ;;  %v2195_v7 = vmin.f32 %v8246_v59, 0.0  ;;  %v1343_v20 = vpop.f32.mrf.mxu0 }
 0x2c5   :  { %v8270_v42 = vmul.f32 %v3130_v24, %v2914_v25  ;;  %5208 = vpow2.f32 %v2452_v8  ;;  %v2456_v33 = vmul.f32 1.442695, %v2194_v11  ;;  %v2216_v55 = vmin.f32 %v8255_v14, 0.0  ;;  %v5205_v27 = vpop.eup %5204 }
 0x2c6   :  { %v2915_v6 = vsel %vm1955_vm0, %v8160_v58, %v4529_v31  ;;  %v3394_v15 = vperm.slane %v8182_v45, 1  ;;  %5210 = vpow2.f32 %v2454_v39  ;;  %v2217_v52 = vmin.f32 %v8258_v21, 0.0  ;;  %v5207_v23 = vpop.eup %5206 }
 0x2c7   :  { %v2936_v24 = vsel %vm1976_vm15, %v8165_v37, %v4550_v26  ;;  %vm1977_vm1 = vcmp.gt.f32.partialorder %v8186_v5, 0.0  ;;  %5212 = vpow2.f32 %v2410_v38  ;;  %v8283_v63 = vadd.f32 %v8131_v56, %v1588_v53 }
 0x2c8   :  { %vm1978_vm2 = vcmp.gt.f32.partialorder %v8189_v43, 0.0  ;;  %v2458_v36 = vmul.f32 1.442695, %v2195_v7  ;;  %v1589_v48 = vmul.f32 %v8135_v10, %v1427_v46  ;;  %v8290_v40 = vmul.f32 %v3131_v61, %v2915_v6  ;;  %v1401_v61 = vpop.f32.mrf.mxu2 }
 0x2c9   :  { %v4551_v37 = vadd.f32 -1.0, %v5205_v27  ;;  %5214 = vpow2.f32 %v2456_v33  ;;  %v2500_v34 = vmul.f32 1.442695, %v2216_v55  ;;  %v8292_v22 = vmul.f32 %v3392_v32, %v2936_v24 }
 0x2ca   :  { %v4552_v51 = vadd.f32 -1.0, %v5207_v23  ;;  %v2502_v8 = vmul.f32 1.442695, %v2217_v52  ;;  %v1610_v11 = vmul.f32 %v8093_v18, %v1343_v20  ;;  %vm1979_vm3 = vcmp.gt.f32.partialorder %v8223_v60, 0.0 }
 0x2cb   :  { %v5209_v47 = vpop.eup %5208  ;;  %v3176_v25 = vperm.slane %v8169_v17, 2  ;;  %v2218_v31 = vmin.f32 %v8283_v63, 0.0  ;;  %v1611_v39 = vmul.f32 %v8112_v0, %v1372_v9  ;;  %v3177_v38 = vperm.slane %v8178_v19, 2 }
 0x2cc   :  { %v5211_v26 = vpop.eup %5210  ;;  %5216 = vpow2.f32 %v2458_v36  ;;  %v8302_v32 = vadd.f32 %v8151_v54, %v1589_v48  ;;  %v2937_v33 = vsel %vm1977_vm1, %v8186_v5, %v4551_v37  ;;  %vm2000_vm4 = vcmp.gt.f32.partialorder %v8208_v44, 0.0 }
 0x2cd   :  { %v5213_v7 = vpop.eup %5212  ;;  %5218 = vpow2.f32 %v2500_v34  ;;  %v8309_v55 = vadd.f32 %v8106_v12, %v1610_v11  ;;  %v2938_v46 = vsel %vm1978_vm2, %v8189_v43, %v4552_v51  ;;  %vm2001_vm5 = vcmp.gt.f32.partialorder %v8214_v4, 0.0  ;;  %v1430_v43 = vpop.f32.mrf.mxu3 }
 0x2ce   :  { %5220 = vpow2.f32 %v2502_v8  ;;  %v1612_v27 = vmul.f32 %v8117_v29, %v1401_v61  ;;  %v4574_v52 = vadd.f32 -1.0, %v5209_v47  ;;  %v4575_v23 = vadd.f32 -1.0, %v5211_v26 }
 0x2cf   :  { %v5215_v6 = vpop.eup %5214  ;;  %v2504_v24 = vmul.f32 1.442695, %v2218_v31  ;;  %v8317_v5 = vadd.f32 %v8127_v35, %v1611_v39  ;;  %v8319_v20 = vmul.f32 %v3393_v28, %v2937_v33  ;;  %v4553_v36 = vadd.f32 -1.0, %v5213_v7  ;;  %v1345_v7 = vpop.f32.mrf.mxu0 }
 0x2d0   :  { %v3179_v48 = vperm.slane %v8199_v41, 2  ;;  %v2219_v9 = vmin.f32 %v8302_v32, 0.0  ;;  %vm2002_vm6 = vcmp.gt.f32.partialorder %v8229_v62, 0.0  ;;  %v3440_v37 = vperm.slane %v8169_v17, 3 }
 0x2d1   :  { %v2240_v34 = vmin.f32 %v8309_v55, 0.0  ;;  %v8327_v51 = vadd.f32 %v8131_v56, %v1612_v27  ;;  %v8329_v11 = vmul.f32 %v3394_v15, %v2938_v46  ;;  %v4576_v28 = vadd.f32 -1.0, %v5215_v6  ;;  %v1374_v6 = vpop.f32.mrf.mxu1  ;;  %v1403_v46 = vpop.f32.mrf.mxu2 }
 0x2d2   :  { %v5217_v8 = vpop.eup %5216  ;;  %vm2003_vm7 = vcmp.gt.f32.partialorder %v8246_v59, 0.0  ;;  %v3441_v47 = vperm.slane %v8178_v19, 3  ;;  %v2960_v39 = vsel %vm2000_vm4, %v8208_v44, %v4574_v52  ;;  %v2961_v61 = vsel %vm2001_vm5, %v8214_v4, %v4575_v23 }
 0x2d3   :  { %v5219_v31 = vpop.eup %5218  ;;  %5222 = vpow2.f32 %v2504_v24  ;;  %v2241_v26 = vmin.f32 %v8317_v5, 0.0  ;;  %v2939_v33 = vsel %vm1979_vm3, %v8223_v60, %v4553_v36  ;;  %vm2024_vm8 = vcmp.gt.f32.partialorder %v8255_v14, 0.0 }
 0x2d4   :  { %v5221_v15 = vpop.eup %5220  ;;  %v2506_v27 = vmul.f32 1.442695, %v2219_v9  ;;  %v4577_v44 = vadd.f32 -1.0, %v5217_v8  ;;  %v2548_v52 = vmul.f32 1.442695, %v2240_v34  ;;  %v2242_v53 = vmin.f32 %v8327_v51, 0.0 }
 0x2d5   :  { %v1613_v4 = vmul.f32 %v8135_v10, %v1430_v43  ;;  %v3200_v23 = vmul.f32 %v3176_v25, %v2960_v39  ;;  %v3201_v24 = vmul.f32 %v3177_v38, %v2961_v61  ;;  %v2962_v58 = vsel %vm2002_vm6, %v8229_v62, %v4576_v28 }
 0x2d6   :  { %vm2025_vm9 = vcmp.gt.f32.partialorder %v8258_v21, 0.0  ;;  %v4598_v60 = vadd.f32 -1.0, %v5219_v31  ;;  %v4599_v36 = vadd.f32 -1.0, %v5221_v15  ;;  %v2550_v2 = vmul.f32 1.442695, %v2241_v26  ;;  %v1432_v15 = vpop.f32.mrf.mxu3 }
 0x2d7   :  { %v1634_v9 = vmul.f32 %v8093_v18, %v1345_v7  ;;  %v8601_v34 = vperm.slane %v8199_v41, 1  ;;  %vm2026_vm10 = vcmp.gt.f32.partialorder %v8283_v63, 0.0  ;;  %5224 = vpow2.f32 %v2506_v27 }
 0x2d8   :  { %v1635_v25 = vmul.f32 %v8112_v0, %v1374_v6  ;;  %v2963_v62 = vsel %vm2003_vm7, %v8246_v59, %v4577_v44  ;;  %5226 = vpow2.f32 %v2548_v52  ;;  %v2552_v43 = vmul.f32 1.442695, %v2242_v53  ;;  %v1348_v44 = vpop.f32.mrf.mxu0 }
 0x2d9   :  { %v8354_v8 = vmul.f32 %v8601_v34, %v2939_v33  ;;  %v5223_v38 = vpop.eup %5222  ;;  %v8362_v28 = vadd.f32 %v8151_v54, %v1613_v4  ;;  %v8365_v31 = vadd.f32 %v3200_v23, %v8237_v50  ;;  %v8368_v39 = vadd.f32 %v3201_v24, %v8263_v30  ;;  %v1377_v4 = vpop.f32.mrf.mxu1 }
 0x2da   :  { %v8602_v61 = vperm.slane %v8182_v45, 2  ;;  %v3443_v7 = vperm.slane %v8199_v41, 3  ;;  %v2984_v59 = vsel %vm2024_vm8, %v8255_v14, %v4598_v60  ;;  %v2985_v53 = vsel %vm2025_vm9, %v8258_v21, %v4599_v36 }
 0x2db   :  { %5228 = vpow2.f32 %v2550_v2  ;;  %v8380_v50 = vadd.f32 %v8106_v12, %v1634_v9  ;;  %v3203_v30 = vmul.f32 %v3179_v48, %v2963_v62  ;;  %v4600_v33 = vadd.f32 -1.0, %v5223_v38 }
 0x2dc   :  { %v3202_v26 = vmul.f32 %v8602_v61, %v2962_v58  ;;  %v3248_v27 = vperm.slane %v8169_v17, 4  ;;  %v8384_v58 = vadd.f32 %v8127_v35, %v1635_v25  ;;  %vm2027_vm11 = vcmp.gt.f32.partialorder %v8302_v32, 0.0 }
 0x2dd   :  { %5230 = vpow2.f32 %v2552_v43  ;;  %v2243_v14 = vmin.f32 %v8362_v28, 0.0  ;;  %v1636_v6 = vmul.f32 %v8117_v29, %v1403_v46  ;;  %v5225_v21 = vpop.eup %5224  ;;  %v3464_v2 = vmul.f32 %v3440_v37, %v2984_v59  ;;  %v1406_v43 = vpop.f32.mrf.mxu2 }
 0x2de   :  { %v3465_v52 = vmul.f32 %v3441_v47, %v2985_v53  ;;  %vm2048_vm12 = vcmp.gt.f32.partialorder %v8309_v55, 0.0  ;;  %v3249_v48 = vperm.slane %v8178_v19, 4  ;;  %v5227_v23 = vpop.eup %5226  ;;  %v8392_v24 = vadd.f32 %v3202_v26, %v8270_v42 }
 0x2df   :  { %vm2049_vm13 = vcmp.gt.f32.partialorder %v8317_v5, 0.0  ;;  %v3250_v60 = vperm.slane %v8182_v45, 4  ;;  %v2264_v36 = vmin.f32 %v8380_v50, 0.0  ;;  %v8398_v46 = vadd.f32 %v3203_v30, %v8290_v40 }
 0x2e0   :  { %v2986_v37 = vsel %vm2026_vm10, %v8283_v63, %v4600_v33  ;;  %v2265_v47 = vmin.f32 %v8384_v58, 0.0  ;;  %v1658_v9 = vmul.f32 %v8093_v18, %v1348_v44  ;;  %v2554_v42 = vmul.f32 1.442695, %v2243_v14 }
 0x2e1   :  { %v5229_v34 = vpop.eup %5228  ;;  %v8406_v25 = vadd.f32 %v8131_v56, %v1636_v6  ;;  %v1637_v38 = vmul.f32 %v8135_v10, %v1432_v15  ;;  %v1659_v62 = vmul.f32 %v8112_v0, %v1377_v4  ;;  %v8411_v40 = vadd.f32 %v3464_v2, %v8292_v22 }
 0x2e2   :  { %v8414_v61 = vadd.f32 %v3465_v52, %v8319_v20  ;;  %v4601_v63 = vadd.f32 -1.0, %v5225_v21  ;;  %v4622_v26 = vadd.f32 -1.0, %v5227_v23  ;;  %vm2050_vm14 = vcmp.gt.f32.partialorder %v8327_v51, 0.0  ;;  %v1435_v21 = vpop.f32.mrf.mxu3 }
 0x2e3   :  { %v5231_v59 = vpop.eup %5230  ;;  %v8603_v53 = vperm.slane %v8182_v45, 3  ;;  %v3251_v33 = vperm.slane %v8199_v41, 4  ;;  %v2596_v15 = vmul.f32 1.442695, %v2264_v36  ;;  %v8421_v14 = vadd.f32 %v8106_v12, %v1658_v9 }
 0x2e4   :  { %v4623_v6 = vadd.f32 -1.0, %v5229_v34  ;;  %v2598_v22 = vmul.f32 1.442695, %v2265_v47  ;;  %v8424_v44 = vadd.f32 %v8127_v35, %v1659_v62  ;;  %v1660_v20 = vmul.f32 %v8117_v29, %v1406_v43  ;;  %v1350_v62 = vpop.f32.mrf.mxu0 }
 0x2e5   :  { %v3466_v30 = vmul.f32 %v8603_v53, %v2986_v37  ;;  %5232 = vpow2.f32 %v2554_v42  ;;  %v2266_v2 = vmin.f32 %v8406_v25, 0.0  ;;  %v8429_v52 = vadd.f32 %v8151_v54, %v1637_v38 }
 0x2e6   :  { %v2288_v4 = vmin.f32 %v8421_v14, 0.0  ;;  %v2987_v23 = vsel %vm2027_vm11, %v8302_v32, %v4601_v63  ;;  %v3008_v36 = vsel %vm2048_vm12, %v8309_v55, %v4622_v26  ;;  %v4624_v37 = vadd.f32 -1.0, %v5231_v59 }
 0x2e7   :  { %v3512_v47 = vperm.slane %v8169_v17, 5  ;;  %5234 = vpow2.f32 %v2596_v15  ;;  %v8440_v34 = vadd.f32 %v8131_v56, %v1660_v20  ;;  %v1661_v42 = vmul.f32 %v8135_v10, %v1435_v21 }
 0x2e8   :  { %v2644_v9 = vmul.f32 1.442695, %v2288_v4  ;;  %v8444_v38 = vadd.f32 %v3466_v30, %v8329_v11  ;;  %v3009_v32 = vsel %vm2049_vm13, %v8317_v5, %v4623_v6  ;;  %5236 = vpow2.f32 %v2598_v22 }
 0x2e9   :  { %v2289_v55 = vmin.f32 %v8424_v44, 0.0  ;;  %v3467_v43 = vmul.f32 %v3443_v7, %v2987_v23  ;;  %v3513_v63 = vperm.slane %v8178_v19, 5  ;;  %v2600_v26 = vmul.f32 1.442695, %v2266_v2  ;;  %v1379_v2 = vpop.f32.mrf.mxu1 }
 0x2ea   :  { %v2267_v59 = vmin.f32 %v8429_v52, 0.0  ;;  %v3272_v11 = vmul.f32 %v3248_v27, %v3008_v36  ;;  %vm2051_vm0 = vcmp.gt.f32.partialorder %v8362_v28, 0.0  ;;  %5238 = vpow2.f32 %v2644_v9 }
 0x2eb   :  { %v2290_v5 = vmin.f32 %v8440_v34, 0.0  ;;  %v5233_v53 = vpop.eup %5232  ;;  %v3273_v30 = vmul.f32 %v3249_v48, %v3009_v32  ;;  %v3010_v15 = vsel %vm2050_vm14, %v8327_v51, %v4624_v37  ;;  %v8462_v7 = vadd.f32 %v8151_v54, %v1661_v42 }
 0x2ec   :  { %v1682_v6 = vmul.f32 %v8093_v18, %v1350_v62  ;;  %vm2072_vm15 = vcmp.gt.f32.partialorder %v8380_v50, 0.0  ;;  %vm2073_vm1 = vcmp.gt.f32.partialorder %v8384_v58, 0.0  ;;  %v3514_v27 = vperm.slane %v8182_v45, 5 }
 0x2ed   :  { %v2646_v22 = vmul.f32 1.442695, %v2289_v55  ;;  %v5235_v20 = vpop.eup %5234  ;;  %v8469_v21 = vadd.f32 %v3467_v43, %v8354_v8  ;;  %5240 = vpow2.f32 %v2600_v26  ;;  %v2602_v48 = vmul.f32 1.442695, %v2267_v59  ;;  %v1408_v43 = vpop.f32.mrf.mxu2 }
 0x2ee   :  { %v8472_v51 = vadd.f32 %v8106_v12, %v1682_v6  ;;  %v5237_v4 = vpop.eup %5236  ;;  %v3274_v18 = vmul.f32 %v3250_v60, %v3010_v15  ;;  %v4625_v23 = vadd.f32 -1.0, %v5233_v53  ;;  %v3515_v36 = vperm.slane %v8199_v41, 5  ;;  %v1437_v6 = vpop.f32.mrf.mxu3 }
 0x2ef   :  { %v2648_v37 = vmul.f32 1.442695, %v2290_v5  ;;  %v8478_v9 = vadd.f32 %v3272_v11, %v8365_v31  ;;  %v8481_v8 = vadd.f32 %v3273_v30, %v8368_v39  ;;  %v2291_v42 = vmin.f32 %v8462_v7, 0.0 }
 0x2f0   :  { %v2312_v12 = vmin.f32 %v8472_v51, 0.0  ;;  %v5239_v32 = vpop.eup %5238  ;;  %v4646_v55 = vadd.f32 -1.0, %v5235_v20  ;;  %v3320_v62 = vperm.slane %v8169_v17, 6  ;;  %5242 = vpow2.f32 %v2646_v22 }
 0x2f1   :  { %v1683_v60 = vmul.f32 %v8112_v0, %v1379_v2  ;;  %v4647_v26 = vadd.f32 -1.0, %v5237_v4  ;;  %vm2074_vm2 = vcmp.gt.f32.partialorder %v8406_v25, 0.0  ;;  %5244 = vpow2.f32 %v2602_v48 }
 0x2f2   :  { %v3321_v31 = vperm.slane %v8178_v19, 6  ;;  %v2692_v39 = vmul.f32 1.442695, %v2312_v12  ;;  %v8490_v59 = vadd.f32 %v3274_v18, %v8392_v24  ;;  %v3011_v11 = vsel %vm2051_vm0, %v8362_v28, %v4625_v23 }
 0x2f3   :  { %5246 = vpow2.f32 %v2648_v37  ;;  %v8496_v5 = vadd.f32 %v8127_v35, %v1683_v60  ;;  %v5241_v0 = vpop.eup %5240  ;;  %v4670_v53 = vadd.f32 -1.0, %v5239_v32  ;;  %v2650_v30 = vmul.f32 1.442695, %v2291_v42 }
 0x2f4   :  { %5248 = vpow2.f32 %v2692_v39  ;;  %v1684_v15 = vmul.f32 %v8117_v29, %v1408_v43  ;;  %v3032_v24 = vsel %vm2072_vm15, %v8380_v50, %v4646_v55  ;;  %vm2096_vm3 = vcmp.gt.f32.partialorder %v8421_v14, 0.0 }
 0x2f5   :  { %v3322_v22 = vperm.slane %v8182_v45, 6  ;;  %v2313_v28 = vmin.f32 %v8496_v5, 0.0  ;;  %v8507_v35 = vmul.f32 %v3251_v33, %v3011_v11  ;;  %v3033_v20 = vsel %vm2073_vm1, %v8384_v58, %v4647_v26 }
 0x2f6   :  { %vm2097_vm4 = vcmp.gt.f32.partialorder %v8424_v44, 0.0  ;;  %v8514_v29 = vadd.f32 %v8131_v56, %v1684_v15  ;;  %v5243_v50 = vpop.eup %5242  ;;  %v4648_v48 = vadd.f32 -1.0, %v5241_v0  ;;  %v3323_v2 = vperm.slane %v8199_v41, 6 }
 0x2f7   :  { %v2694_v4 = vmul.f32 1.442695, %v2313_v28  ;;  %v1685_v18 = vmul.f32 %v8135_v10, %v1437_v6  ;;  %v5245_v23 = vpop.eup %5244  ;;  %v3536_v33 = vmul.f32 %v3512_v47, %v3032_v24  ;;  %vm2075_vm5 = vcmp.gt.f32.partialorder %v8429_v52, 0.0 }
 0x2f8   :  { %v3056_v58 = vsel %vm2096_vm3, %v8421_v14, %v4670_v53  ;;  %5250 = vpow2.f32 %v2650_v30  ;;  %v2314_v37 = vmin.f32 %v8514_v29, 0.0  ;;  %v3537_v42 = vmul.f32 %v3513_v63, %v3033_v20 }
 0x2f9   :  { %v5247_v56 = vpop.eup %5246  ;;  %vm2098_vm6 = vcmp.gt.f32.partialorder %v8440_v34, 0.0  ;;  %5252 = vpow2.f32 %v2694_v4  ;;  %v8527_v10 = vadd.f32 %v8151_v54, %v1685_v18  ;;  %v4671_v32 = vadd.f32 -1.0, %v5243_v50 }
 0x2fa   :  { %v5249_v12 = vpop.eup %5248  ;;  %v3584_v47 = vperm.slane %v8169_v17, 7  ;;  %v2696_v55 = vmul.f32 1.442695, %v2314_v37  ;;  %v3978_v14 = vmul.f32 0.25, %v8217_v1  ;;  %v3034_v60 = vsel %vm2074_vm2, %v8406_v25, %v4648_v48 }
 0x2fb   :  { %v3344_v43 = vmul.f32 %v3320_v62, %v3056_v58  ;;  %vm2120_vm7 = vcmp.gt.f32.partialorder %v8472_v51, 0.0  ;;  %v4694_v63 = vadd.f32 -1.0, %v5249_v12  ;;  %v4672_v26 = vadd.f32 -1.0, %v5247_v56 }
 0x2fc   :  { %5254 = vpow2.f32 %v2696_v55  ;;  %v2315_v54 = vmin.f32 %v8527_v10, 0.0  ;;  %v3979_v39 = vmul.f32 0.25, %v8233_v57  ;;  %3984 = vst [vmem:[#allocation14] sm:$0xff] %v3978_v14  ;;  %v3560_v17 = vadd.f32 %v3536_v33, %v8411_v40  ;;  %v5288_v33 = vld [vmem:[#allocation11 + $0x10] sm:$0xff] }
 0x2fd   :  { %v3561_v11 = vadd.f32 %v3537_v42, %v8414_v61  ;;  %v4649_v1 = vadd.f32 -1.0, %v5245_v23  ;;  %v3080_v0 = vsel %vm2120_vm7, %v8472_v51, %v4694_v63  ;;  %v3538_v25 = vmul.f32 %v3514_v27, %v3034_v60 }
 0x2fe   :  { %v5251_v53 = vpop.eup %5250  ;;  %v3057_v62 = vsel %vm2097_vm4, %v8424_v44, %v4671_v32  ;;  %v3608_v30 = vmul.f32 %v3584_v47, %v3080_v0  ;;  %v2698_v15 = vmul.f32 1.442695, %v2315_v54  ;;  %3985 = vst [vmem:[#allocation14 + $0x8] sm:$0xff] %v3979_v39  ;;  %v3368_v6 = vadd.f32 %v3344_v43, %v8478_v9  ;;  %v5289_v54 = vld [vmem:[#allocation13 + $0x10] sm:$0xff] }
 0x2ff   :  { %v5253_v57 = vpop.eup %5252  ;;  %vm2099_vm8 = vcmp.gt.f32.partialorder %v8462_v7, 0.0  ;;  %v3686_v40 = vperm.slane %v8072_v16, 4  ;;  %v3585_v61 = vperm.slane %v8178_v19, 7  ;;  %v3058_v27 = vsel %vm2098_vm6, %v8440_v34, %v4672_v26 }
 0x300   :  { %v3632_v51 = vadd.f32 %v3608_v30, %v3560_v17  ;;  %v4695_v24 = vadd.f32 -1.0, %v5253_v57  ;;  %5256 = vpow2.f32 %v2698_v15  ;;  %v3035_v44 = vsel %vm2075_vm5, %v8429_v52, %v4649_v1 }
 0x301   :  { %v3345_v9 = vmul.f32 %v3321_v31, %v3057_v62  ;;  %v4673_v28 = vadd.f32 -1.0, %v5251_v53  ;;  %vm2121_vm9 = vcmp.gt.f32.partialorder %v8496_v5, 0.0  ;;  %v3764_v50 = vperm.slane %v8084_v3, 4 }
 0x302   :  { %v5255_v16 = vpop.eup %5254  ;;  %v3656_v20 = vadd.f32 %v3632_v51, %v3368_v6  ;;  %v3081_v48 = vsel %vm2121_vm9, %v8496_v5, %v4695_v24  ;;  %v3586_v34 = vperm.slane %v8182_v45, 7  ;;  %v3562_v4 = vadd.f32 %v3538_v25, %v8444_v38 }
 0x303   :  { %v3346_v18 = vmul.f32 %v3322_v22, %v3058_v27  ;;  %v3609_v52 = vmul.f32 %v3585_v61, %v3081_v48  ;;  %v4696_v23 = vadd.f32 -1.0, %v5255_v16  ;;  %v3539_v19 = vmul.f32 %v3515_v36, %v3035_v44 }
 0x304   :  { %v3734_v31 = vmul.f32 %v3686_v40, %v3656_v20  ;;  %v3687_v58 = vperm.slane %v5288_v33, 5  ;;  %vm2122_vm10 = vcmp.gt.f32.partialorder %v8514_v29, 0.0  ;;  %v3369_v37 = vadd.f32 %v3345_v9, %v8481_v8  ;;  %v8604_v20 = vld [vmem:[#allocation20_spill] sm:$0xff] }
 0x305   :  { %v3059_v5 = vsel %vm2099_vm8, %v8462_v7, %v4673_v28  ;;  %v3633_v38 = vadd.f32 %v3609_v52, %v3561_v11  ;;  %v3082_v45 = vsel %vm2122_vm10, %v8514_v29, %v4696_v23  ;;  %v3765_v42 = vperm.slane %v8084_v3, 5 }
 0x306   :  { %v5257_v22 = vpop.eup %5256  ;;  %v3812_v56 = vadd.f32 %v3764_v50, %v3734_v31  ;;  %v3610_v12 = vmul.f32 %v3586_v34, %v3082_v45  ;;  %v3587_v36 = vperm.slane %v8199_v41, 7  ;;  %v3370_v32 = vadd.f32 %v3346_v18, %v8490_v59  ;;  %v8605_v31 = vld [vmem:[#allocation21_spill] sm:$0xff] }
 0x307   :  { %v3657_v47 = vadd.f32 %v3633_v38, %v3369_v37  ;;  %v3688_v55 = vperm.slane %v5288_v33, 6  ;;  %v4697_v14 = vadd.f32 -1.0, %v5257_v22  ;;  %v3347_v8 = vmul.f32 %v3323_v2, %v3059_v5 }
 0x308   :  { %v3860_v60 = vmin.f32 %v3812_v56, 0.0  ;;  %v3634_v7 = vadd.f32 %v3610_v12, %v3562_v4  ;;  %vm2123_vm11 = vcmp.gt.f32.partialorder %v8527_v10, 0.0  ;;  %v3299_v29 = vadd.f32 %v8507_v35, %v8398_v46 }
 0x309   :  { %v3563_v3 = vadd.f32 %v3539_v19, %v8469_v21  ;;  %v3735_v43 = vmul.f32 %v3687_v58, %v3657_v47  ;;  %v3083_v63 = vsel %vm2123_vm11, %v8527_v10, %v4697_v14  ;;  %v3766_v39 = vperm.slane %v5289_v54, 6 }
 0x30a   :  { %v3904_v26 = vmul.f32 1.442695, %v3860_v60  ;;  %v3658_v59 = vadd.f32 %v3634_v7, %v3370_v32  ;;  %v3611_v17 = vmul.f32 %v3587_v36, %v3083_v63  ;;  %v3689_v41 = vperm.slane %v5288_v33, 7 }
 0x30b   :  { %v3813_v11 = vadd.f32 %v3765_v42, %v3735_v43  ;;  %v3371_v2 = vadd.f32 %v3347_v8, %v3299_v29  ;;  %v3767_v46 = vperm.slane %v5289_v54, 7  ;;  %vm3836_vm12 = vcmp.gt.f32.partialorder %v3812_v56, 0.0 }
 0x30c   :  { %5258 = vpow2.f32 %v3904_v26  ;;  %v3736_v1 = vmul.f32 %v3688_v55, %v3658_v59  ;;  %v3635_v0 = vadd.f32 %v3611_v17, %v3563_v3 }
 0x30d   :  { %v3861_v53 = vmin.f32 %v3813_v11, 0.0  ;;  %vm3837_vm13 = vcmp.gt.f32.partialorder %v3813_v11, 0.0 }
 0x30e   :  { %v3814_v25 = vadd.f32 %v3766_v39, %v3736_v1  ;;  %v3659_v62 = vadd.f32 %v3635_v0, %v3371_v2 }
 0x30f   :  { %v3906_v35 = vmul.f32 1.442695, %v3861_v53 }
 0x310   :  { %v3862_v21 = vmin.f32 %v3814_v25, 0.0  ;;  %v3737_v30 = vmul.f32 %v3689_v41, %v3659_v62  ;;  %vm3838_vm14 = vcmp.gt.f32.partialorder %v3814_v25, 0.0 }
 0x311   :  { %5260 = vpow2.f32 %v3906_v35 }
 0x312   :  { %v5259_v10 = vpop.eup %5258  ;;  %v3908_v15 = vmul.f32 1.442695, %v3862_v21  ;;  %v3815_v57 = vadd.f32 %v3767_v46, %v3737_v30 }
 0x313   :  { %v4718_v6 = vadd.f32 -1.0, %v5259_v10 }
 0x314   :  { %5262 = vpow2.f32 %v3908_v15  ;;  %v3863_v40 = vmin.f32 %v3815_v57, 0.0  ;;  %vm3839_vm0 = vcmp.gt.f32.partialorder %v3815_v57, 0.0 }
 0x315   :  { %v3956_v61 = vsel %vm3836_vm12, %v3812_v56, %v4718_v6 }
 0x316   :  { %v3974_v27 = vadd.f32 %v7801_v13, %v3956_v61  ;;  %v3910_v51 = vmul.f32 1.442695, %v3863_v40 }
 0x317   :  { %v5261_v24 = vpop.eup %5260 }
 0x318   :  { %v4719_v44 = vadd.f32 -1.0, %v5261_v24  ;;  %5264 = vpow2.f32 %v3910_v51  ;;  %v3980_v9 = vmul.f32 0.25, %v3974_v27 }
 0x31a   :  { %v5263_v28 = vpop.eup %5262  ;;  %v3957_v16 = vsel %vm3837_vm13, %v3813_v11, %v4719_v44  ;;  %3986 = vst [vmem:[#allocation14 + $0x10] sm:$0xff] %v3980_v9 }
 0x31b   :  { %v3975_v50 = vadd.f32 %v8604_v20, %v3957_v16  ;;  %v4720_v48 = vadd.f32 -1.0, %v5263_v28 }
 0x31d   :  { %v3958_v34 = vsel %vm3838_vm14, %v3814_v25, %v4720_v48  ;;  %v3981_v4 = vmul.f32 0.25, %v3975_v50 }
 0x31e   :  { %v5265_v18 = vpop.eup %5264  ;;  %v3976_v52 = vadd.f32 %v8176_v49, %v3958_v34 }
 0x31f   :  { %v4721_v23 = vadd.f32 -1.0, %v5265_v18  ;;  %3987 = vst [vmem:[#allocation14 + $0x18] sm:$0xff] %v3981_v4 }
 0x320   :  { %v3982_v13 = vmul.f32 0.25, %v3976_v52 }
 0x321   :  { %v3959_v19 = vsel %vm3839_vm0, %v3815_v57, %v4721_v23 }
 0x322   :  { %v3977_v33 = vadd.f32 %v8605_v31, %v3959_v19  ;;  %3988 = vst [vmem:[#allocation14 + $0x20] sm:$0xff] %v3982_v13 }
 0x324   :  { %v3983_v58 = vmul.f32 0.25, %v3977_v33 }
 0x326   :  { %3989 = vst [vmem:[#allocation14 + $0x28] sm:$0xff] %v3983_v58 }
 0x327   :  { %4000 = dma.vmem_to_hbm [thread:$0]  %s3996_s6, 768, %s3998_s14, [#allocation4]  }
 0x328   :  { %5490 = dma.done.wait [#allocation4], 768  }
 0x329   :  { %5491 = vsyncadd [#allocation4], 4294966528 }
 0x32a   :  { %4005 = vsyncpa [#allocation3], 1 }
 0x32b   :  { %4006 = vsyncpa [#allocation6], 1 }
 0x32c   :  { %4007 = vsyncpa [#allocation9], 1 }
 0x32d   :  { %4008 = vsyncpa [#allocation12], 1 }
 0x32e   :  { %4009 = vsyncpa [#allocation4], 1 }

// kernel: tpu_custom_call.1
= control target key start
LH: loop header
LB: loop body
LE: loop exit
PB: predicated region body
PF: predicated region fallthrough
CT: control target
= control target key end

     0   :  { %12 = vsyncpa [#allocation3], 0  ;;  %s8589_s0 = inlined_call_operand.hbm [shape: bf16[1,64,64], index: 0, kind: input, shape index: {}]   ;;  %s8590_s1 = inlined_call_operand.hbm [shape: bf16[64,3072], index: 1, kind: input, shape index: {}]   ;;  %s8591_s2 = inlined_call_operand.hbm [shape: f32[1,3072], index: 2, kind: input, shape index: {}]   ;;  %s8592_s3 = inlined_call_operand.hbm [shape: f32[1,3072], index: 3, kind: input, shape index: {}]   ;;  %s8593_s4 = inlined_call_operand.hbm [shape: f32[8,3072], index: 4, kind: input, shape index: {}]   ;;  %s8594_s5 = inlined_call_operand.hbm [shape: f32[1,3072], index: 5, kind: input, shape index: {}]   ;;  %s8595_s6 = inlined_call_operand.hbm [shape: f32[1,3072], index: 6, kind: input, shape index: {}]   ;;  %s8596_s7 = inlined_call_operand.hbm [shape: f32[1,8,768], index: 7, kind: output, shape index: {}]  }
   0x1   :  { %13 = vsyncpa [#allocation6], 0 }
   0x2   :  { %14 = vsyncpa [#allocation9], 0 }
   0x3   :  { %15 = vsyncpa [#allocation12], 0  ;;  %s34_s26 = sshll.u32 %s8590_s1, 4  ;;  %s35_s26 = int_to_ptr.hbm [resolvable:$true] %s34_s26 }
   0x4   :  { %16 = vsyncpa [#allocation4], 0  ;;  %s5492_s27 = smov [#allocation5]   ;;  %s59_s8 = sshll.u32 %s8592_s3, 4  ;;  %s60_s8 = int_to_ptr.hbm [resolvable:$true] %s59_s8 }
   0x5   :  { %s36_s28 = sshll.u32 %s5492_s27, 4  ;;  %s5493_s9 = smov 1536   ;;  %s37_s28 = int_to_ptr.vmem [resolvable:$true] %s36_s28 }
   0x6   :  { %s5494_s10 = smov 96   ;;  %s5495_s11 = smov [#allocation8]  }
   0x7   :  { %42 = dma.hbm_to_vmem [thread:$0]  %s35_s26, 12288, %s37_s28, [#allocation6], %s5493_s9, %s5493_s9, %s5494_s10  }
   0x8   :  { %s61_s12 = sshll.u32 %s5495_s11, 4  ;;  %s81_s15 = sshll.u32 %s8594_s5, 4  ;;  %s62_s12 = int_to_ptr.vmem [resolvable:$true] %s61_s12  ;;  %s82_s15 = int_to_ptr.hbm [resolvable:$true] %s81_s15 }
   0x9   :  { %64 = dma.hbm_to_vmem [thread:$0]  %s60_s8, 384, %s62_s12, [#allocation9]  }
   0xa   :  { %s21_s17 = sshll.u32 %s8589_s0, 4  ;;  %s5496_s18 = smov [#allocation11]   ;;  %s22_s17 = int_to_ptr.hbm [resolvable:$true] %s21_s17 }
   0xb   :  { %s83_s19 = sshll.u32 %s5496_s18, 4  ;;  %s5497_s3 = smov [#allocation2]   ;;  %s84_s19 = int_to_ptr.vmem [resolvable:$true] %s83_s19 }
   0xc   :  { %86 = dma.hbm_to_vmem [thread:$0]  %s82_s15, 384, %s84_s19, [#allocation12]  }
   0xd   :  { %s23_s20 = sshll.u32 %s5497_s3, 4  ;;  %s5498_s21 = smov 64   ;;  %s24_s20 = int_to_ptr.vmem [resolvable:$true] %s23_s20 }
   0xe   :  { %s5499_s22 = smov 4   ;;  %s48_s24 = sshll.u32 %s8591_s2, 4  ;;  %s49_s24 = int_to_ptr.hbm [resolvable:$true] %s48_s24 }
   0xf   :  { %29 = dma.hbm_to_vmem [thread:$0]  %s22_s17, 512, %s24_s20, [#allocation3], %s5498_s21, %s5498_s21, %s5499_s22  }
  0x10   :  { %s5500_s25 = smov [#allocation7]   ;;  %s70_s28 = sshll.u32 %s8593_s4, 4  ;;  %s71_s28 = int_to_ptr.hbm [resolvable:$true] %s70_s28 }
  0x11   :  { %s50_s26 = sshll.u32 %s5500_s25, 4  ;;  %s5501_s29 = smov [#allocation10]   ;;  %s51_s26 = int_to_ptr.vmem [resolvable:$true] %s50_s26 }
  0x12   :  { %53 = dma.hbm_to_vmem [thread:$0]  %s49_s24, 384, %s51_s26, [#allocation6]  }
  0x13   :  { %s72_s30 = sshll.u32 %s5501_s29, 4  ;;  %s92_s10 = sshll.u32 %s8595_s6, 4  ;;  %s73_s30 = int_to_ptr.vmem [resolvable:$true] %s72_s30  ;;  %s93_s10 = int_to_ptr.hbm [resolvable:$true] %s92_s10 }
  0x14   :  { %75 = dma.hbm_to_vmem [thread:$0]  %s71_s28, 3072, %s73_s30, [#allocation9]  }
  0x15   :  { %s5502_s2 = smov [#allocation13]  }
  0x16   :  { %s94_s11 = sshll.u32 %s5502_s2, 4  ;;  %s95_s11 = int_to_ptr.vmem [resolvable:$true] %s94_s11 }
  0x17   :  { %97 = dma.hbm_to_vmem [thread:$0]  %s93_s10, 384, %s95_s11, [#allocation12]  }
  0x18   :  { %5482 = dma.done.wait [#allocation3], 512  }
  0x19   :  { %5483 = vsyncadd [#allocation3], 4294966784 }
  0x1a   :  { %5484 = dma.done.wait [#allocation6], 12672  }
  0x1b   :  { %5485 = vsyncadd [#allocation6], 4294954624 }
  0x1c   :  { %5486 = dma.done.wait [#allocation9], 3456  }
  0x1d   :  { %5487 = vsyncadd [#allocation9], 4294963840 }
  0x1e   :  { %5488 = dma.done.wait [#allocation12], 768  }
  0x1f   :  { %5489 = vsyncadd [#allocation12], 4294966528  ;;  %v4316_v0 = vld [vmem:[#allocation5 + $0x240] sm:$0xf]  ;;  %v4798_v2 = vld [vmem:[#allocation5 + $0x244] sm:$0xf] }
  0x20   :  { %v4810_v1 = vld [vmem:[#allocation5 + $0x29c] sm:$0xf0]  ;;  %v4318_v4 = vld [vmem:[#allocation5 + $0x2a0] sm:$0xf0]  ;;  %v4324_v5 = vld [vmem:[#allocation5 + $0x248] sm:$0xf] }
  0x21   :  { %v4317_v3 = vor.u32 %v4810_v1, %v4316_v0  ;;  %v4811_v6 = vld [vmem:[#allocation5 + $0x2a4] sm:$0xf0]  ;;  %v4321_v7 = vor.u32 %v4798_v2, %v4318_v4  ;;  %v4799_v9 = vld [vmem:[#allocation5 + $0x24c] sm:$0xf]  ;;  %v4220_v11 = vld [vmem:[#allocation5 + $0x180] sm:$0xf] }
  0x22   :  { %v4325_v8 = vor.u32 %v4811_v6, %v4324_v5  ;;  %v4326_v10 = vld [vmem:[#allocation5 + $0x2a8] sm:$0xf0]  ;;  %v4786_v13 = vld [vmem:[#allocation5 + $0x1dc] sm:$0xf0]  ;;  %v4774_v14 = vld [vmem:[#allocation5 + $0x184] sm:$0xf] }
  0x23   :  { %748 = vmatpush.bf16.msra.mxu0 %v4317_v3  ;;  %v4329_v12 = vor.u32 %v4799_v9, %v4326_v10  ;;  %v4222_v15 = vld [vmem:[#allocation5 + $0x1e0] sm:$0xf0]  ;;  %777 = vmatpush.bf16.msra.mxu1 %v4321_v7  ;;  %v4221_v16 = vor.u32 %v4786_v13, %v4220_v11  ;;  %v4228_v18 = vld [vmem:[#allocation5 + $0x188] sm:$0xf]  ;;  %v4775_v20 = vld [vmem:[#allocation5 + $0x18c] sm:$0xf] }
  0x24   :  { %806 = vmatpush.bf16.msra.mxu2 %v4325_v8  ;;  %v4225_v17 = vor.u32 %v4774_v14, %v4222_v15  ;;  %v4787_v19 = vld [vmem:[#allocation5 + $0x1e4] sm:$0xf0]  ;;  %v4230_v22 = vld [vmem:[#allocation5 + $0x1e8] sm:$0xf0]  ;;  %v4124_v23 = vld [vmem:[#allocation5 + $0xc0] sm:$0xf] }
  0x25   :  { %835 = vmatpush.bf16.msra.mxu3 %v4329_v12  ;;  %v4229_v21 = vor.u32 %v4787_v19, %v4228_v18  ;;  %v4762_v24 = vld [vmem:[#allocation5 + $0x11c] sm:$0xf0]  ;;  %v4233_v25 = vor.u32 %v4775_v20, %v4230_v22  ;;  %v4750_v26 = vld [vmem:[#allocation5 + $0xc4] sm:$0xf]  ;;  %v4132_v28 = vld [vmem:[#allocation5 + $0xc8] sm:$0xf] }
  0x26   :  { %v4126_v27 = vld [vmem:[#allocation5 + $0x120] sm:$0xf0]  ;;  %v4125_v29 = vor.u32 %v4762_v24, %v4124_v23  ;;  %v4763_v30 = vld [vmem:[#allocation5 + $0x124] sm:$0xf0]  ;;  %v4751_v31 = vld [vmem:[#allocation5 + $0xcc] sm:$0xf] }
  0x27   :  { %749 = vmatpush.bf16.msra.mxu0 %v4221_v16  ;;  %v4134_v32 = vld [vmem:[#allocation5 + $0x128] sm:$0xf0]  ;;  %778 = vmatpush.bf16.msra.mxu1 %v4225_v17  ;;  %v4129_v33 = vor.u32 %v4750_v26, %v4126_v27  ;;  %v4133_v34 = vor.u32 %v4763_v30, %v4132_v28  ;;  %v4028_v35 = vld [vmem:[#allocation5] sm:$0xf]  ;;  %v4726_v37 = vld [vmem:[#allocation5 + $0x4] sm:$0xf] }
  0x28   :  { %807 = vmatpush.bf16.msra.mxu2 %v4229_v21  ;;  %v4738_v36 = vld [vmem:[#allocation5 + $0x5c] sm:$0xf0]  ;;  %v4137_v38 = vor.u32 %v4751_v31, %v4134_v32  ;;  %v4030_v39 = vld [vmem:[#allocation5 + $0x60] sm:$0xf0]  ;;  %v4036_v40 = vld [vmem:[#allocation5 + $0x8] sm:$0xf] }
  0x29   :  { %836 = vmatpush.bf16.msra.mxu3 %v4233_v25  ;;  %v4739_v41 = vld [vmem:[#allocation5 + $0x64] sm:$0xf0]  ;;  %v4727_v42 = vld [vmem:[#allocation5 + $0xc] sm:$0xf]  ;;  %v4029_v44 = vor.u32 %v4738_v36, %v4028_v35  ;;  %v4340_v45 = vld [vmem:[#allocation5 + $0x258] sm:$0xf]  ;;  %v4033_v48 = vor.u32 %v4726_v37, %v4030_v39 }
  0x2a   :  { %v4038_v43 = vld [vmem:[#allocation5 + $0x68] sm:$0xf0]  ;;  %v4813_v46 = vld [vmem:[#allocation5 + $0x2b4] sm:$0xf0]  ;;  %v4801_v47 = vld [vmem:[#allocation5 + $0x25c] sm:$0xf]  ;;  %v4037_v49 = vor.u32 %v4739_v41, %v4036_v40 }
  0x2b   :  { %750 = vmatpush.bf16.msra.mxu0 %v4125_v29  ;;  %779 = vmatpush.bf16.msra.mxu1 %v4129_v33  ;;  %v5565_v50 = vld [vmem:[#allocation2] sm:$0xff]  ;;  %v4342_v51 = vld [vmem:[#allocation5 + $0x2b8] sm:$0xf0]  ;;  %v4041_v52 = vor.u32 %v4727_v42, %v4038_v43  ;;  %v4341_v53 = vor.u32 %v4813_v46, %v4340_v45  ;;  %v4332_v54 = vld [vmem:[#allocation5 + $0x250] sm:$0xf]  ;;  %vm731_vm0 = vcmask 523264  }
  0x2c   :  { %808 = vmatpush.bf16.msra.mxu2 %v4133_v34  ;;  %v4812_v55 = vld [vmem:[#allocation5 + $0x2ac] sm:$0xf0]  ;;  %v4800_v56 = vld [vmem:[#allocation5 + $0x254] sm:$0xf]  ;;  %v4345_v57 = vor.u32 %v4801_v47, %v4342_v51  ;;  %v4244_v59 = vld [vmem:[#allocation5 + $0x198] sm:$0xf] }
  0x2d   :  { %837 = vmatpush.bf16.msra.mxu3 %v4137_v38  ;;  %v4334_v58 = vld [vmem:[#allocation5 + $0x2b0] sm:$0xf0]  ;;  %v4789_v60 = vld [vmem:[#allocation5 + $0x1f4] sm:$0xf0]  ;;  %v4777_v61 = vld [vmem:[#allocation5 + $0x19c] sm:$0xf]  ;;  %v4333_v63 = vor.u32 %v4812_v55, %v4332_v54 }
  0x2e   :  { %v4246_v62 = vld [vmem:[#allocation5 + $0x1f8] sm:$0xf0]  ;;  %v4337_v0 = vor.u32 %v4800_v56, %v4334_v58  ;;  %v4245_v1 = vor.u32 %v4789_v60, %v4244_v59  ;;  %v4236_v2 = vld [vmem:[#allocation5 + $0x190] sm:$0xf]  ;;  %v4776_v5 = vld [vmem:[#allocation5 + $0x194] sm:$0xf] }
  0x2f   :  { %751 = vmatpush.bf16.msra.mxu0 %v4029_v44  ;;  %780 = vmatpush.bf16.msra.mxu1 %v4033_v48  ;;  %v4788_v3 = vld [vmem:[#allocation5 + $0x1ec] sm:$0xf0]  ;;  %v4249_v4 = vor.u32 %v4777_v61, %v4246_v62  ;;  %v4238_v6 = vld [vmem:[#allocation5 + $0x1f0] sm:$0xf0]  ;;  %v4148_v8 = vld [vmem:[#allocation5 + $0xd8] sm:$0xf] }
  0x30   :  { %809 = vmatpush.bf16.msra.mxu2 %v4037_v49  ;;  %v4237_v7 = vor.u32 %v4788_v3, %v4236_v2  ;;  %v4765_v9 = vld [vmem:[#allocation5 + $0x134] sm:$0xf0]  ;;  %v4753_v10 = vld [vmem:[#allocation5 + $0xdc] sm:$0xf]  ;;  %v4241_v11 = vor.u32 %v4776_v5, %v4238_v6  ;;  %v4140_v14 = vld [vmem:[#allocation5 + $0xd0] sm:$0xf] }
  0x31   :  { %838 = vmatpush.bf16.msra.mxu3 %v4041_v52  ;;  %v4149_v12 = vor.u32 %v4765_v9, %v4148_v8  ;;  %v4150_v13 = vld [vmem:[#allocation5 + $0x138] sm:$0xf0]  ;;  %v4764_v15 = vld [vmem:[#allocation5 + $0x12c] sm:$0xf0]  ;;  %v4752_v17 = vld [vmem:[#allocation5 + $0xd4] sm:$0xf] }
  0x32   :  { %4410 = vmatmul.msk.bf16.vlgmr.msra.gmra.mxu0 %vm731_vm0, %v5565_v50  ;;  %4414 = vmatmul.msk.bf16.vlgmr.msra.gmra.mxu1 %vm731_vm0, %v5565_v50  ;;  %v4153_v16 = vor.u32 %v4753_v10, %v4150_v13  ;;  %v4142_v18 = vld [vmem:[#allocation5 + $0x130] sm:$0xf0]  ;;  %v4141_v19 = vor.u32 %v4764_v15, %v4140_v14  ;;  %v5575_v21 = vld [vmem:[#allocation2 + $0x8] sm:$0xff]  ;;  %v4052_v22 = vld [vmem:[#allocation5 + $0x18] sm:$0xf]  ;;  %s5503_s4 = smov [#allocation14]  }
  0x33   :  { %4418 = vmatmul.msk.bf16.vlgmr.msra.gmra.mxu2 %vm731_vm0, %v5565_v50  ;;  %864 = vmatpush.bf16.msrb.mxu0 %v4333_v63  ;;  %v4145_v20 = vor.u32 %v4752_v17, %v4142_v18  ;;  %v4741_v23 = vld [vmem:[#allocation5 + $0x74] sm:$0xf0]  ;;  %v4729_v24 = vld [vmem:[#allocation5 + $0x1c] sm:$0xf]  ;;  %v4044_v27 = vld [vmem:[#allocation5 + $0x10] sm:$0xf] }
  0x34   :  { %922 = vmatpush.bf16.msrb.mxu2 %v4341_v53  ;;  %4422 = vmatmul.msk.bf16.vlgmr.msra.gmra.mxu3 %vm731_vm0, %v5565_v50  ;;  %v4053_v25 = vor.u32 %v4741_v23, %v4052_v22  ;;  %v4054_v26 = vld [vmem:[#allocation5 + $0x78] sm:$0xf0]  ;;  %v4740_v28 = vld [vmem:[#allocation5 + $0x6c] sm:$0xf0]  ;;  %v4728_v31 = vld [vmem:[#allocation5 + $0x14] sm:$0xf] }
  0x35   :  { %951 = vmatpush.bf16.msrb.mxu3 %v4345_v57  ;;  %893 = vmatpush.bf16.msrb.mxu1 %v4337_v0  ;;  %v4057_v29 = vor.u32 %v4729_v24, %v4054_v26  ;;  %v4045_v30 = vor.u32 %v4740_v28, %v4044_v27  ;;  %v4046_v32 = vld [vmem:[#allocation5 + $0x70] sm:$0xf0]  ;;  %v4356_v35 = vld [vmem:[#allocation5 + $0x268] sm:$0xf]  ;;  %v4803_v37 = vld [vmem:[#allocation5 + $0x26c] sm:$0xf] }
  0x36   :  { %v4049_v33 = vor.u32 %v4728_v31, %v4046_v32  ;;  %v5585_v34 = vld [vmem:[#allocation2 + $0x10] sm:$0xff]  ;;  %v4815_v36 = vld [vmem:[#allocation5 + $0x2c4] sm:$0xf0]  ;;  %v4358_v39 = vld [vmem:[#allocation5 + $0x2c8] sm:$0xf0]  ;;  %s3995_s6 = sshll.u32 %s5503_s4, 4  ;;  %s3996_s6 = int_to_ptr.vmem [resolvable:$true] %s3995_s6 }
  0x37   :  { %865 = vmatpush.bf16.msrb.mxu0 %v4237_v7  ;;  %v4357_v38 = vor.u32 %v4815_v36, %v4356_v35  ;;  %v4348_v40 = vld [vmem:[#allocation5 + $0x260] sm:$0xf]  ;;  %v4361_v42 = vor.u32 %v4803_v37, %v4358_v39  ;;  %v4802_v44 = vld [vmem:[#allocation5 + $0x264] sm:$0xf]  ;;  %v5595_v47 = vld [vmem:[#allocation2 + $0x18] sm:$0xff]  ;;  %s3997_s14 = sshll.u32 %s8596_s7, 4  ;;  %s3998_s14 = int_to_ptr.hbm [resolvable:$true] %s3997_s14 }
  0x38   :  { %923 = vmatpush.bf16.msrb.mxu2 %v4245_v1  ;;  %v4814_v41 = vld [vmem:[#allocation5 + $0x2bc] sm:$0xf0]  ;;  %v4350_v45 = vld [vmem:[#allocation5 + $0x2c0] sm:$0xf0]  ;;  %v4260_v48 = vld [vmem:[#allocation5 + $0x1a8] sm:$0xf] }
  0x39   :  { %952 = vmatpush.bf16.msrb.mxu3 %v4249_v4  ;;  %894 = vmatpush.bf16.msrb.mxu1 %v4241_v11  ;;  %v4349_v43 = vor.u32 %v4814_v41, %v4348_v40  ;;  %v4353_v46 = vor.u32 %v4802_v44, %v4350_v45  ;;  %v4791_v49 = vld [vmem:[#allocation5 + $0x204] sm:$0xf0]  ;;  %v4779_v51 = vld [vmem:[#allocation5 + $0x1ac] sm:$0xf]  ;;  %v4252_v54 = vld [vmem:[#allocation5 + $0x1a0] sm:$0xf] }
  0x3a   :  { %v4261_v52 = vor.u32 %v4791_v49, %v4260_v48  ;;  %v4262_v53 = vld [vmem:[#allocation5 + $0x208] sm:$0xf0]  ;;  %v4790_v55 = vld [vmem:[#allocation5 + $0x1fc] sm:$0xf0]  ;;  %v4778_v58 = vld [vmem:[#allocation5 + $0x1a4] sm:$0xf] }
  0x3b   :  { %866 = vmatpush.bf16.msrb.mxu0 %v4141_v19  ;;  %v4265_v56 = vor.u32 %v4779_v51, %v4262_v53  ;;  %v4253_v57 = vor.u32 %v4790_v55, %v4252_v54  ;;  %v4254_v59 = vld [vmem:[#allocation5 + $0x200] sm:$0xf0]  ;;  %v4164_v61 = vld [vmem:[#allocation5 + $0xe8] sm:$0xf]  ;;  %v4755_v63 = vld [vmem:[#allocation5 + $0xec] sm:$0xf] }
  0x3c   :  { %924 = vmatpush.bf16.msrb.mxu2 %v4149_v12  ;;  %v4257_v60 = vor.u32 %v4778_v58, %v4254_v59  ;;  %v4767_v62 = vld [vmem:[#allocation5 + $0x144] sm:$0xf0]  ;;  %v4166_v1 = vld [vmem:[#allocation5 + $0x148] sm:$0xf0]  ;;  %v4156_v2 = vld [vmem:[#allocation5 + $0xe0] sm:$0xf] }
  0x3d   :  { %953 = vmatpush.bf16.msrb.mxu3 %v4153_v16  ;;  %895 = vmatpush.bf16.msrb.mxu1 %v4145_v20  ;;  %v4165_v0 = vor.u32 %v4767_v62, %v4164_v61  ;;  %v4766_v3 = vld [vmem:[#allocation5 + $0x13c] sm:$0xf0]  ;;  %v4169_v4 = vor.u32 %v4755_v63, %v4166_v1  ;;  %v4754_v6 = vld [vmem:[#allocation5 + $0xe4] sm:$0xf]  ;;  %v4068_v9 = vld [vmem:[#allocation5 + $0x28] sm:$0xf] }
  0x3e   :  { %v4157_v5 = vor.u32 %v4766_v3, %v4156_v2  ;;  %v4158_v7 = vld [vmem:[#allocation5 + $0x140] sm:$0xf0]  ;;  %v4743_v10 = vld [vmem:[#allocation5 + $0x84] sm:$0xf0]  ;;  %v4731_v11 = vld [vmem:[#allocation5 + $0x2c] sm:$0xf] }
  0x3f   :  { %867 = vmatpush.bf16.msrb.mxu0 %v4045_v30  ;;  %v4161_v8 = vor.u32 %v4754_v6, %v4158_v7  ;;  %v4069_v12 = vor.u32 %v4743_v10, %v4068_v9  ;;  %v4070_v13 = vld [vmem:[#allocation5 + $0x88] sm:$0xf0]  ;;  %v4060_v14 = vld [vmem:[#allocation5 + $0x20] sm:$0xf]  ;;  %v4730_v18 = vld [vmem:[#allocation5 + $0x24] sm:$0xf] }
  0x40   :  { %925 = vmatpush.bf16.msrb.mxu2 %v4053_v25  ;;  %v4742_v15 = vld [vmem:[#allocation5 + $0x7c] sm:$0xf0]  ;;  %v4073_v16 = vor.u32 %v4731_v11, %v4070_v13  ;;  %v4062_v19 = vld [vmem:[#allocation5 + $0x80] sm:$0xf0]  ;;  %v4372_v22 = vld [vmem:[#allocation5 + $0x278] sm:$0xf] }
  0x41   :  { %954 = vmatpush.bf16.msrb.mxu3 %v4057_v29  ;;  %896 = vmatpush.bf16.msrb.mxu1 %v4049_v33  ;;  %v4061_v17 = vor.u32 %v4742_v15, %v4060_v14  ;;  %v4065_v20 = vor.u32 %v4730_v18, %v4062_v19  ;;  %v4817_v23 = vld [vmem:[#allocation5 + $0x2d4] sm:$0xf0]  ;;  %v4805_v24 = vld [vmem:[#allocation5 + $0x27c] sm:$0xf]  ;;  %v5637_v28 = vld [vmem:[#allocation7] sm:$0xff] }
  0x42   :  { %4411 = vmatmul.msk.bf16.gmra.mxu0 %vm731_vm0, %v5575_v21  ;;  %4415 = vmatmul.msk.bf16.gmra.mxu1 %vm731_vm0, %v5575_v21  ;;  %v4373_v25 = vor.u32 %v4817_v23, %v4372_v22  ;;  %v4374_v26 = vld [vmem:[#allocation5 + $0x2d8] sm:$0xf0]  ;;  %v5640_v29 = vperm.slane %v5637_v28, 0  ;;  %v4364_v31 = vld [vmem:[#allocation5 + $0x270] sm:$0xf]  ;;  %v5645_v35 = vperm.slane %v5637_v28, 1 }
  0x43   :  { %4419 = vmatmul.msk.bf16.gmra.mxu2 %vm731_vm0, %v5575_v21  ;;  %980 = vmatpush.bf16.msra.mxu0 %v4349_v43  ;;  %v4377_v27 = vor.u32 %v4805_v24, %v4374_v26  ;;  %v5642_v30 = vld [vmem:[#allocation8] sm:$0xff]  ;;  %v4816_v32 = vld [vmem:[#allocation5 + $0x2cc] sm:$0xf0]  ;;  %v4804_v33 = vld [vmem:[#allocation5 + $0x274] sm:$0xf]  ;;  %v5668_v48 = vperm.slane %v5637_v28, 2 }
  0x44   :  { %4423 = vmatmul.msk.bf16.gmra.mxu3 %vm731_vm0, %v5575_v21  ;;  %1038 = vmatpush.bf16.msra.mxu2 %v4357_v38  ;;  %v4365_v36 = vor.u32 %v4816_v32, %v4364_v31  ;;  %v4366_v37 = vld [vmem:[#allocation5 + $0x2d0] sm:$0xf0]  ;;  %v5648_v38 = vperm.slane %v5642_v30, 0  ;;  %v5651_v41 = vperm.slane %v5642_v30, 1  ;;  %v5674_v51 = vperm.slane %v5637_v28, 3  ;;  %v5703_v13 = vld [vmem:[#allocation10 + $0x18] sm:$0xff] }
  0x45   :  { %1067 = vmatpush.bf16.msra.mxu3 %v4361_v42  ;;  %1009 = vmatpush.bf16.msra.mxu1 %v4353_v46  ;;  %v4369_v39 = vor.u32 %v4804_v33, %v4366_v37  ;;  %v5678_v53 = vperm.slane %v5642_v30, 2  ;;  %v5681_v55 = vperm.slane %v5642_v30, 3  ;;  %v4781_v62 = vld [vmem:[#allocation5 + $0x1bc] sm:$0xf]  ;;  %v5690_v7 = vld [vmem:[#allocation10] sm:$0xff]  ;;  %v3111_v24 = vperm.slane %v5703_v13, 0 }
  0x46   :  { %v4278_v63 = vld [vmem:[#allocation5 + $0x218] sm:$0xf0] }
  0x47   :  { %981 = vmatpush.bf16.msra.mxu0 %v4253_v57  ;;  %v4793_v57 = vld [vmem:[#allocation5 + $0x214] sm:$0xf0] }
  0x48   :  { %1039 = vmatpush.bf16.msra.mxu2 %v4261_v52 }
  0x49   :  { %1068 = vmatpush.bf16.msra.mxu3 %v4265_v56  ;;  %1010 = vmatpush.bf16.msra.mxu1 %v4257_v60  ;;  %v4276_v56 = vld [vmem:[#allocation5 + $0x1b8] sm:$0xf] }
  0x4b   :  { %982 = vmatpush.bf16.msra.mxu0 %v4157_v5 }
  0x4c   :  { %1040 = vmatpush.bf16.msra.mxu2 %v4165_v0 }
  0x4d   :  { %1069 = vmatpush.bf16.msra.mxu3 %v4169_v4  ;;  %1011 = vmatpush.bf16.msra.mxu1 %v4161_v8  ;;  %v4281_v4 = vor.u32 %v4781_v62, %v4278_v63  ;;  %v5692_v8 = vld [vmem:[#allocation10 + $0x8] sm:$0xff] }
  0x4e   :  { %v3109_v18 = vperm.slane %v5692_v8, 0  ;;  %v3373_v37 = vperm.slane %v5692_v8, 1 }
  0x4f   :  { %983 = vmatpush.bf16.msra.mxu0 %v4061_v17  ;;  %v3108_v17 = vperm.slane %v5690_v7, 0 }
  0x50   :  { %1041 = vmatpush.bf16.msra.mxu2 %v4069_v12  ;;  %v5701_v12 = vld [vmem:[#allocation10 + $0x10] sm:$0xff] }
  0x51   :  { %1070 = vmatpush.bf16.msra.mxu3 %v4073_v16  ;;  %1012 = vmatpush.bf16.msra.mxu1 %v4065_v20  ;;  %v3110_v22 = vperm.slane %v5701_v12, 0 }
  0x52   :  { %4412 = vmatmul.msk.bf16.gmra.mxu0 %vm731_vm0, %v5585_v34  ;;  %4416 = vmatmul.msk.bf16.gmra.mxu1 %vm731_vm0, %v5585_v34 }
  0x53   :  { %4420 = vmatmul.msk.bf16.gmra.mxu2 %vm731_vm0, %v5585_v34 }
  0x54   :  { %4424 = vmatmul.msk.bf16.gmra.mxu3 %vm731_vm0, %v5585_v34 }
  0x62   :  { %4413 = vmatmul.msk.bf16.gmra.mxu0 %vm731_vm0, %v5595_v47  ;;  %4417 = vmatmul.msk.bf16.gmra.mxu1 %vm731_vm0, %v5595_v47 }
  0x63   :  { %4421 = vmatmul.msk.bf16.gmra.mxu2 %vm731_vm0, %v5595_v47 }
  0x64   :  { %4425 = vmatmul.msk.bf16.gmra.mxu3 %vm731_vm0, %v5595_v47 }
  0x72   :  { %4426 = vmatmul.msk.bf16.vlgmr.msrb.gmra.mxu0 %vm731_vm0, %v5565_v50  ;;  %4430 = vmatmul.msk.bf16.vlgmr.msrb.gmra.mxu1 %vm731_vm0, %v5565_v50 }
  0x73   :  { %4434 = vmatmul.msk.bf16.vlgmr.msrb.gmra.mxu2 %vm731_vm0, %v5565_v50  ;;  %1096 = vmatpush.bf16.msrb.mxu0 %v4365_v36 }
  0x74   :  { %4438 = vmatmul.msk.bf16.vlgmr.msrb.gmra.mxu3 %vm731_vm0, %v5565_v50  ;;  %1154 = vmatpush.bf16.msrb.mxu2 %v4373_v25 }
  0x75   :  { %1183 = vmatpush.bf16.msrb.mxu3 %v4377_v27  ;;  %1125 = vmatpush.bf16.msrb.mxu1 %v4369_v39  ;;  %v3372_v27 = vperm.slane %v5690_v7, 1 }
  0x79   :  { %1184 = vmatpush.bf16.msrb.mxu3 %v4281_v4 }
  0x82   :  { %4427 = vmatmul.msk.bf16.gmra.mxu0 %vm731_vm0, %v5575_v21  ;;  %4431 = vmatmul.msk.bf16.gmra.mxu1 %vm731_vm0, %v5575_v21 }
  0x83   :  { %4435 = vmatmul.msk.bf16.gmra.mxu2 %vm731_vm0, %v5575_v21 }
  0x84   :  { %4439 = vmatmul.msk.bf16.gmra.mxu3 %vm731_vm0, %v5575_v21 }
  0x92   :  { %4428 = vmatmul.msk.bf16.gmra.mxu0 %vm731_vm0, %v5585_v34  ;;  %4432 = vmatmul.msk.bf16.gmra.mxu1 %vm731_vm0, %v5585_v34 }
  0x93   :  { %4436 = vmatmul.msk.bf16.gmra.mxu2 %vm731_vm0, %v5585_v34 }
  0x94   :  { %4440 = vmatmul.msk.bf16.gmra.mxu3 %vm731_vm0, %v5585_v34 }
  0xa2   :  { %4429 = vmatmul.msk.bf16.gmra.mxu0 %vm731_vm0, %v5595_v47  ;;  %4433 = vmatmul.msk.bf16.gmra.mxu1 %vm731_vm0, %v5595_v47 }
  0xa3   :  { %4437 = vmatmul.msk.bf16.gmra.mxu2 %vm731_vm0, %v5595_v47 }
  0xa4   :  { %4441 = vmatmul.msk.bf16.gmra.mxu3 %vm731_vm0, %v5595_v47 }
  0xaf   :  { %v753_v40 = vpop.f32.mrf.mxu0  ;;  %v782_v43 = vpop.f32.mrf.mxu1 }
  0xb0   :  { %v1494_v42 = vmul.f32 %v5640_v29, %v753_v40  ;;  %v1495_v44 = vmul.f32 %v5645_v35, %v782_v43 }
  0xb2   :  { %v5656_v45 = vadd.f32 %v5648_v38, %v1494_v42  ;;  %4442 = vmatmul.msk.bf16.vlgmr.msra.gmra.mxu0 %vm731_vm0, %v5565_v50  ;;  %v5661_v46 = vadd.f32 %v5651_v41, %v1495_v44  ;;  %4446 = vmatmul.msk.bf16.vlgmr.msra.gmra.mxu1 %vm731_vm0, %v5565_v50 }
  0xb3   :  { %4450 = vmatmul.msk.bf16.vlgmr.msra.gmra.mxu2 %vm731_vm0, %v5565_v50 }
  0xb4   :  { %v2124_v49 = vmin.f32 %v5656_v45, 0.0  ;;  %4454 = vmatmul.msk.bf16.vlgmr.msra.gmra.mxu3 %vm731_vm0, %v5565_v50  ;;  %v2125_v52 = vmin.f32 %v5661_v46, 0.0  ;;  %v4277_v50 = vor.u32 %v4793_v57, %v4276_v56  ;;  %v3375_v57 = vperm.slane %v5703_v13, 1 }
  0xb5   :  { %vm1932_vm1 = vcmp.gt.f32.partialorder %v5656_v45, 0.0  ;;  %vm1933_vm2 = vcmp.gt.f32.partialorder %v5661_v46, 0.0 }
  0xb6   :  { %v811_v54 = vpop.f32.mrf.mxu2  ;;  %v2316_v58 = vmul.f32 1.442695, %v2124_v49  ;;  %v2318_v0 = vmul.f32 1.442695, %v2125_v52  ;;  %1155 = vmatpush.bf16.msrb.mxu2 %v4277_v50  ;;  %v3374_v49 = vperm.slane %v5701_v12, 1 }
  0xb7   :  { %v1496_v59 = vmul.f32 %v5668_v48, %v811_v54  ;;  %v840_v60 = vpop.f32.mrf.mxu3  ;;  %v755_v61 = vpop.f32.mrf.mxu0  ;;  %v4792_v50 = vld [vmem:[#allocation5 + $0x20c] sm:$0xf0] }
  0xb8   :  { %v1497_v1 = vmul.f32 %v5674_v51, %v840_v60  ;;  %v1518_v2 = vmul.f32 %v5640_v29, %v755_v61  ;;  %v784_v3 = vpop.f32.mrf.mxu1  ;;  %4834 = vpow2.f32 %v2316_v58  ;;  %v3156_v58 = vperm.slane %v5690_v7, 2  ;;  %v4268_v61 = vld [vmem:[#allocation5 + $0x1b0] sm:$0xf] }
  0xb9   :  { %v5687_v5 = vadd.f32 %v5678_v53, %v1496_v59  ;;  %v1519_v6 = vmul.f32 %v5645_v35, %v784_v3  ;;  %4836 = vpow2.f32 %v2318_v0  ;;  %v3157_v60 = vperm.slane %v5692_v8, 2 }
  0xba   :  { %v5695_v9 = vadd.f32 %v5681_v55, %v1497_v1  ;;  %v5698_v10 = vadd.f32 %v5648_v38, %v1518_v2  ;;  %v3158_v0 = vperm.slane %v5701_v12, 2 }
  0xbb   :  { %v2126_v11 = vmin.f32 %v5687_v5, 0.0  ;;  %v5706_v14 = vadd.f32 %v5651_v41, %v1519_v6  ;;  %v4269_v6 = vor.u32 %v4792_v50, %v4268_v61  ;;  %vm1934_vm3 = vcmp.gt.f32.partialorder %v5687_v5, 0.0 }
  0xbc   :  { %v2127_v15 = vmin.f32 %v5695_v9, 0.0  ;;  %v2148_v16 = vmin.f32 %v5698_v10, 0.0  ;;  %vm1935_vm4 = vcmp.gt.f32.partialorder %v5695_v9, 0.0  ;;  %vm1956_vm5 = vcmp.gt.f32.partialorder %v5698_v10, 0.0 }
  0xbd   :  { %v2320_v19 = vmul.f32 1.442695, %v2126_v11  ;;  %v2149_v20 = vmin.f32 %v5706_v14, 0.0  ;;  %1097 = vmatpush.bf16.msrb.mxu0 %v4269_v6  ;;  %vm1957_vm6 = vcmp.gt.f32.partialorder %v5706_v14, 0.0 }
  0xbe   :  { %v2322_v23 = vmul.f32 1.442695, %v2127_v15  ;;  %v2364_v25 = vmul.f32 1.442695, %v2148_v16  ;;  %v813_v26 = vpop.f32.mrf.mxu2  ;;  %v4835_v43 = vpop.eup %4834 }
  0xbf   :  { %4838 = vpow2.f32 %v2320_v19  ;;  %v2366_v31 = vmul.f32 1.442695, %v2149_v20  ;;  %v1520_v32 = vmul.f32 %v5668_v48, %v813_v26  ;;  %v842_v33 = vpop.f32.mrf.mxu3  ;;  %v758_v36 = vpop.f32.mrf.mxu0  ;;  %v4506_v62 = vadd.f32 -1.0, %v4835_v43 }
  0xc0   :  { %4840 = vpow2.f32 %v2322_v23  ;;  %v1521_v39 = vmul.f32 %v5674_v51, %v842_v33  ;;  %v1542_v40 = vmul.f32 %v5640_v29, %v758_v36  ;;  %v787_v42 = vpop.f32.mrf.mxu1  ;;  %v4837_v54 = vpop.eup %4836  ;;  %v3159_v20 = vperm.slane %v5703_v13, 2 }
  0xc1   :  { %4842 = vpow2.f32 %v2364_v25  ;;  %v5721_v44 = vadd.f32 %v5678_v53, %v1520_v32  ;;  %v1543_v52 = vmul.f32 %v5645_v35, %v787_v42  ;;  %v4507_v2 = vadd.f32 -1.0, %v4837_v54  ;;  %v4780_v54 = vld [vmem:[#allocation5 + $0x1b4] sm:$0xf] }
  0xc2   :  { %4844 = vpow2.f32 %v2366_v31  ;;  %v5726_v56 = vadd.f32 %v5681_v55, %v1521_v39  ;;  %4443 = vmatmul.msk.bf16.gmra.mxu0 %vm731_vm0, %v5575_v21  ;;  %v5734_v59 = vadd.f32 %v5648_v38, %v1542_v40  ;;  %4447 = vmatmul.msk.bf16.gmra.mxu1 %vm731_vm0, %v5575_v21  ;;  %v2892_v32 = vsel %vm1932_vm1, %v5656_v45, %v4506_v62  ;;  %v4270_v62 = vld [vmem:[#allocation5 + $0x210] sm:$0xf0] }
  0xc3   :  { %4451 = vmatmul.msk.bf16.gmra.mxu2 %vm731_vm0, %v5575_v21  ;;  %v5743_v63 = vadd.f32 %v5651_v41, %v1543_v52  ;;  %v2150_v3 = vmin.f32 %v5721_v44, 0.0  ;;  %v3420_v39 = vperm.slane %v5690_v7, 3  ;;  %v2893_v40 = vsel %vm1933_vm2, %v5661_v46, %v4507_v2 }
  0xc4   :  { %4455 = vmatmul.msk.bf16.gmra.mxu3 %vm731_vm0, %v5575_v21  ;;  %v2172_v4 = vmin.f32 %v5734_v59, 0.0  ;;  %v2151_v15 = vmin.f32 %v5726_v56, 0.0  ;;  %v3132_v46 = vmul.f32 %v3108_v17, %v2892_v32  ;;  %vm1980_vm7 = vcmp.gt.f32.partialorder %v5734_v59, 0.0 }
  0xc5   :  { %v4839_v1 = vpop.eup %4838  ;;  %v2173_v16 = vmin.f32 %v5743_v63, 0.0  ;;  %v2368_v43 = vmul.f32 1.442695, %v2150_v3  ;;  %v3421_v3 = vperm.slane %v5692_v8, 3  ;;  %vm1981_vm8 = vcmp.gt.f32.partialorder %v5743_v63, 0.0 }
  0xc6   :  { %v4841_v11 = vpop.eup %4840  ;;  %v816_v19 = vpop.f32.mrf.mxu2  ;;  %v2412_v23 = vmul.f32 1.442695, %v2172_v4  ;;  %v4508_v42 = vadd.f32 -1.0, %v4839_v1  ;;  %v2370_v50 = vmul.f32 1.442695, %v2151_v15  ;;  %v3133_v1 = vmul.f32 %v3109_v18, %v2893_v40 }
  0xc7   :  { %v4843_v21 = vpop.eup %4842  ;;  %v1544_v25 = vmul.f32 %v5668_v48, %v816_v19  ;;  %v845_v26 = vpop.f32.mrf.mxu3  ;;  %v2414_v33 = vmul.f32 1.442695, %v2173_v16  ;;  %v4509_v61 = vadd.f32 -1.0, %v4841_v11  ;;  %vm1958_vm9 = vcmp.gt.f32.partialorder %v5721_v44, 0.0 }
  0xc8   :  { %v4845_v31 = vpop.eup %4844  ;;  %v760_v36 = vpop.f32.mrf.mxu0  ;;  %4846 = vpow2.f32 %v2412_v23  ;;  %v4530_v4 = vadd.f32 -1.0, %v4843_v21  ;;  %v1545_v16 = vmul.f32 %v5674_v51, %v845_v26  ;;  %v4273_v21 = vor.u32 %v4780_v54, %v4270_v62 }
  0xc9   :  { %v789_v52 = vpop.f32.mrf.mxu1  ;;  %4848 = vpow2.f32 %v2414_v33  ;;  %v5766_v45 = vadd.f32 %v5678_v53, %v1544_v25  ;;  %v4531_v6 = vadd.f32 -1.0, %v4845_v31  ;;  %v1566_v19 = vmul.f32 %v5640_v29, %v760_v36 }
  0xca   :  { %4850 = vpow2.f32 %v2368_v43  ;;  %v5777_v11 = vadd.f32 %v5681_v55, %v1545_v16  ;;  %v2894_v23 = vsel %vm1934_vm3, %v5687_v5, %v4508_v42  ;;  %v2895_v17 = vsel %vm1935_vm4, %v5695_v9, %v4509_v61  ;;  %1126 = vmatpush.bf16.msrb.mxu1 %v4273_v21 }
  0xcb   :  { %v2174_v2 = vmin.f32 %v5766_v45, 0.0  ;;  %v5780_v15 = vadd.f32 %v5648_v38, %v1566_v19  ;;  %4852 = vpow2.f32 %v2370_v50  ;;  %v2916_v26 = vsel %vm1956_vm5, %v5698_v10, %v4530_v4 }
  0xcc   :  { %v2917_v31 = vsel %vm1957_vm6, %v5706_v14, %v4531_v6  ;;  %v2175_v32 = vmin.f32 %v5777_v11, 0.0  ;;  %v1567_v33 = vmul.f32 %v5645_v35, %v789_v52  ;;  %v3134_v36 = vmul.f32 %v3110_v22, %v2894_v23 }
  0xcd   :  { %v2416_v18 = vmul.f32 1.442695, %v2174_v2  ;;  %v2196_v42 = vmin.f32 %v5780_v15, 0.0  ;;  %v5803_v52 = vmul.f32 %v3111_v24, %v2895_v17  ;;  %v5807_v54 = vmul.f32 %v3372_v27, %v2916_v26 }
  0xce   :  { %v4847_v25 = vpop.eup %4846  ;;  %v2418_v40 = vmul.f32 1.442695, %v2175_v32  ;;  %v818_v14 = vpop.f32.mrf.mxu2  ;;  %v5811_v61 = vmul.f32 %v3373_v37, %v2917_v31  ;;  %v5823_v37 = vadd.f32 %v5651_v41, %v1567_v33  ;;  %vm1959_vm10 = vcmp.gt.f32.partialorder %v5726_v56, 0.0  ;;  %v4180_v32 = vld [vmem:[#allocation5 + $0xf8] sm:$0xf] }
  0xcf   :  { %v4849_v5 = vpop.eup %4848  ;;  %v4554_v9 = vadd.f32 -1.0, %v4847_v25  ;;  %4854 = vpow2.f32 %v2416_v18  ;;  %v847_v43 = vpop.f32.mrf.mxu3  ;;  %vm1982_vm11 = vcmp.gt.f32.partialorder %v5766_v45, 0.0  ;;  %v2460_v19 = vmul.f32 1.442695, %v2196_v42 }
  0xd0   :  { %v4555_v10 = vadd.f32 -1.0, %v4849_v5  ;;  %v763_v50 = vpop.f32.mrf.mxu0  ;;  %v4851_v62 = vpop.eup %4850  ;;  %4856 = vpow2.f32 %v2418_v40  ;;  %v1569_v6 = vmul.f32 %v5674_v51, %v847_v43  ;;  %v3422_v2 = vperm.slane %v5701_v12, 3  ;;  %v4757_v43 = vld [vmem:[#allocation5 + $0xfc] sm:$0xf] }
  0xd1   :  { %v2940_v22 = vsel %vm1980_vm7, %v5734_v59, %v4554_v9  ;;  %v792_v4 = vpop.f32.mrf.mxu1  ;;  %v4853_v59 = vpop.eup %4852  ;;  %v1590_v21 = vmul.f32 %v5640_v29, %v763_v50  ;;  %v4532_v26 = vadd.f32 -1.0, %v4851_v62  ;;  %vm1983_vm12 = vcmp.gt.f32.partialorder %v5777_v11, 0.0  ;;  %v4769_v9 = vld [vmem:[#allocation5 + $0x154] sm:$0xf0] }
  0xd2   :  { %4444 = vmatmul.msk.bf16.gmra.mxu0 %vm731_vm0, %v5585_v34  ;;  %v3180_v24 = vmul.f32 %v3156_v58, %v2940_v22  ;;  %v2941_v27 = vsel %vm1981_vm8, %v5743_v63, %v4555_v10  ;;  %4448 = vmatmul.msk.bf16.gmra.mxu1 %vm731_vm0, %v5585_v34  ;;  %v1568_v63 = vmul.f32 %v5668_v48, %v818_v14  ;;  %v4533_v33 = vadd.f32 -1.0, %v4853_v59  ;;  %v4182_v22 = vld [vmem:[#allocation5 + $0x158] sm:$0xf0] }
  0xd3   :  { %4452 = vmatmul.msk.bf16.gmra.mxu2 %vm731_vm0, %v5585_v34  ;;  %v3181_v58 = vmul.f32 %v3157_v60, %v2941_v27  ;;  %v5847_v18 = vadd.f32 %v5681_v55, %v1569_v6  ;;  %v1591_v25 = vmul.f32 %v5645_v35, %v792_v4  ;;  %v5852_v31 = vadd.f32 %v5648_v38, %v1590_v21 }
  0xd4   :  { %4456 = vmatmul.msk.bf16.gmra.mxu3 %vm731_vm0, %v5585_v34  ;;  %v5837_v16 = vadd.f32 %v3180_v24, %v3132_v46  ;;  %v5844_v60 = vadd.f32 %v5678_v53, %v1568_v63  ;;  %v2197_v46 = vmin.f32 %v5823_v37, 0.0  ;;  %4858 = vpow2.f32 %v2460_v19 }
  0xd5   :  { %v4855_v23 = vpop.eup %4854  ;;  %v5841_v17 = vadd.f32 %v3181_v58, %v3133_v1  ;;  %v2199_v5 = vmin.f32 %v5847_v18, 0.0  ;;  %v2220_v42 = vmin.f32 %v5852_v31, 0.0  ;;  %v5862_v14 = vadd.f32 %v5651_v41, %v1591_v25 }
  0xd6   :  { %v4556_v34 = vadd.f32 -1.0, %v4855_v23  ;;  %v2198_v1 = vmin.f32 %v5844_v60, 0.0  ;;  %v4857_v10 = vpop.eup %4856  ;;  %v2918_v4 = vsel %vm1958_vm9, %v5721_v44, %v4532_v26  ;;  %v2462_v59 = vmul.f32 1.442695, %v2197_v46 }
  0xd7   :  { %v4557_v62 = vadd.f32 -1.0, %v4857_v10  ;;  %v2466_v27 = vmul.f32 1.442695, %v2199_v5  ;;  %v2221_v58 = vmin.f32 %v5862_v14, 0.0  ;;  %v4181_v19 = vor.u32 %v4769_v9, %v4180_v32  ;;  %v850_v25 = vpop.f32.mrf.mxu3 }
  0xd8   :  { %v2942_v40 = vsel %vm1982_vm11, %v5766_v45, %v4556_v34  ;;  %v2464_v24 = vmul.f32 1.442695, %v2198_v1  ;;  %v2508_v45 = vmul.f32 1.442695, %v2220_v42  ;;  %v2919_v21 = vsel %vm1959_vm10, %v5726_v56, %v4533_v33  ;;  %v765_v26 = vpop.f32.mrf.mxu0  ;;  %v4172_v33 = vld [vmem:[#allocation5 + $0xf0] sm:$0xf] }
  0xd9   :  { %v3182_v50 = vmul.f32 %v3158_v0, %v2942_v40  ;;  %v2943_v6 = vsel %vm1983_vm12, %v5777_v11, %v4557_v62  ;;  %v821_v0 = vpop.f32.mrf.mxu2  ;;  %v2510_v23 = vmul.f32 1.442695, %v2221_v58  ;;  %vm2004_vm13 = vcmp.gt.f32.partialorder %v5780_v15, 0.0  ;;  %1156 = vmatpush.bf16.msrb.mxu2 %v4181_v19  ;;  %v794_v32 = vpop.f32.mrf.mxu1  ;;  %v4768_v1 = vld [vmem:[#allocation5 + $0x14c] sm:$0xf0] }
  0xda   :  { %4860 = vpow2.f32 %v2464_v24  ;;  %v3183_v44 = vmul.f32 %v3159_v20, %v2943_v6  ;;  %v4185_v11 = vor.u32 %v4757_v43, %v4182_v22  ;;  %v4859_v34 = vpop.eup %4858  ;;  %v3398_v46 = vmul.f32 %v3374_v49, %v2918_v4 }
  0xdb   :  { %v5870_v63 = vadd.f32 %v3182_v50, %v3134_v36  ;;  %4862 = vpow2.f32 %v2466_v27  ;;  %v3423_v36 = vperm.slane %v5703_v13, 3  ;;  %v1592_v20 = vmul.f32 %v5668_v48, %v821_v0 }
  0xdc   :  { %4864 = vpow2.f32 %v2508_v45  ;;  %v5885_v56 = vadd.f32 %v3183_v44, %v5803_v52  ;;  %v3399_v5 = vmul.f32 %v3375_v57, %v2919_v21  ;;  %v3228_v9 = vperm.slane %v5690_v7, 4  ;;  %1185 = vmatpush.bf16.msrb.mxu3 %v4185_v11 }
  0xdd   :  { %4866 = vpow2.f32 %v2510_v23  ;;  %v1593_v10 = vmul.f32 %v5674_v51, %v850_v25  ;;  %vm2006_vm14 = vcmp.gt.f32.partialorder %v5844_v60, 0.0  ;;  %v3229_v49 = vperm.slane %v5692_v8, 4 }
  0xde   :  { %4868 = vpow2.f32 %v2462_v59  ;;  %v5895_v52 = vadd.f32 %v5678_v53, %v1592_v20  ;;  %v1614_v40 = vmul.f32 %v5640_v29, %v765_v26  ;;  %vm2007_vm15 = vcmp.gt.f32.partialorder %v5847_v18, 0.0 }
  0xdf   :  { %v5900_v57 = vadd.f32 %v5681_v55, %v1593_v10  ;;  %v1615_v43 = vmul.f32 %v5645_v35, %v794_v32  ;;  %v4173_v22 = vor.u32 %v4768_v1, %v4172_v33  ;;  %v4578_v62 = vadd.f32 -1.0, %v4859_v34  ;;  %v4756_v32 = vld [vmem:[#allocation5 + $0xf4] sm:$0xf] }
  0xe0   :  { %v4861_v42 = vpop.eup %4860  ;;  %vm2028_vm1 = vcmp.gt.f32.partialorder %v5852_v31, 0.0  ;;  %v2222_v27 = vmin.f32 %v5895_v52, 0.0  ;;  %vm2029_vm2 = vcmp.gt.f32.partialorder %v5862_v14, 0.0  ;;  %v5914_v58 = vadd.f32 %v5648_v38, %v1614_v40  ;;  %v4174_v33 = vld [vmem:[#allocation5 + $0x150] sm:$0xf0]  ;;  %v852_v40 = vpop.f32.mrf.mxu3 }
  0xe1   :  { %v4863_v50 = vpop.eup %4862  ;;  %v4580_v24 = vadd.f32 -1.0, %v4861_v42  ;;  %v2223_v45 = vmin.f32 %v5900_v57, 0.0  ;;  %1098 = vmatpush.bf16.msrb.mxu0 %v4173_v22  ;;  %v5922_v44 = vadd.f32 %v5651_v41, %v1615_v43  ;;  %v2964_v34 = vsel %vm2004_vm13, %v5780_v15, %v4578_v62  ;;  %v823_v1 = vpop.f32.mrf.mxu2 }
  0xe2   :  { %4445 = vmatmul.msk.bf16.gmra.mxu0 %vm731_vm0, %v5595_v47  ;;  %4449 = vmatmul.msk.bf16.gmra.mxu1 %vm731_vm0, %v5595_v47  ;;  %v4865_v4 = vpop.eup %4864  ;;  %v4581_v59 = vadd.f32 -1.0, %v4863_v50  ;;  %v2512_v21 = vmul.f32 1.442695, %v2222_v27  ;;  %v2244_v43 = vmin.f32 %v5914_v58, 0.0  ;;  %v4177_v50 = vor.u32 %v4756_v32, %v4174_v33  ;;  %v797_v62 = vpop.f32.mrf.mxu1 }
  0xe3   :  { %4453 = vmatmul.msk.bf16.gmra.mxu2 %vm731_vm0, %v5595_v47  ;;  %v4867_v6 = vpop.eup %4866  ;;  %v2966_v19 = vsel %vm2006_vm14, %v5844_v60, %v4580_v24  ;;  %v4602_v0 = vadd.f32 -1.0, %v4865_v4  ;;  %vm2005_vm3 = vcmp.gt.f32.partialorder %v5823_v37, 0.0  ;;  %v3444_v24 = vmul.f32 %v3420_v39, %v2964_v34 }
  0xe4   :  { %4457 = vmatmul.msk.bf16.gmra.mxu3 %vm731_vm0, %v5595_v47  ;;  %v4869_v23 = vpop.eup %4868  ;;  %v3446_v25 = vmul.f32 %v3422_v2, %v2966_v19  ;;  %v2967_v11 = vsel %vm2007_vm15, %v5847_v18, %v4581_v59  ;;  %v4603_v26 = vadd.f32 -1.0, %v4867_v6  ;;  %v2514_v47 = vmul.f32 1.442695, %v2223_v45  ;;  %1127 = vmatpush.bf16.msrb.mxu1 %v4177_v50 }
  0xe5   :  { %v3447_v60 = vmul.f32 %v3423_v36, %v2967_v11  ;;  %v2988_v20 = vsel %vm2028_vm1, %v5852_v31, %v4602_v0  ;;  %4870 = vpow2.f32 %v2512_v21  ;;  %v4579_v42 = vadd.f32 -1.0, %v4869_v23  ;;  %v768_v31 = vpop.f32.mrf.mxu0 }
  0xe6   :  { %v5935_v2 = vadd.f32 %v3446_v25, %v3398_v46  ;;  %v3252_v10 = vmul.f32 %v3228_v9, %v2988_v20  ;;  %v2989_v18 = vsel %vm2029_vm2, %v5862_v14, %v4603_v26  ;;  %4872 = vpow2.f32 %v2514_v47  ;;  %v4084_v26 = vld [vmem:[#allocation5 + $0x38] sm:$0xf] }
  0xe7   :  { %v5940_v15 = vadd.f32 %v3447_v60, %v3399_v5  ;;  %v3253_v36 = vmul.f32 %v3229_v49, %v2989_v18  ;;  %v2245_v46 = vmin.f32 %v5922_v44, 0.0  ;;  %v1616_v9 = vmul.f32 %v5668_v48, %v823_v1  ;;  %v4745_v20 = vld [vmem:[#allocation5 + $0x94] sm:$0xf0]  ;;  %v4086_v18 = vld [vmem:[#allocation5 + $0x98] sm:$0xf0] }
  0xe8   :  { %v5944_v22 = vadd.f32 %v3252_v10, %v5837_v16  ;;  %v2556_v5 = vmul.f32 1.442695, %v2244_v43  ;;  %v1617_v49 = vmul.f32 %v5674_v51, %v852_v40  ;;  %v3230_v16 = vperm.slane %v5701_v12, 4  ;;  %v4733_v10 = vld [vmem:[#allocation5 + $0x3c] sm:$0xf] }
  0xe9   :  { %v5950_v14 = vadd.f32 %v3253_v36, %v5841_v17  ;;  %v5957_v27 = vadd.f32 %v5678_v53, %v1616_v9  ;;  %v1638_v4 = vmul.f32 %v5640_v29, %v768_v31  ;;  %v2965_v45 = vsel %vm2005_vm3, %v5823_v37, %v4579_v42  ;;  %v826_v36 = vpop.f32.mrf.mxu2 }
  0xea   :  { %v2558_v6 = vmul.f32 1.442695, %v2245_v46  ;;  %v5962_v17 = vadd.f32 %v5681_v55, %v1617_v49  ;;  %v1639_v19 = vmul.f32 %v5645_v35, %v797_v62  ;;  %vm2030_vm4 = vcmp.gt.f32.partialorder %v5895_v52, 0.0 }
  0xeb   :  { %v4871_v59 = vpop.eup %4870  ;;  %v3231_v21 = vperm.slane %v5703_v13, 4  ;;  %v2246_v23 = vmin.f32 %v5957_v27, 0.0  ;;  %4874 = vpow2.f32 %v2556_v5  ;;  %v5970_v37 = vadd.f32 %v5648_v38, %v1638_v4 }
  0xec   :  { %v4873_v0 = vpop.eup %4872  ;;  %v4604_v39 = vadd.f32 -1.0, %v4871_v59  ;;  %v2247_v11 = vmin.f32 %v5962_v17, 0.0  ;;  %vm2031_vm5 = vcmp.gt.f32.partialorder %v5900_v57, 0.0  ;;  %v5975_v60 = vadd.f32 %v5651_v41, %v1639_v19 }
  0xed   :  { %v4605_v25 = vadd.f32 -1.0, %v4873_v0  ;;  %v2560_v34 = vmul.f32 1.442695, %v2246_v23  ;;  %4876 = vpow2.f32 %v2558_v6  ;;  %v3445_v40 = vmul.f32 %v3421_v3, %v2965_v45  ;;  %v770_v59 = vpop.f32.mrf.mxu0 }
  0xee   :  { %v2990_v47 = vsel %vm2030_vm4, %v5895_v52, %v4604_v39  ;;  %v2562_v1 = vmul.f32 1.442695, %v2247_v11  ;;  %v2268_v52 = vmin.f32 %v5970_v37, 0.0  ;;  %v2269_v31 = vmin.f32 %v5975_v60, 0.0 }
  0xef   :  { %v3254_v32 = vmul.f32 %v3230_v16, %v2990_v47  ;;  %v2991_v33 = vsel %vm2031_vm5, %v5900_v57, %v4605_v25  ;;  %4878 = vpow2.f32 %v2560_v34  ;;  %v4085_v46 = vor.u32 %v4745_v20, %v4084_v26  ;;  %v855_v57 = vpop.f32.mrf.mxu3  ;;  %v6010_v25 = vld [vmem:[#allocation2] sm:$0xff] }
  0xf0   :  { %v3255_v42 = vmul.f32 %v3231_v21, %v2991_v33  ;;  %4880 = vpow2.f32 %v2562_v1  ;;  %v5986_v50 = vadd.f32 %v3444_v24, %v5807_v54  ;;  %v2604_v3 = vmul.f32 1.442695, %v2268_v52 }
  0xf1   :  { %v5982_v43 = vadd.f32 %v3254_v32, %v5870_v63  ;;  %v4089_v62 = vor.u32 %v4733_v10, %v4086_v18  ;;  %v4875_v5 = vpop.eup %4874  ;;  %v3492_v49 = vperm.slane %v5690_v7, 5  ;;  %v3493_v16 = vperm.slane %v5692_v8, 5  ;;  %1157 = vmatpush.bf16.msrb.mxu2 %v4085_v46 }
  0xf2   :  { %v5989_v9 = vadd.f32 %v3255_v42, %v5885_v56  ;;  %v2606_v63 = vmul.f32 1.442695, %v2269_v31  ;;  %v1640_v4 = vmul.f32 %v5668_v48, %v826_v36  ;;  %v5995_v45 = vadd.f32 %v3445_v40, %v5811_v61  ;;  %v799_v31 = vpop.f32.mrf.mxu1 }
  0xf3   :  { %vm2052_vm6 = vcmp.gt.f32.partialorder %v5914_v58, 0.0  ;;  %4882 = vpow2.f32 %v2604_v3  ;;  %1186 = vmatpush.bf16.msrb.mxu3 %v4089_v62  ;;  %v1641_v54 = vmul.f32 %v5674_v51, %v855_v57  ;;  %v4877_v56 = vpop.eup %4876  ;;  %vm2053_vm7 = vcmp.gt.f32.partialorder %v5922_v44, 0.0 }
  0xf4   :  { %v3494_v24 = vperm.slane %v5701_v12, 5  ;;  %v3495_v6 = vperm.slane %v5703_v13, 5  ;;  %4884 = vpow2.f32 %v2606_v63  ;;  %v6003_v19 = vadd.f32 %v5678_v53, %v1640_v4  ;;  %4466 = vmatmul.msk.bf16.vlgmr.msrb.gmra.mxu2 %vm731_vm0, %v6010_v25 }
  0xf5   :  { %v4879_v0 = vpop.eup %4878  ;;  %v4626_v61 = vadd.f32 -1.0, %v4875_v5  ;;  %v3300_v39 = vperm.slane %v5690_v7, 6  ;;  %v6007_v21 = vadd.f32 %v5681_v55, %v1641_v54  ;;  %v1662_v23 = vmul.f32 %v5640_v29, %v770_v59  ;;  %v4076_v5 = vld [vmem:[#allocation5 + $0x30] sm:$0xf]  ;;  %v4732_v54 = vld [vmem:[#allocation5 + $0x34] sm:$0xf] }
  0xf6   :  { %v4881_v11 = vpop.eup %4880  ;;  %vm2054_vm8 = vcmp.gt.f32.partialorder %v5957_v27, 0.0  ;;  %v4628_v26 = vadd.f32 -1.0, %v4879_v0  ;;  %vm2055_vm9 = vcmp.gt.f32.partialorder %v5962_v17, 0.0  ;;  %v2270_v47 = vmin.f32 %v6003_v19, 0.0  ;;  %4470 = vmatmul.msk.bf16.vlgmr.msrb.gmra.mxu3 %vm731_vm0, %v6010_v25 }
  0xf7   :  { %v4629_v34 = vadd.f32 -1.0, %v4881_v11  ;;  %vm2076_vm10 = vcmp.gt.f32.partialorder %v5970_v37, 0.0  ;;  %v3301_v29 = vperm.slane %v5692_v8, 6  ;;  %v2271_v20 = vmin.f32 %v6007_v21, 0.0 }
  0xf8   :  { %v4627_v32 = vadd.f32 -1.0, %v4877_v56  ;;  %v3014_v33 = vsel %vm2054_vm8, %v5957_v27, %v4628_v26  ;;  %v2608_v1 = vmul.f32 1.442695, %v2270_v47  ;;  %v6024_v10 = vadd.f32 %v5648_v38, %v1662_v23  ;;  %v4078_v56 = vld [vmem:[#allocation5 + $0x90] sm:$0xf0] }
  0xf9   :  { %v4883_v18 = vpop.eup %4882  ;;  %v3012_v40 = vsel %vm2052_vm6, %v5914_v58, %v4626_v61  ;;  %v3518_v42 = vmul.f32 %v3494_v24, %v3014_v33  ;;  %v3015_v52 = vsel %vm2055_vm9, %v5962_v17, %v4629_v34  ;;  %v2610_v36 = vmul.f32 1.442695, %v2271_v20  ;;  %v4744_v58 = vld [vmem:[#allocation5 + $0x8c] sm:$0xf0]  ;;  %v6073_v33 = vld [vmem:[#allocation13] sm:$0xff] }
  0xfa   :  { %v4885_v46 = vpop.eup %4884  ;;  %v3519_v57 = vmul.f32 %v3495_v6, %v3015_v52  ;;  %v4650_v3 = vadd.f32 -1.0, %v4883_v18  ;;  %vm2077_vm11 = vcmp.gt.f32.partialorder %v5975_v60, 0.0  ;;  %4886 = vpow2.f32 %v2608_v1  ;;  %v6064_v34 = vld [vmem:[#allocation11] sm:$0xff] }
  0xfb   :  { %v6032_v27 = vadd.f32 %v3518_v42, %v5935_v2  ;;  %v4651_v38 = vadd.f32 -1.0, %v4885_v46  ;;  %4888 = vpow2.f32 %v2610_v36  ;;  %v2292_v62 = vmin.f32 %v6024_v10, 0.0  ;;  %v828_v2 = vpop.f32.mrf.mxu2  ;;  %v869_v36 = vpop.f32.mrf.mxu0 }
  0xfc   :  { %v3516_v63 = vmul.f32 %v3492_v49, %v3012_v40  ;;  %v6036_v17 = vadd.f32 %v3519_v57, %v5940_v15  ;;  %v3036_v4 = vsel %vm2076_vm10, %v5970_v37, %v4650_v3  ;;  %v1663_v59 = vmul.f32 %v5645_v35, %v799_v31  ;;  %v6092_v3 = vld [vmem:[#allocation2 + $0x8] sm:$0xff] }
  0xfd   :  { %v3013_v24 = vsel %vm2053_vm7, %v5922_v44, %v4627_v32  ;;  %v3324_v6 = vmul.f32 %v3300_v39, %v3036_v4  ;;  %v3037_v49 = vsel %vm2077_vm11, %v5975_v60, %v4651_v38  ;;  %v2652_v15 = vmul.f32 1.442695, %v2292_v62  ;;  %v857_v39 = vpop.f32.mrf.mxu3 }
  0xfe   :  { %v3325_v0 = vmul.f32 %v3301_v29, %v3037_v49  ;;  %v3302_v61 = vperm.slane %v5701_v12, 6  ;;  %v6050_v37 = vadd.f32 %v5651_v41, %v1663_v59  ;;  %v4077_v35 = vor.u32 %v4744_v58, %v4076_v5  ;;  %v898_v58 = vpop.f32.mrf.mxu1 }
  0xff   :  { %v6053_v23 = vadd.f32 %v3324_v6, %v5944_v22  ;;  %4890 = vpow2.f32 %v2652_v15  ;;  %v4081_v11 = vor.u32 %v4732_v54, %v4078_v56  ;;  %v1664_v44 = vmul.f32 %v5668_v48, %v828_v2 }
 0x100   :  { %v4887_v26 = vpop.eup %4886  ;;  %v6058_v60 = vmul.f32 %v3493_v16, %v3013_v24  ;;  %v6061_v47 = vadd.f32 %v3325_v0, %v5950_v14  ;;  %v3303_v41 = vperm.slane %v5703_v13, 6  ;;  %v2293_v22 = vmin.f32 %v6050_v37, 0.0  ;;  %1099 = vmatpush.bf16.msrb.mxu0 %v4077_v35 }
 0x101   :  { %v4889_v29 = vpop.eup %4888  ;;  %v3540_v20 = vadd.f32 %v3516_v63, %v5986_v50  ;;  %v4652_v48 = vadd.f32 -1.0, %v4887_v26  ;;  %v3564_v32 = vperm.slane %v5690_v7, 7  ;;  %1128 = vmatpush.bf16.msrb.mxu1 %v4081_v11  ;;  %v6070_v16 = vadd.f32 %v5678_v53, %v1664_v44  ;;  %v4807_v26 = vld [vmem:[#allocation5 + $0x28c] sm:$0xf] }
 0x102   :  { %vm2078_vm12 = vcmp.gt.f32.partialorder %v6003_v19, 0.0  ;;  %v4653_v14 = vadd.f32 -1.0, %v4889_v29  ;;  %v2654_v1 = vmul.f32 1.442695, %v2293_v22  ;;  %v1665_v18 = vmul.f32 %v5674_v51, %v857_v39  ;;  %v4819_v39 = vld [vmem:[#allocation5 + $0x2e4] sm:$0xf0] }
 0x103   :  { %v3038_v40 = vsel %vm2078_vm12, %v6003_v19, %v4652_v48  ;;  %vm2079_vm13 = vcmp.gt.f32.partialorder %v6007_v21, 0.0  ;;  %v3666_v50 = vperm.slane %v6064_v34, 0  ;;  %v2294_v7 = vmin.f32 %v6070_v16, 0.0  ;;  %4458 = vmatmul.msk.bf16.vlgmr.msrb.gmra.mxu0 %vm731_vm0, %v6010_v25  ;;  %v927_v24 = vpop.f32.mrf.mxu2 }
 0x104   :  { %v3326_v53 = vmul.f32 %v3302_v61, %v3038_v40  ;;  %v3039_v42 = vsel %vm2079_vm13, %v6007_v21, %v4653_v14  ;;  %4892 = vpow2.f32 %v2654_v1  ;;  %v6084_v52 = vadd.f32 %v5681_v55, %v1665_v18  ;;  %4462 = vmatmul.msk.bf16.vlgmr.msrb.gmra.mxu1 %vm731_vm0, %v6010_v25  ;;  %4467 = vmatmul.msk.bf16.gmra.mxu2 %vm731_vm0, %v6092_v3  ;;  %v4388_v61 = vld [vmem:[#allocation5 + $0x288] sm:$0xf] }
 0x105   :  { %v4891_v51 = vpop.eup %4890  ;;  %v3327_v19 = vmul.f32 %v3303_v41, %v3039_v42  ;;  %v3744_v31 = vperm.slane %v6073_v33, 0  ;;  %v2656_v46 = vmul.f32 1.442695, %v2294_v7  ;;  %v6090_v57 = vperm.slane %v5637_v28, 4  ;;  %v4390_v41 = vld [vmem:[#allocation5 + $0x2e8] sm:$0xf0]  ;;  %v871_v42 = vpop.f32.mrf.mxu0 }
 0x106   :  { %v6097_v55 = vadd.f32 %v3326_v53, %v5982_v43  ;;  %vm2100_vm14 = vcmp.gt.f32.partialorder %v6024_v10, 0.0  ;;  %v4674_v21 = vadd.f32 -1.0, %v4891_v51  ;;  %v2295_v25 = vmin.f32 %v6084_v52, 0.0  ;;  %4471 = vmatmul.msk.bf16.gmra.mxu3 %vm731_vm0, %v6092_v3 }
 0x107   :  { %v6104_v38 = vadd.f32 %v3327_v19, %v5989_v9  ;;  %4894 = vpow2.f32 %v2656_v46  ;;  %v1498_v62 = vmul.f32 %v6090_v57, %v869_v36  ;;  %v6108_v5 = vperm.slane %v5642_v30, 4  ;;  %v956_v19 = vpop.f32.mrf.mxu3 }
 0x108   :  { %v3060_v43 = vsel %vm2100_vm14, %v6024_v10, %v4674_v21  ;;  %v3565_v63 = vperm.slane %v5692_v8, 7  ;;  %v2658_v4 = vmul.f32 1.442695, %v2295_v25  ;;  %v6113_v59 = vperm.slane %v5637_v28, 5 }
 0x109   :  { %v3588_v54 = vmul.f32 %v3564_v32, %v3060_v43  ;;  %v3667_v56 = vperm.slane %v6064_v34, 1  ;;  %v6117_v9 = vadd.f32 %v6108_v5, %v1498_v62  ;;  %v6120_v2 = vperm.slane %v5642_v30, 5  ;;  %v5268_v62 = vld [vmem:[#allocation7] sm:$0xff] }
 0x10a   :  { %v4893_v6 = vpop.eup %4892  ;;  %vm2101_vm15 = vcmp.gt.f32.partialorder %v6050_v37, 0.0  ;;  %4896 = vpow2.f32 %v2658_v4  ;;  %v1499_v8 = vmul.f32 %v6113_v59, %v898_v58  ;;  %v6125_v10 = vperm.slane %v5637_v28, 6 }
 0x10b   :  { %v3612_v49 = vadd.f32 %v3588_v54, %v3540_v20  ;;  %v4675_v15 = vadd.f32 -1.0, %v4893_v6  ;;  %v3566_v0 = vperm.slane %v5701_v12, 7  ;;  %v6129_v35 = vperm.slane %v5642_v30, 6  ;;  %v5269_v6 = vld [vmem:[#allocation8] sm:$0xff] }
 0x10c   :  { %v3541_v11 = vadd.f32 %v6058_v60, %v5995_v45  ;;  %v6134_v44 = vadd.f32 %v6120_v2, %v1499_v8  ;;  %v1500_v28 = vmul.f32 %v6125_v10, %v927_v24  ;;  %v2128_v30 = vmin.f32 %v6117_v9, 0.0 }
 0x10d   :  { %v4895_v22 = vpop.eup %4894  ;;  %v3636_v29 = vadd.f32 %v3612_v49, %v6053_v23  ;;  %v3061_v12 = vsel %vm2101_vm15, %v6050_v37, %v4675_v15  ;;  %v4389_v20 = vor.u32 %v4819_v39, %v4388_v61  ;;  %v3745_v45 = vperm.slane %v6073_v33, 1  ;;  %v900_v39 = vpop.f32.mrf.mxu1 }
 0x10e   :  { %v3589_v48 = vmul.f32 %v3565_v63, %v3061_v12  ;;  %v4676_v60 = vadd.f32 -1.0, %v4895_v22  ;;  %v2129_v32 = vmin.f32 %v6134_v44, 0.0  ;;  %vm2102_vm1 = vcmp.gt.f32.partialorder %v6070_v16, 0.0  ;;  %v6196_v12 = vld [vmem:[#allocation10 + $0x28] sm:$0xff] }
 0x10f   :  { %v3714_v14 = vmul.f32 %v3666_v50, %v3636_v29  ;;  %1270 = vmatpush.bf16.msra.mxu2 %v4389_v20  ;;  %v4393_v1 = vor.u32 %v4807_v26, %v4390_v41  ;;  %v6146_v23 = vadd.f32 %v6129_v35, %v1500_v28  ;;  %v3668_v7 = vperm.slane %v6064_v34, 2  ;;  %v6190_v26 = vld [vmem:[#allocation10 + $0x20] sm:$0xff] }
 0x110   :  { %v4897_v18 = vpop.eup %4896  ;;  %v3613_v40 = vadd.f32 %v3589_v48, %v3541_v11  ;;  %v3062_v37 = vsel %vm2102_vm1, %v6070_v16, %v4676_v60  ;;  %v3567_v53 = vperm.slane %v5703_v13, 7  ;;  %vm2103_vm2 = vcmp.gt.f32.partialorder %v6084_v52, 0.0 }
 0x111   :  { %v3590_v36 = vmul.f32 %v3566_v0, %v3062_v37  ;;  %v4677_v50 = vadd.f32 -1.0, %v4897_v18  ;;  %v2324_v51 = vmul.f32 1.442695, %v2128_v30  ;;  %1299 = vmatpush.bf16.msra.mxu3 %v4393_v1  ;;  %v2326_v21 = vmul.f32 1.442695, %v2129_v32 }
 0x112   :  { %v3637_v46 = vadd.f32 %v3613_v40, %v6061_v47  ;;  %v2130_v25 = vmin.f32 %v6146_v23, 0.0  ;;  %v6154_v58 = vperm.slane %v5268_v62, 7  ;;  %v6158_v16 = vadd.f32 %v3744_v31, %v3714_v14  ;;  %v4380_v32 = vld [vmem:[#allocation5 + $0x280] sm:$0xf]  ;;  %v4806_v18 = vld [vmem:[#allocation5 + $0x284] sm:$0xf] }
 0x113   :  { %v3614_v13 = vadd.f32 %v3590_v36, %v6032_v27  ;;  %v3063_v43 = vsel %vm2103_vm2, %v6084_v52, %v4677_v50  ;;  %v1522_v63 = vmul.f32 %v6090_v57, %v871_v42  ;;  %4459 = vmatmul.msk.bf16.gmra.mxu0 %vm731_vm0, %v6092_v3  ;;  %4898 = vpow2.f32 %v2324_v51  ;;  %v6171_v52 = vld [vmem:[#allocation2 + $0x10] sm:$0xff]  ;;  %v4818_v1 = vld [vmem:[#allocation5 + $0x2dc] sm:$0xf0]  ;;  %v929_v50 = vpop.f32.mrf.mxu2  ;;  %v6213_v62 = vld [vmem:[#allocation10 + $0x38] sm:$0xff] }
 0x114   :  { %v3715_v47 = vmul.f32 %v3667_v56, %v3637_v46  ;;  %v3591_v4 = vmul.f32 %v3567_v53, %v3063_v43  ;;  %v1501_v54 = vmul.f32 %v6154_v58, %v956_v19  ;;  %4463 = vmatmul.msk.bf16.gmra.mxu1 %vm731_vm0, %v6092_v3  ;;  %v2328_v31 = vmul.f32 1.442695, %v2130_v25  ;;  %4468 = vmatmul.msk.bf16.gmra.mxu2 %vm731_vm0, %v6171_v52  ;;  %v4382_v53 = vld [vmem:[#allocation5 + $0x2e0] sm:$0xf0]  ;;  %v874_v25 = vpop.f32.mrf.mxu0 }
 0x115   :  { %v3638_v24 = vadd.f32 %v3614_v13, %v6097_v55  ;;  %v6169_v27 = vperm.slane %v5269_v6, 7  ;;  %v3746_v56 = vperm.slane %v6073_v33, 2  ;;  %4900 = vpow2.f32 %v2326_v21  ;;  %v6211_v46 = vld [vmem:[#allocation10 + $0x30] sm:$0xff]  ;;  %v958_v21 = vpop.f32.mrf.mxu3 }
 0x116   :  { %v6175_v8 = vadd.f32 %v3745_v45, %v3715_v47  ;;  %v3615_v49 = vadd.f32 %v3591_v4, %v6036_v17  ;;  %4472 = vmatmul.msk.bf16.gmra.mxu3 %vm731_vm0, %v6171_v52  ;;  %v3840_v3 = vmin.f32 %v6158_v16, 0.0  ;;  %v6186_v0 = vadd.f32 %v6108_v5, %v1522_v63 }
 0x117   :  { %v3716_v55 = vmul.f32 %v3668_v7, %v3638_v24  ;;  %v6183_v15 = vadd.f32 %v6169_v27, %v1501_v54  ;;  %v3669_v11 = vperm.slane %v6064_v34, 3  ;;  %4902 = vpow2.f32 %v2328_v31  ;;  %v903_v24 = vpop.f32.mrf.mxu1 }
 0x118   :  { %v3639_v61 = vadd.f32 %v3615_v49, %v6104_v38  ;;  %v3841_v17 = vmin.f32 %v6175_v8, 0.0  ;;  %v3864_v22 = vmul.f32 1.442695, %v3840_v3  ;;  %v2152_v30 = vmin.f32 %v6186_v0, 0.0 }
 0x119   :  { %v2131_v41 = vmin.f32 %v6183_v15, 0.0  ;;  %v4899_v28 = vpop.eup %4898  ;;  %v6194_v29 = vadd.f32 %v3746_v56, %v3716_v55  ;;  %v1523_v38 = vmul.f32 %v6113_v59, %v900_v39  ;;  %v3747_v48 = vperm.slane %v6073_v33, 3 }
 0x11a   :  { %v3717_v34 = vmul.f32 %v3669_v11, %v3639_v61  ;;  %v3112_v45 = vperm.slane %v6190_v26, 0  ;;  %v2372_v14 = vmul.f32 1.442695, %v2152_v30  ;;  %v3866_v40 = vmul.f32 1.442695, %v3841_v17 }
 0x11b   :  { %v4901_v20 = vpop.eup %4900  ;;  %v2330_v60 = vmul.f32 1.442695, %v2131_v41  ;;  %v4510_v37 = vadd.f32 -1.0, %v4899_v28  ;;  %v3113_v7 = vperm.slane %v6196_v12, 0  ;;  %4904 = vpow2.f32 %v3864_v22  ;;  %v6239_v41 = vld [vmem:[#allocation2 + $0x18] sm:$0xff] }
 0x11c   :  { %v3842_v36 = vmin.f32 %v6194_v29, 0.0  ;;  %vm1936_vm3 = vcmp.gt.f32.partialorder %v6117_v9, 0.0  ;;  %v6206_v33 = vadd.f32 %v6120_v2, %v1523_v38  ;;  %v6208_v51 = vadd.f32 %v3747_v48, %v3717_v34  ;;  %v4795_v48 = vld [vmem:[#allocation5 + $0x224] sm:$0xf0] }
 0x11d   :  { %v4903_v42 = vpop.eup %4902  ;;  %vm1937_vm4 = vcmp.gt.f32.partialorder %v6134_v44, 0.0  ;;  %v4511_v19 = vadd.f32 -1.0, %v4901_v20  ;;  %4906 = vpow2.f32 %v2330_v60  ;;  %v4381_v43 = vor.u32 %v4818_v1, %v4380_v32  ;;  %v4783_v1 = vld [vmem:[#allocation5 + $0x1cc] sm:$0xf] }
 0x11e   :  { %4908 = vpow2.f32 %v2372_v14  ;;  %v2153_v13 = vmin.f32 %v6206_v33, 0.0  ;;  %v4385_v63 = vor.u32 %v4806_v18, %v4382_v53  ;;  %v2896_v47 = vsel %vm1936_vm3, %v6117_v9, %v4510_v37  ;;  %v4294_v53 = vld [vmem:[#allocation5 + $0x228] sm:$0xf0] }
 0x11f   :  { %4910 = vpow2.f32 %v3866_v40  ;;  %v4512_v4 = vadd.f32 -1.0, %v4903_v42  ;;  %v1524_v54 = vmul.f32 %v6125_v10, %v929_v50  ;;  %v3868_v31 = vmul.f32 1.442695, %v3842_v36  ;;  %1212 = vmatpush.bf16.msra.mxu0 %v4381_v43 }
 0x120   :  { %v3114_v6 = vperm.slane %v6211_v46, 0  ;;  %1241 = vmatpush.bf16.msra.mxu1 %v4385_v63  ;;  %v1525_v56 = vmul.f32 %v6154_v58, %v958_v21  ;;  %v1546_v49 = vmul.f32 %v6090_v57, %v874_v25  ;;  %v2897_v3 = vsel %vm1937_vm4, %v6134_v44, %v4511_v19  ;;  %v932_v21 = vpop.f32.mrf.mxu2  ;;  %v961_v25 = vpop.f32.mrf.mxu3 }
 0x121   :  { %vm1938_vm5 = vcmp.gt.f32.partialorder %v6146_v23, 0.0  ;;  %v3115_v9 = vperm.slane %v6213_v62, 0  ;;  %v2374_v55 = vmul.f32 1.442695, %v2153_v13  ;;  %v4905_v61 = vpop.eup %4904  ;;  %v3843_v11 = vmin.f32 %v6208_v51, 0.0 }
 0x122   :  { %v6233_v39 = vmul.f32 %v3112_v45, %v2896_v47  ;;  %v6236_v17 = vadd.f32 %v6108_v5, %v1546_v49  ;;  %v1547_v44 = vmul.f32 %v6113_v59, %v903_v24  ;;  %v2898_v22 = vsel %vm1938_vm5, %v6146_v23, %v4512_v4  ;;  %v4292_v23 = vld [vmem:[#allocation5 + $0x1c8] sm:$0xf]  ;;  %v876_v4 = vpop.f32.mrf.mxu0 }
 0x123   :  { %4460 = vmatmul.msk.bf16.gmra.mxu0 %vm731_vm0, %v6171_v52  ;;  %v4907_v28 = vpop.eup %4906  ;;  %vm1939_vm6 = vcmp.gt.f32.partialorder %v6183_v15, 0.0  ;;  %vm1960_vm7 = vcmp.gt.f32.partialorder %v6186_v0, 0.0  ;;  %4912 = vpow2.f32 %v3868_v31  ;;  %v6251_v38 = vmul.f32 %v3113_v7, %v2897_v3 }
 0x124   :  { %4464 = vmatmul.msk.bf16.gmra.mxu1 %vm731_vm0, %v6171_v52  ;;  %4469 = vmatmul.msk.bf16.gmra.mxu2 %vm731_vm0, %v6239_v41  ;;  %v6247_v52 = vadd.f32 %v6129_v35, %v1524_v54  ;;  %v4909_v30 = vpop.eup %4908  ;;  %v3376_v20 = vperm.slane %v6190_v26, 1  ;;  %v6255_v34 = vadd.f32 %v6169_v27, %v1525_v56  ;;  %v6257_v60 = vadd.f32 -1.0, %v4905_v61  ;;  %v4284_v61 = vld [vmem:[#allocation5 + $0x1c0] sm:$0xf] }
 0x125   :  { %v4911_v45 = vpop.eup %4910  ;;  %4914 = vpow2.f32 %v2374_v55  ;;  %v3377_v32 = vperm.slane %v6196_v12, 1  ;;  %v2176_v14 = vmin.f32 %v6236_v17, 0.0  ;;  %v3870_v18 = vmul.f32 1.442695, %v3843_v11  ;;  %v905_v55 = vpop.f32.mrf.mxu1  ;;  %v4794_v11 = vld [vmem:[#allocation5 + $0x21c] sm:$0xf0] }
 0x126   :  { %4473 = vmatmul.msk.bf16.gmra.mxu3 %vm731_vm0, %v6239_v41  ;;  %v6261_v40 = vmul.f32 %v3114_v6, %v2898_v22  ;;  %v3378_v37 = vperm.slane %v6211_v46, 1  ;;  %v6265_v7 = vadd.f32 %v6120_v2, %v1547_v44  ;;  %v4513_v42 = vadd.f32 -1.0, %v4907_v28 }
 0x127   :  { %v4534_v36 = vadd.f32 -1.0, %v4909_v30  ;;  %v2154_v50 = vmin.f32 %v6247_v52, 0.0  ;;  %v2420_v19 = vmul.f32 1.442695, %v2176_v14  ;;  %v6268_v13 = vadd.f32 -1.0, %v4911_v45 }
 0x128   :  { %v2155_v43 = vmin.f32 %v6255_v34, 0.0  ;;  %v3379_v63 = vperm.slane %v6213_v62, 1  ;;  %v2177_v47 = vmin.f32 %v6265_v7, 0.0  ;;  %vm1961_vm8 = vcmp.gt.f32.partialorder %v6206_v33, 0.0 }
 0x129   :  { %4916 = vpow2.f32 %v2420_v19  ;;  %v3160_v54 = vperm.slane %v6190_v26, 2  ;;  %v4293_v24 = vor.u32 %v4795_v48, %v4292_v23  ;;  %v4297_v31 = vor.u32 %v4783_v1, %v4294_v53  ;;  %v6275_v6 = vpop.eup %4912 }
 0x12a   :  { %4918 = vpow2.f32 %v3870_v18  ;;  %v2422_v56 = vmul.f32 1.442695, %v2177_v47  ;;  %v1548_v49 = vmul.f32 %v6125_v10, %v932_v21  ;;  %v1549_v3 = vmul.f32 %v6154_v58, %v961_v25 }
 0x12b   :  { %v4915_v44 = vpop.eup %4914  ;;  %v2899_v28 = vsel %vm1939_vm6, %v6183_v15, %v4513_v42  ;;  %v2920_v22 = vsel %vm1960_vm7, %v6186_v0, %v4534_v36  ;;  %v2376_v30 = vmul.f32 1.442695, %v2154_v50  ;;  %1271 = vmatpush.bf16.msra.mxu2 %v4293_v24  ;;  %1300 = vmatpush.bf16.msra.mxu3 %v4297_v31  ;;  %v1570_v23 = vmul.f32 %v6090_v57, %v876_v4  ;;  %v4286_v24 = vld [vmem:[#allocation5 + $0x220] sm:$0xf0] }
 0x12c   :  { %v2378_v48 = vmul.f32 1.442695, %v2155_v43  ;;  %4920 = vpow2.f32 %v2422_v56  ;;  %v6287_v45 = vadd.f32 %v6129_v35, %v1548_v49  ;;  %v6290_v14 = vadd.f32 %v6169_v27, %v1549_v3  ;;  %v4782_v43 = vld [vmem:[#allocation5 + $0x1c4] sm:$0xf]  ;;  %v934_v3 = vpop.f32.mrf.mxu2 }
 0x12d   :  { %vm1984_vm9 = vcmp.gt.f32.partialorder %v6236_v17, 0.0  ;;  %v6294_v15 = vadd.f32 %v6108_v5, %v1570_v23  ;;  %v1571_v0 = vmul.f32 %v6113_v59, %v905_v55  ;;  %v4285_v1 = vor.u32 %v4794_v11, %v4284_v61 }
 0x12e   :  { %v6299_v18 = vmul.f32 %v3115_v9, %v2899_v28  ;;  %v6301_v53 = vmul.f32 %v3376_v20, %v2920_v22  ;;  %v4535_v42 = vadd.f32 -1.0, %v4915_v44  ;;  %v2178_v36 = vmin.f32 %v6287_v45, 0.0  ;;  %v963_v28 = vpop.f32.mrf.mxu3 }
 0x12f   :  { %v4917_v50 = vpop.eup %4916  ;;  %4922 = vpow2.f32 %v2376_v30  ;;  %v3161_v19 = vperm.slane %v6196_v12, 2  ;;  %v2179_v21 = vmin.f32 %v6290_v14, 0.0  ;;  %v2200_v25 = vmin.f32 %v6294_v15, 0.0  ;;  %1213 = vmatpush.bf16.msra.mxu0 %v4285_v1  ;;  %v908_v1 = vpop.f32.mrf.mxu1 }
 0x130   :  { %v6307_v47 = vpop.eup %4918  ;;  %4924 = vpow2.f32 %v2378_v48  ;;  %v4558_v9 = vadd.f32 -1.0, %v4917_v50  ;;  %v2424_v4 = vmul.f32 1.442695, %v2178_v36  ;;  %v6310_v20 = vadd.f32 %v6120_v2, %v1571_v0  ;;  %v879_v48 = vpop.f32.mrf.mxu0 }
 0x131   :  { %vm1985_vm10 = vcmp.gt.f32.partialorder %v6265_v7, 0.0  ;;  %v3162_v31 = vperm.slane %v6211_v46, 2  ;;  %v2426_v56 = vmul.f32 1.442695, %v2179_v21  ;;  %v2468_v49 = vmul.f32 1.442695, %v2200_v25 }
 0x132   :  { %v4921_v55 = vpop.eup %4920  ;;  %v2921_v61 = vsel %vm1961_vm8, %v6206_v33, %v4535_v42  ;;  %v2944_v11 = vsel %vm1984_vm9, %v6236_v17, %v4558_v9  ;;  %4926 = vpow2.f32 %v2424_v4  ;;  %v3163_v44 = vperm.slane %v6213_v62, 2 }
 0x133   :  { %4461 = vmatmul.msk.bf16.gmra.mxu0 %vm731_vm0, %v6239_v41  ;;  %v3184_v22 = vmul.f32 %v3160_v54, %v2944_v11  ;;  %v4559_v30 = vadd.f32 -1.0, %v4921_v55  ;;  %4928 = vpow2.f32 %v2426_v56  ;;  %v2201_v23 = vmin.f32 %v6310_v20, 0.0 }
 0x134   :  { %4465 = vmatmul.msk.bf16.gmra.mxu1 %vm731_vm0, %v6239_v41  ;;  %vm1962_vm11 = vcmp.gt.f32.partialorder %v6247_v52, 0.0  ;;  %4930 = vpow2.f32 %v2468_v49  ;;  %v3424_v41 = vperm.slane %v6190_v26, 3  ;;  %v4289_v33 = vor.u32 %v4782_v43, %v4286_v24 }
 0x135   :  { %v1572_v0 = vmul.f32 %v6125_v10, %v934_v3  ;;  %v4923_v17 = vpop.eup %4922  ;;  %vm1963_vm12 = vcmp.gt.f32.partialorder %v6255_v34, 0.0  ;;  %v6331_v42 = vadd.f32 %v3184_v22, %v6233_v39  ;;  %v2945_v54 = vsel %vm1985_vm10, %v6265_v7, %v4559_v30 }
 0x136   :  { %v2470_v36 = vmul.f32 1.442695, %v2201_v23  ;;  %v1573_v50 = vmul.f32 %v6154_v58, %v963_v28  ;;  %v4925_v21 = vpop.eup %4924  ;;  %v6339_v25 = vmul.f32 %v3377_v32, %v2921_v61  ;;  %v3185_v43 = vmul.f32 %v3161_v19, %v2945_v54  ;;  %1242 = vmatpush.bf16.msra.mxu1 %v4289_v33 }
 0x137   :  { %v6342_v9 = vadd.f32 %v6129_v35, %v1572_v0  ;;  %v1594_v39 = vmul.f32 %v6090_v57, %v879_v48  ;;  %v3425_v4 = vperm.slane %v6196_v12, 3  ;;  %v1595_v24 = vmul.f32 %v6113_v59, %v908_v1  ;;  %v4196_v1 = vld [vmem:[#allocation5 + $0x108] sm:$0xf] }
 0x138   :  { %4932 = vpow2.f32 %v2470_v36  ;;  %v6347_v7 = vadd.f32 %v6169_v27, %v1573_v50  ;;  %v4927_v56 = vpop.eup %4926  ;;  %v4536_v49 = vadd.f32 -1.0, %v4923_v17  ;;  %v6351_v32 = vadd.f32 %v3185_v43, %v6251_v38  ;;  %v4771_v43 = vld [vmem:[#allocation5 + $0x164] sm:$0xf0] }
 0x139   :  { %v2202_v19 = vmin.f32 %v6342_v9, 0.0  ;;  %v6355_v3 = vadd.f32 %v6108_v5, %v1594_v39  ;;  %v4929_v55 = vpop.eup %4928  ;;  %vm1986_vm13 = vcmp.gt.f32.partialorder %v6287_v45, 0.0  ;;  %v4560_v61 = vadd.f32 -1.0, %v4927_v56  ;;  %v4759_v56 = vld [vmem:[#allocation5 + $0x10c] sm:$0xf] }
 0x13a   :  { %v2203_v11 = vmin.f32 %v6347_v7, 0.0  ;;  %v6360_v28 = vadd.f32 %v6120_v2, %v1595_v24  ;;  %v4931_v22 = vpop.eup %4930  ;;  %v4537_v30 = vadd.f32 -1.0, %v4925_v21  ;;  %v4561_v23 = vadd.f32 -1.0, %v4929_v55  ;;  %v937_v55 = vpop.f32.mrf.mxu2 }
 0x13b   :  { %v2472_v48 = vmul.f32 1.442695, %v2202_v19  ;;  %v2224_v38 = vmin.f32 %v6355_v3, 0.0  ;;  %v2946_v33 = vsel %vm1986_vm13, %v6287_v45, %v4560_v61  ;;  %vm1987_vm14 = vcmp.gt.f32.partialorder %v6290_v14, 0.0  ;;  %v4198_v19 = vld [vmem:[#allocation5 + $0x168] sm:$0xf0] }
 0x13c   :  { %vm2008_vm15 = vcmp.gt.f32.partialorder %v6294_v15, 0.0  ;;  %v4582_v0 = vadd.f32 -1.0, %v4931_v22  ;;  %v3186_v17 = vmul.f32 %v3162_v31, %v2946_v33  ;;  %v2947_v54 = vsel %vm1987_vm14, %v6290_v14, %v4561_v23  ;;  %v881_v23 = vpop.f32.mrf.mxu0 }
 0x13d   :  { %v2474_v36 = vmul.f32 1.442695, %v2203_v11  ;;  %v2516_v50 = vmul.f32 1.442695, %v2224_v38  ;;  %v2922_v21 = vsel %vm1962_vm11, %v6247_v52, %v4536_v49  ;;  %v3187_v24 = vmul.f32 %v3163_v44, %v2947_v54  ;;  %v966_v52 = vpop.f32.mrf.mxu3 }
 0x13e   :  { %v4933_v39 = vpop.eup %4932  ;;  %4934 = vpow2.f32 %v2472_v48  ;;  %v2225_v45 = vmin.f32 %v6360_v28, 0.0  ;;  %v2923_v31 = vsel %vm1963_vm12, %v6255_v34, %v4537_v30  ;;  %v6375_v14 = vadd.f32 %v3186_v17, %v6261_v40 }
 0x13f   :  { %v2968_v61 = vsel %vm2008_vm15, %v6294_v15, %v4582_v0  ;;  %4936 = vpow2.f32 %v2516_v50  ;;  %v6381_v44 = vadd.f32 %v3187_v24, %v6299_v18  ;;  %v4583_v49 = vadd.f32 -1.0, %v4933_v39  ;;  %v910_v0 = vpop.f32.mrf.mxu1 }
 0x140   :  { %v2518_v11 = vmul.f32 1.442695, %v2225_v45  ;;  %v4197_v22 = vor.u32 %v4771_v43, %v4196_v1  ;;  %v6385_v48 = vmul.f32 %v3378_v37, %v2922_v21  ;;  %4938 = vpow2.f32 %v2474_v36 }
 0x141   :  { %v4201_v34 = vor.u32 %v4759_v56, %v4198_v19  ;;  %v1596_v40 = vmul.f32 %v6125_v10, %v937_v55  ;;  %v6390_v15 = vmul.f32 %v3379_v63, %v2923_v31  ;;  %vm2009_vm1 = vcmp.gt.f32.partialorder %v6310_v20, 0.0 }
 0x142   :  { %4940 = vpow2.f32 %v2518_v11  ;;  %1272 = vmatpush.bf16.msra.mxu2 %v4197_v22  ;;  %v1597_v18 = vmul.f32 %v6154_v58, %v966_v52  ;;  %v3448_v30 = vmul.f32 %v3424_v41, %v2968_v61  ;;  %v3426_v37 = vperm.slane %v6211_v46, 3  ;;  %v4188_v61 = vld [vmem:[#allocation5 + $0x100] sm:$0xf] }
 0x143   :  { %1301 = vmatpush.bf16.msra.mxu3 %v4201_v34  ;;  %v6398_v38 = vadd.f32 %v6129_v35, %v1596_v40  ;;  %v1618_v33 = vmul.f32 %v6090_v57, %v881_v23  ;;  %v2969_v1 = vsel %vm2009_vm1, %v6310_v20, %v4583_v49  ;;  %v3427_v17 = vperm.slane %v6213_v62, 3  ;;  %v4770_v34 = vld [vmem:[#allocation5 + $0x15c] sm:$0xf0] }
 0x144   :  { %v4935_v63 = vpop.eup %4934  ;;  %v3232_v54 = vperm.slane %v6190_v26, 4  ;;  %v6405_v36 = vadd.f32 %v6169_v27, %v1597_v18  ;;  %vm2010_vm2 = vcmp.gt.f32.partialorder %v6342_v9, 0.0  ;;  %vm2032_vm3 = vcmp.gt.f32.partialorder %v6355_v3, 0.0  ;;  %v4758_v18 = vld [vmem:[#allocation5 + $0x104] sm:$0xf] }
 0x145   :  { %v4937_v41 = vpop.eup %4936  ;;  %vm2033_vm4 = vcmp.gt.f32.partialorder %v6360_v28, 0.0  ;;  %v2226_v50 = vmin.f32 %v6398_v38, 0.0  ;;  %v6412_v43 = vadd.f32 %v6108_v5, %v1618_v33  ;;  %vm2011_vm5 = vcmp.gt.f32.partialorder %v6347_v7, 0.0 }
 0x146   :  { %v4606_v20 = vadd.f32 -1.0, %v4937_v41  ;;  %v3233_v39 = vperm.slane %v6196_v12, 4  ;;  %v2227_v21 = vmin.f32 %v6405_v36, 0.0  ;;  %v1619_v24 = vmul.f32 %v6113_v59, %v910_v0  ;;  %v4939_v45 = vpop.eup %4938  ;;  %v968_v41 = vpop.f32.mrf.mxu3 }
 0x147   :  { %v6419_v56 = vadd.f32 %v3448_v30, %v6301_v53  ;;  %v3449_v19 = vmul.f32 %v3425_v4, %v2969_v1  ;;  %v2520_v55 = vmul.f32 1.442695, %v2226_v50  ;;  %v3234_v31 = vperm.slane %v6211_v46, 4  ;;  %v4190_v1 = vld [vmem:[#allocation5 + $0x160] sm:$0xf0] }
 0x148   :  { %v4941_v52 = vpop.eup %4940  ;;  %v2992_v49 = vsel %vm2032_vm3, %v6355_v3, %v4606_v20  ;;  %v2522_v11 = vmul.f32 1.442695, %v2227_v21  ;;  %v3235_v22 = vperm.slane %v6213_v62, 4  ;;  %v2248_v23 = vmin.f32 %v6412_v43, 0.0  ;;  %v939_v3 = vpop.f32.mrf.mxu2 }
 0x149   :  { %v3256_v53 = vmul.f32 %v3232_v54, %v2992_v49  ;;  %v4607_v40 = vadd.f32 -1.0, %v4941_v52  ;;  %4942 = vpow2.f32 %v2520_v55  ;;  %v3496_v4 = vperm.slane %v6190_v26, 5  ;;  %v884_v55 = vpop.f32.mrf.mxu0 }
 0x14a   :  { %v4584_v30 = vadd.f32 -1.0, %v4935_v63  ;;  %4944 = vpow2.f32 %v2522_v11  ;;  %v2564_v33 = vmul.f32 1.442695, %v2248_v23  ;;  %v6431_v0 = vadd.f32 %v6120_v2, %v1619_v24  ;;  %v913_v11 = vpop.f32.mrf.mxu1 }
 0x14b   :  { %v4585_v50 = vadd.f32 -1.0, %v4939_v45  ;;  %v6434_v20 = vadd.f32 %v3256_v53, %v6331_v42  ;;  %v2993_v54 = vsel %vm2033_vm4, %v6360_v28, %v4607_v40  ;;  %v4189_v21 = vor.u32 %v4770_v34, %v4188_v61 }
 0x14c   :  { %v6440_v63 = vadd.f32 %v3449_v19, %v6339_v25  ;;  %v3257_v52 = vmul.f32 %v3233_v39, %v2993_v54  ;;  %4946 = vpow2.f32 %v2564_v33  ;;  %v2249_v24 = vmin.f32 %v6431_v0, 0.0 }
 0x14d   :  { %vm2034_vm6 = vcmp.gt.f32.partialorder %v6398_v38, 0.0  ;;  %1214 = vmatpush.bf16.msra.mxu0 %v4189_v21  ;;  %v4193_v45 = vor.u32 %v4758_v18, %v4190_v1  ;;  %v1620_v42 = vmul.f32 %v6125_v10, %v939_v3  ;;  %v1621_v49 = vmul.f32 %v6154_v58, %v968_v41  ;;  %v4100_v21 = vld [vmem:[#allocation5 + $0x48] sm:$0xf] }
 0x14e   :  { %v2970_v28 = vsel %vm2010_vm2, %v6342_v9, %v4584_v30  ;;  %v6450_v25 = vadd.f32 %v3257_v52, %v6351_v32  ;;  %v2566_v39 = vmul.f32 1.442695, %v2249_v24  ;;  %v1642_v19 = vmul.f32 %v6090_v57, %v884_v55  ;;  %v4747_v55 = vld [vmem:[#allocation5 + $0xa4] sm:$0xf0] }
 0x14f   :  { %v4943_v61 = vpop.eup %4942  ;;  %v2971_v23 = vsel %vm2011_vm5, %v6347_v7, %v4585_v50  ;;  %vm2035_vm7 = vcmp.gt.f32.partialorder %v6405_v36, 0.0  ;;  %1243 = vmatpush.bf16.msra.mxu1 %v4193_v45  ;;  %v6458_v34 = vadd.f32 %v6129_v35, %v1620_v42  ;;  %v6461_v53 = vadd.f32 %v6169_v27, %v1621_v49  ;;  %v4735_v42 = vld [vmem:[#allocation5 + $0x4c] sm:$0xf] }
 0x150   :  { %v4945_v9 = vpop.eup %4944  ;;  %v4608_v32 = vadd.f32 -1.0, %v4943_v61  ;;  %4948 = vpow2.f32 %v2566_v39  ;;  %v6464_v40 = vadd.f32 %v6108_v5, %v1642_v19  ;;  %v1643_v18 = vmul.f32 %v6113_v59, %v913_v11  ;;  %v942_v61 = vpop.f32.mrf.mxu2 }
 0x151   :  { %v3450_v7 = vmul.f32 %v3426_v37, %v2970_v28  ;;  %v4609_v30 = vadd.f32 -1.0, %v4945_v9  ;;  %vm2056_vm8 = vcmp.gt.f32.partialorder %v6412_v43, 0.0  ;;  %v2250_v33 = vmin.f32 %v6458_v34, 0.0 }
 0x152   :  { %v4947_v1 = vpop.eup %4946  ;;  %v3451_v3 = vmul.f32 %v3427_v17, %v2971_v23  ;;  %v2994_v41 = vsel %vm2034_vm6, %v6398_v38, %v4608_v32  ;;  %v2251_v50 = vmin.f32 %v6461_v53, 0.0  ;;  %v2272_v54 = vmin.f32 %v6464_v40, 0.0  ;;  %v4102_v38 = vld [vmem:[#allocation5 + $0xa8] sm:$0xf0] }
 0x153   :  { %v3258_v37 = vmul.f32 %v3234_v31, %v2994_v41  ;;  %v2995_v52 = vsel %vm2035_vm7, %v6405_v36, %v4609_v30  ;;  %v4630_v24 = vadd.f32 -1.0, %v4947_v1  ;;  %v2568_v45 = vmul.f32 1.442695, %v2250_v33  ;;  %v971_v36 = vpop.f32.mrf.mxu3 }
 0x154   :  { %v3259_v49 = vmul.f32 %v3235_v22, %v2995_v52  ;;  %v2570_v17 = vmul.f32 1.442695, %v2251_v50  ;;  %v2612_v11 = vmul.f32 1.442695, %v2272_v54  ;;  %v6482_v28 = vadd.f32 %v6120_v2, %v1643_v18 }
 0x155   :  { %v6485_v39 = vadd.f32 %v3450_v7, %v6385_v48  ;;  %v6488_v19 = vadd.f32 %v3258_v37, %v6375_v14  ;;  %4950 = vpow2.f32 %v2568_v45  ;;  %v4101_v31 = vor.u32 %v4747_v55, %v4100_v21  ;;  %v886_v48 = vpop.f32.mrf.mxu0  ;;  %v6516_v55 = vld [vmem:[#allocation2] sm:$0xff] }
 0x156   :  { %v4949_v23 = vpop.eup %4948  ;;  %v6491_v9 = vadd.f32 %v3451_v3, %v6390_v15  ;;  %v6494_v22 = vadd.f32 %v3259_v49, %v6381_v44  ;;  %v3016_v32 = vsel %vm2056_vm8, %v6412_v43, %v4630_v24  ;;  %4952 = vpow2.f32 %v2570_v17 }
 0x157   :  { %v3497_v14 = vperm.slane %v6196_v12, 5  ;;  %4954 = vpow2.f32 %v2612_v11  ;;  %v2273_v18 = vmin.f32 %v6482_v28, 0.0  ;;  %1273 = vmatpush.bf16.msra.mxu2 %v4101_v31  ;;  %v4105_v7 = vor.u32 %v4735_v42, %v4102_v38  ;;  %v915_v42 = vpop.f32.mrf.mxu1 }
 0x158   :  { %vm2057_vm9 = vcmp.gt.f32.partialorder %v6431_v0, 0.0  ;;  %v4631_v15 = vadd.f32 -1.0, %v4949_v23  ;;  %v1644_v30 = vmul.f32 %v6125_v10, %v942_v61  ;;  %v1645_v44 = vmul.f32 %v6154_v58, %v971_v36 }
 0x159   :  { %v3520_v33 = vmul.f32 %v3496_v4, %v3016_v32  ;;  %v3498_v43 = vperm.slane %v6211_v46, 5  ;;  %v2614_v1 = vmul.f32 1.442695, %v2273_v18  ;;  %1302 = vmatpush.bf16.msra.mxu3 %v4105_v7  ;;  %v1666_v3 = vmul.f32 %v6090_v57, %v886_v48 }
 0x15a   :  { %v3499_v41 = vperm.slane %v6213_v62, 5  ;;  %v3304_v50 = vperm.slane %v6190_v26, 6  ;;  %v6511_v54 = vadd.f32 %v6129_v35, %v1644_v30  ;;  %v6514_v21 = vadd.f32 %v6169_v27, %v1645_v44  ;;  %4482 = vmatmul.msk.bf16.vlgmr.msra.gmra.mxu2 %vm731_vm0, %v6516_v55 }
 0x15b   :  { %v4951_v4 = vpop.eup %4950  ;;  %vm2058_vm10 = vcmp.gt.f32.partialorder %v6458_v34, 0.0  ;;  %4956 = vpow2.f32 %v2614_v1  ;;  %v3305_v57 = vperm.slane %v6196_v12, 6  ;;  %v6523_v37 = vadd.f32 %v6108_v5, %v1666_v3  ;;  %v4746_v1 = vld [vmem:[#allocation5 + $0x9c] sm:$0xf0]  ;;  %v4094_v3 = vld [vmem:[#allocation5 + $0xa0] sm:$0xf0] }
 0x15c   :  { %v4953_v52 = vpop.eup %4952  ;;  %v3017_v24 = vsel %vm2057_vm9, %v6431_v0, %v4631_v15  ;;  %vm2059_vm11 = vcmp.gt.f32.partialorder %v6461_v53, 0.0  ;;  %vm2080_vm12 = vcmp.gt.f32.partialorder %v6464_v40, 0.0  ;;  %v2274_v45 = vmin.f32 %v6511_v54, 0.0  ;;  %4486 = vmatmul.msk.bf16.vlgmr.msra.gmra.mxu3 %vm731_vm0, %v6516_v55  ;;  %v4092_v15 = vld [vmem:[#allocation5 + $0x40] sm:$0xf] }
 0x15d   :  { %v4955_v49 = vpop.eup %4954  ;;  %v6534_v17 = vadd.f32 %v3520_v33, %v6419_v56  ;;  %v4632_v5 = vadd.f32 -1.0, %v4951_v4  ;;  %vm2081_vm13 = vcmp.gt.f32.partialorder %v6482_v28, 0.0  ;;  %v2275_v11 = vmin.f32 %v6514_v21, 0.0 }
 0x15e   :  { %v4654_v0 = vadd.f32 -1.0, %v4955_v49  ;;  %v2616_v38 = vmul.f32 1.442695, %v2274_v45  ;;  %v3306_v31 = vperm.slane %v6211_v46, 6  ;;  %v2296_v61 = vmin.f32 %v6523_v37, 0.0  ;;  %v944_v45 = vpop.f32.mrf.mxu2 }
 0x15f   :  { %v3521_v36 = vmul.f32 %v3497_v14, %v3017_v24  ;;  %v2618_v23 = vmul.f32 1.442695, %v2275_v11  ;;  %v3307_v32 = vperm.slane %v6213_v62, 6  ;;  %v1667_v48 = vmul.f32 %v6113_v59, %v915_v42  ;;  %v4734_v59 = vld [vmem:[#allocation5 + $0x44] sm:$0xf] }
 0x160   :  { %v4633_v18 = vadd.f32 -1.0, %v4953_v52  ;;  %v3040_v56 = vsel %vm2080_vm12, %v6464_v40, %v4654_v0  ;;  %4958 = vpow2.f32 %v2616_v38  ;;  %v2660_v7 = vmul.f32 1.442695, %v2296_v61  ;;  %v6552_v52 = vld [vmem:[#allocation11] sm:$0xff] }
 0x161   :  { %v4957_v30 = vpop.eup %4956  ;;  %v3018_v44 = vsel %vm2058_vm10, %v6458_v34, %v4632_v5  ;;  %v3328_v33 = vmul.f32 %v3304_v50, %v3040_v56  ;;  %4960 = vpow2.f32 %v2618_v23  ;;  %v6549_v14 = vadd.f32 %v6120_v2, %v1667_v48  ;;  %v6561_v2 = vld [vmem:[#allocation13] sm:$0xff]  ;;  %v973_v5 = vpop.f32.mrf.mxu3 }
 0x162   :  { %v4655_v4 = vadd.f32 -1.0, %v4957_v30  ;;  %4962 = vpow2.f32 %v2660_v7  ;;  %v3568_v40 = vperm.slane %v6190_v26, 7  ;;  %v3670_v24 = vperm.slane %v6552_v52, 4 }
 0x163   :  { %v6556_v42 = vadd.f32 %v3521_v36, %v6440_v63  ;;  %v6559_v34 = vadd.f32 %v3328_v33, %v6434_v20  ;;  %v3748_v50 = vperm.slane %v6561_v2, 4  ;;  %v2297_v49 = vmin.f32 %v6549_v14, 0.0  ;;  %v6610_v33 = vld [vmem:[#allocation2 + $0x8] sm:$0xff] }
 0x164   :  { %v3522_v11 = vmul.f32 %v3498_v43, %v3018_v44  ;;  %v3041_v26 = vsel %vm2081_vm13, %v6482_v28, %v4655_v4  ;;  %v4093_v0 = vor.u32 %v4746_v1, %v4092_v15  ;;  %v4097_v38 = vor.u32 %v4734_v59, %v4094_v3 }
 0x165   :  { %v3019_v63 = vsel %vm2059_vm11, %v6461_v53, %v4633_v18  ;;  %v3329_v20 = vmul.f32 %v3305_v57, %v3041_v26  ;;  %v2662_v61 = vmul.f32 1.442695, %v2297_v49  ;;  %v1668_v36 = vmul.f32 %v6125_v10, %v944_v45 }
 0x166   :  { %v4959_v23 = vpop.eup %4958  ;;  %vm2082_vm14 = vcmp.gt.f32.partialorder %v6511_v54, 0.0  ;;  %vm2083_vm15 = vcmp.gt.f32.partialorder %v6514_v21, 0.0  ;;  %vm2104_vm1 = vcmp.gt.f32.partialorder %v6523_v37, 0.0  ;;  %1215 = vmatpush.bf16.msra.mxu0 %v4093_v0  ;;  %1244 = vmatpush.bf16.msra.mxu1 %v4097_v38  ;;  %v1669_v28 = vmul.f32 %v6154_v58, %v973_v5  ;;  %v6590_v58 = vld [vmem:[#allocation7 + $0x8] sm:$0xff] }
 0x167   :  { %v4961_v43 = vpop.eup %4960  ;;  %v6577_v48 = vadd.f32 %v3329_v20, %v6450_v25  ;;  %v4656_v53 = vadd.f32 -1.0, %v4959_v23  ;;  %4964 = vpow2.f32 %v2662_v61  ;;  %v6580_v57 = vadd.f32 %v6129_v35, %v1668_v36 }
 0x168   :  { %v4963_v10 = vpop.eup %4962  ;;  %v6583_v18 = vadd.f32 %v3522_v11, %v6485_v39  ;;  %v3523_v56 = vmul.f32 %v3499_v41, %v3019_v63  ;;  %v4657_v7 = vadd.f32 -1.0, %v4961_v43  ;;  %v6588_v15 = vadd.f32 %v6169_v27, %v1669_v28  ;;  %v6597_v39 = vld [vmem:[#allocation8 + $0x8] sm:$0xff]  ;;  %v1014_v11 = vpop.f32.mrf.mxu1  ;;  %v4404_v28 = vld [vmem:[#allocation5 + $0x298] sm:$0xf] }
 0x169   :  { %v3042_v25 = vsel %vm2082_vm14, %v6511_v54, %v4656_v53  ;;  %v4678_v30 = vadd.f32 -1.0, %v4963_v10  ;;  %v3569_v35 = vperm.slane %v6196_v12, 7  ;;  %v2298_v44 = vmin.f32 %v6580_v57, 0.0  ;;  %4474 = vmatmul.msk.bf16.vlgmr.msra.gmra.mxu0 %vm731_vm0, %v6516_v55  ;;  %4478 = vmatmul.msk.bf16.vlgmr.msra.gmra.mxu1 %vm731_vm0, %v6516_v55  ;;  %v985_v54 = vpop.f32.mrf.mxu0  ;;  %v1043_v63 = vpop.f32.mrf.mxu2  ;;  %v4821_v43 = vld [vmem:[#allocation5 + $0x2f4] sm:$0xf0] }
 0x16a   :  { %v3330_v27 = vmul.f32 %v3306_v31, %v3042_v25  ;;  %v3043_v41 = vsel %vm2083_vm15, %v6514_v21, %v4657_v7  ;;  %vm2105_vm2 = vcmp.gt.f32.partialorder %v6549_v14, 0.0  ;;  %v2299_v12 = vmin.f32 %v6588_v15, 0.0  ;;  %4483 = vmatmul.msk.bf16.gmra.mxu2 %vm731_vm0, %v6610_v33  ;;  %v4809_v53 = vld [vmem:[#allocation5 + $0x29c] sm:$0xf] }
 0x16b   :  { %v3331_v55 = vmul.f32 %v3307_v32, %v3043_v41  ;;  %v3064_v31 = vsel %vm2104_vm1, %v6523_v37, %v4678_v30  ;;  %v2664_v1 = vmul.f32 1.442695, %v2298_v44  ;;  %v6620_v21 = vperm.slane %v6590_v58, 0  ;;  %v4406_v44 = vld [vmem:[#allocation5 + $0x2f8] sm:$0xf0] }
 0x16c   :  { %v6623_v59 = vadd.f32 %v3330_v27, %v6488_v19  ;;  %v3592_v3 = vmul.f32 %v3568_v40, %v3064_v31  ;;  %v2666_v4 = vmul.f32 1.442695, %v2299_v12  ;;  %v6626_v45 = vperm.slane %v6597_v39, 0  ;;  %4487 = vmatmul.msk.bf16.gmra.mxu3 %vm731_vm0, %v6610_v33 }
 0x16d   :  { %v4965_v32 = vpop.eup %4964  ;;  %v6631_v49 = vadd.f32 %v3331_v55, %v6494_v22  ;;  %v3671_v37 = vperm.slane %v6552_v52, 5  ;;  %4966 = vpow2.f32 %v2664_v1  ;;  %v1502_v5 = vmul.f32 %v6620_v21, %v985_v54 }
 0x16e   :  { %v3616_v19 = vadd.f32 %v3592_v3, %v6534_v17  ;;  %v4679_v40 = vadd.f32 -1.0, %v4965_v32  ;;  %4968 = vpow2.f32 %v2666_v4  ;;  %v6637_v26 = vperm.slane %v6590_v58, 1 }
 0x16f   :  { %v3749_v0 = vperm.slane %v6561_v2, 5  ;;  %v6641_v38 = vadd.f32 %v6626_v45, %v1502_v5  ;;  %v6644_v22 = vperm.slane %v6597_v39, 1  ;;  %v6647_v20 = vperm.slane %v6590_v58, 2 }
 0x170   :  { %v3547_v61 = vadd.f32 %v3523_v56, %v6491_v9  ;;  %v3640_v17 = vadd.f32 %v3616_v19, %v6559_v34  ;;  %v3065_v36 = vsel %vm2105_vm2, %v6549_v14, %v4679_v40  ;;  %v1503_v23 = vmul.f32 %v6637_v26, %v1014_v11 }
 0x171   :  { %v3593_v10 = vmul.f32 %v3569_v35, %v3065_v36  ;;  %v3570_v7 = vperm.slane %v6211_v46, 7  ;;  %v2132_v25 = vmin.f32 %v6641_v38, 0.0  ;;  %v4405_v30 = vor.u32 %v4821_v43, %v4404_v28  ;;  %v987_v4 = vpop.f32.mrf.mxu0  ;;  %v1072_v36 = vpop.f32.mrf.mxu3 }
 0x172   :  { %v3718_v9 = vmul.f32 %v3670_v24, %v3640_v17  ;;  %v6660_v34 = vadd.f32 %v6644_v22, %v1503_v23  ;;  %v4409_v56 = vor.u32 %v4809_v53, %v4406_v44  ;;  %v1504_v14 = vmul.f32 %v6647_v20, %v1043_v63 }
 0x173   :  { %v4967_v27 = vpop.eup %4966  ;;  %v3617_v41 = vadd.f32 %v3593_v10, %v6556_v42  ;;  %v3672_v35 = vperm.slane %v6552_v52, 6  ;;  %v3571_v46 = vperm.slane %v6213_v62, 7  ;;  %1386 = vmatpush.bf16.msrb.mxu2 %v4405_v30  ;;  %v6667_v12 = vperm.slane %v6597_v39, 2 }
 0x174   :  { %v4969_v54 = vpop.eup %4968  ;;  %v6671_v24 = vadd.f32 %v3748_v50, %v3718_v9  ;;  %v4680_v55 = vadd.f32 -1.0, %v4967_v27  ;;  %v2332_v31 = vmul.f32 1.442695, %v2132_v25  ;;  %v2133_v1 = vmin.f32 %v6660_v34, 0.0  ;;  %1415 = vmatpush.bf16.msrb.mxu3 %v4409_v56  ;;  %v6722_v9 = vld [vmem:[#allocation10 + $0x48] sm:$0xff] }
 0x175   :  { %v3641_v42 = vadd.f32 %v3617_v41, %v6577_v48  ;;  %vm2106_vm3 = vcmp.gt.f32.partialorder %v6580_v57, 0.0  ;;  %v4681_v3 = vadd.f32 -1.0, %v4969_v54  ;;  %v6677_v62 = vadd.f32 %v6667_v12, %v1504_v14  ;;  %v6743_v54 = vld [vmem:[#allocation10 + $0x50] sm:$0xff] }
 0x176   :  { %vm3816_vm4 = vcmp.gt.f32.partialorder %v6158_v16, 0.0  ;;  %vm3817_vm5 = vcmp.gt.f32.partialorder %v6175_v8, 0.0  ;;  %v3844_v50 = vmin.f32 %v6671_v24, 0.0  ;;  %v3066_v32 = vsel %vm2106_vm3, %v6580_v57, %v4680_v55 }
 0x177   :  { %v3750_v5 = vperm.slane %v6561_v2, 6  ;;  %vm2107_vm6 = vcmp.gt.f32.partialorder %v6588_v15, 0.0  ;;  %v3719_v48 = vmul.f32 %v3671_v37, %v3641_v42  ;;  %v3594_v11 = vmul.f32 %v3570_v7, %v3066_v32  ;;  %v6704_v7 = vld [vmem:[#allocation2 + $0x10] sm:$0xff] }
 0x178   :  { %v3067_v19 = vsel %vm2107_vm6, %v6588_v15, %v4681_v3  ;;  %v2334_v40 = vmul.f32 1.442695, %v2133_v1  ;;  %vm3818_vm7 = vcmp.gt.f32.partialorder %v6194_v29, 0.0  ;;  %vm3819_vm8 = vcmp.gt.f32.partialorder %v6208_v51, 0.0 }
 0x179   :  { %v3595_v63 = vmul.f32 %v3571_v46, %v3067_v19  ;;  %4970 = vpow2.f32 %v2332_v31  ;;  %v2134_v17 = vmin.f32 %v6677_v62, 0.0  ;;  %v1526_v57 = vmul.f32 %v6620_v21, %v987_v4  ;;  %4475 = vmatmul.msk.bf16.gmra.mxu0 %vm731_vm0, %v6610_v33  ;;  %4479 = vmatmul.msk.bf16.gmra.mxu1 %vm731_vm0, %v6610_v33  ;;  %v4820_v4 = vld [vmem:[#allocation5 + $0x2ec] sm:$0xf0] }
 0x17a   :  { %v6690_v23 = vadd.f32 %v3749_v0, %v3719_v48  ;;  %v3618_v28 = vadd.f32 %v3594_v11, %v6583_v18  ;;  %v6694_v37 = vperm.slane %v6590_v58, 3  ;;  %v6697_v15 = vperm.slane %v6597_v39, 3  ;;  %4484 = vmatmul.msk.bf16.gmra.mxu2 %vm731_vm0, %v6704_v7  ;;  %v4398_v11 = vld [vmem:[#allocation5 + $0x2f0] sm:$0xf0] }
 0x17b   :  { %v3872_v43 = vmul.f32 1.442695, %v3844_v50  ;;  %v3619_v53 = vadd.f32 %v3595_v63, %v3547_v61  ;;  %v3673_v10 = vperm.slane %v6552_v52, 7  ;;  %v2336_v0 = vmul.f32 1.442695, %v2134_v17  ;;  %v6714_v52 = vld [vmem:[#allocation10 + $0x40] sm:$0xff] }
 0x17c   :  { %v3845_v18 = vmin.f32 %v6690_v23, 0.0  ;;  %v3642_v58 = vadd.f32 %v3618_v28, %v6623_v59  ;;  %4972 = vpow2.f32 %v2334_v40  ;;  %v1505_v39 = vmul.f32 %v6694_v37, %v1072_v36  ;;  %4488 = vmatmul.msk.bf16.gmra.mxu3 %vm731_vm0, %v6704_v7  ;;  %v4808_v50 = vld [vmem:[#allocation5 + $0x294] sm:$0xf]  ;;  %v6764_v36 = vld [vmem:[#allocation10 + $0x58] sm:$0xff]  ;;  %v1045_v28 = vpop.f32.mrf.mxu2 }
 0x17d   :  { %v4700_v25 = vadd.f32 -1.0, %v6275_v6  ;;  %v3643_v33 = vadd.f32 %v3619_v53, %v6631_v49  ;;  %v3751_v61 = vperm.slane %v6561_v2, 7  ;;  %v6717_v30 = vadd.f32 %v6626_v45, %v1526_v57  ;;  %v1016_v49 = vpop.f32.mrf.mxu1 }
 0x17e   :  { %v4701_v44 = vadd.f32 -1.0, %v6307_v47  ;;  %v3720_v59 = vmul.f32 %v3672_v35, %v3642_v58  ;;  %4974 = vpow2.f32 %v2336_v0  ;;  %v6725_v6 = vadd.f32 %v6697_v15, %v1505_v39  ;;  %v990_v0 = vpop.f32.mrf.mxu0 }
 0x17f   :  { %v4971_v56 = vpop.eup %4970  ;;  %4976 = vpow2.f32 %v3872_v43  ;;  %v3874_v2 = vmul.f32 1.442695, %v3845_v18  ;;  %v3721_v14 = vmul.f32 %v3673_v10, %v3643_v33  ;;  %v2156_v27 = vmin.f32 %v6717_v30, 0.0  ;;  %v1074_v10 = vpop.f32.mrf.mxu3 }
 0x180   :  { %v6732_v41 = vsel %vm3816_vm4, %v6158_v16, %v6257_v60  ;;  %v6738_v47 = vsel %vm3817_vm5, %v6175_v8, %v6268_v13  ;;  %v6740_v35 = vadd.f32 %v3750_v5, %v3720_v59  ;;  %v3116_v46 = vperm.slane %v6714_v52, 0  ;;  %v4396_v60 = vld [vmem:[#allocation5 + $0x290] sm:$0xf] }
 0x181   :  { %v6745_v55 = vadd.f32 %v3751_v61, %v3721_v14  ;;  %v3117_v31 = vperm.slane %v6722_v9, 0  ;;  %v2135_v1 = vmin.f32 %v6725_v6, 0.0  ;;  %v2380_v16 = vmul.f32 1.442695, %v2156_v27 }
 0x182   :  { %v4973_v42 = vpop.eup %4972  ;;  %v6752_v8 = vsel %vm3818_vm7, %v6194_v29, %v4700_v25  ;;  %v6757_v13 = vsel %vm3819_vm8, %v6208_v51, %v4701_v44  ;;  %v3846_v3 = vmin.f32 %v6740_v35, 0.0  ;;  %vm1940_vm9 = vcmp.gt.f32.partialorder %v6641_v38, 0.0 }
 0x183   :  { %4978 = vpow2.f32 %v3874_v2  ;;  %v3847_v32 = vmin.f32 %v6745_v55, 0.0  ;;  %v4514_v5 = vadd.f32 -1.0, %v4971_v56  ;;  %v2338_v48 = vmul.f32 1.442695, %v2135_v1 }
 0x184   :  { %v4975_v19 = vpop.eup %4974  ;;  %v3876_v29 = vmul.f32 1.442695, %v3846_v3  ;;  %vm1941_vm10 = vcmp.gt.f32.partialorder %v6660_v34, 0.0  ;;  %v3118_v40 = vperm.slane %v6743_v54, 0  ;;  %4980 = vpow2.f32 %v2380_v16 }
 0x185   :  { %v4977_v51 = vpop.eup %4976  ;;  %v3878_v63 = vmul.f32 1.442695, %v3847_v32  ;;  %v4515_v17 = vadd.f32 -1.0, %v4973_v42  ;;  %4982 = vpow2.f32 %v2338_v48  ;;  %v1527_v57 = vmul.f32 %v6637_v26, %v1016_v49  ;;  %v1019_v44 = vpop.f32.mrf.mxu1  ;;  %v6800_v42 = vld [vmem:[#allocation2 + $0x18] sm:$0xff] }
 0x186   :  { %vm3820_vm11 = vcmp.gt.f32.partialorder %v6671_v24, 0.0  ;;  %4984 = vpow2.f32 %v3876_v29  ;;  %v4397_v43 = vor.u32 %v4820_v4, %v4396_v60  ;;  %v4401_v53 = vor.u32 %v4808_v50, %v4398_v11 }
 0x187   :  { %4986 = vpow2.f32 %v3878_v63  ;;  %v2900_v18 = vsel %vm1940_vm9, %v6641_v38, %v4514_v5  ;;  %v4516_v58 = vadd.f32 -1.0, %v4975_v19  ;;  %v6772_v39 = vadd.f32 %v6644_v22, %v1527_v57  ;;  %v4797_v63 = vld [vmem:[#allocation5 + $0x234] sm:$0xf0] }
 0x188   :  { %v4702_v25 = vadd.f32 -1.0, %v4977_v51  ;;  %vm1942_vm12 = vcmp.gt.f32.partialorder %v6677_v62, 0.0  ;;  %v3119_v33 = vperm.slane %v6764_v36, 0  ;;  %1328 = vmatpush.bf16.msrb.mxu0 %v4397_v43  ;;  %1357 = vmatpush.bf16.msrb.mxu1 %v4401_v53  ;;  %v1528_v61 = vmul.f32 %v6647_v20, %v1045_v28 }
 0x189   :  { %v4979_v59 = vpop.eup %4978  ;;  %v2901_v49 = vsel %vm1941_vm10, %v6660_v34, %v4515_v17  ;;  %v2157_v38 = vmin.f32 %v6772_v39, 0.0  ;;  %v1529_v56 = vmul.f32 %v6694_v37, %v1074_v10  ;;  %v1550_v2 = vmul.f32 %v6620_v21, %v990_v0  ;;  %4476 = vmatmul.msk.bf16.gmra.mxu0 %vm731_vm0, %v6704_v7  ;;  %4480 = vmatmul.msk.bf16.gmra.mxu1 %vm731_vm0, %v6704_v7  ;;  %v4785_v17 = vld [vmem:[#allocation5 + $0x1dc] sm:$0xf]  ;;  %v1048_v0 = vpop.f32.mrf.mxu2 }
 0x18a   :  { %v4981_v14 = vpop.eup %4980  ;;  %v6783_v27 = vmul.f32 %v3116_v46, %v2900_v18  ;;  %vm1964_vm13 = vcmp.gt.f32.partialorder %v6717_v30, 0.0  ;;  %v3380_v1 = vperm.slane %v6714_v52, 1  ;;  %v6788_v16 = vadd.f32 %v6667_v12, %v1528_v61  ;;  %4485 = vmatmul.msk.bf16.gmra.mxu2 %vm731_vm0, %v6800_v42  ;;  %v4310_v10 = vld [vmem:[#allocation5 + $0x238] sm:$0xf0]  ;;  %v1077_v61 = vpop.f32.mrf.mxu3 }
 0x18b   :  { %v4983_v34 = vpop.eup %4982  ;;  %vm3822_vm14 = vcmp.gt.f32.partialorder %v6740_v35, 0.0  ;;  %vm3823_vm15 = vcmp.gt.f32.partialorder %v6745_v55, 0.0  ;;  %v2902_v46 = vsel %vm1942_vm12, %v6677_v62, %v4516_v58  ;;  %vm1943_vm1 = vcmp.gt.f32.partialorder %v6725_v6, 0.0 }
 0x18c   :  { %v2382_v60 = vmul.f32 1.442695, %v2157_v38  ;;  %v4985_v3 = vpop.eup %4984  ;;  %v6807_v7 = vsel %vm3820_vm11, %v6671_v24, %v4702_v25  ;;  %v6811_v4 = vmul.f32 %v3117_v31, %v2901_v49  ;;  %v3381_v62 = vperm.slane %v6722_v9, 1  ;;  %v4308_v24 = vld [vmem:[#allocation5 + $0x1d8] sm:$0xf]  ;;  %4489 = vmatmul.msk.bf16.gmra.mxu3 %vm731_vm0, %v6800_v42  ;;  %v992_v38 = vpop.f32.mrf.mxu0 }
 0x18d   :  { %v6815_v50 = vadd.f32 %v6626_v45, %v1550_v2  ;;  %v4987_v32 = vpop.eup %4986  ;;  %v6817_v5 = vadd.f32 -1.0, %v4979_v59  ;;  %v4704_v48 = vadd.f32 -1.0, %v4985_v3  ;;  %v6820_v11 = vadd.f32 %v6697_v15, %v1529_v56 }
 0x18e   :  { %v1551_v19 = vmul.f32 %v6637_v26, %v1019_v44  ;;  %v4705_v31 = vadd.f32 -1.0, %v4987_v32  ;;  %v6825_v29 = vmul.f32 %v3118_v40, %v2902_v46  ;;  %4988 = vpow2.f32 %v2382_v60 }
 0x18f   :  { %v2158_v51 = vmin.f32 %v6788_v16, 0.0  ;;  %v3942_v57 = vsel %vm3822_vm14, %v6740_v35, %v4704_v48  ;;  %v4538_v28 = vadd.f32 -1.0, %v4981_v14  ;;  %v3382_v43 = vperm.slane %v6743_v54, 1 }
 0x190   :  { %v3383_v53 = vperm.slane %v6764_v36, 1  ;;  %v6834_v18 = vadd.f32 %v3942_v57, %v6732_v41  ;;  %v3943_v40 = vsel %vm3823_vm15, %v6745_v55, %v4705_v31  ;;  %v4517_v58 = vadd.f32 -1.0, %v4983_v34  ;;  %v1021_v55 = vpop.f32.mrf.mxu1 }
 0x191   :  { %v2180_v25 = vmin.f32 %v6815_v50, 0.0  ;;  %v6841_v35 = vadd.f32 %v3943_v40, %v6738_v47  ;;  %v2159_v44 = vmin.f32 %v6820_v11, 0.0  ;;  %v6845_v59 = vadd.f32 %v6644_v22, %v1551_v19 }
 0x192   :  { %v4309_v49 = vor.u32 %v4797_v63, %v4308_v24  ;;  %v2384_v41 = vmul.f32 1.442695, %v2158_v51  ;;  %v4313_v2 = vor.u32 %v4785_v17, %v4310_v10  ;;  %v1552_v14 = vmul.f32 %v6647_v20, %v1048_v0  ;;  %v4300_v10 = vld [vmem:[#allocation5 + $0x1d0] sm:$0xf] }
 0x193   :  { %v2428_v56 = vmul.f32 1.442695, %v2180_v25  ;;  %v2924_v34 = vsel %vm1964_vm13, %v6717_v30, %v4538_v28  ;;  %vm1965_vm2 = vcmp.gt.f32.partialorder %v6772_v39, 0.0  ;;  %v2181_v47 = vmin.f32 %v6845_v59, 0.0  ;;  %v4796_v25 = vld [vmem:[#allocation5 + $0x22c] sm:$0xf0] }
 0x194   :  { %1387 = vmatpush.bf16.msrb.mxu2 %v4309_v49  ;;  %v1553_v46 = vmul.f32 %v6694_v37, %v1077_v61  ;;  %v4989_v60 = vpop.eup %4988  ;;  %v2903_v3 = vsel %vm1943_vm1, %v6725_v6, %v4517_v58  ;;  %1416 = vmatpush.bf16.msrb.mxu3 %v4313_v2  ;;  %v6858_v32 = vadd.f32 %v6667_v12, %v1552_v14  ;;  %v2386_v30 = vmul.f32 1.442695, %v2159_v44  ;;  %v4784_v49 = vld [vmem:[#allocation5 + $0x1d4] sm:$0xf]  ;;  %v1050_v2 = vpop.f32.mrf.mxu2 }
 0x195   :  { %4990 = vpow2.f32 %v2428_v56  ;;  %v1574_v48 = vmul.f32 %v6620_v21, %v992_v38  ;;  %v2430_v19 = vmul.f32 1.442695, %v2181_v47  ;;  %v1575_v31 = vmul.f32 %v6637_v26, %v1021_v55  ;;  %v4302_v38 = vld [vmem:[#allocation5 + $0x230] sm:$0xf0] }
 0x196   :  { %v6862_v24 = vadd.f32 %v6697_v15, %v1553_v46  ;;  %4992 = vpow2.f32 %v2384_v41  ;;  %v3164_v51 = vperm.slane %v6714_v52, 2  ;;  %v2182_v63 = vmin.f32 %v6858_v32, 0.0  ;;  %v1079_v46 = vpop.f32.mrf.mxu3 }
 0x197   :  { %v6868_v6 = vadd.f32 %v6626_v45, %v1574_v48  ;;  %v6872_v17 = vmul.f32 %v3380_v1, %v2924_v34  ;;  %v4539_v57 = vadd.f32 -1.0, %v4989_v60  ;;  %4994 = vpow2.f32 %v2430_v19  ;;  %v995_v19 = vpop.f32.mrf.mxu0 }
 0x198   :  { %v3165_v28 = vperm.slane %v6722_v9, 2  ;;  %v6877_v0 = vmul.f32 %v3119_v33, %v2903_v3  ;;  %vm1988_vm3 = vcmp.gt.f32.partialorder %v6815_v50, 0.0  ;;  %v2432_v40 = vmul.f32 1.442695, %v2182_v63 }
 0x199   :  { %v2183_v58 = vmin.f32 %v6862_v24, 0.0  ;;  %4996 = vpow2.f32 %v2386_v30  ;;  %v3166_v61 = vperm.slane %v6743_v54, 2  ;;  %v2204_v1 = vmin.f32 %v6868_v6, 0.0  ;;  %4477 = vmatmul.msk.bf16.gmra.mxu0 %vm731_vm0, %v6800_v42  ;;  %4481 = vmatmul.msk.bf16.gmra.mxu1 %vm731_vm0, %v6800_v42 }
 0x19a   :  { %v6884_v44 = vadd.f32 %v6644_v22, %v1575_v31  ;;  %vm1989_vm4 = vcmp.gt.f32.partialorder %v6845_v59, 0.0  ;;  %4998 = vpow2.f32 %v2432_v40  ;;  %v3167_v56 = vperm.slane %v6764_v36, 2 }
 0x19b   :  { %v4991_v41 = vpop.eup %4990  ;;  %v2434_v33 = vmul.f32 1.442695, %v2183_v58  ;;  %v2925_v14 = vsel %vm1965_vm2, %v6772_v39, %v4539_v57  ;;  %vm1966_vm5 = vcmp.gt.f32.partialorder %v6788_v16, 0.0  ;;  %v2476_v34 = vmul.f32 1.442695, %v2204_v1 }
 0x19c   :  { %v4562_v55 = vadd.f32 -1.0, %v4991_v41  ;;  %v3428_v47 = vperm.slane %v6714_v52, 3  ;;  %v4993_v60 = vpop.eup %4992  ;;  %v2205_v3 = vmin.f32 %v6884_v44, 0.0  ;;  %v4301_v48 = vor.u32 %v4796_v25, %v4300_v10 }
 0x19d   :  { %5000 = vpow2.f32 %v2434_v33  ;;  %v4305_v30 = vor.u32 %v4784_v49, %v4302_v38  ;;  %v4995_v31 = vpop.eup %4994  ;;  %vm1967_vm6 = vcmp.gt.f32.partialorder %v6820_v11, 0.0  ;;  %vm1990_vm7 = vcmp.gt.f32.partialorder %v6858_v32, 0.0  ;;  %v1024_v38 = vpop.f32.mrf.mxu1 }
 0x19e   :  { %v2948_v39 = vsel %vm1988_vm3, %v6815_v50, %v4562_v55  ;;  %5002 = vpow2.f32 %v2476_v34  ;;  %v1576_v42 = vmul.f32 %v6647_v20, %v1050_v2  ;;  %v4563_v57 = vadd.f32 -1.0, %v4995_v31  ;;  %1329 = vmatpush.bf16.msrb.mxu0 %v4301_v48 }
 0x19f   :  { %v3188_v63 = vmul.f32 %v3164_v51, %v2948_v39  ;;  %v2478_v40 = vmul.f32 1.442695, %v2205_v3  ;;  %1358 = vmatpush.bf16.msrb.mxu1 %v4305_v30  ;;  %v1577_v10 = vmul.f32 %v6694_v37, %v1079_v46  ;;  %v4997_v58 = vpop.eup %4996  ;;  %v6907_v25 = vmul.f32 %v3381_v62, %v2925_v14 }
 0x1a0   :  { %v4540_v1 = vadd.f32 -1.0, %v4993_v60  ;;  %v6910_v50 = vadd.f32 %v6667_v12, %v1576_v42  ;;  %v1598_v49 = vmul.f32 %v6620_v21, %v995_v19  ;;  %v4999_v41 = vpop.eup %4998  ;;  %v2949_v33 = vsel %vm1989_vm4, %v6845_v59, %v4563_v57 }
 0x1a1   :  { %v6914_v51 = vadd.f32 %v3188_v63, %v6783_v27  ;;  %5004 = vpow2.f32 %v2478_v40  ;;  %v6920_v2 = vadd.f32 %v6697_v15, %v1577_v10  ;;  %v3189_v62 = vmul.f32 %v3165_v28, %v2949_v33  ;;  %v4212_v40 = vld [vmem:[#allocation5 + $0x118] sm:$0xf] }
 0x1a2   :  { %v4564_v14 = vadd.f32 -1.0, %v4999_v41  ;;  %vm1991_vm8 = vcmp.gt.f32.partialorder %v6862_v24, 0.0  ;;  %v2206_v55 = vmin.f32 %v6910_v50, 0.0  ;;  %v4541_v46 = vadd.f32 -1.0, %v4997_v58  ;;  %v4773_v10 = vld [vmem:[#allocation5 + $0x174] sm:$0xf0] }
 0x1a3   :  { %v5001_v34 = vpop.eup %5000  ;;  %v2207_v60 = vmin.f32 %v6920_v2, 0.0  ;;  %v6926_v27 = vadd.f32 %v6626_v45, %v1598_v49  ;;  %v1599_v3 = vmul.f32 %v6637_v26, %v1024_v38  ;;  %v6930_v48 = vadd.f32 %v3189_v62, %v6811_v4  ;;  %v4761_v49 = vld [vmem:[#allocation5 + $0x11c] sm:$0xf] }
 0x1a4   :  { %v5003_v59 = vpop.eup %5002  ;;  %v2950_v28 = vsel %vm1990_vm7, %v6858_v32, %v4564_v14  ;;  %v4565_v30 = vadd.f32 -1.0, %v5001_v34  ;;  %v2480_v19 = vmul.f32 1.442695, %v2206_v55  ;;  %v2926_v31 = vsel %vm1966_vm5, %v6788_v16, %v4540_v1  ;;  %v4214_v38 = vld [vmem:[#allocation5 + $0x178] sm:$0xf0]  ;;  %v1053_v14 = vpop.f32.mrf.mxu2 }
 0x1a5   :  { %v3190_v39 = vmul.f32 %v3166_v61, %v2950_v28  ;;  %vm2012_vm9 = vcmp.gt.f32.partialorder %v6868_v6, 0.0  ;;  %v4586_v42 = vadd.f32 -1.0, %v5003_v59  ;;  %v3429_v63 = vperm.slane %v6722_v9, 3  ;;  %v1082_v34 = vpop.f32.mrf.mxu3  ;;  %v1026_v59 = vpop.f32.mrf.mxu1 }
 0x1a6   :  { %v2951_v4 = vsel %vm1991_vm8, %v6862_v24, %v4565_v30  ;;  %v2228_v32 = vmin.f32 %v6926_v27, 0.0  ;;  %v6947_v57 = vadd.f32 %v6644_v22, %v1599_v3  ;;  %v2927_v61 = vsel %vm1967_vm6, %v6820_v11, %v4541_v46  ;;  %v997_v46 = vpop.f32.mrf.mxu0 }
 0x1a7   :  { %v5005_v16 = vpop.eup %5004  ;;  %v6953_v58 = vadd.f32 %v3190_v39, %v6825_v29  ;;  %v3191_v24 = vmul.f32 %v3167_v56, %v2951_v4  ;;  %v2482_v1 = vmul.f32 1.442695, %v2207_v60  ;;  %v6959_v41 = vmul.f32 %v3382_v43, %v2926_v31 }
 0x1a8   :  { %v4587_v33 = vadd.f32 -1.0, %v5005_v16  ;;  %5006 = vpow2.f32 %v2480_v19  ;;  %v2524_v62 = vmul.f32 1.442695, %v2228_v32  ;;  %v2972_v11 = vsel %vm2012_vm9, %v6868_v6, %v4586_v42 }
 0x1a9   :  { %v6962_v55 = vadd.f32 %v3191_v24, %v6877_v0  ;;  %v2229_v29 = vmin.f32 %v6947_v57, 0.0  ;;  %v4213_v56 = vor.u32 %v4773_v10, %v4212_v40  ;;  %v6970_v43 = vmul.f32 %v3383_v53, %v2927_v61  ;;  %v4204_v40 = vld [vmem:[#allocation5 + $0x110] sm:$0xf] }
 0x1aa   :  { %vm2013_vm10 = vcmp.gt.f32.partialorder %v6884_v44, 0.0  ;;  %5008 = vpow2.f32 %v2524_v62  ;;  %v4217_v60 = vor.u32 %v4761_v49, %v4214_v38  ;;  %v3430_v0 = vperm.slane %v6743_v54, 3  ;;  %v4772_v61 = vld [vmem:[#allocation5 + $0x16c] sm:$0xf0] }
 0x1ab   :  { %5010 = vpow2.f32 %v2482_v1  ;;  %v2526_v3 = vmul.f32 1.442695, %v2229_v29  ;;  %1388 = vmatpush.bf16.msrb.mxu2 %v4213_v56  ;;  %v1600_v6 = vmul.f32 %v6647_v20, %v1053_v14  ;;  %v3452_v28 = vmul.f32 %v3428_v47, %v2972_v11 }
 0x1ac   :  { %v2973_v30 = vsel %vm2013_vm10, %v6884_v44, %v4587_v33  ;;  %1417 = vmatpush.bf16.msrb.mxu3 %v4217_v60  ;;  %v1601_v53 = vmul.f32 %v6694_v37, %v1082_v34  ;;  %v1622_v19 = vmul.f32 %v6620_v21, %v997_v46  ;;  %v3431_v31 = vperm.slane %v6764_v36, 3 }
 0x1ad   :  { %v3236_v39 = vperm.slane %v6714_v52, 4  ;;  %5012 = vpow2.f32 %v2526_v3  ;;  %v6983_v42 = vadd.f32 %v6667_v12, %v1600_v6  ;;  %vm2014_vm11 = vcmp.gt.f32.partialorder %v6910_v50, 0.0  ;;  %v4206_v3 = vld [vmem:[#allocation5 + $0x170] sm:$0xf0]  ;;  %v1055_v6 = vpop.f32.mrf.mxu2 }
 0x1ae   :  { %v5007_v4 = vpop.eup %5006  ;;  %v6987_v47 = vadd.f32 %v6697_v15, %v1601_v53  ;;  %v6990_v44 = vadd.f32 %v6626_v45, %v1622_v19  ;;  %v1623_v32 = vmul.f32 %v6637_v26, %v1026_v59  ;;  %v3453_v10 = vmul.f32 %v3429_v63, %v2973_v30  ;;  %v4760_v63 = vld [vmem:[#allocation5 + $0x114] sm:$0xf] }
 0x1af   :  { %vm2036_vm12 = vcmp.gt.f32.partialorder %v6926_v27, 0.0  ;;  %vm2037_vm13 = vcmp.gt.f32.partialorder %v6947_v57, 0.0  ;;  %v2230_v16 = vmin.f32 %v6983_v42, 0.0  ;;  %v6997_v1 = vadd.f32 %v3452_v28, %v6872_v17 }
 0x1b0   :  { %v5009_v24 = vpop.eup %5008  ;;  %vm2015_vm14 = vcmp.gt.f32.partialorder %v6920_v2, 0.0  ;;  %v3237_v49 = vperm.slane %v6722_v9, 4  ;;  %v3238_v38 = vperm.slane %v6743_v54, 4  ;;  %v2231_v33 = vmin.f32 %v6987_v47, 0.0 }
 0x1b1   :  { %v5011_v62 = vpop.eup %5010  ;;  %v4610_v14 = vadd.f32 -1.0, %v5009_v24  ;;  %v2528_v11 = vmul.f32 1.442695, %v2230_v16  ;;  %v4588_v34 = vadd.f32 -1.0, %v5007_v4  ;;  %v2252_v17 = vmin.f32 %v6990_v44, 0.0  ;;  %v1084_v24 = vpop.f32.mrf.mxu3 }
 0x1b2   :  { %v2530_v46 = vmul.f32 1.442695, %v2231_v33  ;;  %v7007_v60 = vadd.f32 %v6644_v22, %v1623_v32  ;;  %v7010_v28 = vadd.f32 %v3453_v10, %v6907_v25  ;;  %v4205_v53 = vor.u32 %v4772_v61, %v4204_v40  ;;  %v1000_v25 = vpop.f32.mrf.mxu0  ;;  %v1029_v10 = vpop.f32.mrf.mxu1 }
 0x1b3   :  { %v5013_v59 = vpop.eup %5012  ;;  %v2996_v30 = vsel %vm2036_vm12, %v6926_v27, %v4610_v14  ;;  %5014 = vpow2.f32 %v2528_v11  ;;  %v2572_v16 = vmul.f32 1.442695, %v2252_v17  ;;  %v4589_v33 = vadd.f32 -1.0, %v5011_v62 }
 0x1b4   :  { %v3260_v19 = vmul.f32 %v3236_v39, %v2996_v30  ;;  %v4611_v4 = vadd.f32 -1.0, %v5013_v59  ;;  %5016 = vpow2.f32 %v2530_v46  ;;  %v2253_v32 = vmin.f32 %v7007_v60, 0.0  ;;  %1330 = vmatpush.bf16.msrb.mxu0 %v4205_v53  ;;  %v4749_v46 = vld [vmem:[#allocation5 + $0xb4] sm:$0xf0] }
 0x1b5   :  { %v4209_v56 = vor.u32 %v4760_v63, %v4206_v3  ;;  %v1624_v29 = vmul.f32 %v6647_v20, %v1055_v6  ;;  %v2974_v27 = vsel %vm2014_vm11, %v6910_v50, %v4588_v34  ;;  %5018 = vpow2.f32 %v2572_v16  ;;  %v4116_v34 = vld [vmem:[#allocation5 + $0x58] sm:$0xf] }
 0x1b6   :  { %v7021_v40 = vadd.f32 %v3260_v19, %v6914_v51  ;;  %v2997_v39 = vsel %vm2037_vm13, %v6947_v57, %v4611_v4  ;;  %v2574_v62 = vmul.f32 1.442695, %v2253_v32  ;;  %v1625_v14 = vmul.f32 %v6694_v37, %v1084_v24  ;;  %v4118_v32 = vld [vmem:[#allocation5 + $0xb8] sm:$0xf0] }
 0x1b7   :  { %v3261_v61 = vmul.f32 %v3237_v49, %v2997_v39  ;;  %1359 = vmatpush.bf16.msrb.mxu1 %v4209_v56  ;;  %v7027_v63 = vadd.f32 %v6667_v12, %v1624_v29  ;;  %vm2038_vm15 = vcmp.gt.f32.partialorder %v6983_v42, 0.0  ;;  %v3501_v50 = vperm.slane %v6722_v9, 5 }
 0x1b8   :  { %v1646_v51 = vmul.f32 %v6620_v21, %v1000_v25  ;;  %v1647_v11 = vmul.f32 %v6637_v26, %v1029_v10  ;;  %v2975_v49 = vsel %vm2015_vm14, %v6920_v2, %v4589_v33  ;;  %5020 = vpow2.f32 %v2574_v62  ;;  %v4737_v33 = vld [vmem:[#allocation5 + $0x5c] sm:$0xf]  ;;  %v1058_v62 = vpop.f32.mrf.mxu2 }
 0x1b9   :  { %v5015_v57 = vpop.eup %5014  ;;  %v7038_v29 = vadd.f32 %v3261_v61, %v6930_v48  ;;  %v2254_v56 = vmin.f32 %v7027_v63, 0.0  ;;  %v3454_v3 = vmul.f32 %v3430_v0, %v2974_v27  ;;  %v7044_v59 = vadd.f32 %v6697_v15, %v1625_v14 }
 0x1ba   :  { %v5017_v17 = vpop.eup %5016  ;;  %v4612_v6 = vadd.f32 -1.0, %v5015_v57  ;;  %v7047_v30 = vadd.f32 %v6626_v45, %v1646_v51  ;;  %v7050_v2 = vadd.f32 %v6644_v22, %v1647_v11  ;;  %v4117_v48 = vor.u32 %v4749_v46, %v4116_v34  ;;  %v1087_v34 = vpop.f32.mrf.mxu3 }
 0x1bb   :  { %v4613_v53 = vadd.f32 -1.0, %v5017_v17  ;;  %v2576_v19 = vmul.f32 1.442695, %v2254_v56  ;;  %v5019_v4 = vpop.eup %5018  ;;  %v3455_v16 = vmul.f32 %v3431_v31, %v2975_v49  ;;  %vm2039_vm1 = vcmp.gt.f32.partialorder %v6987_v47, 0.0  ;;  %v1002_v56 = vpop.f32.mrf.mxu0  ;;  %v7080_v17 = vld [vmem:[#allocation2] sm:$0xff] }
 0x1bc   :  { %v2998_v0 = vsel %vm2038_vm15, %v6983_v42, %v4612_v6  ;;  %v2255_v24 = vmin.f32 %v7044_v59, 0.0  ;;  %v4634_v27 = vadd.f32 -1.0, %v5019_v4  ;;  %1389 = vmatpush.bf16.msrb.mxu2 %v4117_v48  ;;  %v8597_v31 = vperm.slane %v6764_v36, 4 }
 0x1bd   :  { %v3262_v25 = vmul.f32 %v3238_v38, %v2998_v0  ;;  %v2999_v10 = vsel %vm2039_vm1, %v6987_v47, %v4613_v53  ;;  %5022 = vpow2.f32 %v2576_v19  ;;  %vm2060_vm2 = vcmp.gt.f32.partialorder %v6990_v44, 0.0 }
 0x1be   :  { %v3263_v39 = vmul.f32 %v8597_v31, %v2999_v10  ;;  %v2578_v42 = vmul.f32 1.442695, %v2255_v24  ;;  %v2276_v61 = vmin.f32 %v7047_v30, 0.0  ;;  %v5021_v14 = vpop.eup %5020  ;;  %v7067_v51 = vadd.f32 %v3454_v3, %v6959_v41 }
 0x1bf   :  { %v7070_v38 = vadd.f32 %v3262_v25, %v6953_v58  ;;  %v2277_v47 = vmin.f32 %v7050_v2, 0.0  ;;  %v4121_v11 = vor.u32 %v4737_v33, %v4118_v32  ;;  %v7074_v46 = vadd.f32 %v3455_v16, %v6970_v43  ;;  %4498 = vmatmul.msk.bf16.vlgmr.msrb.gmra.mxu2 %vm731_vm0, %v7080_v17  ;;  %v1031_v25 = vpop.f32.mrf.mxu1 }
 0x1c0   :  { %v7077_v57 = vadd.f32 %v3263_v39, %v6962_v55  ;;  %vm2061_vm3 = vcmp.gt.f32.partialorder %v7007_v60, 0.0  ;;  %v4635_v49 = vadd.f32 -1.0, %v5021_v14  ;;  %v3020_v58 = vsel %vm2060_vm2, %v6990_v44, %v4634_v27 }
 0x1c1   :  { %v2620_v41 = vmul.f32 1.442695, %v2276_v61  ;;  %v2622_v3 = vmul.f32 1.442695, %v2277_v47  ;;  %1418 = vmatpush.bf16.msrb.mxu3 %v4121_v11  ;;  %v1648_v43 = vmul.f32 %v6647_v20, %v1058_v62  ;;  %v3502_v6 = vperm.slane %v6743_v54, 5 }
 0x1c2   :  { %v3021_v55 = vsel %vm2061_vm3, %v7007_v60, %v4635_v49  ;;  %5024 = vpow2.f32 %v2578_v42  ;;  %v1649_v53 = vmul.f32 %v6694_v37, %v1087_v34  ;;  %v3503_v48 = vperm.slane %v6764_v36, 5 }
 0x1c3   :  { %v5023_v19 = vpop.eup %5022  ;;  %5026 = vpow2.f32 %v2620_v41  ;;  %v7093_v4 = vadd.f32 %v6667_v12, %v1648_v43  ;;  %v1670_v44 = vmul.f32 %v6620_v21, %v1002_v56  ;;  %v8598_v16 = vperm.slane %v6714_v52, 5  ;;  %v4108_v56 = vld [vmem:[#allocation5 + $0x50] sm:$0xf] }
 0x1c4   :  { %v3308_v24 = vperm.slane %v6714_v52, 6  ;;  %5028 = vpow2.f32 %v2622_v3  ;;  %v7100_v60 = vadd.f32 %v6697_v15, %v1649_v53  ;;  %4502 = vmatmul.msk.bf16.vlgmr.msrb.gmra.mxu3 %vm731_vm0, %v7080_v17  ;;  %v3525_v33 = vmul.f32 %v3501_v50, %v3021_v55 }
 0x1c5   :  { %v3524_v0 = vmul.f32 %v8598_v16, %v3020_v58  ;;  %vm2062_vm4 = vcmp.gt.f32.partialorder %v7027_v63, 0.0  ;;  %v2278_v32 = vmin.f32 %v7093_v4, 0.0  ;;  %v7109_v21 = vadd.f32 %v6626_v45, %v1670_v44  ;;  %v4748_v58 = vld [vmem:[#allocation5 + $0xac] sm:$0xf0]  ;;  %v4110_v44 = vld [vmem:[#allocation5 + $0xb0] sm:$0xf0]  ;;  %v1060_v16 = vpop.f32.mrf.mxu2 }
 0x1c6   :  { %v4636_v10 = vadd.f32 -1.0, %v5023_v19  ;;  %vm2063_vm5 = vcmp.gt.f32.partialorder %v7044_v59, 0.0  ;;  %v3309_v27 = vperm.slane %v6722_v9, 6  ;;  %v2279_v31 = vmin.f32 %v7100_v60, 0.0 }
 0x1c7   :  { %vm2084_vm6 = vcmp.gt.f32.partialorder %v7047_v30, 0.0  ;;  %vm2085_vm7 = vcmp.gt.f32.partialorder %v7050_v2, 0.0  ;;  %v2624_v50 = vmul.f32 1.442695, %v2278_v32  ;;  %v3310_v39 = vperm.slane %v6743_v54, 6 }
 0x1c8   :  { %v5025_v42 = vpop.eup %5024  ;;  %v7118_v61 = vadd.f32 %v3524_v0, %v6997_v1  ;;  %v2626_v45 = vmul.f32 1.442695, %v2279_v31  ;;  %v2300_v62 = vmin.f32 %v7109_v21, 0.0  ;;  %v1671_v14 = vmul.f32 %v6637_v26, %v1031_v25  ;;  %v4736_v26 = vld [vmem:[#allocation5 + $0x54] sm:$0xf] }
 0x1c9   :  { %v5027_v47 = vpop.eup %5026  ;;  %v7123_v11 = vadd.f32 %v3525_v33, %v7010_v28  ;;  %5030 = vpow2.f32 %v2624_v50  ;;  %v3311_v34 = vperm.slane %v6764_v36, 6  ;;  %v3572_v49 = vperm.slane %v6714_v52, 7  ;;  %v7131_v28 = vld [vmem:[#allocation11 + $0x8] sm:$0xff] }
 0x1ca   :  { %v5029_v41 = vpop.eup %5028  ;;  %v3022_v1 = vsel %vm2062_vm4, %v7027_v63, %v4636_v10  ;;  %v4658_v3 = vadd.f32 -1.0, %v5027_v47  ;;  %5032 = vpow2.f32 %v2626_v45  ;;  %v2668_v43 = vmul.f32 1.442695, %v2300_v62 }
 0x1cb   :  { %v4637_v55 = vadd.f32 -1.0, %v5025_v42  ;;  %v4659_v53 = vadd.f32 -1.0, %v5029_v41  ;;  %vm2086_vm8 = vcmp.gt.f32.partialorder %v7093_v4, 0.0  ;;  %v7134_v19 = vadd.f32 %v6644_v22, %v1671_v14  ;;  %v1089_v22 = vpop.f32.mrf.mxu3  ;;  %v7145_v42 = vld [vmem:[#allocation13 + $0x8] sm:$0xff] }
 0x1cc   :  { %v3044_v0 = vsel %vm2084_vm6, %v7047_v30, %v4658_v3  ;;  %vm2087_vm9 = vcmp.gt.f32.partialorder %v7100_v60, 0.0  ;;  %5034 = vpow2.f32 %v2668_v43  ;;  %v4109_v63 = vor.u32 %v4748_v58, %v4108_v56  ;;  %v7160_v58 = vld [vmem:[#allocation2 + $0x8] sm:$0xff] }
 0x1cd   :  { %v3526_v33 = vmul.f32 %v3502_v6, %v3022_v1  ;;  %v3332_v32 = vmul.f32 %v3308_v24, %v3044_v0  ;;  %v3045_v25 = vsel %vm2085_vm7, %v7050_v2, %v4659_v53  ;;  %v2301_v10 = vmin.f32 %v7134_v19, 0.0 }
 0x1ce   :  { %v3333_v31 = vmul.f32 %v3309_v27, %v3045_v25  ;;  %v3674_v50 = vperm.slane %v7131_v28, 0  ;;  %1331 = vmatpush.bf16.msrb.mxu0 %v4109_v63  ;;  %v4113_v30 = vor.u32 %v4736_v26, %v4110_v44  ;;  %v1672_v45 = vmul.f32 %v6647_v20, %v1060_v16  ;;  %v1101_v44 = vpop.f32.mrf.mxu0 }
 0x1cf   :  { %v5031_v62 = vpop.eup %5030  ;;  %v3023_v6 = vsel %vm2063_vm5, %v7044_v59, %v4637_v55  ;;  %v3356_v24 = vadd.f32 %v3332_v32, %v7021_v40  ;;  %vm2108_vm10 = vcmp.gt.f32.partialorder %v7109_v21, 0.0  ;;  %v2670_v2 = vmul.f32 1.442695, %v2301_v10  ;;  %4499 = vmatmul.msk.bf16.gmra.mxu2 %vm731_vm0, %v7160_v58 }
 0x1d0   :  { %v5033_v14 = vpop.eup %5032  ;;  %v7154_v27 = vadd.f32 %v3333_v31, %v7038_v29  ;;  %v4660_v47 = vadd.f32 -1.0, %v5031_v62  ;;  %1360 = vmatpush.bf16.msrb.mxu1 %v4113_v30  ;;  %v7157_v56 = vadd.f32 %v6667_v12, %v1672_v45  ;;  %v1673_v20 = vmul.f32 %v6694_v37, %v1089_v22  ;;  %v1159_v45 = vpop.f32.mrf.mxu2 }
 0x1d1   :  { %v7165_v40 = vadd.f32 %v3526_v33, %v7067_v51  ;;  %v4661_v59 = vadd.f32 -1.0, %v5033_v14  ;;  %v3752_v41 = vperm.slane %v7145_v42, 0  ;;  %5036 = vpow2.f32 %v2670_v2  ;;  %4490 = vmatmul.msk.bf16.vlgmr.msrb.gmra.mxu0 %vm731_vm0, %v7080_v17 }
 0x1d2   :  { %v5035_v29 = vpop.eup %5034  ;;  %v3046_v12 = vsel %vm2086_vm8, %v7093_v4, %v4660_v47  ;;  %v3573_v37 = vperm.slane %v6722_v9, 7  ;;  %v2302_v1 = vmin.f32 %v7157_v56, 0.0  ;;  %v7176_v3 = vadd.f32 %v6697_v15, %v1673_v20 }
 0x1d3   :  { %v3527_v51 = vmul.f32 %v3503_v48, %v3023_v6  ;;  %v3334_v43 = vmul.f32 %v3310_v39, %v3046_v12  ;;  %v3047_v26 = vsel %vm2087_vm9, %v7100_v60, %v4661_v59  ;;  %v4682_v55 = vadd.f32 -1.0, %v5035_v29  ;;  %4494 = vmatmul.msk.bf16.vlgmr.msrb.gmra.mxu1 %vm731_vm0, %v7080_v17  ;;  %v5280_v39 = vld [vmem:[#allocation7 + $0x8] sm:$0xff]  ;;  %v5281_v17 = vld [vmem:[#allocation8 + $0x8] sm:$0xff]  ;;  %v1188_v6 = vpop.f32.mrf.mxu3 }
 0x1d4   :  { %v3335_v9 = vmul.f32 %v3311_v34, %v3047_v26  ;;  %v3675_v4 = vperm.slane %v7131_v28, 1  ;;  %v2672_v53 = vmul.f32 1.442695, %v2302_v1  ;;  %v2303_v15 = vmin.f32 %v7176_v3, 0.0  ;;  %4503 = vmatmul.msk.bf16.gmra.mxu3 %vm731_vm0, %v7160_v58 }
 0x1d5   :  { %v7192_v48 = vadd.f32 %v3334_v43, %v7070_v38  ;;  %v3068_v60 = vsel %vm2108_vm10, %v7109_v21, %v4682_v55  ;;  %v7197_v16 = vperm.slane %v5280_v39, 4  ;;  %v7199_v34 = vperm.slane %v5281_v17, 4  ;;  %v1130_v38 = vpop.f32.mrf.mxu1 }
 0x1d6   :  { %v7202_v0 = vadd.f32 %v3335_v9, %v7077_v57  ;;  %v3596_v63 = vmul.f32 %v3572_v49, %v3068_v60  ;;  %5038 = vpow2.f32 %v2672_v53  ;;  %v2674_v33 = vmul.f32 1.442695, %v2303_v15 }
 0x1d7   :  { %v5037_v32 = vpop.eup %5036  ;;  %v3753_v25 = vperm.slane %v7145_v42, 1  ;;  %v1506_v21 = vmul.f32 %v7197_v16, %v1101_v44  ;;  %v7208_v10 = vperm.slane %v5280_v39, 5  ;;  %v7210_v22 = vperm.slane %v5281_v17, 5 }
 0x1d8   :  { %v3551_v31 = vadd.f32 %v3527_v51, %v7074_v46  ;;  %v3620_v57 = vadd.f32 %v3596_v63, %v7118_v61  ;;  %v4683_v30 = vadd.f32 -1.0, %v5037_v32  ;;  %5040 = vpow2.f32 %v2674_v33 }
 0x1d9   :  { %vm2109_vm11 = vcmp.gt.f32.partialorder %v7134_v19, 0.0  ;;  %v7216_v52 = vadd.f32 %v7199_v34, %v1506_v21  ;;  %v1507_v49 = vmul.f32 %v7208_v10, %v1130_v38  ;;  %v7219_v62 = vperm.slane %v5280_v39, 6 }
 0x1da   :  { %v3644_v2 = vadd.f32 %v3620_v57, %v3356_v24  ;;  %v3069_v14 = vsel %vm2109_vm11, %v7134_v19, %v4683_v30  ;;  %v7222_v47 = vperm.slane %v5281_v17, 6  ;;  %v7224_v46 = vperm.slane %v5280_v39, 7 }
 0x1db   :  { %v3597_v61 = vmul.f32 %v3573_v37, %v3069_v14  ;;  %v3574_v20 = vperm.slane %v6743_v54, 7  ;;  %v2136_v59 = vmin.f32 %v7216_v52, 0.0  ;;  %v7229_v29 = vadd.f32 %v7210_v22, %v1507_v49 }
 0x1dc   :  { %v5039_v12 = vpop.eup %5038  ;;  %vm3821_vm12 = vcmp.gt.f32.partialorder %v6690_v23, 0.0  ;;  %v3722_v24 = vmul.f32 %v3674_v50, %v3644_v2  ;;  %v1508_v19 = vmul.f32 %v7219_v62, %v1159_v45  ;;  %v1509_v1 = vmul.f32 %v7224_v46, %v1188_v6  ;;  %v1103_v45 = vpop.f32.mrf.mxu0 }
 0x1dd   :  { %v7236_v51 = vperm.slane %v5281_v17, 7  ;;  %v3621_v37 = vadd.f32 %v3597_v61, %v7123_v11  ;;  %v4684_v54 = vadd.f32 -1.0, %v5039_v12  ;;  %v3575_v43 = vperm.slane %v6764_v36, 7  ;;  %v1132_v14 = vpop.f32.mrf.mxu1 }
 0x1de   :  { %v2340_v26 = vmul.f32 1.442695, %v2136_v59  ;;  %v5041_v55 = vpop.eup %5040  ;;  %v7242_v9 = vadd.f32 %v3752_v41, %v3722_v24  ;;  %vm2110_vm13 = vcmp.gt.f32.partialorder %v7157_v56, 0.0  ;;  %v2137_v50 = vmin.f32 %v7229_v29, 0.0  ;;  %v7256_v41 = vld [vmem:[#allocation2 + $0x10] sm:$0xff]  ;;  %v7289_v59 = vld [vmem:[#allocation10 + $0x68] sm:$0xff] }
 0x1df   :  { %v7247_v53 = vadd.f32 %v7222_v47, %v1508_v19  ;;  %v3645_v15 = vadd.f32 %v3621_v37, %v7154_v27  ;;  %v3070_v11 = vsel %vm2110_vm13, %v7157_v56, %v4684_v54  ;;  %v4685_v44 = vadd.f32 -1.0, %v5041_v55  ;;  %4500 = vmatmul.msk.bf16.gmra.mxu2 %vm731_vm0, %v7256_v41 }
 0x1e0   :  { %v7252_v36 = vadd.f32 %v7236_v51, %v1509_v1  ;;  %v3848_v60 = vmin.f32 %v7242_v9, 0.0  ;;  %v3598_v39 = vmul.f32 %v3574_v20, %v3070_v11  ;;  %vm2111_vm14 = vcmp.gt.f32.partialorder %v7176_v3, 0.0 }
 0x1e1   :  { %5042 = vpow2.f32 %v2340_v26  ;;  %v3723_v27 = vmul.f32 %v3675_v4, %v3645_v15  ;;  %v3676_v56 = vperm.slane %v7131_v28, 2  ;;  %v3071_v17 = vsel %vm2111_vm14, %v7176_v3, %v4685_v44  ;;  %4491 = vmatmul.msk.bf16.gmra.mxu0 %vm731_vm0, %v7160_v58 }
 0x1e2   :  { %v2138_v63 = vmin.f32 %v7247_v53, 0.0  ;;  %v3880_v33 = vmul.f32 1.442695, %v3848_v60  ;;  %v3622_v38 = vadd.f32 %v3598_v39, %v7165_v40  ;;  %v3599_v32 = vmul.f32 %v3575_v43, %v3071_v17  ;;  %v7276_v40 = vld [vmem:[#allocation10 + $0x60] sm:$0xff]  ;;  %v7312_v60 = vld [vmem:[#allocation10 + $0x78] sm:$0xff] }
 0x1e3   :  { %v2342_v21 = vmul.f32 1.442695, %v2137_v50  ;;  %v7268_v57 = vadd.f32 %v3753_v25, %v3723_v27  ;;  %v3754_v30 = vperm.slane %v7145_v42, 2  ;;  %v2139_v4 = vmin.f32 %v7252_v36, 0.0  ;;  %4495 = vmatmul.msk.bf16.gmra.mxu1 %vm731_vm0, %v7160_v58 }
 0x1e4   :  { %v2344_v49 = vmul.f32 1.442695, %v2138_v63  ;;  %5044 = vpow2.f32 %v3880_v33  ;;  %v3646_v3 = vadd.f32 %v3622_v38, %v7192_v48  ;;  %v3623_v6 = vadd.f32 %v3599_v32, %v3551_v31  ;;  %4504 = vmatmul.msk.bf16.gmra.mxu3 %vm731_vm0, %v7256_v41 }
 0x1e5   :  { %v3677_v2 = vperm.slane %v7131_v28, 3  ;;  %v7284_v25 = vsel %vm3821_vm12, %v6690_v23, %v6817_v5  ;;  %v3849_v58 = vmin.f32 %v7268_v57, 0.0  ;;  %v3755_v61 = vperm.slane %v7145_v42, 3  ;;  %v7293_v23 = vld [vmem:[#allocation10 + $0x70] sm:$0xff] }
 0x1e6   :  { %v2346_v48 = vmul.f32 1.442695, %v2139_v4  ;;  %v3724_v20 = vmul.f32 %v3676_v56, %v3646_v3  ;;  %v3647_v28 = vadd.f32 %v3623_v6, %v7202_v0  ;;  %5046 = vpow2.f32 %v2342_v21  ;;  %v1161_v0 = vpop.f32.mrf.mxu2 }
 0x1e7   :  { %v5043_v31 = vpop.eup %5042  ;;  %v1530_v12 = vmul.f32 %v7197_v16, %v1103_v45  ;;  %v3882_v24 = vmul.f32 1.442695, %v3849_v58  ;;  %v3120_v19 = vperm.slane %v7276_v40, 0  ;;  %5048 = vpow2.f32 %v2344_v49 }
 0x1e8   :  { %v1531_v5 = vmul.f32 %v7208_v10, %v1132_v14  ;;  %v7296_v1 = vadd.f32 %v3754_v30, %v3724_v20  ;;  %v3725_v42 = vmul.f32 %v3677_v2, %v3647_v28  ;;  %5050 = vpow2.f32 %v2346_v48  ;;  %v1106_v14 = vpop.f32.mrf.mxu0  ;;  %v7329_v48 = vld [vmem:[#allocation2 + $0x18] sm:$0xff] }
 0x1e9   :  { %v7299_v37 = vadd.f32 %v7199_v34, %v1530_v12  ;;  %5052 = vpow2.f32 %v3882_v24  ;;  %v4518_v54 = vadd.f32 -1.0, %v5043_v31  ;;  %v3121_v43 = vperm.slane %v7289_v59, 0 }
 0x1ea   :  { %v7303_v26 = vadd.f32 %v7210_v22, %v1531_v5  ;;  %v5045_v55 = vpop.eup %5044  ;;  %v3850_v50 = vmin.f32 %v7296_v1, 0.0  ;;  %v7306_v15 = vadd.f32 %v3755_v61, %v3725_v42  ;;  %vm1944_vm15 = vcmp.gt.f32.partialorder %v7216_v52, 0.0 }
 0x1eb   :  { %v3122_v11 = vperm.slane %v7293_v23, 0  ;;  %vm3824_vm1 = vcmp.gt.f32.partialorder %v7242_v9, 0.0  ;;  %v4706_v44 = vadd.f32 -1.0, %v5045_v55  ;;  %vm1945_vm2 = vcmp.gt.f32.partialorder %v7229_v29, 0.0 }
 0x1ec   :  { %v2160_v39 = vmin.f32 %v7299_v37, 0.0  ;;  %v5047_v27 = vpop.eup %5046  ;;  %v3884_v56 = vmul.f32 1.442695, %v3850_v50  ;;  %v3851_v17 = vmin.f32 %v7306_v15, 0.0  ;;  %vm1946_vm3 = vcmp.gt.f32.partialorder %v7247_v53, 0.0 }
 0x1ed   :  { %vm1947_vm4 = vcmp.gt.f32.partialorder %v7252_v36, 0.0  ;;  %v5049_v63 = vpop.eup %5048  ;;  %v3944_v33 = vsel %vm3824_vm1, %v7242_v9, %v4706_v44  ;;  %v2904_v38 = vsel %vm1944_vm15, %v7216_v52, %v4518_v54  ;;  %v2161_v21 = vmin.f32 %v7303_v26, 0.0  ;;  %v1190_v9 = vpop.f32.mrf.mxu3 }
 0x1ee   :  { %v2388_v32 = vmul.f32 1.442695, %v2160_v39  ;;  %v5051_v30 = vpop.eup %5050  ;;  %v7322_v49 = vadd.f32 %v3944_v33, %v6752_v8  ;;  %5054 = vpow2.f32 %v3884_v56  ;;  %v3886_v4 = vmul.f32 1.442695, %v3851_v17  ;;  %v1135_v8 = vpop.f32.mrf.mxu1 }
 0x1ef   :  { %v3123_v45 = vperm.slane %v7312_v60, 0  ;;  %v5053_v3 = vpop.eup %5052  ;;  %vm3825_vm5 = vcmp.gt.f32.partialorder %v7268_v57, 0.0  ;;  %v4519_v6 = vadd.f32 -1.0, %v5047_v27  ;;  %v2390_v2 = vmul.f32 1.442695, %v2161_v21  ;;  %4501 = vmatmul.msk.bf16.gmra.mxu2 %vm731_vm0, %v7329_v48  ;;  %v1164_v5 = vpop.f32.mrf.mxu2 }
 0x1f0   :  { %5056 = vpow2.f32 %v2388_v32  ;;  %v4707_v52 = vadd.f32 -1.0, %v5053_v3  ;;  %v7326_v58 = vmul.f32 %v3120_v19, %v2904_v38  ;;  %v3384_v61 = vperm.slane %v7276_v40, 1 }
 0x1f1   :  { %5058 = vpow2.f32 %v3886_v4  ;;  %v4520_v31 = vadd.f32 -1.0, %v5049_v63  ;;  %v4521_v20 = vadd.f32 -1.0, %v5051_v30  ;;  %v1532_v28 = vmul.f32 %v7219_v62, %v1161_v0  ;;  %4492 = vmatmul.msk.bf16.gmra.mxu0 %vm731_vm0, %v7256_v41 }
 0x1f2   :  { %5060 = vpow2.f32 %v2390_v2  ;;  %v3945_v12 = vsel %vm3825_vm5, %v7268_v57, %v4707_v52  ;;  %vm3826_vm6 = vcmp.gt.f32.partialorder %v7296_v1, 0.0  ;;  %v1533_v24 = vmul.f32 %v7224_v46, %v1190_v9 }
 0x1f3   :  { %v1554_v19 = vmul.f32 %v7197_v16, %v1106_v14  ;;  %v7343_v42 = vadd.f32 %v3945_v12, %v6757_v13  ;;  %v2905_v0 = vsel %vm1945_vm2, %v7229_v29, %v4519_v6  ;;  %v7349_v54 = vadd.f32 %v7222_v47, %v1532_v28  ;;  %4496 = vmatmul.msk.bf16.gmra.mxu1 %vm731_vm0, %v7256_v41 }
 0x1f4   :  { %v1555_v55 = vmul.f32 %v7208_v10, %v1135_v8  ;;  %v5055_v57 = vpop.eup %5054  ;;  %vm3827_vm7 = vcmp.gt.f32.partialorder %v7306_v15, 0.0  ;;  %vm1968_vm8 = vcmp.gt.f32.partialorder %v7299_v37, 0.0  ;;  %vm1969_vm9 = vcmp.gt.f32.partialorder %v7303_v26, 0.0  ;;  %4505 = vmatmul.msk.bf16.gmra.mxu3 %vm731_vm0, %v7329_v48  ;;  %v1108_v8 = vpop.f32.mrf.mxu0 }
 0x1f5   :  { %v7358_v13 = vadd.f32 %v7236_v51, %v1533_v24  ;;  %v7361_v29 = vadd.f32 %v7199_v34, %v1554_v19  ;;  %v4708_v44 = vadd.f32 -1.0, %v5055_v57  ;;  %v2906_v41 = vsel %vm1946_vm3, %v7247_v53, %v4520_v31  ;;  %v1193_v52 = vpop.f32.mrf.mxu3 }
 0x1f6   :  { %v5057_v50 = vpop.eup %5056  ;;  %v2907_v39 = vsel %vm1947_vm4, %v7252_v36, %v4521_v20  ;;  %v2162_v27 = vmin.f32 %v7349_v54, 0.0  ;;  %v7374_v17 = vmul.f32 %v3121_v43, %v2905_v0  ;;  %v3385_v63 = vperm.slane %v7289_v59, 1  ;;  %v1137_v12 = vpop.f32.mrf.mxu1 }
 0x1f7   :  { %v5059_v56 = vpop.eup %5058  ;;  %v2163_v33 = vmin.f32 %v7358_v13, 0.0  ;;  %v1556_v38 = vmul.f32 %v7219_v62, %v1164_v5  ;;  %v3946_v53 = vsel %vm3826_vm6, %v7296_v1, %v4708_v44  ;;  %v2184_v36 = vmin.f32 %v7361_v29, 0.0  ;;  %v1166_v5 = vpop.f32.mrf.mxu2 }
 0x1f8   :  { %v5061_v32 = vpop.eup %5060  ;;  %v4709_v21 = vadd.f32 -1.0, %v5059_v56  ;;  %v7384_v30 = vadd.f32 %v7210_v22, %v1555_v55  ;;  %v7387_v43 = vadd.f32 %v3946_v53, %v6807_v7  ;;  %v7391_v4 = vmul.f32 %v3122_v11, %v2906_v41 }
 0x1f9   :  { %v7393_v3 = vmul.f32 %v3123_v45, %v2907_v39  ;;  %v2392_v6 = vmul.f32 1.442695, %v2162_v27  ;;  %v4542_v2 = vadd.f32 -1.0, %v5057_v50  ;;  %v4543_v9 = vadd.f32 -1.0, %v5061_v32 }
 0x1fa   :  { %v3947_v1 = vsel %vm3827_vm7, %v7306_v15, %v4709_v21  ;;  %v2436_v14 = vmul.f32 1.442695, %v2184_v36  ;;  %v3386_v7 = vperm.slane %v7293_v23, 1  ;;  %v2394_v20 = vmul.f32 1.442695, %v2163_v33 }
 0x1fb   :  { %v7399_v31 = vadd.f32 %v3947_v1, %v7284_v25  ;;  %v3387_v11 = vperm.slane %v7312_v60, 1  ;;  %v3168_v45 = vperm.slane %v7276_v40, 2  ;;  %v2185_v28 = vmin.f32 %v7384_v30, 0.0 }
 0x1fc   :  { %5062 = vpow2.f32 %v2436_v14  ;;  %v7406_v15 = vadd.f32 %v7222_v47, %v1556_v38  ;;  %v3169_v24 = vperm.slane %v7289_v59, 2  ;;  %v1557_v25 = vmul.f32 %v7224_v46, %v1193_v52 }
 0x1fd   :  { %5064 = vpow2.f32 %v2392_v6  ;;  %v1578_v19 = vmul.f32 %v7197_v16, %v1108_v8  ;;  %v2928_v0 = vsel %vm1968_vm8, %v7299_v37, %v4542_v2  ;;  %v2929_v55 = vsel %vm1969_vm9, %v7303_v26, %v4543_v9  ;;  %v1195_v52 = vpop.f32.mrf.mxu3 }
 0x1fe   :  { %v2438_v57 = vmul.f32 1.442695, %v2185_v28  ;;  %v2186_v50 = vmin.f32 %v7406_v15, 0.0  ;;  %5066 = vpow2.f32 %v2394_v20  ;;  %v7419_v44 = vadd.f32 %v7236_v51, %v1557_v25  ;;  %v1111_v25 = vpop.f32.mrf.mxu0 }
 0x1ff   :  { %v7422_v41 = vadd.f32 %v7199_v34, %v1578_v19  ;;  %v1579_v39 = vmul.f32 %v7208_v10, %v1137_v12  ;;  %vm1992_vm10 = vcmp.gt.f32.partialorder %v7361_v29, 0.0  ;;  %v1580_v27 = vmul.f32 %v7219_v62, %v1166_v5 }
 0x200   :  { %5068 = vpow2.f32 %v2438_v57  ;;  %v2440_v37 = vmul.f32 1.442695, %v2186_v50  ;;  %v7429_v26 = vmul.f32 %v3384_v61, %v2928_v0  ;;  %v7431_v56 = vmul.f32 %v3385_v63, %v2929_v55 }
 0x201   :  { %vm1993_vm11 = vcmp.gt.f32.partialorder %v7384_v30, 0.0  ;;  %v2187_v33 = vmin.f32 %v7419_v44, 0.0  ;;  %vm1970_vm12 = vcmp.gt.f32.partialorder %v7349_v54, 0.0  ;;  %v3170_v32 = vperm.slane %v7293_v23, 2  ;;  %4493 = vmatmul.msk.bf16.gmra.mxu0 %vm731_vm0, %v7329_v48 }
 0x202   :  { %v5063_v38 = vpop.eup %5062  ;;  %5070 = vpow2.f32 %v2440_v37  ;;  %v2208_v53 = vmin.f32 %v7422_v41, 0.0  ;;  %v7439_v21 = vadd.f32 %v7210_v22, %v1579_v39  ;;  %vm1971_vm13 = vcmp.gt.f32.partialorder %v7358_v13, 0.0  ;;  %v1140_v39 = vpop.f32.mrf.mxu1 }
 0x203   :  { %v5065_v61 = vpop.eup %5064  ;;  %v4566_v63 = vadd.f32 -1.0, %v5063_v38  ;;  %v2442_v36 = vmul.f32 1.442695, %v2187_v33  ;;  %v3171_v6 = vperm.slane %v7312_v60, 2  ;;  %v7446_v1 = vadd.f32 %v7222_v47, %v1580_v27  ;;  %4497 = vmatmul.msk.bf16.gmra.mxu1 %vm731_vm0, %v7329_v48 }
 0x204   :  { %vm1994_vm14 = vcmp.gt.f32.partialorder %v7406_v15, 0.0  ;;  %v2484_v2 = vmul.f32 1.442695, %v2208_v53  ;;  %v3432_v9 = vperm.slane %v7276_v40, 3  ;;  %v3433_v14 = vperm.slane %v7289_v59, 3  ;;  %v5067_v8 = vpop.eup %5066 }
 0x205   :  { %v2952_v20 = vsel %vm1992_vm10, %v7361_v29, %v4566_v63  ;;  %5072 = vpow2.f32 %v2442_v36  ;;  %v2209_v28 = vmin.f32 %v7439_v21, 0.0  ;;  %v3434_v12 = vperm.slane %v7293_v23, 3 }
 0x206   :  { %v5069_v19 = vpop.eup %5068  ;;  %v4544_v5 = vadd.f32 -1.0, %v5065_v61  ;;  %v3192_v0 = vmul.f32 %v3168_v45, %v2952_v20  ;;  %5074 = vpow2.f32 %v2484_v2  ;;  %v2210_v55 = vmin.f32 %v7446_v1, 0.0 }
 0x207   :  { %v4567_v57 = vadd.f32 -1.0, %v5069_v19  ;;  %vm1995_vm0 = vcmp.gt.f32.partialorder %v7419_v44, 0.0  ;;  %v2486_v48 = vmul.f32 1.442695, %v2209_v28  ;;  %v1581_v50 = vmul.f32 %v7224_v46, %v1195_v52 }
 0x208   :  { %v5071_v29 = vpop.eup %5070  ;;  %v4545_v37 = vadd.f32 -1.0, %v5067_v8  ;;  %v7462_v27 = vadd.f32 %v3192_v0, %v7326_v58  ;;  %v2488_v33 = vmul.f32 1.442695, %v2210_v55  ;;  %v1602_v38 = vmul.f32 %v7197_v16, %v1111_v25 }
 0x209   :  { %v2953_v45 = vsel %vm1993_vm11, %v7384_v30, %v4567_v57  ;;  %v4568_v53 = vadd.f32 -1.0, %v5071_v29  ;;  %5076 = vpow2.f32 %v2486_v48  ;;  %v7469_v61 = vadd.f32 %v7236_v51, %v1581_v50  ;;  %v1198_v29 = vpop.f32.mrf.mxu3 }
 0x20a   :  { %v3193_v63 = vmul.f32 %v3169_v24, %v2953_v45  ;;  %5078 = vpow2.f32 %v2488_v33  ;;  %v7474_v36 = vadd.f32 %v7199_v34, %v1602_v38  ;;  %v1603_v58 = vmul.f32 %v7208_v10, %v1140_v39  ;;  %v1169_v24 = vpop.f32.mrf.mxu2 }
 0x20b   :  { %v5073_v2 = vpop.eup %5072  ;;  %v2930_v52 = vsel %vm1970_vm12, %v7349_v54, %v4544_v5  ;;  %v2954_v30 = vsel %vm1994_vm14, %v7406_v15, %v4568_v53  ;;  %vm2016_vm15 = vcmp.gt.f32.partialorder %v7422_v41, 0.0  ;;  %v2211_v8 = vmin.f32 %v7469_v61, 0.0 }
 0x20c   :  { %v5075_v20 = vpop.eup %5074  ;;  %v2931_v28 = vsel %vm1971_vm13, %v7358_v13, %v4545_v37  ;;  %v7489_v25 = vadd.f32 %v3193_v63, %v7374_v17  ;;  %v3194_v19 = vmul.f32 %v3170_v32, %v2954_v30  ;;  %v4569_v0 = vadd.f32 -1.0, %v5073_v2 }
 0x20d   :  { %v4590_v54 = vadd.f32 -1.0, %v5075_v20  ;;  %v2490_v5 = vmul.f32 1.442695, %v2211_v8  ;;  %v2232_v55 = vmin.f32 %v7474_v36, 0.0  ;;  %v7493_v15 = vadd.f32 %v7210_v22, %v1603_v58  ;;  %v1113_v58 = vpop.f32.mrf.mxu0 }
 0x20e   :  { %v7496_v57 = vadd.f32 %v3194_v19, %v7391_v4  ;;  %v2955_v48 = vsel %vm1995_vm0, %v7419_v44, %v4569_v0  ;;  %vm2017_vm1 = vcmp.gt.f32.partialorder %v7439_v21, 0.0  ;;  %v1604_v13 = vmul.f32 %v7219_v62, %v1169_v24 }
 0x20f   :  { %v5077_v17 = vpop.eup %5076  ;;  %v3195_v32 = vmul.f32 %v3171_v6, %v2955_v48  ;;  %v2976_v50 = vsel %vm2016_vm15, %v7422_v41, %v4590_v54  ;;  %5080 = vpow2.f32 %v2490_v5  ;;  %v2532_v39 = vmul.f32 1.442695, %v2232_v55 }
 0x210   :  { %v5079_v37 = vpop.eup %5078  ;;  %v3456_v4 = vmul.f32 %v3432_v9, %v2976_v50  ;;  %v4591_v33 = vadd.f32 -1.0, %v5077_v17  ;;  %vm2018_vm2 = vcmp.gt.f32.partialorder %v7446_v1, 0.0  ;;  %v2233_v44 = vmin.f32 %v7493_v15, 0.0 }
 0x211   :  { %v7509_v38 = vadd.f32 %v3195_v32, %v7393_v3  ;;  %v4592_v45 = vadd.f32 -1.0, %v5079_v37  ;;  %5082 = vpow2.f32 %v2532_v39  ;;  %v7512_v6 = vadd.f32 %v7222_v47, %v1604_v13  ;;  %v1200_v37 = vpop.f32.mrf.mxu3 }
 0x212   :  { %v7515_v41 = vadd.f32 %v3456_v4, %v7429_v26  ;;  %v2977_v9 = vsel %vm2017_vm1, %v7439_v21, %v4591_v33  ;;  %v2534_v53 = vmul.f32 1.442695, %v2233_v44  ;;  %v1605_v63 = vmul.f32 %v7224_v46, %v1198_v29  ;;  %v1142_v26 = vpop.f32.mrf.mxu1  ;;  %v1171_v0 = vpop.f32.mrf.mxu2 }
 0x213   :  { %v3410_v3 = vmul.f32 %v3386_v7, %v2930_v52  ;;  %v3457_v2 = vmul.f32 %v3433_v14, %v2977_v9  ;;  %v2978_v30 = vsel %vm2018_vm2, %v7446_v1, %v4592_v45  ;;  %v2234_v8 = vmin.f32 %v7512_v6, 0.0 }
 0x214   :  { %v3411_v24 = vmul.f32 %v3387_v11, %v2931_v28  ;;  %v3458_v21 = vmul.f32 %v3434_v12, %v2978_v30  ;;  %5084 = vpow2.f32 %v2534_v53  ;;  %v7532_v20 = vadd.f32 %v7236_v51, %v1605_v63 }
 0x215   :  { %v5081_v19 = vpop.eup %5080  ;;  %v7535_v7 = vadd.f32 %v3457_v2, %v7431_v56  ;;  %v3435_v14 = vperm.slane %v7312_v60, 3  ;;  %v2536_v1 = vmul.f32 1.442695, %v2234_v8  ;;  %v1626_v52 = vmul.f32 %v7197_v16, %v1113_v58 }
 0x216   :  { %v7539_v54 = vadd.f32 %v3458_v21, %v3410_v3  ;;  %v4593_v11 = vadd.f32 -1.0, %v5081_v19  ;;  %v3240_v28 = vperm.slane %v7276_v40, 4  ;;  %v2235_v12 = vmin.f32 %v7532_v20, 0.0 }
 0x217   :  { %v5083_v5 = vpop.eup %5082  ;;  %vm2019_vm3 = vcmp.gt.f32.partialorder %v7469_v61, 0.0  ;;  %5086 = vpow2.f32 %v2536_v1  ;;  %v7545_v56 = vadd.f32 %v7199_v34, %v1626_v52  ;;  %v1627_v55 = vmul.f32 %v7208_v10, %v1142_v26 }
 0x218   :  { %v2979_v48 = vsel %vm2019_vm3, %v7469_v61, %v4593_v11  ;;  %v4614_v13 = vadd.f32 -1.0, %v5083_v5  ;;  %v2538_v17 = vmul.f32 1.442695, %v2235_v12  ;;  %v1628_v32 = vmul.f32 %v7219_v62, %v1171_v0 }
 0x219   :  { %v3459_v50 = vmul.f32 %v3435_v14, %v2979_v48  ;;  %vm2040_vm4 = vcmp.gt.f32.partialorder %v7474_v36, 0.0  ;;  %v2256_v39 = vmin.f32 %v7545_v56, 0.0  ;;  %v7553_v29 = vadd.f32 %v7210_v22, %v1627_v55 }
 0x21a   :  { %v5085_v4 = vpop.eup %5084  ;;  %v3000_v33 = vsel %vm2040_vm4, %v7474_v36, %v4614_v13  ;;  %v3241_v44 = vperm.slane %v7289_v59, 4  ;;  %5088 = vpow2.f32 %v2538_v17  ;;  %v7558_v61 = vadd.f32 %v7222_v47, %v1628_v32  ;;  %v1116_v36 = vpop.f32.mrf.mxu0 }
 0x21b   :  { %v7560_v45 = vadd.f32 %v3459_v50, %v3411_v24  ;;  %v3264_v9 = vmul.f32 %v3240_v28, %v3000_v33  ;;  %v4615_v53 = vadd.f32 -1.0, %v5085_v4  ;;  %v2580_v63 = vmul.f32 1.442695, %v2256_v39  ;;  %v1145_v21 = vpop.f32.mrf.mxu1  ;;  %v1174_v55 = vpop.f32.mrf.mxu2 }
 0x21c   :  { %vm2041_vm5 = vcmp.gt.f32.partialorder %v7493_v15, 0.0  ;;  %v3242_v58 = vperm.slane %v7293_v23, 4  ;;  %v2257_v3 = vmin.f32 %v7553_v29, 0.0  ;;  %v2258_v2 = vmin.f32 %v7558_v61, 0.0 }
 0x21d   :  { %v5087_v30 = vpop.eup %5086  ;;  %v7567_v8 = vadd.f32 %v3264_v9, %v7462_v27  ;;  %v3001_v26 = vsel %vm2041_vm5, %v7493_v15, %v4615_v53  ;;  %5090 = vpow2.f32 %v2580_v63  ;;  %v1629_v24 = vmul.f32 %v7224_v46, %v1200_v37 }
 0x21e   :  { %v3265_v19 = vmul.f32 %v3241_v44, %v3001_v26  ;;  %v4616_v14 = vadd.f32 -1.0, %v5087_v30  ;;  %v2582_v1 = vmul.f32 1.442695, %v2257_v3  ;;  %v2584_v52 = vmul.f32 1.442695, %v2258_v2  ;;  %v1203_v44 = vpop.f32.mrf.mxu3 }
 0x21f   :  { %vm2042_vm6 = vcmp.gt.f32.partialorder %v7512_v6, 0.0  ;;  %v3243_v0 = vperm.slane %v7312_v60, 4  ;;  %v7574_v11 = vadd.f32 %v7236_v51, %v1629_v24  ;;  %v1650_v27 = vmul.f32 %v7197_v16, %v1116_v36 }
 0x220   :  { %v5089_v28 = vpop.eup %5088  ;;  %v7578_v15 = vadd.f32 %v3265_v19, %v7489_v25  ;;  %v3002_v12 = vsel %vm2042_vm6, %v7512_v6, %v4616_v14  ;;  %5092 = vpow2.f32 %v2582_v1  ;;  %v1651_v5 = vmul.f32 %v7208_v10, %v1145_v21 }
 0x221   :  { %v3266_v48 = vmul.f32 %v3242_v58, %v3002_v12  ;;  %v4617_v13 = vadd.f32 -1.0, %v5089_v28  ;;  %v3504_v17 = vperm.slane %v7276_v40, 5  ;;  %5094 = vpow2.f32 %v2584_v52 }
 0x222   :  { %vm2043_vm7 = vcmp.gt.f32.partialorder %v7532_v20, 0.0  ;;  %v2259_v32 = vmin.f32 %v7574_v11, 0.0  ;;  %v7586_v50 = vadd.f32 %v7199_v34, %v1650_v27  ;;  %v7589_v25 = vadd.f32 %v7210_v22, %v1651_v5 }
 0x223   :  { %v5091_v6 = vpop.eup %5090  ;;  %v7592_v39 = vadd.f32 %v3266_v48, %v7496_v57  ;;  %v3003_v37 = vsel %vm2043_vm7, %v7532_v20, %v4617_v13  ;;  %v3505_v4 = vperm.slane %v7289_v59, 5  ;;  %v1652_v33 = vmul.f32 %v7219_v62, %v1174_v55 }
 0x224   :  { %v3267_v9 = vmul.f32 %v3243_v0, %v3003_v37  ;;  %vm2064_vm8 = vcmp.gt.f32.partialorder %v7545_v56, 0.0  ;;  %v4638_v53 = vadd.f32 -1.0, %v5091_v6  ;;  %v2586_v63 = vmul.f32 1.442695, %v2259_v32  ;;  %v1147_v32 = vpop.f32.mrf.mxu1 }
 0x225   :  { %v3506_v58 = vperm.slane %v7293_v23, 5  ;;  %v2280_v3 = vmin.f32 %v7586_v50, 0.0  ;;  %v2281_v2 = vmin.f32 %v7589_v25, 0.0  ;;  %v7602_v57 = vadd.f32 %v7222_v47, %v1652_v33 }
 0x226   :  { %v5093_v20 = vpop.eup %5092  ;;  %v7605_v36 = vadd.f32 %v3267_v9, %v7509_v38  ;;  %v3024_v30 = vsel %vm2064_vm8, %v7545_v56, %v4638_v53  ;;  %5096 = vpow2.f32 %v2586_v63  ;;  %v1653_v26 = vmul.f32 %v7224_v46, %v1203_v44  ;;  %v1118_v38 = vpop.f32.mrf.mxu0 }
 0x227   :  { %v5095_v24 = vpop.eup %5094  ;;  %v3528_v21 = vmul.f32 %v3504_v17, %v3024_v30  ;;  %v4639_v19 = vadd.f32 -1.0, %v5093_v20  ;;  %v2628_v14 = vmul.f32 1.442695, %v2280_v3  ;;  %v2630_v1 = vmul.f32 1.442695, %v2281_v2  ;;  %v1176_v9 = vpop.f32.mrf.mxu2 }
 0x228   :  { %vm2065_vm9 = vcmp.gt.f32.partialorder %v7553_v29, 0.0  ;;  %v4640_v52 = vadd.f32 -1.0, %v5095_v24  ;;  %v2282_v0 = vmin.f32 %v7602_v57, 0.0  ;;  %v7612_v27 = vadd.f32 %v7236_v51, %v1653_v26 }
 0x229   :  { %v7615_v28 = vadd.f32 %v3528_v21, %v7515_v41  ;;  %v3025_v56 = vsel %vm2065_vm9, %v7553_v29, %v4639_v19  ;;  %vm2066_vm10 = vcmp.gt.f32.partialorder %v7558_v61, 0.0  ;;  %5098 = vpow2.f32 %v2628_v14  ;;  %v1205_v14 = vpop.f32.mrf.mxu3 }
 0x22a   :  { %v3529_v12 = vmul.f32 %v3505_v4, %v3025_v56  ;;  %v3026_v5 = vsel %vm2066_vm10, %v7558_v61, %v4640_v52  ;;  %5100 = vpow2.f32 %v2630_v1  ;;  %v2632_v55 = vmul.f32 1.442695, %v2282_v0 }
 0x22b   :  { %v3530_v48 = vmul.f32 %v3506_v58, %v3026_v5  ;;  %v2283_v13 = vmin.f32 %v7612_v27, 0.0  ;;  %v1674_v17 = vmul.f32 %v7197_v16, %v1118_v38  ;;  %v3507_v29 = vperm.slane %v7312_v60, 5 }
 0x22c   :  { %v5097_v6 = vpop.eup %5096  ;;  %v7623_v41 = vadd.f32 %v3529_v12, %v7535_v7  ;;  %5102 = vpow2.f32 %v2632_v55  ;;  %vm2067_vm11 = vcmp.gt.f32.partialorder %v7574_v11, 0.0  ;;  %v3312_v16 = vperm.slane %v7276_v40, 6 }
 0x22d   :  { %v7627_v37 = vadd.f32 %v3530_v48, %v7539_v54  ;;  %v4641_v4 = vadd.f32 -1.0, %v5097_v6  ;;  %v2634_v61 = vmul.f32 1.442695, %v2283_v13  ;;  %v7630_v33 = vadd.f32 %v7199_v34, %v1674_v17  ;;  %v7662_v17 = vld [vmem:[#allocation7 + $0x10] sm:$0xff] }
 0x22e   :  { %v1675_v44 = vmul.f32 %v7208_v10, %v1147_v32  ;;  %v3313_v63 = vperm.slane %v7289_v59, 6  ;;  %v3314_v34 = vperm.slane %v7293_v23, 6  ;;  %vm2088_vm12 = vcmp.gt.f32.partialorder %v7586_v50, 0.0 }
 0x22f   :  { %v5099_v7 = vpop.eup %5098  ;;  %v3027_v53 = vsel %vm2067_vm11, %v7574_v11, %v4641_v4  ;;  %5104 = vpow2.f32 %v2634_v61  ;;  %v2304_v54 = vmin.f32 %v7630_v33, 0.0  ;;  %v1676_v26 = vmul.f32 %v7219_v62, %v1176_v9  ;;  %v1217_v4 = vpop.f32.mrf.mxu0  ;;  %v7670_v61 = vld [vmem:[#allocation8 + $0x10] sm:$0xff] }
 0x230   :  { %v5101_v58 = vpop.eup %5100  ;;  %v3531_v3 = vmul.f32 %v3507_v29, %v3027_v53  ;;  %v4662_v2 = vadd.f32 -1.0, %v5099_v7  ;;  %v1921_v20 = vadd.f32 %v7210_v22, %v1675_v44  ;;  %vm2089_vm13 = vcmp.gt.f32.partialorder %v7589_v25, 0.0 }
 0x231   :  { %v4663_v30 = vadd.f32 -1.0, %v5101_v58  ;;  %v2676_v10 = vmul.f32 1.442695, %v2304_v54  ;;  %vm2090_vm14 = vcmp.gt.f32.partialorder %v7602_v57, 0.0  ;;  %v7650_v62 = vadd.f32 %v7222_v47, %v1676_v26  ;;  %v1246_v54 = vpop.f32.mrf.mxu1 }
 0x232   :  { %v5103_v24 = vpop.eup %5102  ;;  %v7643_v11 = vadd.f32 %v3531_v3, %v7560_v45  ;;  %v3048_v21 = vsel %vm2088_vm12, %v7586_v50, %v4662_v2  ;;  %v2305_v19 = vmin.f32 %v1921_v20, 0.0  ;;  %v3315_v12 = vperm.slane %v7312_v60, 6 }
 0x233   :  { %v3336_v1 = vmul.f32 %v3312_v16, %v3048_v21  ;;  %v3049_v52 = vsel %vm2089_vm13, %v7589_v25, %v4663_v30  ;;  %v4664_v22 = vadd.f32 -1.0, %v5103_v24  ;;  %5106 = vpow2.f32 %v2676_v10  ;;  %v7696_v10 = vld [vmem:[#allocation13 + $0x8] sm:$0xff] }
 0x234   :  { %v3337_v0 = vmul.f32 %v3313_v63, %v3049_v52  ;;  %v2678_v38 = vmul.f32 1.442695, %v2305_v19  ;;  %v1677_v5 = vmul.f32 %v7224_v46, %v1205_v14  ;;  %vm2091_vm0 = vcmp.gt.f32.partialorder %v7612_v27, 0.0 }
 0x235   :  { %v5105_v45 = vpop.eup %5104  ;;  %v3360_v56 = vadd.f32 %v3336_v1, %v7567_v8  ;;  %v3050_v50 = vsel %vm2090_vm14, %v7602_v57, %v4664_v22  ;;  %v2306_v13 = vmin.f32 %v7650_v62, 0.0  ;;  %vm2112_vm15 = vcmp.gt.f32.partialorder %v7630_v33, 0.0 }
 0x236   :  { %v3361_v25 = vadd.f32 %v3337_v0, %v7578_v15  ;;  %v3338_v55 = vmul.f32 %v3314_v34, %v3050_v50  ;;  %v4665_v48 = vadd.f32 -1.0, %v5105_v45  ;;  %5108 = vpow2.f32 %v2678_v38 }
 0x237   :  { %v7660_v47 = vadd.f32 %v7236_v51, %v1677_v5  ;;  %v3576_v15 = vperm.slane %v7276_v40, 7  ;;  %v2680_v6 = vmul.f32 1.442695, %v2306_v13  ;;  %v7674_v16 = vperm.slane %v7662_v17, 0  ;;  %v1275_v5 = vpop.f32.mrf.mxu2 }
 0x238   :  { %v7665_v8 = vadd.f32 %v3338_v55, %v7592_v39  ;;  %v3051_v57 = vsel %vm2091_vm0, %v7612_v27, %v4665_v48  ;;  %v7680_v44 = vperm.slane %v7662_v17, 1  ;;  %v3577_v7 = vperm.slane %v7289_v59, 7 }
 0x239   :  { %v5107_v46 = vpop.eup %5106  ;;  %v3339_v32 = vmul.f32 %v3315_v12, %v3051_v57  ;;  %v2307_v29 = vmin.f32 %v7660_v47, 0.0  ;;  %5110 = vpow2.f32 %v2680_v6  ;;  %v1510_v53 = vmul.f32 %v7674_v16, %v1217_v4 }
 0x23a   :  { %v4686_v51 = vadd.f32 -1.0, %v5107_v46  ;;  %v7686_v63 = vperm.slane %v7670_v61, 0  ;;  %vm2113_vm1 = vcmp.gt.f32.partialorder %v1921_v20, 0.0  ;;  %v7694_v59 = vperm.slane %v7670_v61, 1 }
 0x23b   :  { %v7677_v39 = vadd.f32 %v3339_v32, %v7605_v36  ;;  %v2682_v27 = vmul.f32 1.442695, %v2307_v29  ;;  %v7688_v36 = vld [vmem:[#allocation11 + $0x8] sm:$0xff]  ;;  %v3756_v26 = vperm.slane %v7696_v10, 4  ;;  %vm2114_vm2 = vcmp.gt.f32.partialorder %v7650_v62, 0.0 }
 0x23c   :  { %v5109_v40 = vpop.eup %5108  ;;  %v3072_v9 = vsel %vm2112_vm15, %v7630_v33, %v4686_v51  ;;  %v3678_v2 = vperm.slane %v7688_v36, 4  ;;  %v1511_v33 = vmul.f32 %v7680_v44, %v1246_v54  ;;  %v3679_v21 = vperm.slane %v7688_v36, 5 }
 0x23d   :  { %v3600_v58 = vmul.f32 %v3576_v15, %v3072_v9  ;;  %v4687_v3 = vadd.f32 -1.0, %v5109_v40  ;;  %5112 = vpow2.f32 %v2682_v27  ;;  %v7701_v19 = vadd.f32 %v7686_v63, %v1510_v53 }
 0x23e   :  { %v3680_v52 = vperm.slane %v7688_v36, 6  ;;  %v7709_v38 = vperm.slane %v7662_v17, 2  ;;  %v3579_v12 = vperm.slane %v7312_v60, 7  ;;  %v3758_v32 = vperm.slane %v7696_v10, 6  ;;  %v1304_v60 = vpop.f32.mrf.mxu3 }
 0x23f   :  { %v3624_v34 = vadd.f32 %v3600_v58, %v7615_v28  ;;  %v3073_v30 = vsel %vm2113_vm1, %v1921_v20, %v4687_v3  ;;  %v5111_v14 = vpop.eup %5110  ;;  %v3757_v28 = vperm.slane %v7696_v10, 5  ;;  %v3578_v20 = vperm.slane %v7293_v23, 7 }
 0x240   :  { %v3601_v24 = vmul.f32 %v3577_v7, %v3073_v30  ;;  %v4688_v0 = vadd.f32 -1.0, %v5111_v14  ;;  %v7716_v23 = vperm.slane %v7662_v17, 3  ;;  %v2140_v13 = vmin.f32 %v7701_v19, 0.0 }
 0x241   :  { %v3648_v1 = vadd.f32 %v3624_v34, %v3360_v56  ;;  %v7713_v56 = vadd.f32 %v7694_v59, %v1511_v33  ;;  %vm2115_vm3 = vcmp.gt.f32.partialorder %v7660_v47, 0.0  ;;  %v1512_v29 = vmul.f32 %v7709_v38, %v1275_v5  ;;  %v1219_v33 = vpop.f32.mrf.mxu0 }
 0x242   :  { %v3625_v22 = vadd.f32 %v3601_v24, %v7623_v41  ;;  %v3074_v41 = vsel %vm2114_vm2, %v7650_v62, %v4688_v0  ;;  %v7725_v4 = vperm.slane %v7670_v61, 2  ;;  %v3681_v27 = vperm.slane %v7688_v36, 7 }
 0x243   :  { %v5113_v45 = vpop.eup %5112  ;;  %v3726_v50 = vmul.f32 %v3678_v2, %v3648_v1  ;;  %v3602_v46 = vmul.f32 %v3578_v20, %v3074_v41  ;;  %v2348_v9 = vmul.f32 1.442695, %v2140_v13  ;;  %v2141_v7 = vmin.f32 %v7713_v56, 0.0 }
 0x244   :  { %v3649_v55 = vadd.f32 %v3625_v22, %v3361_v25  ;;  %v4689_v48 = vadd.f32 -1.0, %v5113_v45  ;;  %v1513_v53 = vmul.f32 %v7716_v23, %v1304_v60  ;;  %v7734_v3 = vperm.slane %v7670_v61, 3  ;;  %v7752_v45 = vld [vmem:[#allocation10 + $0x80] sm:$0xff] }
 0x245   :  { %v3804_v57 = vadd.f32 %v3756_v26, %v3726_v50  ;;  %v3626_v62 = vadd.f32 %v3602_v46, %v7627_v37  ;;  %v7737_v37 = vadd.f32 %v7725_v4, %v1512_v29  ;;  %v3759_v30 = vperm.slane %v7696_v10, 7  ;;  %v1277_v10 = vpop.f32.mrf.mxu2  ;;  %v7754_v50 = vld [vmem:[#allocation10 + $0x88] sm:$0xff]  ;;  %v7763_v29 = vld [vmem:[#allocation10 + $0x90] sm:$0xff] }
 0x246   :  { %v3727_v15 = vmul.f32 %v3679_v21, %v3649_v55  ;;  %v3075_v6 = vsel %vm2115_vm3, %v7660_v47, %v4689_v48  ;;  %v2350_v24 = vmul.f32 1.442695, %v2141_v7  ;;  %v1248_v21 = vpop.f32.mrf.mxu1  ;;  %v7744_v14 = vadd.f32 %v7734_v3, %v1513_v53  ;;  %v7768_v7 = vld [vmem:[#allocation10 + $0x98] sm:$0xff] }
 0x247   :  { %v3852_v25 = vmin.f32 %v3804_v57, 0.0  ;;  %v3603_v51 = vmul.f32 %v3579_v12, %v3075_v6  ;;  %v3650_v47 = vadd.f32 %v3626_v62, %v7665_v8  ;;  %v2142_v1 = vmin.f32 %v7737_v37, 0.0 }
 0x248   :  { %v3805_v40 = vadd.f32 %v3757_v28, %v3727_v15  ;;  %v1534_v28 = vmul.f32 %v7674_v16, %v1219_v33  ;;  %v2143_v12 = vmin.f32 %v7744_v14, 0.0  ;;  %v1535_v48 = vmul.f32 %v7680_v44, %v1248_v21 }
 0x249   :  { %v3888_v54 = vmul.f32 1.442695, %v3852_v25  ;;  %v3627_v58 = vadd.f32 %v3603_v51, %v7643_v11  ;;  %v3728_v36 = vmul.f32 %v3680_v52, %v3650_v47  ;;  %v2352_v55 = vmul.f32 1.442695, %v2142_v1  ;;  %v1306_v25 = vpop.f32.mrf.mxu3 }
 0x24a   :  { %v3853_v2 = vmin.f32 %v3805_v40, 0.0  ;;  %v7758_v41 = vadd.f32 %v7686_v63, %v1534_v28  ;;  %vm3828_vm4 = vcmp.gt.f32.partialorder %v3804_v57, 0.0  ;;  %v3124_v15 = vperm.slane %v7752_v45, 0 }
 0x24b   :  { %5114 = vpow2.f32 %v3888_v54  ;;  %v3651_v34 = vadd.f32 %v3627_v58, %v7677_v39  ;;  %v7741_v8 = vadd.f32 %v3758_v32, %v3728_v36  ;;  %v3125_v6 = vperm.slane %v7754_v50, 0 }
 0x24c   :  { %v3890_v26 = vmul.f32 1.442695, %v3853_v2  ;;  %5116 = vpow2.f32 %v2348_v9  ;;  %v1222_v9 = vpop.f32.mrf.mxu0  ;;  %vm3829_vm5 = vcmp.gt.f32.partialorder %v3805_v40, 0.0  ;;  %v7772_v53 = vadd.f32 %v7694_v59, %v1535_v48 }
 0x24d   :  { %v3729_v11 = vmul.f32 %v3681_v27, %v3651_v34  ;;  %v3854_v39 = vmin.f32 %v7741_v8, 0.0  ;;  %v2354_v27 = vmul.f32 1.442695, %v2143_v12  ;;  %v1536_v36 = vmul.f32 %v7709_v38, %v1277_v10  ;;  %v1280_v21 = vpop.f32.mrf.mxu2 }
 0x24e   :  { %5118 = vpow2.f32 %v3890_v26  ;;  %v1251_v54 = vpop.f32.mrf.mxu1  ;;  %vm1948_vm6 = vcmp.gt.f32.partialorder %v7701_v19, 0.0  ;;  %vm1949_vm7 = vcmp.gt.f32.partialorder %v7713_v56, 0.0  ;;  %v3127_v26 = vperm.slane %v7768_v7, 0 }
 0x24f   :  { %v7749_v20 = vadd.f32 %v3759_v30, %v3729_v11  ;;  %v3892_v22 = vmul.f32 1.442695, %v3854_v39  ;;  %5120 = vpow2.f32 %v2350_v24  ;;  %v1558_v30 = vmul.f32 %v7674_v16, %v1222_v9 }
 0x250   :  { %v1559_v24 = vmul.f32 %v7680_v44, %v1251_v54  ;;  %vm1950_vm8 = vcmp.gt.f32.partialorder %v7737_v37, 0.0  ;;  %v2165_v1 = vmin.f32 %v7772_v53, 0.0  ;;  %vm3830_vm9 = vcmp.gt.f32.partialorder %v7741_v8, 0.0 }
 0x251   :  { %v5115_v52 = vpop.eup %5114  ;;  %v3855_v0 = vmin.f32 %v7749_v20, 0.0  ;;  %5122 = vpow2.f32 %v3892_v22  ;;  %v7788_v28 = vadd.f32 %v7686_v63, %v1558_v30  ;;  %v7795_v22 = vadd.f32 %v7725_v4, %v1536_v36 }
 0x252   :  { %v4710_v5 = vadd.f32 -1.0, %v5115_v52  ;;  %v5117_v13 = vpop.eup %5116  ;;  %v1560_v48 = vmul.f32 %v7709_v38, %v1280_v21  ;;  %vm3831_vm10 = vcmp.gt.f32.partialorder %v7749_v20, 0.0  ;;  %vm1951_vm11 = vcmp.gt.f32.partialorder %v7744_v14, 0.0 }
 0x253   :  { %v3894_v46 = vmul.f32 1.442695, %v3855_v0  ;;  %v4522_v2 = vadd.f32 -1.0, %v5117_v13  ;;  %v2166_v9 = vmin.f32 %v7795_v22, 0.0  ;;  %vm1972_vm12 = vcmp.gt.f32.partialorder %v7758_v41, 0.0 }
 0x254   :  { %v5119_v32 = vpop.eup %5118  ;;  %v3948_v60 = vsel %vm3828_vm4, %v3804_v57, %v4710_v5  ;;  %v2164_v57 = vmin.f32 %v7758_v41, 0.0  ;;  %v1224_v54 = vpop.f32.mrf.mxu0  ;;  %vm1996_vm13 = vcmp.gt.f32.partialorder %v7788_v28, 0.0  ;;  %vm1973_vm14 = vcmp.gt.f32.partialorder %v7772_v53, 0.0 }
 0x255   :  { %v7766_v62 = vadd.f32 %v6834_v18, %v3948_v60  ;;  %v4711_v51 = vadd.f32 -1.0, %v5119_v32  ;;  %5124 = vpow2.f32 %v3894_v46  ;;  %v5121_v47 = vpop.eup %5120  ;;  %v3126_v18 = vperm.slane %v7763_v29, 0 }
 0x256   :  { %5126 = vpow2.f32 %v2352_v55  ;;  %v2908_v10 = vsel %vm1948_vm6, %v7701_v19, %v4522_v2  ;;  %v4523_v52 = vadd.f32 -1.0, %v5121_v47  ;;  %v2188_v55 = vmin.f32 %v7788_v28, 0.0 }
 0x257   :  { %v3949_v58 = vsel %vm3829_vm5, %v3805_v40, %v4711_v51  ;;  %v5123_v33 = vpop.eup %5122  ;;  %5128 = vpow2.f32 %v2354_v27  ;;  %v1537_v40 = vmul.f32 %v7716_v23, %v1306_v25  ;;  %v7808_v19 = vadd.f32 %v7694_v59, %v1559_v24  ;;  %v1309_v25 = vpop.f32.mrf.mxu3 }
 0x258   :  { %v7777_v34 = vadd.f32 %v6841_v35, %v3949_v58  ;;  %v4712_v11 = vadd.f32 -1.0, %v5123_v33  ;;  %v2396_v35 = vmul.f32 1.442695, %v2164_v57  ;;  %v2444_v60 = vmul.f32 1.442695, %v2188_v55  ;;  %v1253_v58 = vpop.f32.mrf.mxu1 }
 0x259   :  { %v7805_v46 = vadd.f32 %v7734_v3, %v1537_v40  ;;  %v2189_v57 = vmin.f32 %v7808_v19, 0.0  ;;  %v3388_v47 = vperm.slane %v7752_v45, 1  ;;  %v1561_v30 = vmul.f32 %v7716_v23, %v1309_v25 }
 0x25a   :  { %v3950_v12 = vsel %vm3830_vm9, %v7741_v8, %v4712_v11  ;;  %5130 = vpow2.f32 %v2396_v35  ;;  %v2398_v8 = vmul.f32 1.442695, %v2165_v1  ;;  %v3148_v33 = vmul.f32 %v3124_v15, %v2908_v10 }
 0x25b   :  { %v5125_v39 = vpop.eup %5124  ;;  %v7801_v13 = vadd.f32 %v7322_v49, %v3950_v12  ;;  %5132 = vpow2.f32 %v2444_v60  ;;  %v2167_v2 = vmin.f32 %v7805_v46, 0.0  ;;  %v2446_v36 = vmul.f32 1.442695, %v2189_v57  ;;  %v1282_v12 = vpop.f32.mrf.mxu2 }
 0x25c   :  { %v5127_v0 = vpop.eup %5126  ;;  %v4713_v5 = vadd.f32 -1.0, %v5125_v39  ;;  %5134 = vpow2.f32 %v2398_v8  ;;  %v1582_v24 = vmul.f32 %v7674_v16, %v1224_v54  ;;  %v2400_v11 = vmul.f32 1.442695, %v2166_v9 }
 0x25d   :  { %v5129_v51 = vpop.eup %5128  ;;  %v4524_v49 = vadd.f32 -1.0, %v5127_v0  ;;  %5136 = vpow2.f32 %v2446_v36  ;;  %v3389_v10 = vperm.slane %v7754_v50, 1  ;;  %vm1997_vm0 = vcmp.gt.f32.partialorder %v7808_v19, 0.0 }
 0x25e   :  { %v3951_v32 = vsel %vm3831_vm10, %v7749_v20, %v4713_v5  ;;  %v7819_v20 = vadd.f32 %v7725_v4, %v1560_v48  ;;  %v4525_v40 = vadd.f32 -1.0, %v5129_v51  ;;  %v7838_v39 = vadd.f32 %v7686_v63, %v1582_v24 }
 0x25f   :  { %v7812_v27 = vadd.f32 %v7343_v42, %v3951_v32  ;;  %v2909_v42 = vsel %vm1949_vm7, %v7713_v56, %v4523_v52  ;;  %v2910_v21 = vsel %vm1950_vm8, %v7737_v37, %v4524_v49  ;;  %v1583_v56 = vmul.f32 %v7680_v44, %v1253_v58 }
 0x260   :  { %v5131_v35 = vpop.eup %5130  ;;  %v3149_v1 = vmul.f32 %v3125_v6, %v2909_v42  ;;  %v2190_v15 = vmin.f32 %v7819_v20, 0.0  ;;  %v2402_v52 = vmul.f32 1.442695, %v2167_v2  ;;  %v7842_v37 = vadd.f32 %v7734_v3, %v1561_v30  ;;  %v1311_v42 = vpop.f32.mrf.mxu3 }
 0x261   :  { %8599 = vst [vmem:[#allocation20_spill] sm:$0xff] %v7812_v27  ;;  %v7845_v0 = vadd.f32 %v7694_v59, %v1583_v56  ;;  %v5133_v5 = vpop.eup %5132  ;;  %v7849_v6 = vmul.f32 %v3126_v18, %v2910_v21  ;;  %v2911_v55 = vsel %vm1951_vm11, %v7744_v14, %v4525_v40  ;;  %v3172_v48 = vperm.slane %v7752_v45, 2  ;;  %v1227_v30 = vpop.f32.mrf.mxu0 }
 0x262   :  { %v2212_v32 = vmin.f32 %v7838_v39, 0.0  ;;  %v4546_v8 = vadd.f32 -1.0, %v5131_v35  ;;  %5138 = vpow2.f32 %v2400_v11  ;;  %v4570_v60 = vadd.f32 -1.0, %v5133_v5  ;;  %v5135_v51 = vpop.eup %5134  ;;  %v1256_v21 = vpop.f32.mrf.mxu1 }
 0x263   :  { %v2213_v25 = vmin.f32 %v7845_v0, 0.0  ;;  %v3173_v49 = vperm.slane %v7754_v50, 2  ;;  %v2448_v18 = vmul.f32 1.442695, %v2190_v15  ;;  %v5137_v57 = vpop.eup %5136  ;;  %5140 = vpow2.f32 %v2402_v52 }
 0x264   :  { %v2492_v9 = vmul.f32 1.442695, %v2212_v32  ;;  %v2956_v14 = vsel %vm1996_vm13, %v7788_v28, %v4570_v60  ;;  %v2191_v54 = vmin.f32 %v7842_v37, 0.0  ;;  %v4571_v36 = vadd.f32 -1.0, %v5137_v57 }
 0x265   :  { %v2494_v58 = vmul.f32 1.442695, %v2213_v25  ;;  %v3196_v2 = vmul.f32 %v3172_v48, %v2956_v14  ;;  %v2932_v40 = vsel %vm1972_vm12, %v7758_v41, %v4546_v8  ;;  %v4547_v24 = vadd.f32 -1.0, %v5135_v51  ;;  %v1285_v25 = vpop.f32.mrf.mxu2 }
 0x266   :  { %5142 = vpow2.f32 %v2492_v9  ;;  %v7868_v28 = vmul.f32 %v3127_v26, %v2911_v55  ;;  %v2957_v56 = vsel %vm1997_vm0, %v7808_v19, %v4571_v36  ;;  %v2450_v52 = vmul.f32 1.442695, %v2191_v54 }
 0x267   :  { %5144 = vpow2.f32 %v2494_v58  ;;  %v7870_v11 = vadd.f32 %v3196_v2, %v3148_v33  ;;  %v3197_v15 = vmul.f32 %v3173_v49, %v2957_v56  ;;  %v1584_v5 = vmul.f32 %v7709_v38, %v1282_v12 }
 0x268   :  { %5146 = vpow2.f32 %v2448_v18  ;;  %v5139_v35 = vpop.eup %5138  ;;  %v1606_v41 = vmul.f32 %v7674_v16, %v1227_v30  ;;  %v3412_v48 = vmul.f32 %v3388_v47, %v2932_v40  ;;  %v3390_v32 = vperm.slane %v7763_v29, 1 }
 0x269   :  { %v3391_v26 = vperm.slane %v7768_v7, 1  ;;  %v1607_v33 = vmul.f32 %v7680_v44, %v1256_v21  ;;  %v5141_v55 = vpop.eup %5140  ;;  %v2933_v19 = vsel %vm1973_vm14, %v7772_v53, %v4547_v24  ;;  %v7883_v8 = vadd.f32 %v3197_v15, %v3149_v1  ;;  %v1314_v24 = vpop.f32.mrf.mxu3 }
 0x26a   :  { %v1585_v12 = vmul.f32 %v7716_v23, %v1311_v42  ;;  %v7887_v60 = vadd.f32 %v7686_v63, %v1606_v41  ;;  %vm1974_vm15 = vcmp.gt.f32.partialorder %v7795_v22, 0.0  ;;  %v4548_v51 = vadd.f32 -1.0, %v5139_v35  ;;  %v1229_v41 = vpop.f32.mrf.mxu0 }
 0x26b   :  { %v3436_v49 = vperm.slane %v7752_v45, 3  ;;  %v3437_v18 = vperm.slane %v7754_v50, 3  ;;  %v7893_v9 = vadd.f32 %v7694_v59, %v1607_v33  ;;  %vm1975_vm1 = vcmp.gt.f32.partialorder %v7805_v46, 0.0 }
 0x26c   :  { %v5143_v47 = vpop.eup %5142  ;;  %5148 = vpow2.f32 %v2450_v52  ;;  %v7897_v57 = vadd.f32 %v7725_v4, %v1584_v5  ;;  %v2236_v14 = vmin.f32 %v7887_v60, 0.0  ;;  %v3413_v58 = vmul.f32 %v3389_v10, %v2933_v19 }
 0x26d   :  { %v5145_v53 = vpop.eup %5144  ;;  %v4594_v1 = vadd.f32 -1.0, %v5143_v47  ;;  %vm2020_vm2 = vcmp.gt.f32.partialorder %v7838_v39, 0.0  ;;  %v2237_v2 = vmin.f32 %v7893_v9, 0.0  ;;  %vm2021_vm3 = vcmp.gt.f32.partialorder %v7845_v0, 0.0 }
 0x26e   :  { %v5147_v54 = vpop.eup %5146  ;;  %v4595_v42 = vadd.f32 -1.0, %v5145_v53  ;;  %v7907_v30 = vadd.f32 %v7734_v3, %v1585_v12  ;;  %v2540_v40 = vmul.f32 1.442695, %v2236_v14  ;;  %v4549_v21 = vadd.f32 -1.0, %v5141_v55 }
 0x26f   :  { %v2980_v36 = vsel %vm2020_vm2, %v7838_v39, %v4594_v1  ;;  %v2542_v15 = vmul.f32 1.442695, %v2237_v2  ;;  %v2214_v52 = vmin.f32 %v7897_v57, 0.0  ;;  %v1608_v5 = vmul.f32 %v7709_v38, %v1285_v25  ;;  %v1258_v39 = vpop.f32.mrf.mxu1 }
 0x270   :  { %v3460_v56 = vmul.f32 %v3436_v49, %v2980_v36  ;;  %v2981_v35 = vsel %vm2021_vm3, %v7845_v0, %v4595_v42  ;;  %5150 = vpow2.f32 %v2540_v40  ;;  %v4572_v33 = vadd.f32 -1.0, %v5147_v54  ;;  %v1287_v42 = vpop.f32.mrf.mxu2 }
 0x271   :  { %v3461_v10 = vmul.f32 %v3437_v18, %v2981_v35  ;;  %5152 = vpow2.f32 %v2542_v15  ;;  %v1609_v12 = vmul.f32 %v7716_v23, %v1314_v24  ;;  %vm1998_vm4 = vcmp.gt.f32.partialorder %v7819_v20, 0.0 }
 0x272   :  { %v7912_v19 = vadd.f32 %v3460_v56, %v3412_v48  ;;  %v5149_v47 = vpop.eup %5148  ;;  %v2215_v0 = vmin.f32 %v7907_v30, 0.0  ;;  %v7920_v49 = vadd.f32 %v7725_v4, %v1608_v5  ;;  %v3174_v25 = vperm.slane %v7763_v29, 2 }
 0x273   :  { %v7916_v55 = vadd.f32 %v3461_v10, %v3413_v58  ;;  %v7924_v18 = vadd.f32 %v7734_v3, %v1609_v12  ;;  %v1630_v48 = vmul.f32 %v7674_v16, %v1229_v41  ;;  %v1631_v53 = vmul.f32 %v7680_v44, %v1258_v39  ;;  %v1316_v12 = vpop.f32.mrf.mxu3 }
 0x274   :  { %v2934_v1 = vsel %vm1974_vm15, %v7795_v22, %v4548_v51  ;;  %v3175_v14 = vperm.slane %v7768_v7, 2  ;;  %v2496_v54 = vmul.f32 1.442695, %v2214_v52  ;;  %v2238_v58 = vmin.f32 %v7920_v49, 0.0 }
 0x275   :  { %v2935_v2 = vsel %vm1975_vm1, %v7805_v46, %v4549_v21  ;;  %v2958_v36 = vsel %vm1998_vm4, %v7819_v20, %v4572_v33  ;;  %vm1999_vm5 = vcmp.gt.f32.partialorder %v7842_v37, 0.0  ;;  %v4573_v40 = vadd.f32 -1.0, %v5149_v47 }
 0x276   :  { %v5151_v24 = vpop.eup %5150  ;;  %v2498_v56 = vmul.f32 1.442695, %v2215_v0  ;;  %v3244_v35 = vperm.slane %v7752_v45, 4  ;;  %v7940_v22 = vadd.f32 %v7686_v63, %v1630_v48  ;;  %v7943_v51 = vadd.f32 %v7694_v59, %v1631_v53 }
 0x277   :  { %v5153_v15 = vpop.eup %5152  ;;  %v4618_v10 = vadd.f32 -1.0, %v5151_v24  ;;  %v3245_v52 = vperm.slane %v7754_v50, 4  ;;  %v2239_v46 = vmin.f32 %v7924_v18, 0.0  ;;  %v1632_v20 = vmul.f32 %v7709_v38, %v1287_v42 }
 0x278   :  { %5154 = vpow2.f32 %v2496_v54  ;;  %vm2044_vm6 = vcmp.gt.f32.partialorder %v7887_v60, 0.0  ;;  %v4619_v21 = vadd.f32 -1.0, %v5153_v15  ;;  %v2544_v5 = vmul.f32 1.442695, %v2238_v58 }
 0x279   :  { %v2959_v41 = vsel %vm1999_vm5, %v7842_v37, %v4573_v40  ;;  %v3004_v39 = vsel %vm2044_vm6, %v7887_v60, %v4618_v10  ;;  %vm2045_vm7 = vcmp.gt.f32.partialorder %v7893_v9, 0.0  ;;  %v2260_v33 = vmin.f32 %v7940_v22, 0.0  ;;  %v1232_v37 = vpop.f32.mrf.mxu0 }
 0x27a   :  { %5156 = vpow2.f32 %v2498_v56  ;;  %v3268_v47 = vmul.f32 %v3244_v35, %v3004_v39  ;;  %v3005_v0 = vsel %vm2045_vm7, %v7893_v9, %v4619_v21  ;;  %v2261_v48 = vmin.f32 %v7943_v51, 0.0  ;;  %v1261_v56 = vpop.f32.mrf.mxu1 }
 0x27b   :  { %v3269_v53 = vmul.f32 %v3245_v52, %v3005_v0  ;;  %v2546_v54 = vmul.f32 1.442695, %v2239_v46  ;;  %v2588_v58 = vmul.f32 1.442695, %v2260_v33  ;;  %v7958_v42 = vadd.f32 %v7725_v4, %v1632_v20  ;;  %v1290_v20 = vpop.f32.mrf.mxu2 }
 0x27c   :  { %v7961_v60 = vadd.f32 %v3268_v47, %v7870_v11  ;;  %5158 = vpow2.f32 %v2544_v5  ;;  %v2590_v40 = vmul.f32 1.442695, %v2261_v48  ;;  %v1633_v24 = vmul.f32 %v7716_v23, %v1316_v12 }
 0x27d   :  { %v3198_v35 = vmul.f32 %v3174_v25, %v2958_v36  ;;  %v3199_v15 = vmul.f32 %v3175_v14, %v2959_v41  ;;  %v7965_v9 = vadd.f32 %v3269_v53, %v7883_v8  ;;  %5160 = vpow2.f32 %v2588_v58 }
 0x27e   :  { %v5155_v10 = vpop.eup %5154  ;;  %5162 = vpow2.f32 %v2590_v40  ;;  %v2262_v52 = vmin.f32 %v7958_v42, 0.0  ;;  %v7969_v46 = vadd.f32 %v7734_v3, %v1633_v24  ;;  %v1654_v11 = vmul.f32 %v7674_v16, %v1232_v37  ;;  %v1319_v24 = vpop.f32.mrf.mxu3 }
 0x27f   :  { %v7974_v21 = vmul.f32 %v3390_v32, %v2934_v1  ;;  %v7978_v25 = vmul.f32 %v3391_v26, %v2935_v2  ;;  %v3438_v8 = vperm.slane %v7763_v29, 3  ;;  %v1655_v14 = vmul.f32 %v7680_v44, %v1261_v56 }
 0x280   :  { %v5157_v36 = vpop.eup %5156  ;;  %vm2022_vm8 = vcmp.gt.f32.partialorder %v7897_v57, 0.0  ;;  %v3439_v5 = vperm.slane %v7768_v7, 3  ;;  %5164 = vpow2.f32 %v2546_v54  ;;  %v7985_v41 = vadd.f32 %v7686_v63, %v1654_v11 }
 0x281   :  { %v7988_v32 = vadd.f32 %v3198_v35, %v7849_v6  ;;  %v7991_v1 = vadd.f32 %v3199_v15, %v7868_v28  ;;  %vm2023_vm9 = vcmp.gt.f32.partialorder %v7907_v30, 0.0  ;;  %v7995_v26 = vadd.f32 %v7694_v59, %v1655_v14 }
 0x282   :  { %v1656_v2 = vmul.f32 %v7709_v38, %v1290_v20  ;;  %v5159_v39 = vpop.eup %5158  ;;  %v4596_v33 = vadd.f32 -1.0, %v5155_v10  ;;  %v3508_v12 = vperm.slane %v7752_v45, 5  ;;  %v2592_v47 = vmul.f32 1.442695, %v2262_v52 }
 0x283   :  { %v2263_v0 = vmin.f32 %v7969_v46, 0.0  ;;  %v5161_v48 = vpop.eup %5160  ;;  %v4597_v6 = vadd.f32 -1.0, %v5157_v36  ;;  %v3509_v53 = vperm.slane %v7754_v50, 5  ;;  %v2284_v28 = vmin.f32 %v7985_v41, 0.0  ;;  %v1234_v36 = vpop.f32.mrf.mxu0 }
 0x284   :  { %v2285_v54 = vmin.f32 %v7995_v26, 0.0  ;;  %v5163_v58 = vpop.eup %5162  ;;  %vm2068_vm10 = vcmp.gt.f32.partialorder %v7940_v22, 0.0  ;;  %v4642_v37 = vadd.f32 -1.0, %v5161_v48  ;;  %vm2069_vm11 = vcmp.gt.f32.partialorder %v7943_v51, 0.0 }
 0x285   :  { %v8006_v40 = vadd.f32 %v7725_v4, %v1656_v2  ;;  %v4620_v56 = vadd.f32 -1.0, %v5159_v39  ;;  %v4643_v35 = vadd.f32 -1.0, %v5163_v58  ;;  %v2636_v15 = vmul.f32 1.442695, %v2284_v28 }
 0x286   :  { %v2638_v10 = vmul.f32 1.442695, %v2285_v54  ;;  %v5165_v52 = vpop.eup %5164  ;;  %v3028_v11 = vsel %vm2068_vm10, %v7940_v22, %v4642_v37  ;;  %5166 = vpow2.f32 %v2592_v47  ;;  %v2594_v20 = vmul.f32 1.442695, %v2263_v0 }
 0x287   :  { %v2286_v14 = vmin.f32 %v8006_v40, 0.0  ;;  %v3532_v27 = vmul.f32 %v3508_v12, %v3028_v11  ;;  %v3029_v48 = vsel %vm2069_vm11, %v7943_v51, %v4643_v35  ;;  %5168 = vpow2.f32 %v2636_v15  ;;  %v1263_v12 = vpop.f32.mrf.mxu1 }
 0x288   :  { %v1657_v2 = vmul.f32 %v7716_v23, %v1319_v24  ;;  %v2982_v39 = vsel %vm2022_vm8, %v7897_v57, %v4596_v33  ;;  %v3246_v28 = vperm.slane %v7763_v29, 4  ;;  %v3533_v54 = vmul.f32 %v3509_v53, %v3029_v48 }
 0x289   :  { %5170 = vpow2.f32 %v2638_v10  ;;  %v4621_v22 = vadd.f32 -1.0, %v5165_v52  ;;  %v8017_v47 = vadd.f32 %v3532_v27, %v7912_v19  ;;  %v1678_v51 = vmul.f32 %v7674_v16, %v1234_v36 }
 0x28a   :  { %v8020_v0 = vadd.f32 %v7734_v3, %v1657_v2  ;;  %v2983_v58 = vsel %vm2023_vm9, %v7907_v30, %v4597_v6  ;;  %vm2046_vm12 = vcmp.gt.f32.partialorder %v7920_v49, 0.0  ;;  %v8028_v57 = vadd.f32 %v3533_v54, %v7916_v55 }
 0x28b   :  { %5172 = vpow2.f32 %v2594_v20  ;;  %v3006_v33 = vsel %vm2046_vm12, %v7920_v49, %v4620_v56  ;;  %v3247_v27 = vperm.slane %v7768_v7, 4  ;;  %v2640_v19 = vmul.f32 1.442695, %v2286_v14 }
 0x28c   :  { %v2287_v53 = vmin.f32 %v8020_v0, 0.0  ;;  %v5167_v37 = vpop.eup %5166  ;;  %v3462_v16 = vmul.f32 %v3438_v8, %v2982_v39  ;;  %vm2047_vm13 = vcmp.gt.f32.partialorder %v7924_v18, 0.0  ;;  %v8035_v24 = vadd.f32 %v7686_v63, %v1678_v51 }
 0x28d   :  { %v1679_v30 = vmul.f32 %v7680_v44, %v1263_v12  ;;  %v5169_v6 = vpop.eup %5168  ;;  %v3463_v55 = vmul.f32 %v3439_v5, %v2983_v58  ;;  %v3007_v35 = vsel %vm2047_vm13, %v7924_v18, %v4621_v22  ;;  %v3316_v49 = vperm.slane %v7752_v45, 6  ;;  %v1292_v5 = vpop.f32.mrf.mxu2 }
 0x28e   :  { %v2642_v56 = vmul.f32 1.442695, %v2287_v53  ;;  %v3270_v10 = vmul.f32 %v3246_v28, %v3006_v33  ;;  %v4666_v52 = vadd.f32 -1.0, %v5169_v6  ;;  %v3317_v11 = vperm.slane %v7754_v50, 6  ;;  %v1321_v22 = vpop.f32.mrf.mxu3 }
 0x28f   :  { %v5171_v15 = vpop.eup %5170  ;;  %v2308_v8 = vmin.f32 %v8035_v24, 0.0  ;;  %vm2092_vm14 = vcmp.gt.f32.partialorder %v7985_v41, 0.0  ;;  %5174 = vpow2.f32 %v2640_v19  ;;  %v8044_v44 = vadd.f32 %v7694_v59, %v1679_v30 }
 0x290   :  { %v4667_v63 = vadd.f32 -1.0, %v5171_v15  ;;  %v3271_v18 = vmul.f32 %v3247_v27, %v3007_v35  ;;  %v3052_v14 = vsel %vm2092_vm14, %v7985_v41, %v4666_v52  ;;  %vm2093_vm0 = vcmp.gt.f32.partialorder %v7995_v26, 0.0 }
 0x291   :  { %v5173_v20 = vpop.eup %5172  ;;  %v2684_v36 = vmul.f32 1.442695, %v2308_v8  ;;  %v4644_v48 = vadd.f32 -1.0, %v5167_v37  ;;  %v3340_v2 = vmul.f32 %v3316_v49, %v3052_v14  ;;  %5176 = vpow2.f32 %v2642_v56 }
 0x292   :  { %v3053_v39 = vsel %vm2093_vm0, %v7995_v26, %v4667_v63  ;;  %v2309_v54 = vmin.f32 %v8044_v44, 0.0  ;;  %v1680_v59 = vmul.f32 %v7709_v38, %v1292_v5  ;;  %v3486_v51 = vadd.f32 %v3462_v16, %v7974_v21  ;;  %v8072_v16 = vld [vmem:[#allocation11 + $0x10] sm:$0xff] }
 0x293   :  { %v3341_v28 = vmul.f32 %v3317_v11, %v3053_v39  ;;  %5178 = vpow2.f32 %v2684_v36  ;;  %v3487_v12 = vadd.f32 %v3463_v55, %v7978_v25  ;;  %v4645_v41 = vadd.f32 -1.0, %v5173_v20 }
 0x294   :  { %v3364_v58 = vadd.f32 %v3340_v2, %v7961_v60  ;;  %v3510_v33 = vperm.slane %v7763_v29, 5  ;;  %v2686_v26 = vmul.f32 1.442695, %v2309_v54  ;;  %v8059_v19 = vadd.f32 %v7725_v4, %v1680_v59 }
 0x295   :  { %v8056_v27 = vadd.f32 %v3341_v28, %v7965_v9  ;;  %v5175_v53 = vpop.eup %5174  ;;  %vm2070_vm15 = vcmp.gt.f32.partialorder %v7958_v42, 0.0  ;;  %vm2071_vm1 = vcmp.gt.f32.partialorder %v7969_v46, 0.0  ;;  %v3511_v38 = vperm.slane %v7768_v7, 5 }
 0x296   :  { %v1681_v21 = vmul.f32 %v7716_v23, %v1321_v22  ;;  %v3294_v60 = vadd.f32 %v3270_v10, %v7988_v32  ;;  %v8067_v25 = vadd.f32 %v3271_v18, %v7991_v1  ;;  %v3030_v9 = vsel %vm2070_vm15, %v7958_v42, %v4644_v48 }
 0x297   :  { %5180 = vpow2.f32 %v2686_v26  ;;  %v5177_v37 = vpop.eup %5176  ;;  %v3031_v4 = vsel %vm2071_vm1, %v7969_v46, %v4645_v41  ;;  %vm2094_vm2 = vcmp.gt.f32.partialorder %v8006_v40, 0.0  ;;  %v2310_v30 = vmin.f32 %v8059_v19, 0.0 }
 0x298   :  { %v8076_v6 = vadd.f32 %v7734_v3, %v1681_v21  ;;  %v4668_v32 = vadd.f32 -1.0, %v5175_v53  ;;  %v3318_v1 = vperm.slane %v7763_v29, 6  ;;  %v3319_v55 = vperm.slane %v7768_v7, 6  ;;  %v8084_v3 = vld [vmem:[#allocation13 + $0x10] sm:$0xff] }
 0x299   :  { %v5179_v23 = vpop.eup %5178  ;;  %v3580_v42 = vperm.slane %v7752_v45, 7  ;;  %v3534_v35 = vmul.f32 %v3510_v33, %v3030_v9  ;;  %vm2095_vm3 = vcmp.gt.f32.partialorder %v8020_v0, 0.0  ;;  %v2688_v49 = vmul.f32 1.442695, %v2310_v30  ;;  %v1362_v9 = vpop.f32.mrf.mxu1 }
 0x29a   :  { %v4690_v46 = vadd.f32 -1.0, %v5179_v23  ;;  %v3535_v56 = vmul.f32 %v3511_v38, %v3031_v4  ;;  %vm2116_vm4 = vcmp.gt.f32.partialorder %v8035_v24, 0.0  ;;  %v3682_v15 = vperm.slane %v8072_v16, 0  ;;  %v5286_v4 = vld [vmem:[#allocation7 + $0x10] sm:$0xff] }
 0x29b   :  { %v2311_v10 = vmin.f32 %v8076_v6, 0.0  ;;  %v4669_v52 = vadd.f32 -1.0, %v5177_v37  ;;  %v3581_v8 = vperm.slane %v7754_v50, 7  ;;  %5182 = vpow2.f32 %v2688_v49 }
 0x29c   :  { %v3076_v11 = vsel %vm2116_vm4, %v8035_v24, %v4690_v46  ;;  %v3054_v63 = vsel %vm2094_vm2, %v8006_v40, %v4668_v32  ;;  %v8093_v18 = vperm.slane %v7662_v17, 4  ;;  %v3558_v14 = vadd.f32 %v3534_v35, %v3486_v51  ;;  %v1333_v24 = vpop.f32.mrf.mxu0 }
 0x29d   :  { %v5181_v45 = vpop.eup %5180  ;;  %v3604_v5 = vmul.f32 %v3580_v42, %v3076_v11  ;;  %v2690_v20 = vmul.f32 1.442695, %v2311_v10  ;;  %v3760_v36 = vperm.slane %v8084_v3, 0  ;;  %v3683_v2 = vperm.slane %v8072_v16, 1 }
 0x29e   :  { %v4691_v48 = vadd.f32 -1.0, %v5181_v45  ;;  %v3559_v39 = vadd.f32 %v3535_v56, %v3487_v12  ;;  %vm2117_vm5 = vcmp.gt.f32.partialorder %v8044_v44, 0.0  ;;  %v3342_v28 = vmul.f32 %v3318_v1, %v3054_v63  ;;  %v1391_v1 = vpop.f32.mrf.mxu2  ;;  %v1420_v63 = vpop.f32.mrf.mxu3 }
 0x29f   :  { %v3628_v50 = vadd.f32 %v3604_v5, %v8017_v47  ;;  %5184 = vpow2.f32 %v2690_v20  ;;  %v3055_v40 = vsel %vm2095_vm3, %v8020_v0, %v4669_v52  ;;  %v3761_v59 = vperm.slane %v8084_v3, 1 }
 0x2a0   :  { %v3077_v54 = vsel %vm2117_vm5, %v8044_v44, %v4691_v48  ;;  %v1514_v41 = vmul.f32 %v8093_v18, %v1333_v24  ;;  %v8106_v12 = vperm.slane %v7670_v61, 4  ;;  %v3582_v33 = vperm.slane %v7763_v29, 7 }
 0x2a1   :  { %v3652_v22 = vadd.f32 %v3628_v50, %v3364_v58  ;;  %v3605_v51 = vmul.f32 %v3581_v8, %v3077_v54  ;;  %v5183_v47 = vpop.eup %5182  ;;  %v3684_v26 = vperm.slane %v8072_v16, 2  ;;  %v3762_v53 = vperm.slane %v8084_v3, 2 }
 0x2a2   :  { %v8112_v0 = vperm.slane %v7662_v17, 5  ;;  %v4692_v58 = vadd.f32 -1.0, %v5183_v47  ;;  %v3583_v21 = vperm.slane %v7768_v7, 7  ;;  %v3366_v37 = vadd.f32 %v3342_v28, %v3294_v60  ;;  %v1364_v47 = vpop.f32.mrf.mxu1 }
 0x2a3   :  { %v3730_v44 = vmul.f32 %v3682_v15, %v3652_v22  ;;  %v3629_v38 = vadd.f32 %v3605_v51, %v8028_v57  ;;  %v3343_v61 = vmul.f32 %v3319_v55, %v3055_v40  ;;  %vm2118_vm6 = vcmp.gt.f32.partialorder %v8059_v19, 0.0  ;;  %v5287_v55 = vld [vmem:[#allocation8 + $0x10] sm:$0xff] }
 0x2a4   :  { %v8117_v29 = vperm.slane %v5286_v4, 6  ;;  %v3078_v32 = vsel %vm2118_vm6, %v8059_v19, %v4692_v58  ;;  %v8124_v57 = vadd.f32 %v8106_v12, %v1514_v41  ;;  %v1515_v60 = vmul.f32 %v8112_v0, %v1362_v9 }
 0x2a5   :  { %v5185_v30 = vpop.eup %5184  ;;  %v8119_v23 = vadd.f32 %v3760_v36, %v3730_v44  ;;  %v3653_v17 = vadd.f32 %v3629_v38, %v8056_v27  ;;  %v3606_v7 = vmul.f32 %v3582_v33, %v3078_v32  ;;  %v8127_v35 = vperm.slane %v5287_v55, 5 }
 0x2a6   :  { %v4693_v42 = vadd.f32 -1.0, %v5185_v30  ;;  %vm2119_vm7 = vcmp.gt.f32.partialorder %v8076_v6, 0.0  ;;  %v8131_v56 = vperm.slane %v5287_v55, 6  ;;  %v1516_v15 = vmul.f32 %v8117_v29, %v1391_v1 }
 0x2a7   :  { %v3856_v46 = vmin.f32 %v8119_v23, 0.0  ;;  %v3731_v49 = vmul.f32 %v3683_v2, %v3653_v17  ;;  %v3630_v27 = vadd.f32 %v3606_v7, %v3558_v14  ;;  %v8135_v10 = vperm.slane %v5286_v4, 7  ;;  %v8169_v17 = vld [vmem:[#allocation10 + $0xa0] sm:$0xff]  ;;  %v1422_v7 = vpop.f32.mrf.mxu3 }
 0x2a8   :  { %v3079_v19 = vsel %vm2119_vm7, %v8076_v6, %v4693_v42  ;;  %v2144_v45 = vmin.f32 %v8124_v57, 0.0  ;;  %v3685_v20 = vperm.slane %v8072_v16, 3  ;;  %v3763_v36 = vperm.slane %v8084_v3, 3  ;;  %v1335_v6 = vpop.f32.mrf.mxu0 }
 0x2a9   :  { %v3896_v52 = vmul.f32 1.442695, %v3856_v46  ;;  %v8137_v11 = vadd.f32 %v3761_v59, %v3731_v49  ;;  %v3607_v8 = vmul.f32 %v3583_v21, %v3079_v19  ;;  %v3654_v5 = vadd.f32 %v3630_v27, %v3366_v37  ;;  %v8178_v19 = vld [vmem:[#allocation10 + $0xa8] sm:$0xff] }
 0x2aa   :  { %v8143_v14 = vadd.f32 %v8127_v35, %v1515_v60  ;;  %v3367_v48 = vadd.f32 %v3343_v61, %v8067_v25  ;;  %v8148_v28 = vadd.f32 %v8131_v56, %v1516_v15  ;;  %v1517_v40 = vmul.f32 %v8135_v10, %v1420_v63 }
 0x2ab   :  { %5186 = vpow2.f32 %v3896_v52  ;;  %v3857_v2 = vmin.f32 %v8137_v11, 0.0  ;;  %v3631_v24 = vadd.f32 %v3607_v8, %v3559_v39  ;;  %v3732_v50 = vmul.f32 %v3684_v26, %v3654_v5  ;;  %v1393_v26 = vpop.f32.mrf.mxu2 }
 0x2ac   :  { %v8151_v54 = vperm.slane %v5287_v55, 7  ;;  %v2356_v51 = vmul.f32 1.442695, %v2144_v45  ;;  %v1538_v41 = vmul.f32 %v8093_v18, %v1335_v6  ;;  %v2145_v25 = vmin.f32 %v8143_v14, 0.0  ;;  %v8182_v45 = vld [vmem:[#allocation10 + $0xb0] sm:$0xff] }
 0x2ad   :  { %v3898_v59 = vmul.f32 1.442695, %v3857_v2  ;;  %v3655_v22 = vadd.f32 %v3631_v24, %v3367_v48  ;;  %v8154_v33 = vadd.f32 %v3762_v53, %v3732_v50  ;;  %v2146_v38 = vmin.f32 %v8148_v28, 0.0 }
 0x2ae   :  { %v8160_v58 = vadd.f32 %v8151_v54, %v1517_v40  ;;  %v8165_v37 = vadd.f32 %v8106_v12, %v1538_v41  ;;  %v2358_v4 = vmul.f32 1.442695, %v2145_v25  ;;  %vm3832_vm8 = vcmp.gt.f32.partialorder %v8119_v23, 0.0  ;;  %v8199_v41 = vld [vmem:[#allocation10 + $0xb8] sm:$0xff] }
 0x2af   :  { %5188 = vpow2.f32 %v3898_v59  ;;  %v3733_v39 = vmul.f32 %v3685_v20, %v3655_v22  ;;  %v3858_v44 = vmin.f32 %v8154_v33, 0.0  ;;  %v1539_v32 = vmul.f32 %v8112_v0, %v1364_v47  ;;  %v1367_v20 = vpop.f32.mrf.mxu1 }
 0x2b0   :  { %5190 = vpow2.f32 %v2356_v51  ;;  %v1540_v1 = vmul.f32 %v8117_v29, %v1393_v26  ;;  %v2360_v60 = vmul.f32 1.442695, %v2146_v38  ;;  %v2147_v55 = vmin.f32 %v8160_v58, 0.0 }
 0x2b1   :  { %v5187_v21 = vpop.eup %5186  ;;  %v8162_v9 = vadd.f32 %v3763_v36, %v3733_v39  ;;  %v3900_v61 = vmul.f32 1.442695, %v3858_v44  ;;  %v2168_v15 = vmin.f32 %v8165_v37, 0.0  ;;  %v3128_v8 = vperm.slane %v8169_v17, 0 }
 0x2b2   :  { %v4714_v53 = vadd.f32 -1.0, %v5187_v21  ;;  %vm3833_vm9 = vcmp.gt.f32.partialorder %v8137_v11, 0.0  ;;  %v8186_v5 = vadd.f32 %v8127_v35, %v1539_v32  ;;  %v3129_v6 = vperm.slane %v8178_v19, 0 }
 0x2b3   :  { %v3859_v30 = vmin.f32 %v8162_v9, 0.0  ;;  %5192 = vpow2.f32 %v3900_v61  ;;  %v2362_v48 = vmul.f32 1.442695, %v2147_v55  ;;  %v3130_v24 = vperm.slane %v8182_v45, 0  ;;  %v1396_v59 = vpop.f32.mrf.mxu2 }
 0x2b4   :  { %v3952_v42 = vsel %vm3832_vm8, %v8119_v23, %v4714_v53  ;;  %5194 = vpow2.f32 %v2358_v4  ;;  %v1338_v23 = vpop.f32.mrf.mxu0  ;;  %v2404_v50 = vmul.f32 1.442695, %v2168_v15  ;;  %vm1952_vm10 = vcmp.gt.f32.partialorder %v8124_v57, 0.0 }
 0x2b5   :  { %v5189_v46 = vpop.eup %5188  ;;  %v8176_v49 = vadd.f32 %v7387_v43, %v3952_v42  ;;  %v3902_v27 = vmul.f32 1.442695, %v3859_v30  ;;  %v8189_v43 = vadd.f32 %v8131_v56, %v1540_v1  ;;  %v1562_v40 = vmul.f32 %v8093_v18, %v1338_v23  ;;  %v1425_v30 = vpop.f32.mrf.mxu3 }
 0x2b6   :  { %v4715_v52 = vadd.f32 -1.0, %v5189_v46  ;;  %v5191_v63 = vpop.eup %5190  ;;  %v1563_v47 = vmul.f32 %v8112_v0, %v1367_v20  ;;  %vm1953_vm11 = vcmp.gt.f32.partialorder %v8143_v14, 0.0  ;;  %vm3834_vm12 = vcmp.gt.f32.partialorder %v8154_v33, 0.0 }
 0x2b7   :  { %5196 = vpow2.f32 %v3902_v27  ;;  %v4526_v51 = vadd.f32 -1.0, %v5191_v63  ;;  %v2170_v39 = vmin.f32 %v8189_v43, 0.0  ;;  %v8208_v44 = vadd.f32 %v8106_v12, %v1562_v40 }
 0x2b8   :  { %v3953_v36 = vsel %vm3833_vm9, %v8137_v11, %v4715_v52  ;;  %5198 = vpow2.f32 %v2360_v60  ;;  %v1541_v11 = vmul.f32 %v8135_v10, %v1422_v7  ;;  %v1564_v38 = vmul.f32 %v8117_v29, %v1396_v59 }
 0x2b9   :  { %v8194_v2 = vadd.f32 %v7399_v31, %v3953_v36  ;;  %v5193_v22 = vpop.eup %5192  ;;  %v2169_v31 = vmin.f32 %v8186_v5, 0.0  ;;  %5200 = vpow2.f32 %v2362_v48  ;;  %v3131_v61 = vperm.slane %v8199_v41, 0  ;;  %v1369_v36 = vpop.f32.mrf.mxu1 }
 0x2ba   :  { %v4716_v25 = vadd.f32 -1.0, %v5193_v22  ;;  %v5195_v26 = vpop.eup %5194  ;;  %5202 = vpow2.f32 %v2404_v50  ;;  %v8214_v4 = vadd.f32 %v8127_v35, %v1563_v47  ;;  %v2912_v42 = vsel %vm1952_vm10, %v8124_v57, %v4526_v51 }
 0x2bb   :  { %8600 = vst [vmem:[#allocation21_spill] sm:$0xff] %v8194_v2  ;;  %v8223_v60 = vadd.f32 %v8151_v54, %v1541_v11  ;;  %vm3835_vm13 = vcmp.gt.f32.partialorder %v8162_v9, 0.0  ;;  %v2406_v55 = vmul.f32 1.442695, %v2169_v31  ;;  %v2408_v46 = vmul.f32 1.442695, %v2170_v39  ;;  %v1398_v51 = vpop.f32.mrf.mxu2 }
 0x2bc   :  { %v3954_v53 = vsel %vm3834_vm12, %v8154_v33, %v4716_v25  ;;  %v4527_v33 = vadd.f32 -1.0, %v5195_v26  ;;  %v2192_v15 = vmin.f32 %v8208_v44, 0.0  ;;  %v1565_v52 = vmul.f32 %v8135_v10, %v1425_v30  ;;  %v1340_v23 = vpop.f32.mrf.mxu0 }
 0x2bd   :  { %v5197_v21 = vpop.eup %5196  ;;  %v8217_v1 = vadd.f32 %v7766_v62, %v3954_v53  ;;  %v8229_v62 = vadd.f32 %v8131_v56, %v1564_v38  ;;  %vm1954_vm14 = vcmp.gt.f32.partialorder %v8148_v28, 0.0  ;;  %v2193_v20 = vmin.f32 %v8214_v4, 0.0 }
 0x2be   :  { %v5199_v32 = vpop.eup %5198  ;;  %v4717_v7 = vadd.f32 -1.0, %v5197_v21  ;;  %v8237_v50 = vmul.f32 %v3128_v8, %v2912_v42  ;;  %vm1955_vm0 = vcmp.gt.f32.partialorder %v8160_v58, 0.0  ;;  %vm1976_vm15 = vcmp.gt.f32.partialorder %v8165_v37, 0.0 }
 0x2bf   :  { %v4528_v63 = vadd.f32 -1.0, %v5199_v32  ;;  %v5201_v48 = vpop.eup %5200  ;;  %5204 = vpow2.f32 %v2406_v55  ;;  %v8246_v59 = vadd.f32 %v8151_v54, %v1565_v52  ;;  %v1586_v22 = vmul.f32 %v8093_v18, %v1340_v23 }
 0x2c0   :  { %v3955_v27 = vsel %vm3835_vm13, %v8162_v9, %v4717_v7  ;;  %v2171_v9 = vmin.f32 %v8223_v60, 0.0  ;;  %v5203_v40 = vpop.eup %5202  ;;  %5206 = vpow2.f32 %v2408_v46  ;;  %v2452_v8 = vmul.f32 1.442695, %v2192_v15  ;;  %v1427_v46 = vpop.f32.mrf.mxu3 }
 0x2c1   :  { %v8233_v57 = vadd.f32 %v7777_v34, %v3955_v27  ;;  %v2913_v34 = vsel %vm1953_vm11, %v8143_v14, %v4527_v33  ;;  %v2194_v11 = vmin.f32 %v8229_v62, 0.0  ;;  %v1587_v47 = vmul.f32 %v8112_v0, %v1369_v36 }
 0x2c2   :  { %v2914_v25 = vsel %vm1954_vm14, %v8148_v28, %v4528_v63  ;;  %v4529_v31 = vadd.f32 -1.0, %v5201_v48  ;;  %v2454_v39 = vmul.f32 1.442695, %v2193_v20  ;;  %v8255_v14 = vadd.f32 %v8106_v12, %v1586_v22 }
 0x2c3   :  { %v4550_v26 = vadd.f32 -1.0, %v5203_v40  ;;  %v2410_v38 = vmul.f32 1.442695, %v2171_v9  ;;  %v8258_v21 = vadd.f32 %v8127_v35, %v1587_v47  ;;  %v1588_v53 = vmul.f32 %v8117_v29, %v1398_v51  ;;  %v1372_v9 = vpop.f32.mrf.mxu1 }
 0x2c4   :  { %v8263_v30 = vmul.f32 %v3129_v6, %v2913_v34  ;;  %v3392_v32 = vperm.slane %v8169_v17, 1  ;;  %v3393_v28 = vperm.slane %v8178_v19, 1  ;;  %v2195_v7 = vmin.f32 %v8246_v59, 0.0  ;;  %v1343_v20 = vpop.f32.mrf.mxu0 }
 0x2c5   :  { %v8270_v42 = vmul.f32 %v3130_v24, %v2914_v25  ;;  %5208 = vpow2.f32 %v2452_v8  ;;  %v2456_v33 = vmul.f32 1.442695, %v2194_v11  ;;  %v2216_v55 = vmin.f32 %v8255_v14, 0.0  ;;  %v5205_v27 = vpop.eup %5204 }
 0x2c6   :  { %v2915_v6 = vsel %vm1955_vm0, %v8160_v58, %v4529_v31  ;;  %v3394_v15 = vperm.slane %v8182_v45, 1  ;;  %5210 = vpow2.f32 %v2454_v39  ;;  %v2217_v52 = vmin.f32 %v8258_v21, 0.0  ;;  %v5207_v23 = vpop.eup %5206 }
 0x2c7   :  { %v2936_v24 = vsel %vm1976_vm15, %v8165_v37, %v4550_v26  ;;  %vm1977_vm1 = vcmp.gt.f32.partialorder %v8186_v5, 0.0  ;;  %5212 = vpow2.f32 %v2410_v38  ;;  %v8283_v63 = vadd.f32 %v8131_v56, %v1588_v53 }
 0x2c8   :  { %vm1978_vm2 = vcmp.gt.f32.partialorder %v8189_v43, 0.0  ;;  %v2458_v36 = vmul.f32 1.442695, %v2195_v7  ;;  %v1589_v48 = vmul.f32 %v8135_v10, %v1427_v46  ;;  %v8290_v40 = vmul.f32 %v3131_v61, %v2915_v6  ;;  %v1401_v61 = vpop.f32.mrf.mxu2 }
 0x2c9   :  { %v4551_v37 = vadd.f32 -1.0, %v5205_v27  ;;  %5214 = vpow2.f32 %v2456_v33  ;;  %v2500_v34 = vmul.f32 1.442695, %v2216_v55  ;;  %v8292_v22 = vmul.f32 %v3392_v32, %v2936_v24 }
 0x2ca   :  { %v4552_v51 = vadd.f32 -1.0, %v5207_v23  ;;  %v2502_v8 = vmul.f32 1.442695, %v2217_v52  ;;  %v1610_v11 = vmul.f32 %v8093_v18, %v1343_v20  ;;  %vm1979_vm3 = vcmp.gt.f32.partialorder %v8223_v60, 0.0 }
 0x2cb   :  { %v5209_v47 = vpop.eup %5208  ;;  %v3176_v25 = vperm.slane %v8169_v17, 2  ;;  %v2218_v31 = vmin.f32 %v8283_v63, 0.0  ;;  %v1611_v39 = vmul.f32 %v8112_v0, %v1372_v9  ;;  %v3177_v38 = vperm.slane %v8178_v19, 2 }
 0x2cc   :  { %v5211_v26 = vpop.eup %5210  ;;  %5216 = vpow2.f32 %v2458_v36  ;;  %v8302_v32 = vadd.f32 %v8151_v54, %v1589_v48  ;;  %v2937_v33 = vsel %vm1977_vm1, %v8186_v5, %v4551_v37  ;;  %vm2000_vm4 = vcmp.gt.f32.partialorder %v8208_v44, 0.0 }
 0x2cd   :  { %v5213_v7 = vpop.eup %5212  ;;  %5218 = vpow2.f32 %v2500_v34  ;;  %v8309_v55 = vadd.f32 %v8106_v12, %v1610_v11  ;;  %v2938_v46 = vsel %vm1978_vm2, %v8189_v43, %v4552_v51  ;;  %vm2001_vm5 = vcmp.gt.f32.partialorder %v8214_v4, 0.0  ;;  %v1430_v43 = vpop.f32.mrf.mxu3 }
 0x2ce   :  { %5220 = vpow2.f32 %v2502_v8  ;;  %v1612_v27 = vmul.f32 %v8117_v29, %v1401_v61  ;;  %v4574_v52 = vadd.f32 -1.0, %v5209_v47  ;;  %v4575_v23 = vadd.f32 -1.0, %v5211_v26 }
 0x2cf   :  { %v5215_v6 = vpop.eup %5214  ;;  %v2504_v24 = vmul.f32 1.442695, %v2218_v31  ;;  %v8317_v5 = vadd.f32 %v8127_v35, %v1611_v39  ;;  %v8319_v20 = vmul.f32 %v3393_v28, %v2937_v33  ;;  %v4553_v36 = vadd.f32 -1.0, %v5213_v7  ;;  %v1345_v7 = vpop.f32.mrf.mxu0 }
 0x2d0   :  { %v3179_v48 = vperm.slane %v8199_v41, 2  ;;  %v2219_v9 = vmin.f32 %v8302_v32, 0.0  ;;  %vm2002_vm6 = vcmp.gt.f32.partialorder %v8229_v62, 0.0  ;;  %v3440_v37 = vperm.slane %v8169_v17, 3 }
 0x2d1   :  { %v2240_v34 = vmin.f32 %v8309_v55, 0.0  ;;  %v8327_v51 = vadd.f32 %v8131_v56, %v1612_v27  ;;  %v8329_v11 = vmul.f32 %v3394_v15, %v2938_v46  ;;  %v4576_v28 = vadd.f32 -1.0, %v5215_v6  ;;  %v1374_v6 = vpop.f32.mrf.mxu1  ;;  %v1403_v46 = vpop.f32.mrf.mxu2 }
 0x2d2   :  { %v5217_v8 = vpop.eup %5216  ;;  %vm2003_vm7 = vcmp.gt.f32.partialorder %v8246_v59, 0.0  ;;  %v3441_v47 = vperm.slane %v8178_v19, 3  ;;  %v2960_v39 = vsel %vm2000_vm4, %v8208_v44, %v4574_v52  ;;  %v2961_v61 = vsel %vm2001_vm5, %v8214_v4, %v4575_v23 }
 0x2d3   :  { %v5219_v31 = vpop.eup %5218  ;;  %5222 = vpow2.f32 %v2504_v24  ;;  %v2241_v26 = vmin.f32 %v8317_v5, 0.0  ;;  %v2939_v33 = vsel %vm1979_vm3, %v8223_v60, %v4553_v36  ;;  %vm2024_vm8 = vcmp.gt.f32.partialorder %v8255_v14, 0.0 }
 0x2d4   :  { %v5221_v15 = vpop.eup %5220  ;;  %v2506_v27 = vmul.f32 1.442695, %v2219_v9  ;;  %v4577_v44 = vadd.f32 -1.0, %v5217_v8  ;;  %v2548_v52 = vmul.f32 1.442695, %v2240_v34  ;;  %v2242_v53 = vmin.f32 %v8327_v51, 0.0 }
 0x2d5   :  { %v1613_v4 = vmul.f32 %v8135_v10, %v1430_v43  ;;  %v3200_v23 = vmul.f32 %v3176_v25, %v2960_v39  ;;  %v3201_v24 = vmul.f32 %v3177_v38, %v2961_v61  ;;  %v2962_v58 = vsel %vm2002_vm6, %v8229_v62, %v4576_v28 }
 0x2d6   :  { %vm2025_vm9 = vcmp.gt.f32.partialorder %v8258_v21, 0.0  ;;  %v4598_v60 = vadd.f32 -1.0, %v5219_v31  ;;  %v4599_v36 = vadd.f32 -1.0, %v5221_v15  ;;  %v2550_v2 = vmul.f32 1.442695, %v2241_v26  ;;  %v1432_v15 = vpop.f32.mrf.mxu3 }
 0x2d7   :  { %v1634_v9 = vmul.f32 %v8093_v18, %v1345_v7  ;;  %v8601_v34 = vperm.slane %v8199_v41, 1  ;;  %vm2026_vm10 = vcmp.gt.f32.partialorder %v8283_v63, 0.0  ;;  %5224 = vpow2.f32 %v2506_v27 }
 0x2d8   :  { %v1635_v25 = vmul.f32 %v8112_v0, %v1374_v6  ;;  %v2963_v62 = vsel %vm2003_vm7, %v8246_v59, %v4577_v44  ;;  %5226 = vpow2.f32 %v2548_v52  ;;  %v2552_v43 = vmul.f32 1.442695, %v2242_v53  ;;  %v1348_v44 = vpop.f32.mrf.mxu0 }
 0x2d9   :  { %v8354_v8 = vmul.f32 %v8601_v34, %v2939_v33  ;;  %v5223_v38 = vpop.eup %5222  ;;  %v8362_v28 = vadd.f32 %v8151_v54, %v1613_v4  ;;  %v8365_v31 = vadd.f32 %v3200_v23, %v8237_v50  ;;  %v8368_v39 = vadd.f32 %v3201_v24, %v8263_v30  ;;  %v1377_v4 = vpop.f32.mrf.mxu1 }
 0x2da   :  { %v8602_v61 = vperm.slane %v8182_v45, 2  ;;  %v3443_v7 = vperm.slane %v8199_v41, 3  ;;  %v2984_v59 = vsel %vm2024_vm8, %v8255_v14, %v4598_v60  ;;  %v2985_v53 = vsel %vm2025_vm9, %v8258_v21, %v4599_v36 }
 0x2db   :  { %5228 = vpow2.f32 %v2550_v2  ;;  %v8380_v50 = vadd.f32 %v8106_v12, %v1634_v9  ;;  %v3203_v30 = vmul.f32 %v3179_v48, %v2963_v62  ;;  %v4600_v33 = vadd.f32 -1.0, %v5223_v38 }
 0x2dc   :  { %v3202_v26 = vmul.f32 %v8602_v61, %v2962_v58  ;;  %v3248_v27 = vperm.slane %v8169_v17, 4  ;;  %v8384_v58 = vadd.f32 %v8127_v35, %v1635_v25  ;;  %vm2027_vm11 = vcmp.gt.f32.partialorder %v8302_v32, 0.0 }
 0x2dd   :  { %5230 = vpow2.f32 %v2552_v43  ;;  %v2243_v14 = vmin.f32 %v8362_v28, 0.0  ;;  %v1636_v6 = vmul.f32 %v8117_v29, %v1403_v46  ;;  %v5225_v21 = vpop.eup %5224  ;;  %v3464_v2 = vmul.f32 %v3440_v37, %v2984_v59  ;;  %v1406_v43 = vpop.f32.mrf.mxu2 }
 0x2de   :  { %v3465_v52 = vmul.f32 %v3441_v47, %v2985_v53  ;;  %vm2048_vm12 = vcmp.gt.f32.partialorder %v8309_v55, 0.0  ;;  %v3249_v48 = vperm.slane %v8178_v19, 4  ;;  %v5227_v23 = vpop.eup %5226  ;;  %v8392_v24 = vadd.f32 %v3202_v26, %v8270_v42 }
 0x2df   :  { %vm2049_vm13 = vcmp.gt.f32.partialorder %v8317_v5, 0.0  ;;  %v3250_v60 = vperm.slane %v8182_v45, 4  ;;  %v2264_v36 = vmin.f32 %v8380_v50, 0.0  ;;  %v8398_v46 = vadd.f32 %v3203_v30, %v8290_v40 }
 0x2e0   :  { %v2986_v37 = vsel %vm2026_vm10, %v8283_v63, %v4600_v33  ;;  %v2265_v47 = vmin.f32 %v8384_v58, 0.0  ;;  %v1658_v9 = vmul.f32 %v8093_v18, %v1348_v44  ;;  %v2554_v42 = vmul.f32 1.442695, %v2243_v14 }
 0x2e1   :  { %v5229_v34 = vpop.eup %5228  ;;  %v8406_v25 = vadd.f32 %v8131_v56, %v1636_v6  ;;  %v1637_v38 = vmul.f32 %v8135_v10, %v1432_v15  ;;  %v1659_v62 = vmul.f32 %v8112_v0, %v1377_v4  ;;  %v8411_v40 = vadd.f32 %v3464_v2, %v8292_v22 }
 0x2e2   :  { %v8414_v61 = vadd.f32 %v3465_v52, %v8319_v20  ;;  %v4601_v63 = vadd.f32 -1.0, %v5225_v21  ;;  %v4622_v26 = vadd.f32 -1.0, %v5227_v23  ;;  %vm2050_vm14 = vcmp.gt.f32.partialorder %v8327_v51, 0.0  ;;  %v1435_v21 = vpop.f32.mrf.mxu3 }
 0x2e3   :  { %v5231_v59 = vpop.eup %5230  ;;  %v8603_v53 = vperm.slane %v8182_v45, 3  ;;  %v3251_v33 = vperm.slane %v8199_v41, 4  ;;  %v2596_v15 = vmul.f32 1.442695, %v2264_v36  ;;  %v8421_v14 = vadd.f32 %v8106_v12, %v1658_v9 }
 0x2e4   :  { %v4623_v6 = vadd.f32 -1.0, %v5229_v34  ;;  %v2598_v22 = vmul.f32 1.442695, %v2265_v47  ;;  %v8424_v44 = vadd.f32 %v8127_v35, %v1659_v62  ;;  %v1660_v20 = vmul.f32 %v8117_v29, %v1406_v43  ;;  %v1350_v62 = vpop.f32.mrf.mxu0 }
 0x2e5   :  { %v3466_v30 = vmul.f32 %v8603_v53, %v2986_v37  ;;  %5232 = vpow2.f32 %v2554_v42  ;;  %v2266_v2 = vmin.f32 %v8406_v25, 0.0  ;;  %v8429_v52 = vadd.f32 %v8151_v54, %v1637_v38 }
 0x2e6   :  { %v2288_v4 = vmin.f32 %v8421_v14, 0.0  ;;  %v2987_v23 = vsel %vm2027_vm11, %v8302_v32, %v4601_v63  ;;  %v3008_v36 = vsel %vm2048_vm12, %v8309_v55, %v4622_v26  ;;  %v4624_v37 = vadd.f32 -1.0, %v5231_v59 }
 0x2e7   :  { %v3512_v47 = vperm.slane %v8169_v17, 5  ;;  %5234 = vpow2.f32 %v2596_v15  ;;  %v8440_v34 = vadd.f32 %v8131_v56, %v1660_v20  ;;  %v1661_v42 = vmul.f32 %v8135_v10, %v1435_v21 }
 0x2e8   :  { %v2644_v9 = vmul.f32 1.442695, %v2288_v4  ;;  %v8444_v38 = vadd.f32 %v3466_v30, %v8329_v11  ;;  %v3009_v32 = vsel %vm2049_vm13, %v8317_v5, %v4623_v6  ;;  %5236 = vpow2.f32 %v2598_v22 }
 0x2e9   :  { %v2289_v55 = vmin.f32 %v8424_v44, 0.0  ;;  %v3467_v43 = vmul.f32 %v3443_v7, %v2987_v23  ;;  %v3513_v63 = vperm.slane %v8178_v19, 5  ;;  %v2600_v26 = vmul.f32 1.442695, %v2266_v2  ;;  %v1379_v2 = vpop.f32.mrf.mxu1 }
 0x2ea   :  { %v2267_v59 = vmin.f32 %v8429_v52, 0.0  ;;  %v3272_v11 = vmul.f32 %v3248_v27, %v3008_v36  ;;  %vm2051_vm0 = vcmp.gt.f32.partialorder %v8362_v28, 0.0  ;;  %5238 = vpow2.f32 %v2644_v9 }
 0x2eb   :  { %v2290_v5 = vmin.f32 %v8440_v34, 0.0  ;;  %v5233_v53 = vpop.eup %5232  ;;  %v3273_v30 = vmul.f32 %v3249_v48, %v3009_v32  ;;  %v3010_v15 = vsel %vm2050_vm14, %v8327_v51, %v4624_v37  ;;  %v8462_v7 = vadd.f32 %v8151_v54, %v1661_v42 }
 0x2ec   :  { %v1682_v6 = vmul.f32 %v8093_v18, %v1350_v62  ;;  %vm2072_vm15 = vcmp.gt.f32.partialorder %v8380_v50, 0.0  ;;  %vm2073_vm1 = vcmp.gt.f32.partialorder %v8384_v58, 0.0  ;;  %v3514_v27 = vperm.slane %v8182_v45, 5 }
 0x2ed   :  { %v2646_v22 = vmul.f32 1.442695, %v2289_v55  ;;  %v5235_v20 = vpop.eup %5234  ;;  %v8469_v21 = vadd.f32 %v3467_v43, %v8354_v8  ;;  %5240 = vpow2.f32 %v2600_v26  ;;  %v2602_v48 = vmul.f32 1.442695, %v2267_v59  ;;  %v1408_v43 = vpop.f32.mrf.mxu2 }
 0x2ee   :  { %v8472_v51 = vadd.f32 %v8106_v12, %v1682_v6  ;;  %v5237_v4 = vpop.eup %5236  ;;  %v3274_v18 = vmul.f32 %v3250_v60, %v3010_v15  ;;  %v4625_v23 = vadd.f32 -1.0, %v5233_v53  ;;  %v3515_v36 = vperm.slane %v8199_v41, 5  ;;  %v1437_v6 = vpop.f32.mrf.mxu3 }
 0x2ef   :  { %v2648_v37 = vmul.f32 1.442695, %v2290_v5  ;;  %v8478_v9 = vadd.f32 %v3272_v11, %v8365_v31  ;;  %v8481_v8 = vadd.f32 %v3273_v30, %v8368_v39  ;;  %v2291_v42 = vmin.f32 %v8462_v7, 0.0 }
 0x2f0   :  { %v2312_v12 = vmin.f32 %v8472_v51, 0.0  ;;  %v5239_v32 = vpop.eup %5238  ;;  %v4646_v55 = vadd.f32 -1.0, %v5235_v20  ;;  %v3320_v62 = vperm.slane %v8169_v17, 6  ;;  %5242 = vpow2.f32 %v2646_v22 }
 0x2f1   :  { %v1683_v60 = vmul.f32 %v8112_v0, %v1379_v2  ;;  %v4647_v26 = vadd.f32 -1.0, %v5237_v4  ;;  %vm2074_vm2 = vcmp.gt.f32.partialorder %v8406_v25, 0.0  ;;  %5244 = vpow2.f32 %v2602_v48 }
 0x2f2   :  { %v3321_v31 = vperm.slane %v8178_v19, 6  ;;  %v2692_v39 = vmul.f32 1.442695, %v2312_v12  ;;  %v8490_v59 = vadd.f32 %v3274_v18, %v8392_v24  ;;  %v3011_v11 = vsel %vm2051_vm0, %v8362_v28, %v4625_v23 }
 0x2f3   :  { %5246 = vpow2.f32 %v2648_v37  ;;  %v8496_v5 = vadd.f32 %v8127_v35, %v1683_v60  ;;  %v5241_v0 = vpop.eup %5240  ;;  %v4670_v53 = vadd.f32 -1.0, %v5239_v32  ;;  %v2650_v30 = vmul.f32 1.442695, %v2291_v42 }
 0x2f4   :  { %5248 = vpow2.f32 %v2692_v39  ;;  %v1684_v15 = vmul.f32 %v8117_v29, %v1408_v43  ;;  %v3032_v24 = vsel %vm2072_vm15, %v8380_v50, %v4646_v55  ;;  %vm2096_vm3 = vcmp.gt.f32.partialorder %v8421_v14, 0.0 }
 0x2f5   :  { %v3322_v22 = vperm.slane %v8182_v45, 6  ;;  %v2313_v28 = vmin.f32 %v8496_v5, 0.0  ;;  %v8507_v35 = vmul.f32 %v3251_v33, %v3011_v11  ;;  %v3033_v20 = vsel %vm2073_vm1, %v8384_v58, %v4647_v26 }
 0x2f6   :  { %vm2097_vm4 = vcmp.gt.f32.partialorder %v8424_v44, 0.0  ;;  %v8514_v29 = vadd.f32 %v8131_v56, %v1684_v15  ;;  %v5243_v50 = vpop.eup %5242  ;;  %v4648_v48 = vadd.f32 -1.0, %v5241_v0  ;;  %v3323_v2 = vperm.slane %v8199_v41, 6 }
 0x2f7   :  { %v2694_v4 = vmul.f32 1.442695, %v2313_v28  ;;  %v1685_v18 = vmul.f32 %v8135_v10, %v1437_v6  ;;  %v5245_v23 = vpop.eup %5244  ;;  %v3536_v33 = vmul.f32 %v3512_v47, %v3032_v24  ;;  %vm2075_vm5 = vcmp.gt.f32.partialorder %v8429_v52, 0.0 }
 0x2f8   :  { %v3056_v58 = vsel %vm2096_vm3, %v8421_v14, %v4670_v53  ;;  %5250 = vpow2.f32 %v2650_v30  ;;  %v2314_v37 = vmin.f32 %v8514_v29, 0.0  ;;  %v3537_v42 = vmul.f32 %v3513_v63, %v3033_v20 }
 0x2f9   :  { %v5247_v56 = vpop.eup %5246  ;;  %vm2098_vm6 = vcmp.gt.f32.partialorder %v8440_v34, 0.0  ;;  %5252 = vpow2.f32 %v2694_v4  ;;  %v8527_v10 = vadd.f32 %v8151_v54, %v1685_v18  ;;  %v4671_v32 = vadd.f32 -1.0, %v5243_v50 }
 0x2fa   :  { %v5249_v12 = vpop.eup %5248  ;;  %v3584_v47 = vperm.slane %v8169_v17, 7  ;;  %v2696_v55 = vmul.f32 1.442695, %v2314_v37  ;;  %v3978_v14 = vmul.f32 0.25, %v8217_v1  ;;  %v3034_v60 = vsel %vm2074_vm2, %v8406_v25, %v4648_v48 }
 0x2fb   :  { %v3344_v43 = vmul.f32 %v3320_v62, %v3056_v58  ;;  %vm2120_vm7 = vcmp.gt.f32.partialorder %v8472_v51, 0.0  ;;  %v4694_v63 = vadd.f32 -1.0, %v5249_v12  ;;  %v4672_v26 = vadd.f32 -1.0, %v5247_v56 }
 0x2fc   :  { %5254 = vpow2.f32 %v2696_v55  ;;  %v2315_v54 = vmin.f32 %v8527_v10, 0.0  ;;  %v3979_v39 = vmul.f32 0.25, %v8233_v57  ;;  %3984 = vst [vmem:[#allocation14] sm:$0xff] %v3978_v14  ;;  %v3560_v17 = vadd.f32 %v3536_v33, %v8411_v40  ;;  %v5288_v33 = vld [vmem:[#allocation11 + $0x10] sm:$0xff] }
 0x2fd   :  { %v3561_v11 = vadd.f32 %v3537_v42, %v8414_v61  ;;  %v4649_v1 = vadd.f32 -1.0, %v5245_v23  ;;  %v3080_v0 = vsel %vm2120_vm7, %v8472_v51, %v4694_v63  ;;  %v3538_v25 = vmul.f32 %v3514_v27, %v3034_v60 }
 0x2fe   :  { %v5251_v53 = vpop.eup %5250  ;;  %v3057_v62 = vsel %vm2097_vm4, %v8424_v44, %v4671_v32  ;;  %v3608_v30 = vmul.f32 %v3584_v47, %v3080_v0  ;;  %v2698_v15 = vmul.f32 1.442695, %v2315_v54  ;;  %3985 = vst [vmem:[#allocation14 + $0x8] sm:$0xff] %v3979_v39  ;;  %v3368_v6 = vadd.f32 %v3344_v43, %v8478_v9  ;;  %v5289_v54 = vld [vmem:[#allocation13 + $0x10] sm:$0xff] }
 0x2ff   :  { %v5253_v57 = vpop.eup %5252  ;;  %vm2099_vm8 = vcmp.gt.f32.partialorder %v8462_v7, 0.0  ;;  %v3686_v40 = vperm.slane %v8072_v16, 4  ;;  %v3585_v61 = vperm.slane %v8178_v19, 7  ;;  %v3058_v27 = vsel %vm2098_vm6, %v8440_v34, %v4672_v26 }
 0x300   :  { %v3632_v51 = vadd.f32 %v3608_v30, %v3560_v17  ;;  %v4695_v24 = vadd.f32 -1.0, %v5253_v57  ;;  %5256 = vpow2.f32 %v2698_v15  ;;  %v3035_v44 = vsel %vm2075_vm5, %v8429_v52, %v4649_v1 }
 0x301   :  { %v3345_v9 = vmul.f32 %v3321_v31, %v3057_v62  ;;  %v4673_v28 = vadd.f32 -1.0, %v5251_v53  ;;  %vm2121_vm9 = vcmp.gt.f32.partialorder %v8496_v5, 0.0  ;;  %v3764_v50 = vperm.slane %v8084_v3, 4 }
 0x302   :  { %v5255_v16 = vpop.eup %5254  ;;  %v3656_v20 = vadd.f32 %v3632_v51, %v3368_v6  ;;  %v3081_v48 = vsel %vm2121_vm9, %v8496_v5, %v4695_v24  ;;  %v3586_v34 = vperm.slane %v8182_v45, 7  ;;  %v3562_v4 = vadd.f32 %v3538_v25, %v8444_v38 }
 0x303   :  { %v3346_v18 = vmul.f32 %v3322_v22, %v3058_v27  ;;  %v3609_v52 = vmul.f32 %v3585_v61, %v3081_v48  ;;  %v4696_v23 = vadd.f32 -1.0, %v5255_v16  ;;  %v3539_v19 = vmul.f32 %v3515_v36, %v3035_v44 }
 0x304   :  { %v3734_v31 = vmul.f32 %v3686_v40, %v3656_v20  ;;  %v3687_v58 = vperm.slane %v5288_v33, 5  ;;  %vm2122_vm10 = vcmp.gt.f32.partialorder %v8514_v29, 0.0  ;;  %v3369_v37 = vadd.f32 %v3345_v9, %v8481_v8  ;;  %v8604_v20 = vld [vmem:[#allocation20_spill] sm:$0xff] }
 0x305   :  { %v3059_v5 = vsel %vm2099_vm8, %v8462_v7, %v4673_v28  ;;  %v3633_v38 = vadd.f32 %v3609_v52, %v3561_v11  ;;  %v3082_v45 = vsel %vm2122_vm10, %v8514_v29, %v4696_v23  ;;  %v3765_v42 = vperm.slane %v8084_v3, 5 }
 0x306   :  { %v5257_v22 = vpop.eup %5256  ;;  %v3812_v56 = vadd.f32 %v3764_v50, %v3734_v31  ;;  %v3610_v12 = vmul.f32 %v3586_v34, %v3082_v45  ;;  %v3587_v36 = vperm.slane %v8199_v41, 7  ;;  %v3370_v32 = vadd.f32 %v3346_v18, %v8490_v59  ;;  %v8605_v31 = vld [vmem:[#allocation21_spill] sm:$0xff] }
 0x307   :  { %v3657_v47 = vadd.f32 %v3633_v38, %v3369_v37  ;;  %v3688_v55 = vperm.slane %v5288_v33, 6  ;;  %v4697_v14 = vadd.f32 -1.0, %v5257_v22  ;;  %v3347_v8 = vmul.f32 %v3323_v2, %v3059_v5 }
 0x308   :  { %v3860_v60 = vmin.f32 %v3812_v56, 0.0  ;;  %v3634_v7 = vadd.f32 %v3610_v12, %v3562_v4  ;;  %vm2123_vm11 = vcmp.gt.f32.partialorder %v8527_v10, 0.0  ;;  %v3299_v29 = vadd.f32 %v8507_v35, %v8398_v46 }
 0x309   :  { %v3563_v3 = vadd.f32 %v3539_v19, %v8469_v21  ;;  %v3735_v43 = vmul.f32 %v3687_v58, %v3657_v47  ;;  %v3083_v63 = vsel %vm2123_vm11, %v8527_v10, %v4697_v14  ;;  %v3766_v39 = vperm.slane %v5289_v54, 6 }
 0x30a   :  { %v3904_v26 = vmul.f32 1.442695, %v3860_v60  ;;  %v3658_v59 = vadd.f32 %v3634_v7, %v3370_v32  ;;  %v3611_v17 = vmul.f32 %v3587_v36, %v3083_v63  ;;  %v3689_v41 = vperm.slane %v5288_v33, 7 }
 0x30b   :  { %v3813_v11 = vadd.f32 %v3765_v42, %v3735_v43  ;;  %v3371_v2 = vadd.f32 %v3347_v8, %v3299_v29  ;;  %v3767_v46 = vperm.slane %v5289_v54, 7  ;;  %vm3836_vm12 = vcmp.gt.f32.partialorder %v3812_v56, 0.0 }
 0x30c   :  { %5258 = vpow2.f32 %v3904_v26  ;;  %v3736_v1 = vmul.f32 %v3688_v55, %v3658_v59  ;;  %v3635_v0 = vadd.f32 %v3611_v17, %v3563_v3 }
 0x30d   :  { %v3861_v53 = vmin.f32 %v3813_v11, 0.0  ;;  %vm3837_vm13 = vcmp.gt.f32.partialorder %v3813_v11, 0.0 }
 0x30e   :  { %v3814_v25 = vadd.f32 %v3766_v39, %v3736_v1  ;;  %v3659_v62 = vadd.f32 %v3635_v0, %v3371_v2 }
 0x30f   :  { %v3906_v35 = vmul.f32 1.442695, %v3861_v53 }
 0x310   :  { %v3862_v21 = vmin.f32 %v3814_v25, 0.0  ;;  %v3737_v30 = vmul.f32 %v3689_v41, %v3659_v62  ;;  %vm3838_vm14 = vcmp.gt.f32.partialorder %v3814_v25, 0.0 }
 0x311   :  { %5260 = vpow2.f32 %v3906_v35 }
 0x312   :  { %v5259_v10 = vpop.eup %5258  ;;  %v3908_v15 = vmul.f32 1.442695, %v3862_v21  ;;  %v3815_v57 = vadd.f32 %v3767_v46, %v3737_v30 }
 0x313   :  { %v4718_v6 = vadd.f32 -1.0, %v5259_v10 }
 0x314   :  { %5262 = vpow2.f32 %v3908_v15  ;;  %v3863_v40 = vmin.f32 %v3815_v57, 0.0  ;;  %vm3839_vm0 = vcmp.gt.f32.partialorder %v3815_v57, 0.0 }
 0x315   :  { %v3956_v61 = vsel %vm3836_vm12, %v3812_v56, %v4718_v6 }
 0x316   :  { %v3974_v27 = vadd.f32 %v7801_v13, %v3956_v61  ;;  %v3910_v51 = vmul.f32 1.442695, %v3863_v40 }
 0x317   :  { %v5261_v24 = vpop.eup %5260 }
 0x318   :  { %v4719_v44 = vadd.f32 -1.0, %v5261_v24  ;;  %5264 = vpow2.f32 %v3910_v51  ;;  %v3980_v9 = vmul.f32 0.25, %v3974_v27 }
 0x31a   :  { %v5263_v28 = vpop.eup %5262  ;;  %v3957_v16 = vsel %vm3837_vm13, %v3813_v11, %v4719_v44  ;;  %3986 = vst [vmem:[#allocation14 + $0x10] sm:$0xff] %v3980_v9 }
 0x31b   :  { %v3975_v50 = vadd.f32 %v8604_v20, %v3957_v16  ;;  %v4720_v48 = vadd.f32 -1.0, %v5263_v28 }
 0x31d   :  { %v3958_v34 = vsel %vm3838_vm14, %v3814_v25, %v4720_v48  ;;  %v3981_v4 = vmul.f32 0.25, %v3975_v50 }
 0x31e   :  { %v5265_v18 = vpop.eup %5264  ;;  %v3976_v52 = vadd.f32 %v8176_v49, %v3958_v34 }
 0x31f   :  { %v4721_v23 = vadd.f32 -1.0, %v5265_v18  ;;  %3987 = vst [vmem:[#allocation14 + $0x18] sm:$0xff] %v3981_v4 }
 0x320   :  { %v3982_v13 = vmul.f32 0.25, %v3976_v52 }
 0x321   :  { %v3959_v19 = vsel %vm3839_vm0, %v3815_v57, %v4721_v23 }
 0x322   :  { %v3977_v33 = vadd.f32 %v8605_v31, %v3959_v19  ;;  %3988 = vst [vmem:[#allocation14 + $0x20] sm:$0xff] %v3982_v13 }
 0x324   :  { %v3983_v58 = vmul.f32 0.25, %v3977_v33 }
 0x326   :  { %3989 = vst [vmem:[#allocation14 + $0x28] sm:$0xff] %v3983_v58 }
 0x327   :  { %4000 = dma.vmem_to_hbm [thread:$0]  %s3996_s6, 768, %s3998_s14, [#allocation4]  }
 0x328   :  { %5490 = dma.done.wait [#allocation4], 768  }
 0x329   :  { %5491 = vsyncadd [#allocation4], 4294966528 }
 0x32a   :  { %4005 = vsyncpa [#allocation3], 1 }
 0x32b   :  { %4006 = vsyncpa [#allocation6], 1 }
 0x32c   :  { %4007 = vsyncpa [#allocation9], 1 }
 0x32d   :  { %4008 = vsyncpa [#allocation12], 1 }
 0x32e   :  { %4009 = vsyncpa [#allocation4], 1 }

</bundles_post_ra>
